<compile_context>
chip_gen: v7x
topology: tpu7x:2x2x1
jax: 0.10.0
libtpu: 0.0.40
codegen_flags: <defaults>
</compile_context>

<pallas_src>
import jax
import jax.numpy as jnp
from jax.experimental import pallas as pl
from jax.experimental.pallas import tpu as pltpu


# ----------------------------------------------------------------------------
# Fused whole-network kernel.  One grid step processes `nb` images.
# Row index inside the kernel is r = s*nb + n_local  (M = 49*nb rows),
# where s = h*7 + w is the spatial position.
# ----------------------------------------------------------------------------
def _make_lenet5_kernel(nb: int):
    M = nb * 49          # spatial positions (7*7) * images-per-block
    MARGIN = 8 * nb      # max |spatial shift| is 8 positions -> 8*nb rows

    def kernel(x_ref, mask_ref, w1_ref, b1_ref, w2_ref, b2_ref,
               wl1_ref, bl1_ref, wl2_ref, bl2_ref, o_ref,
               hpad_ref, p2_ref, h2_ref, flat_ref):
        # ---- conv1 (1->32, 3x3, pad 1) as one im2col matmul + ReLU ---------
        p1 = x_ref[0]                                           # (M, 9)
        h1 = jnp.dot(p1, w1_ref[...], preferred_element_type=jnp.float32)
        h1 = jnp.maximum(h1 + b1_ref[...], 0.0)                 # (M, 32)

        # ---- zero-padded copy of h1 for shift-based patch extraction -------
        zeros_margin = jnp.zeros((MARGIN, 32), jnp.float32)
        hpad_ref[0:MARGIN, :] = zeros_margin
        hpad_ref[MARGIN + M:MARGIN + M + MARGIN, :] = zeros_margin
        hpad_ref[MARGIN:MARGIN + M, :] = h1

        # ---- assemble conv2 im2col patches (M, 288) -------------------------
        # A spatial shift by (dh, dw) is a plain, sublane-aligned row-offset
        # load (offset = (dh*7 + dw) * nb).  Taps that fall outside the image
        # are zeroed by a precomputed 0/1 mask (one lane per tap).
        for kh in range(3):
            for kw in range(3):
                dh, dw = kh - 1, kw - 1
                idx = kh * 3 + kw
                off = MARGIN + (dh * 7 + dw) * nb               # static, aligned
                shifted = hpad_ref[off:off + M, :]              # (M, 32)
                mask = mask_ref[:, idx:idx + 1]                 # (M, 1) 0/1
                p2_ref[:, 32 * idx:32 * (idx + 1)] = shifted * mask

        # ---- conv2 (32->64) as one K=288 matmul + ReLU ----------------------
        h2 = jnp.dot(p2_ref[...], w2_ref[...],
                     preferred_element_type=jnp.float32)
        h2_ref[...] = jnp.maximum(h2 + b2_ref[...], 0.0)        # (M, 64)

        # ---- flatten to (nb, 3136) with lane index = s*64 + c ---------------
        # Rows for spatial position s are the CONTIGUOUS block s*nb:(s+1)*nb.
        # (wl1 rows were pre-permuted to this NHWC order, matching PyTorch's
        #  NCHW .view(N, -1) exactly.)
        for s in range(49):
            flat_ref[:, 64 * s:64 * (s + 1)] = h2_ref[s * nb:(s + 1) * nb, :]

        # ---- MLP head: linear1 + ReLU + linear2 -----------------------------
        a1 = jnp.dot(flat_ref[...], wl1_ref[...],
                     preferred_element_type=jnp.float32)
        a1 = jnp.maximum(a1 + bl1_ref[...], 0.0)                # (nb, 200)
        out = jnp.dot(a1, wl2_ref[...],
                      preferred_element_type=jnp.float32) + bl2_ref[...]
        o_ref[0] = out.astype(o_ref.dtype)                      # (nb, 10)

    return kernel


# ----------------------------------------------------------------------------
# Host-side glue (tiny XLA ops on the network input only).
# ----------------------------------------------------------------------------
def _conv1_im2col(x_nchw):
    """(N, 1, 7, 7) -> (N, 49, 9) patches, tap index = kh*3 + kw."""
    N = x_nchw.shape[0]
    x = x_nchw[:, 0]                                            # (N, 7, 7)
    xp = jnp.pad(x, ((0, 0), (1, 1), (1, 1)))                   # (N, 9, 9)
    taps = [xp[:, kh:kh + 7, kw:kw + 7]
            for kh in range(3) for kw in range(3)]
    return jnp.stack(taps, axis=-1).reshape(N, 49, 9)


def _conv2_tap_masks(nb):
    """(49*nb, 9) 0/1 mask, row = s*nb + n: tap (kh,kw) valid at s = h*7+w."""
    s = jnp.arange(49)
    h, w = s // 7, s % 7
    cols = []
    for kh in range(3):
        for kw in range(3):
            dh, dw = kh - 1, kw - 1
            cols.append((h + dh >= 0) & (h + dh <= 6) &
                        (w + dw >= 0) & (w + dw <= 6))
    m = jnp.stack(cols, axis=-1).astype(jnp.float32)            # (49, 9)
    return jnp.repeat(m, nb, axis=0)                            # (49*nb, 9)


def lenet5_nomaxpool_forward(x_nchw, kparams, *, batch_block=None):
    N, C, H, W = x_nchw.shape
    assert (C, H, W) == (1, 7, 7), "LeNet5_nomaxpool expects (N, 1, 7, 7) input"
    nb = batch_block or 8                  # images per grid step (8 -> aligned)
    G = pl.cdiv(N, nb)
    N_pad = G * nb
    M = nb * 49

    p1 = _conv1_im2col(x_nchw.astype(jnp.float32))              # (N, 49, 9)
    if N_pad != N:
        p1 = jnp.concatenate(
            [p1, jnp.zeros((N_pad - N, 49, 9), p1.dtype)], axis=0)
    # row ordering inside each block: s-major, n-minor  (row = s*nb + n)
    p1 = p1.reshape(G, nb, 49, 9).transpose(0, 2, 1, 3).reshape(G, M, 9)
    masks = _conv2_tap_masks(nb)                                # (M, 9)

    kernel = _make_lenet5_kernel(nb)
    out = pl.pallas_call(
        kernel,
        out_shape=jax.ShapeDtypeStruct((G, nb, 10), jnp.float32),
        grid_spec=pltpu.PrefetchScalarGridSpec(
            num_scalar_prefetch=0,
            grid=(G,),
            in_specs=[
                pl.BlockSpec((1, M, 9), lambda g: (g, 0, 0)),          # patches
                pl.BlockSpec((M, 9), lambda g: (0, 0)),                # masks
                pl.BlockSpec((9, 32), lambda g: (0, 0)),               # w1
                pl.BlockSpec((1, 32), lambda g: (0, 0)),               # b1
                pl.BlockSpec((288, 64), lambda g: (0, 0)),             # w2
                pl.BlockSpec((1, 64), lambda g: (0, 0)),               # b2
                pl.BlockSpec((3136, 200), lambda g: (0, 0)),           # wl1
                pl.BlockSpec((1, 200), lambda g: (0, 0)),              # bl1
                pl.BlockSpec((200, 10), lambda g: (0, 0)),             # wl2
                pl.BlockSpec((1, 10), lambda g: (0, 0)),               # bl2
            ],
            out_specs=pl.BlockSpec((1, nb, 10), lambda g: (g, 0, 0)),
            scratch_shapes=[
                pltpu.VMEM((M + 16 * nb, 32), jnp.float32),    # zero-padded h1
                pltpu.VMEM((M, 288), jnp.float32),             # conv2 im2col
                pltpu.VMEM((M, 64), jnp.float32),              # conv2 output
                pltpu.VMEM((nb, 3136), jnp.float32),           # flattened act
            ],
        ),
        compiler_params=pltpu.CompilerParams(
            dimension_semantics=("parallel",)),    # megacore over batch tiles
    )(p1, masks, kparams["w1"], kparams["b1"], kparams["w2"], kparams["b2"],
      kparams["wl1"], kparams["bl1"], kparams["wl2"], kparams["bl2"])
    return out.reshape(N_pad, 10)[:N]


# ----------------------------------------------------------------------------
# Parameters.  init_params uses PyTorch layouts; prepare_params converts ONCE
# to the kernel layouts (including the wl1 row permutation).
# ----------------------------------------------------------------------------
def init_params(key):
    ks = jax.random.split(key, 8)
    s = 0.05
    return {
        "conv1_w": s * jax.random.normal(ks[0], (32, 1, 3, 3), jnp.float32),
        "conv1_b": s * jax.random.normal(ks[1], (32,), jnp.float32),
        "conv2_w": s * jax.random.normal(ks[2], (64, 32, 3, 3), jnp.float32),
        "conv2_b": s * jax.random.normal(ks[3], (64,), jnp.float32),
        "linear1_w": s * jax.random.normal(ks[4], (200, 7 * 7 * 64), jnp.float32),
        "linear1_b": s * jax.random.normal(ks[5], (200,), jnp.float32),
        "linear2_w": s * jax.random.normal(ks[6], (10, 200), jnp.float32),
        "linear2_b": s * jax.random.normal(ks[7], (10,), jnp.float32),
    }


def prepare_params(pt):
    """PyTorch-layout params -> kernel layouts.  Apply exactly once."""
    wl1 = pt["linear1_w"]                       # (200, 3136), cols in (C,H,W) order
    wl1_nhwc = jnp.transpose(
        wl1.reshape(200, 64, 7, 7), (0, 2, 3, 1)).reshape(200, 3136)
    return {
        # conv1: row = kh*3 + kw (Cin = 1)
        "w1": jnp.transpose(pt["conv1_w"].reshape(32, 9), (1, 0)),        # (9, 32)
        "b1": pt["conv1_b"].reshape(1, 32),
        # conv2: row = (kh*3 + kw)*32 + cin
        "w2": jnp.transpose(pt["conv2_w"], (2, 3, 1, 0)).reshape(288, 64),
        "b2": pt["conv2_b"].reshape(1, 64),
        # linear1: rows permuted (C,H,W) -> (H,W,C) flatten order, then (in,out)
        "wl1": jnp.transpose(wl1_nhwc, (1, 0)),                           # (3136, 200)
        "bl1": pt["linear1_b"].reshape(1, 200),
        "wl2": jnp.transpose(pt["linear2_w"], (1, 0)),                    # (200, 10)
        "bl2": pt["linear2_b"].reshape(1, 10),
    }


# ----------------------------------------------------------------------------
# Pure-JAX reference (PyTorch semantics) for verification.
# ----------------------------------------------------------------------------
def lenet5_nomaxpool_ref(x, pt):
    dn = ("NCHW", "OIHW", "NCHW")
    h = jax.lax.conv_general_dilated(x, pt["conv1_w"], (1, 1),
                                     ((1, 1), (1, 1)), dimension_numbers=dn)
    h = jax.nn.relu(h + pt["conv1_b"][None, :, None, None])
    h = jax.lax.conv_general_dilated(h, pt["conv2_w"], (1, 1),
                                     ((1, 1), (1, 1)), dimension_numbers=dn)
    h = jax.nn.relu(h + pt["conv2_b"][None, :, None, None])
    h = h.reshape(h.shape[0], -1)                                # NCHW flatten
    h = jax.nn.relu(h @ pt["linear1_w"].T + pt["linear1_b"])
    return h @ pt["linear2_w"].T + pt["linear2_b"]


if __name__ == "__main__":
    key = jax.random.PRNGKey(0)
    pkey, xkey = jax.random.split(key)
    pt_params = init_params(pkey)
    kparams = prepare_params(pt_params)          # layout conversion: exactly once
    # No pooling + linear1(7*7*64) => input must be (N, 1, 7, 7).
    x = jax.random.normal(xkey, (2, 1, 7, 7), jnp.float32)

    fwd = jax.jit(lenet5_nomaxpool_forward)
    out = jax.block_until_ready(fwd(x, kparams))
    assert out.shape == (2, 10) and out.dtype == jnp.float32

    ref = lenet5_nomaxpool_ref(x, pt_params)
    if not jnp.allclose(out, ref, atol=1e-4, rtol=1e-3):
        raise AssertionError(
            "kernel/reference mismatch: max|d|="
            f"{float(jnp.max(jnp.abs(out - ref)))}")
    print("KERNEL_OK")
</pallas_src>

<mosaic_0001>
module attributes {stable_mosaic.version = 11 : i64} {
  func.func @kernel(%arg0: i32, %arg1: memref<1x392x9xf32, #tpu.memory_space<vmem>>, %arg2: memref<392x9xf32, #tpu.memory_space<vmem>>, %arg3: memref<9x32xf32, #tpu.memory_space<vmem>>, %arg4: memref<1x32xf32, #tpu.memory_space<vmem>>, %arg5: memref<288x64xf32, #tpu.memory_space<vmem>>, %arg6: memref<1x64xf32, #tpu.memory_space<vmem>>, %arg7: memref<3136x200xf32, #tpu.memory_space<vmem>>, %arg8: memref<1x200xf32, #tpu.memory_space<vmem>>, %arg9: memref<200x10xf32, #tpu.memory_space<vmem>>, %arg10: memref<1x10xf32, #tpu.memory_space<vmem>>, %arg11: memref<1x8x10xf32, #tpu.memory_space<vmem>>, %arg12: memref<520x32xf32, #tpu.memory_space<vmem>>, %arg13: memref<392x288xf32, #tpu.memory_space<vmem>>, %arg14: memref<392x64xf32, #tpu.memory_space<vmem>>, %arg15: memref<8x3136xf32, #tpu.memory_space<vmem>>) attributes {dimension_semantics = [#tpu.dimension_semantics<parallel>], iteration_bounds = array<i64: 1>, scalar_prefetch = 0 : i64, scratch_operands = 4 : i64, tpu.core_type = #tpu.core_type<tc>, window_params = [{transform_indices = @transform_0, window_bounds = array<i64: 1, 392, 9>}, {pipeline_mode = #tpu.pipeline_mode<synchronous>, transform_indices = @transform_1, window_bounds = array<i64: 392, 9>}, {pipeline_mode = #tpu.pipeline_mode<synchronous>, transform_indices = @transform_2, window_bounds = array<i64: 9, 32>}, {pipeline_mode = #tpu.pipeline_mode<synchronous>, transform_indices = @transform_3, window_bounds = array<i64: 1, 32>}, {pipeline_mode = #tpu.pipeline_mode<synchronous>, transform_indices = @transform_4, window_bounds = array<i64: 288, 64>}, {pipeline_mode = #tpu.pipeline_mode<synchronous>, transform_indices = @transform_5, window_bounds = array<i64: 1, 64>}, {pipeline_mode = #tpu.pipeline_mode<synchronous>, transform_indices = @transform_6, window_bounds = array<i64: 3136, 200>}, {pipeline_mode = #tpu.pipeline_mode<synchronous>, transform_indices = @transform_7, window_bounds = array<i64: 1, 200>}, {pipeline_mode = #tpu.pipeline_mode<synchronous>, transform_indices = @transform_8, window_bounds = array<i64: 200, 10>}, {pipeline_mode = #tpu.pipeline_mode<synchronous>, transform_indices = @transform_9, window_bounds = array<i64: 1, 10>}, {transform_indices = @transform_10, window_bounds = array<i64: 1, 8, 10>}]} {
    %c0 = arith.constant 0 : index
    %c0_0 = arith.constant 0 : index
    %c0_1 = arith.constant 0 : index
    %0 = vector.load %arg1[%c0, %c0_0, %c0_1] : memref<1x392x9xf32, #tpu.memory_space<vmem>>, vector<1x392x9xf32>
    %1 = vector.shape_cast %0 : vector<1x392x9xf32> to vector<392x9xf32>
    %c0_2 = arith.constant 0 : index
    %c0_3 = arith.constant 0 : index
    %2 = vector.load %arg3[%c0_2, %c0_3] : memref<9x32xf32, #tpu.memory_space<vmem>>, vector<9x32xf32>
    %cst = arith.constant dense<0.000000e+00> : vector<392x32xf32>
    %3 = tpu.matmul %1, %2, %cst {dimension_numbers = #tpu.dot_dimension_numbers<[1], [0], [0], [1], [0, 0, 1, 1], [], []>} : vector<392x9xf32>, vector<9x32xf32>, vector<392x32xf32> -> vector<392x32xf32>
    %c0_4 = arith.constant 0 : index
    %c0_5 = arith.constant 0 : index
    %4 = vector.load %arg4[%c0_4, %c0_5] : memref<1x32xf32, #tpu.memory_space<vmem>>, vector<1x32xf32>
    %5 = vector.broadcast %4 : vector<1x32xf32> to vector<392x32xf32>
    %6 = arith.addf %3, %5 : vector<392x32xf32>
    %cst_6 = arith.constant 0.000000e+00 : f32
    %7 = vector.broadcast %cst_6 : f32 to vector<392x32xf32>
    %8 = arith.maximumf %6, %7 : vector<392x32xf32>
    %cst_7 = arith.constant 0.000000e+00 : f32
    %9 = vector.broadcast %cst_7 : f32 to vector<64x32xf32>
    %c0_8 = arith.constant 0 : index
    %c0_9 = arith.constant 0 : index
    %10 = vector.load %arg12[%c0_8, %c0_9] : memref<520x32xf32, #tpu.memory_space<vmem>>, vector<64x32xf32>
    tpu.vector_store %arg12[%c0_8, %c0_9], %9 {strides = array<i32>} : memref<520x32xf32, #tpu.memory_space<vmem>>, vector<64x32xf32>,
    %c456 = arith.constant 456 : index
    %c0_10 = arith.constant 0 : index
    %11 = vector.load %arg12[%c456, %c0_10] : memref<520x32xf32, #tpu.memory_space<vmem>>, vector<64x32xf32>
    tpu.vector_store %arg12[%c456, %c0_10], %9 {strides = array<i32>} : memref<520x32xf32, #tpu.memory_space<vmem>>, vector<64x32xf32>,
    %c64 = arith.constant 64 : index
    %c0_11 = arith.constant 0 : index
    %12 = vector.load %arg12[%c64, %c0_11] : memref<520x32xf32, #tpu.memory_space<vmem>>, vector<392x32xf32>
    tpu.vector_store %arg12[%c64, %c0_11], %8 {strides = array<i32>} : memref<520x32xf32, #tpu.memory_space<vmem>>, vector<392x32xf32>,
    %c0_12 = arith.constant 0 : index
    %c0_13 = arith.constant 0 : index
    %13 = vector.load %arg12[%c0_12, %c0_13] : memref<520x32xf32, #tpu.memory_space<vmem>>, vector<392x32xf32>
    %c0_14 = arith.constant 0 : index
    %c0_15 = arith.constant 0 : index
    %14 = vector.load %arg2[%c0_14, %c0_15] : memref<392x9xf32, #tpu.memory_space<vmem>>, vector<392x1xf32>
    %15 = vector.broadcast %14 : vector<392x1xf32> to vector<392x32xf32>
    %16 = arith.mulf %13, %15 : vector<392x32xf32>
    %c0_16 = arith.constant 0 : index
    %c0_17 = arith.constant 0 : index
    %17 = vector.load %arg13[%c0_16, %c0_17] : memref<392x288xf32, #tpu.memory_space<vmem>>, vector<392x32xf32>
    tpu.vector_store %arg13[%c0_16, %c0_17], %16 {strides = array<i32>} : memref<392x288xf32, #tpu.memory_space<vmem>>, vector<392x32xf32>,
    %c8 = arith.constant 8 : index
    %c0_18 = arith.constant 0 : index
    %18 = vector.load %arg12[%c8, %c0_18] : memref<520x32xf32, #tpu.memory_space<vmem>>, vector<392x32xf32>
    %c0_19 = arith.constant 0 : index
    %c1 = arith.constant 1 : index
    %19 = vector.load %arg2[%c0_19, %c1] : memref<392x9xf32, #tpu.memory_space<vmem>>, vector<392x1xf32>
    %20 = vector.broadcast %19 : vector<392x1xf32> to vector<392x32xf32>
    %21 = arith.mulf %18, %20 : vector<392x32xf32>
    %c0_20 = arith.constant 0 : index
    %c32 = arith.constant 32 : index
    %22 = vector.load %arg13[%c0_20, %c32] : memref<392x288xf32, #tpu.memory_space<vmem>>, vector<392x32xf32>
    tpu.vector_store %arg13[%c0_20, %c32], %21 {strides = array<i32>} : memref<392x288xf32, #tpu.memory_space<vmem>>, vector<392x32xf32>,
    %c16 = arith.constant 16 : index
    %c0_21 = arith.constant 0 : index
    %23 = vector.load %arg12[%c16, %c0_21] : memref<520x32xf32, #tpu.memory_space<vmem>>, vector<392x32xf32>
    %c0_22 = arith.constant 0 : index
    %c2 = arith.constant 2 : index
    %24 = vector.load %arg2[%c0_22, %c2] : memref<392x9xf32, #tpu.memory_space<vmem>>, vector<392x1xf32>
    %25 = vector.broadcast %24 : vector<392x1xf32> to vector<392x32xf32>
    %26 = arith.mulf %23, %25 : vector<392x32xf32>
    %c0_23 = arith.constant 0 : index
    %c64_24 = arith.constant 64 : index
    %27 = vector.load %arg13[%c0_23, %c64_24] : memref<392x288xf32, #tpu.memory_space<vmem>>, vector<392x32xf32>
    tpu.vector_store %arg13[%c0_23, %c64_24], %26 {strides = array<i32>} : memref<392x288xf32, #tpu.memory_space<vmem>>, vector<392x32xf32>,
    %c56 = arith.constant 56 : index
    %c0_25 = arith.constant 0 : index
    %28 = vector.load %arg12[%c56, %c0_25] : memref<520x32xf32, #tpu.memory_space<vmem>>, vector<392x32xf32>
    %c0_26 = arith.constant 0 : index
    %c3 = arith.constant 3 : index
    %29 = vector.load %arg2[%c0_26, %c3] : memref<392x9xf32, #tpu.memory_space<vmem>>, vector<392x1xf32>
    %30 = vector.broadcast %29 : vector<392x1xf32> to vector<392x32xf32>
    %31 = arith.mulf %28, %30 : vector<392x32xf32>
    %c0_27 = arith.constant 0 : index
    %c96 = arith.constant 96 : index
    %32 = vector.load %arg13[%c0_27, %c96] : memref<392x288xf32, #tpu.memory_space<vmem>>, vector<392x32xf32>
    tpu.vector_store %arg13[%c0_27, %c96], %31 {strides = array<i32>} : memref<392x288xf32, #tpu.memory_space<vmem>>, vector<392x32xf32>,
    %c64_28 = arith.constant 64 : index
    %c0_29 = arith.constant 0 : index
    %33 = vector.load %arg12[%c64_28, %c0_29] : memref<520x32xf32, #tpu.memory_space<vmem>>, vector<392x32xf32>
    %c0_30 = arith.constant 0 : index
    %c4 = arith.constant 4 : index
    %34 = vector.load %arg2[%c0_30, %c4] : memref<392x9xf32, #tpu.memory_space<vmem>>, vector<392x1xf32>
    %35 = vector.broadcast %34 : vector<392x1xf32> to vector<392x32xf32>
    %36 = arith.mulf %33, %35 : vector<392x32xf32>
    %c0_31 = arith.constant 0 : index
    %c128 = arith.constant 128 : index
    %37 = vector.load %arg13[%c0_31, %c128] : memref<392x288xf32, #tpu.memory_space<vmem>>, vector<392x32xf32>
    tpu.vector_store %arg13[%c0_31, %c128], %36 {strides = array<i32>} : memref<392x288xf32, #tpu.memory_space<vmem>>, vector<392x32xf32>,
    %c72 = arith.constant 72 : index
    %c0_32 = arith.constant 0 : index
    %38 = vector.load %arg12[%c72, %c0_32] : memref<520x32xf32, #tpu.memory_space<vmem>>, vector<392x32xf32>
    %c0_33 = arith.constant 0 : index
    %c5 = arith.constant 5 : index
    %39 = vector.load %arg2[%c0_33, %c5] : memref<392x9xf32, #tpu.memory_space<vmem>>, vector<392x1xf32>
    %40 = vector.broadcast %39 : vector<392x1xf32> to vector<392x32xf32>
    %41 = arith.mulf %38, %40 : vector<392x32xf32>
    %c0_34 = arith.constant 0 : index
    %c160 = arith.constant 160 : index
    %42 = vector.load %arg13[%c0_34, %c160] : memref<392x288xf32, #tpu.memory_space<vmem>>, vector<392x32xf32>
    tpu.vector_store %arg13[%c0_34, %c160], %41 {strides = array<i32>} : memref<392x288xf32, #tpu.memory_space<vmem>>, vector<392x32xf32>,
    %c112 = arith.constant 112 : index
    %c0_35 = arith.constant 0 : index
    %43 = vector.load %arg12[%c112, %c0_35] : memref<520x32xf32, #tpu.memory_space<vmem>>, vector<392x32xf32>
    %c0_36 = arith.constant 0 : index
    %c6 = arith.constant 6 : index
    %44 = vector.load %arg2[%c0_36, %c6] : memref<392x9xf32, #tpu.memory_space<vmem>>, vector<392x1xf32>
    %45 = vector.broadcast %44 : vector<392x1xf32> to vector<392x32xf32>
    %46 = arith.mulf %43, %45 : vector<392x32xf32>
    %c0_37 = arith.constant 0 : index
    %c192 = arith.constant 192 : index
    %47 = vector.load %arg13[%c0_37, %c192] : memref<392x288xf32, #tpu.memory_space<vmem>>, vector<392x32xf32>
    tpu.vector_store %arg13[%c0_37, %c192], %46 {strides = array<i32>} : memref<392x288xf32, #tpu.memory_space<vmem>>, vector<392x32xf32>,
    %c120 = arith.constant 120 : index
    %c0_38 = arith.constant 0 : index
    %48 = vector.load %arg12[%c120, %c0_38] : memref<520x32xf32, #tpu.memory_space<vmem>>, vector<392x32xf32>
    %c0_39 = arith.constant 0 : index
    %c7 = arith.constant 7 : index
    %49 = vector.load %arg2[%c0_39, %c7] : memref<392x9xf32, #tpu.memory_space<vmem>>, vector<392x1xf32>
    %50 = vector.broadcast %49 : vector<392x1xf32> to vector<392x32xf32>
    %51 = arith.mulf %48, %50 : vector<392x32xf32>
    %c0_40 = arith.constant 0 : index
    %c224 = arith.constant 224 : index
    %52 = vector.load %arg13[%c0_40, %c224] : memref<392x288xf32, #tpu.memory_space<vmem>>, vector<392x32xf32>
    tpu.vector_store %arg13[%c0_40, %c224], %51 {strides = array<i32>} : memref<392x288xf32, #tpu.memory_space<vmem>>, vector<392x32xf32>,
    %c128_41 = arith.constant 128 : index
    %c0_42 = arith.constant 0 : index
    %53 = vector.load %arg12[%c128_41, %c0_42] : memref<520x32xf32, #tpu.memory_space<vmem>>, vector<392x32xf32>
    %c0_43 = arith.constant 0 : index
    %c8_44 = arith.constant 8 : index
    %54 = vector.load %arg2[%c0_43, %c8_44] : memref<392x9xf32, #tpu.memory_space<vmem>>, vector<392x1xf32>
    %55 = vector.broadcast %54 : vector<392x1xf32> to vector<392x32xf32>
    %56 = arith.mulf %53, %55 : vector<392x32xf32>
    %c0_45 = arith.constant 0 : index
    %c256 = arith.constant 256 : index
    %57 = vector.load %arg13[%c0_45, %c256] : memref<392x288xf32, #tpu.memory_space<vmem>>, vector<392x32xf32>
    tpu.vector_store %arg13[%c0_45, %c256], %56 {strides = array<i32>} : memref<392x288xf32, #tpu.memory_space<vmem>>, vector<392x32xf32>,
    %c0_46 = arith.constant 0 : index
    %c0_47 = arith.constant 0 : index
    %58 = vector.load %arg13[%c0_46, %c0_47] : memref<392x288xf32, #tpu.memory_space<vmem>>, vector<392x288xf32>
    %c0_48 = arith.constant 0 : index
    %c0_49 = arith.constant 0 : index
    %59 = vector.load %arg5[%c0_48, %c0_49] : memref<288x64xf32, #tpu.memory_space<vmem>>, vector<288x64xf32>
    %cst_50 = arith.constant dense<0.000000e+00> : vector<392x64xf32>
    %60 = tpu.matmul %58, %59, %cst_50 {dimension_numbers = #tpu.dot_dimension_numbers<[1], [0], [0], [1], [0, 0, 1, 1], [], []>} : vector<392x288xf32>, vector<288x64xf32>, vector<392x64xf32> -> vector<392x64xf32>
    %c0_51 = arith.constant 0 : index
    %c0_52 = arith.constant 0 : index
    %61 = vector.load %arg6[%c0_51, %c0_52] : memref<1x64xf32, #tpu.memory_space<vmem>>, vector<1x64xf32>
    %62 = vector.broadcast %61 : vector<1x64xf32> to vector<392x64xf32>
    %63 = arith.addf %60, %62 : vector<392x64xf32>
    %cst_53 = arith.constant 0.000000e+00 : f32
    %64 = vector.broadcast %cst_53 : f32 to vector<392x64xf32>
    %65 = arith.maximumf %63, %64 : vector<392x64xf32>
    %c0_54 = arith.constant 0 : index
    %c0_55 = arith.constant 0 : index
    %66 = vector.load %arg14[%c0_54, %c0_55] : memref<392x64xf32, #tpu.memory_space<vmem>>, vector<392x64xf32>
    tpu.vector_store %arg14[%c0_54, %c0_55], %65 {strides = array<i32>} : memref<392x64xf32, #tpu.memory_space<vmem>>, vector<392x64xf32>,
    %c0_56 = arith.constant 0 : index
    %c0_57 = arith.constant 0 : index
    %67 = vector.load %arg14[%c0_56, %c0_57] : memref<392x64xf32, #tpu.memory_space<vmem>>, vector<8x64xf32>
    %c0_58 = arith.constant 0 : index
    %c0_59 = arith.constant 0 : index
    %68 = vector.load %arg15[%c0_58, %c0_59] : memref<8x3136xf32, #tpu.memory_space<vmem>>, vector<8x64xf32>
    tpu.vector_store %arg15[%c0_58, %c0_59], %67 {strides = array<i32>} : memref<8x3136xf32, #tpu.memory_space<vmem>>, vector<8x64xf32>,
    %c8_60 = arith.constant 8 : index
    %c0_61 = arith.constant 0 : index
    %69 = vector.load %arg14[%c8_60, %c0_61] : memref<392x64xf32, #tpu.memory_space<vmem>>, vector<8x64xf32>
    %c0_62 = arith.constant 0 : index
    %c64_63 = arith.constant 64 : index
    %70 = vector.load %arg15[%c0_62, %c64_63] : memref<8x3136xf32, #tpu.memory_space<vmem>>, vector<8x64xf32>
    tpu.vector_store %arg15[%c0_62, %c64_63], %69 {strides = array<i32>} : memref<8x3136xf32, #tpu.memory_space<vmem>>, vector<8x64xf32>,
    %c16_64 = arith.constant 16 : index
    %c0_65 = arith.constant 0 : index
    %71 = vector.load %arg14[%c16_64, %c0_65] : memref<392x64xf32, #tpu.memory_space<vmem>>, vector<8x64xf32>
    %c0_66 = arith.constant 0 : index
    %c128_67 = arith.constant 128 : index
    %72 = vector.load %arg15[%c0_66, %c128_67] : memref<8x3136xf32, #tpu.memory_space<vmem>>, vector<8x64xf32>
    tpu.vector_store %arg15[%c0_66, %c128_67], %71 {strides = array<i32>} : memref<8x3136xf32, #tpu.memory_space<vmem>>, vector<8x64xf32>,
    %c24 = arith.constant 24 : index
    %c0_68 = arith.constant 0 : index
    %73 = vector.load %arg14[%c24, %c0_68] : memref<392x64xf32, #tpu.memory_space<vmem>>, vector<8x64xf32>
    %c0_69 = arith.constant 0 : index
    %c192_70 = arith.constant 192 : index
    %74 = vector.load %arg15[%c0_69, %c192_70] : memref<8x3136xf32, #tpu.memory_space<vmem>>, vector<8x64xf32>
    tpu.vector_store %arg15[%c0_69, %c192_70], %73 {strides = array<i32>} : memref<8x3136xf32, #tpu.memory_space<vmem>>, vector<8x64xf32>,
    %c32_71 = arith.constant 32 : index
    %c0_72 = arith.constant 0 : index
    %75 = vector.load %arg14[%c32_71, %c0_72] : memref<392x64xf32, #tpu.memory_space<vmem>>, vector<8x64xf32>
    %c0_73 = arith.constant 0 : index
    %c256_74 = arith.constant 256 : index
    %76 = vector.load %arg15[%c0_73, %c256_74] : memref<8x3136xf32, #tpu.memory_space<vmem>>, vector<8x64xf32>
    tpu.vector_store %arg15[%c0_73, %c256_74], %75 {strides = array<i32>} : memref<8x3136xf32, #tpu.memory_space<vmem>>, vector<8x64xf32>,
    %c40 = arith.constant 40 : index
    %c0_75 = arith.constant 0 : index
    %77 = vector.load %arg14[%c40, %c0_75] : memref<392x64xf32, #tpu.memory_space<vmem>>, vector<8x64xf32>
    %c0_76 = arith.constant 0 : index
    %c320 = arith.constant 320 : index
    %78 = vector.load %arg15[%c0_76, %c320] : memref<8x3136xf32, #tpu.memory_space<vmem>>, vector<8x64xf32>
    tpu.vector_store %arg15[%c0_76, %c320], %77 {strides = array<i32>} : memref<8x3136xf32, #tpu.memory_space<vmem>>, vector<8x64xf32>,
    %c48 = arith.constant 48 : index
    %c0_77 = arith.constant 0 : index
    %79 = vector.load %arg14[%c48, %c0_77] : memref<392x64xf32, #tpu.memory_space<vmem>>, vector<8x64xf32>
    %c0_78 = arith.constant 0 : index
    %c384 = arith.constant 384 : index
    %80 = vector.load %arg15[%c0_78, %c384] : memref<8x3136xf32, #tpu.memory_space<vmem>>, vector<8x64xf32>
    tpu.vector_store %arg15[%c0_78, %c384], %79 {strides = array<i32>} : memref<8x3136xf32, #tpu.memory_space<vmem>>, vector<8x64xf32>,
    %c56_79 = arith.constant 56 : index
    %c0_80 = arith.constant 0 : index
    %81 = vector.load %arg14[%c56_79, %c0_80] : memref<392x64xf32, #tpu.memory_space<vmem>>, vector<8x64xf32>
    %c0_81 = arith.constant 0 : index
    %c448 = arith.constant 448 : index
    %82 = vector.load %arg15[%c0_81, %c448] : memref<8x3136xf32, #tpu.memory_space<vmem>>, vector<8x64xf32>
    tpu.vector_store %arg15[%c0_81, %c448], %81 {strides = array<i32>} : memref<8x3136xf32, #tpu.memory_space<vmem>>, vector<8x64xf32>,
    %c64_82 = arith.constant 64 : index
    %c0_83 = arith.constant 0 : index
    %83 = vector.load %arg14[%c64_82, %c0_83] : memref<392x64xf32, #tpu.memory_space<vmem>>, vector<8x64xf32>
    %c0_84 = arith.constant 0 : index
    %c512 = arith.constant 512 : index
    %84 = vector.load %arg15[%c0_84, %c512] : memref<8x3136xf32, #tpu.memory_space<vmem>>, vector<8x64xf32>
    tpu.vector_store %arg15[%c0_84, %c512], %83 {strides = array<i32>} : memref<8x3136xf32, #tpu.memory_space<vmem>>, vector<8x64xf32>,
    %c72_85 = arith.constant 72 : index
    %c0_86 = arith.constant 0 : index
    %85 = vector.load %arg14[%c72_85, %c0_86] : memref<392x64xf32, #tpu.memory_space<vmem>>, vector<8x64xf32>
    %c0_87 = arith.constant 0 : index
    %c576 = arith.constant 576 : index
    %86 = vector.load %arg15[%c0_87, %c576] : memref<8x3136xf32, #tpu.memory_space<vmem>>, vector<8x64xf32>
    tpu.vector_store %arg15[%c0_87, %c576], %85 {strides = array<i32>} : memref<8x3136xf32, #tpu.memory_space<vmem>>, vector<8x64xf32>,
    %c80 = arith.constant 80 : index
    %c0_88 = arith.constant 0 : index
    %87 = vector.load %arg14[%c80, %c0_88] : memref<392x64xf32, #tpu.memory_space<vmem>>, vector<8x64xf32>
    %c0_89 = arith.constant 0 : index
    %c640 = arith.constant 640 : index
    %88 = vector.load %arg15[%c0_89, %c640] : memref<8x3136xf32, #tpu.memory_space<vmem>>, vector<8x64xf32>
    tpu.vector_store %arg15[%c0_89, %c640], %87 {strides = array<i32>} : memref<8x3136xf32, #tpu.memory_space<vmem>>, vector<8x64xf32>,
    %c88 = arith.constant 88 : index
    %c0_90 = arith.constant 0 : index
    %89 = vector.load %arg14[%c88, %c0_90] : memref<392x64xf32, #tpu.memory_space<vmem>>, vector<8x64xf32>
    %c0_91 = arith.constant 0 : index
    %c704 = arith.constant 704 : index
    %90 = vector.load %arg15[%c0_91, %c704] : memref<8x3136xf32, #tpu.memory_space<vmem>>, vector<8x64xf32>
    tpu.vector_store %arg15[%c0_91, %c704], %89 {strides = array<i32>} : memref<8x3136xf32, #tpu.memory_space<vmem>>, vector<8x64xf32>,
    %c96_92 = arith.constant 96 : index
    %c0_93 = arith.constant 0 : index
    %91 = vector.load %arg14[%c96_92, %c0_93] : memref<392x64xf32, #tpu.memory_space<vmem>>, vector<8x64xf32>
    %c0_94 = arith.constant 0 : index
    %c768 = arith.constant 768 : index
    %92 = vector.load %arg15[%c0_94, %c768] : memref<8x3136xf32, #tpu.memory_space<vmem>>, vector<8x64xf32>
    tpu.vector_store %arg15[%c0_94, %c768], %91 {strides = array<i32>} : memref<8x3136xf32, #tpu.memory_space<vmem>>, vector<8x64xf32>,
    %c104 = arith.constant 104 : index
    %c0_95 = arith.constant 0 : index
    %93 = vector.load %arg14[%c104, %c0_95] : memref<392x64xf32, #tpu.memory_space<vmem>>, vector<8x64xf32>
    %c0_96 = arith.constant 0 : index
    %c832 = arith.constant 832 : index
    %94 = vector.load %arg15[%c0_96, %c832] : memref<8x3136xf32, #tpu.memory_space<vmem>>, vector<8x64xf32>
    tpu.vector_store %arg15[%c0_96, %c832], %93 {strides = array<i32>} : memref<8x3136xf32, #tpu.memory_space<vmem>>, vector<8x64xf32>,
    %c112_97 = arith.constant 112 : index
    %c0_98 = arith.constant 0 : index
    %95 = vector.load %arg14[%c112_97, %c0_98] : memref<392x64xf32, #tpu.memory_space<vmem>>, vector<8x64xf32>
    %c0_99 = arith.constant 0 : index
    %c896 = arith.constant 896 : index
    %96 = vector.load %arg15[%c0_99, %c896] : memref<8x3136xf32, #tpu.memory_space<vmem>>, vector<8x64xf32>
    tpu.vector_store %arg15[%c0_99, %c896], %95 {strides = array<i32>} : memref<8x3136xf32, #tpu.memory_space<vmem>>, vector<8x64xf32>,
    %c120_100 = arith.constant 120 : index
    %c0_101 = arith.constant 0 : index
    %97 = vector.load %arg14[%c120_100, %c0_101] : memref<392x64xf32, #tpu.memory_space<vmem>>, vector<8x64xf32>
    %c0_102 = arith.constant 0 : index
    %c960 = arith.constant 960 : index
    %98 = vector.load %arg15[%c0_102, %c960] : memref<8x3136xf32, #tpu.memory_space<vmem>>, vector<8x64xf32>
    tpu.vector_store %arg15[%c0_102, %c960], %97 {strides = array<i32>} : memref<8x3136xf32, #tpu.memory_space<vmem>>, vector<8x64xf32>,
    %c128_103 = arith.constant 128 : index
    %c0_104 = arith.constant 0 : index
    %99 = vector.load %arg14[%c128_103, %c0_104] : memref<392x64xf32, #tpu.memory_space<vmem>>, vector<8x64xf32>
    %c0_105 = arith.constant 0 : index
    %c1024 = arith.constant 1024 : index
    %100 = vector.load %arg15[%c0_105, %c1024] : memref<8x3136xf32, #tpu.memory_space<vmem>>, vector<8x64xf32>
    tpu.vector_store %arg15[%c0_105, %c1024], %99 {strides = array<i32>} : memref<8x3136xf32, #tpu.memory_space<vmem>>, vector<8x64xf32>,
    %c136 = arith.constant 136 : index
    %c0_106 = arith.constant 0 : index
    %101 = vector.load %arg14[%c136, %c0_106] : memref<392x64xf32, #tpu.memory_space<vmem>>, vector<8x64xf32>
    %c0_107 = arith.constant 0 : index
    %c1088 = arith.constant 1088 : index
    %102 = vector.load %arg15[%c0_107, %c1088] : memref<8x3136xf32, #tpu.memory_space<vmem>>, vector<8x64xf32>
    tpu.vector_store %arg15[%c0_107, %c1088], %101 {strides = array<i32>} : memref<8x3136xf32, #tpu.memory_space<vmem>>, vector<8x64xf32>,
    %c144 = arith.constant 144 : index
    %c0_108 = arith.constant 0 : index
    %103 = vector.load %arg14[%c144, %c0_108] : memref<392x64xf32, #tpu.memory_space<vmem>>, vector<8x64xf32>
    %c0_109 = arith.constant 0 : index
    %c1152 = arith.constant 1152 : index
    %104 = vector.load %arg15[%c0_109, %c1152] : memref<8x3136xf32, #tpu.memory_space<vmem>>, vector<8x64xf32>
    tpu.vector_store %arg15[%c0_109, %c1152], %103 {strides = array<i32>} : memref<8x3136xf32, #tpu.memory_space<vmem>>, vector<8x64xf32>,
    %c152 = arith.constant 152 : index
    %c0_110 = arith.constant 0 : index
    %105 = vector.load %arg14[%c152, %c0_110] : memref<392x64xf32, #tpu.memory_space<vmem>>, vector<8x64xf32>
    %c0_111 = arith.constant 0 : index
    %c1216 = arith.constant 1216 : index
    %106 = vector.load %arg15[%c0_111, %c1216] : memref<8x3136xf32, #tpu.memory_space<vmem>>, vector<8x64xf32>
    tpu.vector_store %arg15[%c0_111, %c1216], %105 {strides = array<i32>} : memref<8x3136xf32, #tpu.memory_space<vmem>>, vector<8x64xf32>,
    %c160_112 = arith.constant 160 : index
    %c0_113 = arith.constant 0 : index
    %107 = vector.load %arg14[%c160_112, %c0_113] : memref<392x64xf32, #tpu.memory_space<vmem>>, vector<8x64xf32>
    %c0_114 = arith.constant 0 : index
    %c1280 = arith.constant 1280 : index
    %108 = vector.load %arg15[%c0_114, %c1280] : memref<8x3136xf32, #tpu.memory_space<vmem>>, vector<8x64xf32>
    tpu.vector_store %arg15[%c0_114, %c1280], %107 {strides = array<i32>} : memref<8x3136xf32, #tpu.memory_space<vmem>>, vector<8x64xf32>,
    %c168 = arith.constant 168 : index
    %c0_115 = arith.constant 0 : index
    %109 = vector.load %arg14[%c168, %c0_115] : memref<392x64xf32, #tpu.memory_space<vmem>>, vector<8x64xf32>
    %c0_116 = arith.constant 0 : index
    %c1344 = arith.constant 1344 : index
    %110 = vector.load %arg15[%c0_116, %c1344] : memref<8x3136xf32, #tpu.memory_space<vmem>>, vector<8x64xf32>
    tpu.vector_store %arg15[%c0_116, %c1344], %109 {strides = array<i32>} : memref<8x3136xf32, #tpu.memory_space<vmem>>, vector<8x64xf32>,
    %c176 = arith.constant 176 : index
    %c0_117 = arith.constant 0 : index
    %111 = vector.load %arg14[%c176, %c0_117] : memref<392x64xf32, #tpu.memory_space<vmem>>, vector<8x64xf32>
    %c0_118 = arith.constant 0 : index
    %c1408 = arith.constant 1408 : index
    %112 = vector.load %arg15[%c0_118, %c1408] : memref<8x3136xf32, #tpu.memory_space<vmem>>, vector<8x64xf32>
    tpu.vector_store %arg15[%c0_118, %c1408], %111 {strides = array<i32>} : memref<8x3136xf32, #tpu.memory_space<vmem>>, vector<8x64xf32>,
    %c184 = arith.constant 184 : index
    %c0_119 = arith.constant 0 : index
    %113 = vector.load %arg14[%c184, %c0_119] : memref<392x64xf32, #tpu.memory_space<vmem>>, vector<8x64xf32>
    %c0_120 = arith.constant 0 : index
    %c1472 = arith.constant 1472 : index
    %114 = vector.load %arg15[%c0_120, %c1472] : memref<8x3136xf32, #tpu.memory_space<vmem>>, vector<8x64xf32>
    tpu.vector_store %arg15[%c0_120, %c1472], %113 {strides = array<i32>} : memref<8x3136xf32, #tpu.memory_space<vmem>>, vector<8x64xf32>,
    %c192_121 = arith.constant 192 : index
    %c0_122 = arith.constant 0 : index
    %115 = vector.load %arg14[%c192_121, %c0_122] : memref<392x64xf32, #tpu.memory_space<vmem>>, vector<8x64xf32>
    %c0_123 = arith.constant 0 : index
    %c1536 = arith.constant 1536 : index
    %116 = vector.load %arg15[%c0_123, %c1536] : memref<8x3136xf32, #tpu.memory_space<vmem>>, vector<8x64xf32>
    tpu.vector_store %arg15[%c0_123, %c1536], %115 {strides = array<i32>} : memref<8x3136xf32, #tpu.memory_space<vmem>>, vector<8x64xf32>,
    %c200 = arith.constant 200 : index
    %c0_124 = arith.constant 0 : index
    %117 = vector.load %arg14[%c200, %c0_124] : memref<392x64xf32, #tpu.memory_space<vmem>>, vector<8x64xf32>
    %c0_125 = arith.constant 0 : index
    %c1600 = arith.constant 1600 : index
    %118 = vector.load %arg15[%c0_125, %c1600] : memref<8x3136xf32, #tpu.memory_space<vmem>>, vector<8x64xf32>
    tpu.vector_store %arg15[%c0_125, %c1600], %117 {strides = array<i32>} : memref<8x3136xf32, #tpu.memory_space<vmem>>, vector<8x64xf32>,
    %c208 = arith.constant 208 : index
    %c0_126 = arith.constant 0 : index
    %119 = vector.load %arg14[%c208, %c0_126] : memref<392x64xf32, #tpu.memory_space<vmem>>, vector<8x64xf32>
    %c0_127 = arith.constant 0 : index
    %c1664 = arith.constant 1664 : index
    %120 = vector.load %arg15[%c0_127, %c1664] : memref<8x3136xf32, #tpu.memory_space<vmem>>, vector<8x64xf32>
    tpu.vector_store %arg15[%c0_127, %c1664], %119 {strides = array<i32>} : memref<8x3136xf32, #tpu.memory_space<vmem>>, vector<8x64xf32>,
    %c216 = arith.constant 216 : index
    %c0_128 = arith.constant 0 : index
    %121 = vector.load %arg14[%c216, %c0_128] : memref<392x64xf32, #tpu.memory_space<vmem>>, vector<8x64xf32>
    %c0_129 = arith.constant 0 : index
    %c1728 = arith.constant 1728 : index
    %122 = vector.load %arg15[%c0_129, %c1728] : memref<8x3136xf32, #tpu.memory_space<vmem>>, vector<8x64xf32>
    tpu.vector_store %arg15[%c0_129, %c1728], %121 {strides = array<i32>} : memref<8x3136xf32, #tpu.memory_space<vmem>>, vector<8x64xf32>,
    %c224_130 = arith.constant 224 : index
    %c0_131 = arith.constant 0 : index
    %123 = vector.load %arg14[%c224_130, %c0_131] : memref<392x64xf32, #tpu.memory_space<vmem>>, vector<8x64xf32>
    %c0_132 = arith.constant 0 : index
    %c1792 = arith.constant 1792 : index
    %124 = vector.load %arg15[%c0_132, %c1792] : memref<8x3136xf32, #tpu.memory_space<vmem>>, vector<8x64xf32>
    tpu.vector_store %arg15[%c0_132, %c1792], %123 {strides = array<i32>} : memref<8x3136xf32, #tpu.memory_space<vmem>>, vector<8x64xf32>,
    %c232 = arith.constant 232 : index
    %c0_133 = arith.constant 0 : index
    %125 = vector.load %arg14[%c232, %c0_133] : memref<392x64xf32, #tpu.memory_space<vmem>>, vector<8x64xf32>
    %c0_134 = arith.constant 0 : index
    %c1856 = arith.constant 1856 : index
    %126 = vector.load %arg15[%c0_134, %c1856] : memref<8x3136xf32, #tpu.memory_space<vmem>>, vector<8x64xf32>
    tpu.vector_store %arg15[%c0_134, %c1856], %125 {strides = array<i32>} : memref<8x3136xf32, #tpu.memory_space<vmem>>, vector<8x64xf32>,
    %c240 = arith.constant 240 : index
    %c0_135 = arith.constant 0 : index
    %127 = vector.load %arg14[%c240, %c0_135] : memref<392x64xf32, #tpu.memory_space<vmem>>, vector<8x64xf32>
    %c0_136 = arith.constant 0 : index
    %c1920 = arith.constant 1920 : index
    %128 = vector.load %arg15[%c0_136, %c1920] : memref<8x3136xf32, #tpu.memory_space<vmem>>, vector<8x64xf32>
    tpu.vector_store %arg15[%c0_136, %c1920], %127 {strides = array<i32>} : memref<8x3136xf32, #tpu.memory_space<vmem>>, vector<8x64xf32>,
    %c248 = arith.constant 248 : index
    %c0_137 = arith.constant 0 : index
    %129 = vector.load %arg14[%c248, %c0_137] : memref<392x64xf32, #tpu.memory_space<vmem>>, vector<8x64xf32>
    %c0_138 = arith.constant 0 : index
    %c1984 = arith.constant 1984 : index
    %130 = vector.load %arg15[%c0_138, %c1984] : memref<8x3136xf32, #tpu.memory_space<vmem>>, vector<8x64xf32>
    tpu.vector_store %arg15[%c0_138, %c1984], %129 {strides = array<i32>} : memref<8x3136xf32, #tpu.memory_space<vmem>>, vector<8x64xf32>,
    %c256_139 = arith.constant 256 : index
    %c0_140 = arith.constant 0 : index
    %131 = vector.load %arg14[%c256_139, %c0_140] : memref<392x64xf32, #tpu.memory_space<vmem>>, vector<8x64xf32>
    %c0_141 = arith.constant 0 : index
    %c2048 = arith.constant 2048 : index
    %132 = vector.load %arg15[%c0_141, %c2048] : memref<8x3136xf32, #tpu.memory_space<vmem>>, vector<8x64xf32>
    tpu.vector_store %arg15[%c0_141, %c2048], %131 {strides = array<i32>} : memref<8x3136xf32, #tpu.memory_space<vmem>>, vector<8x64xf32>,
    %c264 = arith.constant 264 : index
    %c0_142 = arith.constant 0 : index
    %133 = vector.load %arg14[%c264, %c0_142] : memref<392x64xf32, #tpu.memory_space<vmem>>, vector<8x64xf32>
    %c0_143 = arith.constant 0 : index
    %c2112 = arith.constant 2112 : index
    %134 = vector.load %arg15[%c0_143, %c2112] : memref<8x3136xf32, #tpu.memory_space<vmem>>, vector<8x64xf32>
    tpu.vector_store %arg15[%c0_143, %c2112], %133 {strides = array<i32>} : memref<8x3136xf32, #tpu.memory_space<vmem>>, vector<8x64xf32>,
    %c272 = arith.constant 272 : index
    %c0_144 = arith.constant 0 : index
    %135 = vector.load %arg14[%c272, %c0_144] : memref<392x64xf32, #tpu.memory_space<vmem>>, vector<8x64xf32>
    %c0_145 = arith.constant 0 : index
    %c2176 = arith.constant 2176 : index
    %136 = vector.load %arg15[%c0_145, %c2176] : memref<8x3136xf32, #tpu.memory_space<vmem>>, vector<8x64xf32>
    tpu.vector_store %arg15[%c0_145, %c2176], %135 {strides = array<i32>} : memref<8x3136xf32, #tpu.memory_space<vmem>>, vector<8x64xf32>,
    %c280 = arith.constant 280 : index
    %c0_146 = arith.constant 0 : index
    %137 = vector.load %arg14[%c280, %c0_146] : memref<392x64xf32, #tpu.memory_space<vmem>>, vector<8x64xf32>
    %c0_147 = arith.constant 0 : index
    %c2240 = arith.constant 2240 : index
    %138 = vector.load %arg15[%c0_147, %c2240] : memref<8x3136xf32, #tpu.memory_space<vmem>>, vector<8x64xf32>
    tpu.vector_store %arg15[%c0_147, %c2240], %137 {strides = array<i32>} : memref<8x3136xf32, #tpu.memory_space<vmem>>, vector<8x64xf32>,
    %c288 = arith.constant 288 : index
    %c0_148 = arith.constant 0 : index
    %139 = vector.load %arg14[%c288, %c0_148] : memref<392x64xf32, #tpu.memory_space<vmem>>, vector<8x64xf32>
    %c0_149 = arith.constant 0 : index
    %c2304 = arith.constant 2304 : index
    %140 = vector.load %arg15[%c0_149, %c2304] : memref<8x3136xf32, #tpu.memory_space<vmem>>, vector<8x64xf32>
    tpu.vector_store %arg15[%c0_149, %c2304], %139 {strides = array<i32>} : memref<8x3136xf32, #tpu.memory_space<vmem>>, vector<8x64xf32>,
    %c296 = arith.constant 296 : index
    %c0_150 = arith.constant 0 : index
    %141 = vector.load %arg14[%c296, %c0_150] : memref<392x64xf32, #tpu.memory_space<vmem>>, vector<8x64xf32>
    %c0_151 = arith.constant 0 : index
    %c2368 = arith.constant 2368 : index
    %142 = vector.load %arg15[%c0_151, %c2368] : memref<8x3136xf32, #tpu.memory_space<vmem>>, vector<8x64xf32>
    tpu.vector_store %arg15[%c0_151, %c2368], %141 {strides = array<i32>} : memref<8x3136xf32, #tpu.memory_space<vmem>>, vector<8x64xf32>,
    %c304 = arith.constant 304 : index
    %c0_152 = arith.constant 0 : index
    %143 = vector.load %arg14[%c304, %c0_152] : memref<392x64xf32, #tpu.memory_space<vmem>>, vector<8x64xf32>
    %c0_153 = arith.constant 0 : index
    %c2432 = arith.constant 2432 : index
    %144 = vector.load %arg15[%c0_153, %c2432] : memref<8x3136xf32, #tpu.memory_space<vmem>>, vector<8x64xf32>
    tpu.vector_store %arg15[%c0_153, %c2432], %143 {strides = array<i32>} : memref<8x3136xf32, #tpu.memory_space<vmem>>, vector<8x64xf32>,
    %c312 = arith.constant 312 : index
    %c0_154 = arith.constant 0 : index
    %145 = vector.load %arg14[%c312, %c0_154] : memref<392x64xf32, #tpu.memory_space<vmem>>, vector<8x64xf32>
    %c0_155 = arith.constant 0 : index
    %c2496 = arith.constant 2496 : index
    %146 = vector.load %arg15[%c0_155, %c2496] : memref<8x3136xf32, #tpu.memory_space<vmem>>, vector<8x64xf32>
    tpu.vector_store %arg15[%c0_155, %c2496], %145 {strides = array<i32>} : memref<8x3136xf32, #tpu.memory_space<vmem>>, vector<8x64xf32>,
    %c320_156 = arith.constant 320 : index
    %c0_157 = arith.constant 0 : index
    %147 = vector.load %arg14[%c320_156, %c0_157] : memref<392x64xf32, #tpu.memory_space<vmem>>, vector<8x64xf32>
    %c0_158 = arith.constant 0 : index
    %c2560 = arith.constant 2560 : index
    %148 = vector.load %arg15[%c0_158, %c2560] : memref<8x3136xf32, #tpu.memory_space<vmem>>, vector<8x64xf32>
    tpu.vector_store %arg15[%c0_158, %c2560], %147 {strides = array<i32>} : memref<8x3136xf32, #tpu.memory_space<vmem>>, vector<8x64xf32>,
    %c328 = arith.constant 328 : index
    %c0_159 = arith.constant 0 : index
    %149 = vector.load %arg14[%c328, %c0_159] : memref<392x64xf32, #tpu.memory_space<vmem>>, vector<8x64xf32>
    %c0_160 = arith.constant 0 : index
    %c2624 = arith.constant 2624 : index
    %150 = vector.load %arg15[%c0_160, %c2624] : memref<8x3136xf32, #tpu.memory_space<vmem>>, vector<8x64xf32>
    tpu.vector_store %arg15[%c0_160, %c2624], %149 {strides = array<i32>} : memref<8x3136xf32, #tpu.memory_space<vmem>>, vector<8x64xf32>,
    %c336 = arith.constant 336 : index
    %c0_161 = arith.constant 0 : index
    %151 = vector.load %arg14[%c336, %c0_161] : memref<392x64xf32, #tpu.memory_space<vmem>>, vector<8x64xf32>
    %c0_162 = arith.constant 0 : index
    %c2688 = arith.constant 2688 : index
    %152 = vector.load %arg15[%c0_162, %c2688] : memref<8x3136xf32, #tpu.memory_space<vmem>>, vector<8x64xf32>
    tpu.vector_store %arg15[%c0_162, %c2688], %151 {strides = array<i32>} : memref<8x3136xf32, #tpu.memory_space<vmem>>, vector<8x64xf32>,
    %c344 = arith.constant 344 : index
    %c0_163 = arith.constant 0 : index
    %153 = vector.load %arg14[%c344, %c0_163] : memref<392x64xf32, #tpu.memory_space<vmem>>, vector<8x64xf32>
    %c0_164 = arith.constant 0 : index
    %c2752 = arith.constant 2752 : index
    %154 = vector.load %arg15[%c0_164, %c2752] : memref<8x3136xf32, #tpu.memory_space<vmem>>, vector<8x64xf32>
    tpu.vector_store %arg15[%c0_164, %c2752], %153 {strides = array<i32>} : memref<8x3136xf32, #tpu.memory_space<vmem>>, vector<8x64xf32>,
    %c352 = arith.constant 352 : index
    %c0_165 = arith.constant 0 : index
    %155 = vector.load %arg14[%c352, %c0_165] : memref<392x64xf32, #tpu.memory_space<vmem>>, vector<8x64xf32>
    %c0_166 = arith.constant 0 : index
    %c2816 = arith.constant 2816 : index
    %156 = vector.load %arg15[%c0_166, %c2816] : memref<8x3136xf32, #tpu.memory_space<vmem>>, vector<8x64xf32>
    tpu.vector_store %arg15[%c0_166, %c2816], %155 {strides = array<i32>} : memref<8x3136xf32, #tpu.memory_space<vmem>>, vector<8x64xf32>,
    %c360 = arith.constant 360 : index
    %c0_167 = arith.constant 0 : index
    %157 = vector.load %arg14[%c360, %c0_167] : memref<392x64xf32, #tpu.memory_space<vmem>>, vector<8x64xf32>
    %c0_168 = arith.constant 0 : index
    %c2880 = arith.constant 2880 : index
    %158 = vector.load %arg15[%c0_168, %c2880] : memref<8x3136xf32, #tpu.memory_space<vmem>>, vector<8x64xf32>
    tpu.vector_store %arg15[%c0_168, %c2880], %157 {strides = array<i32>} : memref<8x3136xf32, #tpu.memory_space<vmem>>, vector<8x64xf32>,
    %c368 = arith.constant 368 : index
    %c0_169 = arith.constant 0 : index
    %159 = vector.load %arg14[%c368, %c0_169] : memref<392x64xf32, #tpu.memory_space<vmem>>, vector<8x64xf32>
    %c0_170 = arith.constant 0 : index
    %c2944 = arith.constant 2944 : index
    %160 = vector.load %arg15[%c0_170, %c2944] : memref<8x3136xf32, #tpu.memory_space<vmem>>, vector<8x64xf32>
    tpu.vector_store %arg15[%c0_170, %c2944], %159 {strides = array<i32>} : memref<8x3136xf32, #tpu.memory_space<vmem>>, vector<8x64xf32>,
    %c376 = arith.constant 376 : index
    %c0_171 = arith.constant 0 : index
    %161 = vector.load %arg14[%c376, %c0_171] : memref<392x64xf32, #tpu.memory_space<vmem>>, vector<8x64xf32>
    %c0_172 = arith.constant 0 : index
    %c3008 = arith.constant 3008 : index
    %162 = vector.load %arg15[%c0_172, %c3008] : memref<8x3136xf32, #tpu.memory_space<vmem>>, vector<8x64xf32>
    tpu.vector_store %arg15[%c0_172, %c3008], %161 {strides = array<i32>} : memref<8x3136xf32, #tpu.memory_space<vmem>>, vector<8x64xf32>,
    %c384_173 = arith.constant 384 : index
    %c0_174 = arith.constant 0 : index
    %163 = vector.load %arg14[%c384_173, %c0_174] : memref<392x64xf32, #tpu.memory_space<vmem>>, vector<8x64xf32>
    %c0_175 = arith.constant 0 : index
    %c3072 = arith.constant 3072 : index
    %164 = vector.load %arg15[%c0_175, %c3072] : memref<8x3136xf32, #tpu.memory_space<vmem>>, vector<8x64xf32>
    tpu.vector_store %arg15[%c0_175, %c3072], %163 {strides = array<i32>} : memref<8x3136xf32, #tpu.memory_space<vmem>>, vector<8x64xf32>,
    %c0_176 = arith.constant 0 : index
    %c0_177 = arith.constant 0 : index
    %165 = vector.load %arg15[%c0_176, %c0_177] : memref<8x3136xf32, #tpu.memory_space<vmem>>, vector<8x3136xf32>
    %c0_178 = arith.constant 0 : index
    %c0_179 = arith.constant 0 : index
    %166 = vector.load %arg7[%c0_178, %c0_179] : memref<3136x200xf32, #tpu.memory_space<vmem>>, vector<3136x200xf32>
    %cst_180 = arith.constant dense<0.000000e+00> : vector<8x200xf32>
    %167 = tpu.matmul %165, %166, %cst_180 {dimension_numbers = #tpu.dot_dimension_numbers<[1], [0], [0], [1], [0, 0, 1, 1], [], []>} : vector<8x3136xf32>, vector<3136x200xf32>, vector<8x200xf32> -> vector<8x200xf32>
    %c0_181 = arith.constant 0 : index
    %c0_182 = arith.constant 0 : index
    %168 = vector.load %arg8[%c0_181, %c0_182] : memref<1x200xf32, #tpu.memory_space<vmem>>, vector<1x200xf32>
    %169 = vector.broadcast %168 : vector<1x200xf32> to vector<8x200xf32>
    %170 = arith.addf %167, %169 : vector<8x200xf32>
    %cst_183 = arith.constant 0.000000e+00 : f32
    %171 = vector.broadcast %cst_183 : f32 to vector<8x200xf32>
    %172 = arith.maximumf %170, %171 : vector<8x200xf32>
    %c0_184 = arith.constant 0 : index
    %c0_185 = arith.constant 0 : index
    %173 = vector.load %arg9[%c0_184, %c0_185] : memref<200x10xf32, #tpu.memory_space<vmem>>, vector<200x10xf32>
    %cst_186 = arith.constant dense<0.000000e+00> : vector<8x10xf32>
    %174 = tpu.matmul %172, %173, %cst_186 {dimension_numbers = #tpu.dot_dimension_numbers<[1], [0], [0], [1], [0, 0, 1, 1], [], []>} : vector<8x200xf32>, vector<200x10xf32>, vector<8x10xf32> -> vector<8x10xf32>
    %c0_187 = arith.constant 0 : index
    %c0_188 = arith.constant 0 : index
    %175 = vector.load %arg10[%c0_187, %c0_188] : memref<1x10xf32, #tpu.memory_space<vmem>>, vector<1x10xf32>
    %176 = vector.broadcast %175 : vector<1x10xf32> to vector<8x10xf32>
    %177 = arith.addf %174, %176 : vector<8x10xf32>
    %c0_189 = arith.constant 0 : index
    %c0_190 = arith.constant 0 : index
    %c0_191 = arith.constant 0 : index
    %178 = vector.load %arg11[%c0_189, %c0_190, %c0_191] : memref<1x8x10xf32, #tpu.memory_space<vmem>>, vector<1x8x10xf32>
    %179 = vector.shape_cast %178 : vector<1x8x10xf32> to vector<8x10xf32>
    %180 = vector.shape_cast %177 : vector<8x10xf32> to vector<1x8x10xf32>
    tpu.vector_store %arg11[%c0_189, %c0_190, %c0_191], %180 {strides = array<i32>} : memref<1x8x10xf32, #tpu.memory_space<vmem>>, vector<1x8x10xf32>,
    return
  }
  func.func @transform_0(%arg0: i32) -> (i32, i32, i32) {
    %c0_i32 = arith.constant 0 : i32
    %c0_i32_0 = arith.constant 0 : i32
    %c0_i32_1 = arith.constant 0 : i32
    return %arg0, %c0_i32, %c0_i32_0 : i32, i32, i32
  }
  func.func @transform_1(%arg0: i32) -> (i32, i32) {
    %c0_i32 = arith.constant 0 : i32
    %c0_i32_0 = arith.constant 0 : i32
    %c0_i32_1 = arith.constant 0 : i32
    return %c0_i32, %c0_i32_0 : i32, i32
  }
  func.func @transform_2(%arg0: i32) -> (i32, i32) {
    %c0_i32 = arith.constant 0 : i32
    %c0_i32_0 = arith.constant 0 : i32
    %c0_i32_1 = arith.constant 0 : i32
    return %c0_i32, %c0_i32_0 : i32, i32
  }
  func.func @transform_3(%arg0: i32) -> (i32, i32) {
    %c0_i32 = arith.constant 0 : i32
    %c0_i32_0 = arith.constant 0 : i32
    %c0_i32_1 = arith.constant 0 : i32
    return %c0_i32, %c0_i32_0 : i32, i32
  }
  func.func @transform_4(%arg0: i32) -> (i32, i32) {
    %c0_i32 = arith.constant 0 : i32
    %c0_i32_0 = arith.constant 0 : i32
    %c0_i32_1 = arith.constant 0 : i32
    return %c0_i32, %c0_i32_0 : i32, i32
  }
  func.func @transform_5(%arg0: i32) -> (i32, i32) {
    %c0_i32 = arith.constant 0 : i32
    %c0_i32_0 = arith.constant 0 : i32
    %c0_i32_1 = arith.constant 0 : i32
    return %c0_i32, %c0_i32_0 : i32, i32
  }
  func.func @transform_6(%arg0: i32) -> (i32, i32) {
    %c0_i32 = arith.constant 0 : i32
    %c0_i32_0 = arith.constant 0 : i32
    %c0_i32_1 = arith.constant 0 : i32
    return %c0_i32, %c0_i32_0 : i32, i32
  }
  func.func @transform_7(%arg0: i32) -> (i32, i32) {
    %c0_i32 = arith.constant 0 : i32
    %c0_i32_0 = arith.constant 0 : i32
    %c0_i32_1 = arith.constant 0 : i32
    return %c0_i32, %c0_i32_0 : i32, i32
  }
  func.func @transform_8(%arg0: i32) -> (i32, i32) {
    %c0_i32 = arith.constant 0 : i32
    %c0_i32_0 = arith.constant 0 : i32
    %c0_i32_1 = arith.constant 0 : i32
    return %c0_i32, %c0_i32_0 : i32, i32
  }
  func.func @transform_9(%arg0: i32) -> (i32, i32) {
    %c0_i32 = arith.constant 0 : i32
    %c0_i32_0 = arith.constant 0 : i32
    %c0_i32_1 = arith.constant 0 : i32
    return %c0_i32, %c0_i32_0 : i32, i32
  }
  func.func @transform_10(%arg0: i32) -> (i32, i32, i32) {
    %c0_i32 = arith.constant 0 : i32
    %c0_i32_0 = arith.constant 0 : i32
    %c0_i32_1 = arith.constant 0 : i32
    return %arg0, %c0_i32, %c0_i32_0 : i32, i32, i32
  }
}

</mosaic_0001>

<bundles_post_ra>
// kernel: lenet5_nomaxpool_forward.1
= control target key start
LH: loop header
LB: loop body
LE: loop exit
PB: predicated region body
PF: predicated region fallthrough
CT: control target
= control target key end

     0   :  { %vm241_vm0 = vcmask 1040384   ;;  %v10736_v0 = vmov 0   ;;  %vm10737_vm1 = vmmov 1   ;;  %vm604_vm3 = vcmask 261120   ;;  %s10743_s12 = smov 32   ;;  %s10748_s21 = smov 96   ;;  %s17820_s1 = inlined_call_operand.vmem [shape: f32[392,9], index: 1, kind: input, shape index: {}]   ;;  %s17821_s2 = inlined_call_operand.vmem [shape: f32[9,32], index: 2, kind: input, shape index: {}]   ;;  %s17822_s0 = inlined_call_operand.vmem [shape: f32[1,392,9], index: 0, kind: input, shape index: {}]   ;;  %s17823_s3 = inlined_call_operand.vmem [shape: f32[1,32], index: 3, kind: input, shape index: {}]   ;;  %s17824_s4 = inlined_call_operand.vmem [shape: f32[288,64], index: 4, kind: input, shape index: {}]   ;;  %s17825_s6 = inlined_call_operand.vmem [shape: f32[3136,200], index: 6, kind: input, shape index: {}]   ;;  %s17826_s5 = inlined_call_operand.vmem [shape: f32[1,64], index: 5, kind: input, shape index: {}]   ;;  %s17827_s8 = inlined_call_operand.vmem [shape: f32[200,10], index: 8, kind: input, shape index: {}]   ;;  %s17828_s7 = inlined_call_operand.vmem [shape: f32[1,200], index: 7, kind: input, shape index: {}]   ;;  %s17829_s9 = inlined_call_operand.vmem [shape: f32[1,10], index: 9, kind: input, shape index: {}]   ;;  %s17830_s10 = inlined_call_operand.vmem [shape: f32[1,8,10], index: 10, kind: output, shape index: {}]  }
   0x1   :  { %10512 = vset.pattern.permute.xlu1 %v10736_v0  ;;  %10511 = vset.pattern.permute.xlu0 %v10736_v0  ;;  %v10810_v1 = vld [vmem:[%s17820_s1 + $0x10] sm:$0xff]  ;;  %v10815_v2 = vld [vmem:[%s17820_s1] sm:$0xff]  ;;  %v85_v4 = vld [vmem:[%s17821_s2 + $0x8] sm:$0x1]  ;;  %v17834_v6 = vmov 0.0|0.0   ;;  %vm10739_vm4 = vmmov 0  }
   0x2   :  { %v84_v3 = vld [vmem:[%s17821_s2] sm:$0xff]  ;;  %780 = vperm.xlu1 %10512, %v10810_v1   ;;  %770 = vperm.xlu0 %10511, %v10815_v2   ;;  %vm10825_vm2 = vmpackc.low %vm241_vm0, %vm10737_vm1  ;;  %v17832_v8 = vmov 0.0   ;;  %v10835_v9 = vld [vmem:[%s17820_s1 + $0x18] sm:$0xff]  ;;  %vm93_vm5 = vcmask 72704   ;;  %vm1699_vm6 = vcmask 523520   ;;  %s10749_s22 = smov 64  }
   0x3   :  { %9444 = vmatprep.subr.bf16.mxu1 %v17834_v6  ;;  %v9445_v7 = vpack.c.bf16 %v85_v4, %v84_v3  ;;  %9142 = vmatprep.mubr.msk.f32.mxu1 %vm10739_vm4, %v17832_v8  ;;  %v10840_v10 = vld [vmem:[%s17820_s1 + $0x8] sm:$0xff]  ;;  %607 = vst.msk [vmem:[#allocation2 + $0x10] sm:$0xff] %vm604_vm3, %v17832_v8  ;;  %605 = vst.msk [vmem:[#allocation2] sm:$0xff] %vm604_vm3, %v17832_v8  ;;  %v35_v11 = vld [vmem:[%s17822_s0] sm:$0xff]  ;;  %vm2337_vm7 = vcmask 785920   ;;  %vm2975_vm8 = vcmask 1048320  }
   0x4   :  { %606 = vst.msk [vmem:[#allocation2 + $0x8] sm:$0xff] %vm604_vm3, %v17832_v8  ;;  %608 = vst.msk [vmem:[#allocation2 + $0x18] sm:$0xff] %vm604_vm3, %v17832_v8  ;;  %v10884_v12 = vld [vmem:[%s17820_s1 + $0x28] sm:$0xff]  ;;  %v10889_v13 = vld [vmem:[%s17820_s1 + $0x20] sm:$0xff]  ;;  %vm6824_vm9 = vcmask 523264   ;;  %vm6881_vm10 = vcmask 1048064  }
   0x5   :  { %609 = vst.msk [vmem:[#allocation2 + $0x20] sm:$0xff] %vm604_vm3, %v17832_v8  ;;  %610 = vst.msk [vmem:[#allocation2 + $0x28] sm:$0xff] %vm604_vm3, %v17832_v8  ;;  %9447 = vmatpush3.bf16.msk.msra.mxu1 %vm10825_vm2, %v9445_v7  ;;  %v36_v14 = vld [vmem:[%s17822_s0 + $0x8] sm:$0xff]  ;;  %v10903_v15 = vld [vmem:[%s17820_s1 + $0x38] sm:$0xff]  ;;  %vm8850_vm11 = vcmask 588800   ;;  %vm8924_vm12 = vcmask 80896  }
   0x6   :  { %611 = vst.msk [vmem:[#allocation2 + $0x30] sm:$0xff] %vm604_vm3, %v17832_v8  ;;  %612 = vst.msk [vmem:[#allocation2 + $0x38] sm:$0xff] %vm604_vm3, %v17832_v8  ;;  %785 = vperm.xlu1 %10512, %v10835_v9   ;;  %775 = vperm.xlu0 %10511, %v10840_v10   ;;  %v10908_v16 = vld [vmem:[%s17820_s1 + $0x30] sm:$0xff]  ;;  %v10921_v18 = vld [vmem:[%s17820_s1 + $0x48] sm:$0xff] }
   0x7   :  { %613 = vst.msk [vmem:[#allocation2 + $0x1c8] sm:$0xff] %vm604_vm3, %v17832_v8  ;;  %614 = vst.msk [vmem:[#allocation2 + $0x1d0] sm:$0xff] %vm604_vm3, %v17832_v8  ;;  %9448 = vmatprep.subr.bf16.mxu1 %v17834_v6  ;;  %v37_v17 = vld [vmem:[%s17822_s0 + $0x10] sm:$0xff]  ;;  %v10926_v19 = vld [vmem:[%s17820_s1 + $0x40] sm:$0xff] }
   0x8   :  { %615 = vst.msk [vmem:[#allocation2 + $0x1d8] sm:$0xff] %vm604_vm3, %v17832_v8  ;;  %616 = vst.msk [vmem:[#allocation2 + $0x1e0] sm:$0xff] %vm604_vm3, %v17832_v8  ;;  %9143 = vmatmul.mubr.msk.f32.vlgmr.msra.gmra.mrb[0].mxu1 %vm93_vm5, %v35_v11  ;;  %v38_v20 = vld [vmem:[%s17822_s0 + $0x18] sm:$0xff]  ;;  %v10944_v22 = vld [vmem:[%s17820_s1 + $0x50] sm:$0xff] }
   0x9   :  { %617 = vst.msk [vmem:[#allocation2 + $0x1e8] sm:$0xff] %vm604_vm3, %v17832_v8  ;;  %618 = vst.msk [vmem:[#allocation2 + $0x1f0] sm:$0xff] %vm604_vm3, %v17832_v8  ;;  %9145 = vmatprep.mubr.msk.f32.mxu1 %vm10739_vm4, %v17832_v8  ;;  %v10939_v21 = vld [vmem:[%s17820_s1 + $0x58] sm:$0xff]  ;;  %v39_v23 = vld [vmem:[%s17822_s0 + $0x20] sm:$0xff] }
   0xa   :  { %619 = vst.msk [vmem:[#allocation2 + $0x1f8] sm:$0xff] %vm604_vm3, %v17832_v8  ;;  %620 = vst.msk [vmem:[#allocation2 + $0x200] sm:$0xff] %vm604_vm3, %v17832_v8  ;;  %795 = vperm.xlu1 %10512, %v10884_v12   ;;  %790 = vperm.xlu0 %10511, %v10889_v13   ;;  %v10957_v24 = vld [vmem:[%s17820_s1 + $0x68] sm:$0xff]  ;;  %v10962_v25 = vld [vmem:[%s17820_s1 + $0x60] sm:$0xff] }
   0xb   :  { %v40_v26 = vld [vmem:[%s17822_s0 + $0x28] sm:$0xff]  ;;  %v10975_v27 = vld [vmem:[%s17820_s1 + $0x78] sm:$0xff]  ;;  %v10980_v28 = vld [vmem:[%s17820_s1 + $0x70] sm:$0xff] }
   0xc   :  { %9146 = vmatmul.mubr.msk.f32.gmra.mrb[2].mxu1 %vm93_vm5, %v36_v14  ;;  %v41_v29 = vld [vmem:[%s17822_s0 + $0x30] sm:$0xff]  ;;  %v10993_v30 = vld [vmem:[%s17820_s1 + $0x88] sm:$0xff]  ;;  %v10998_v31 = vld [vmem:[%s17820_s1 + $0x80] sm:$0xff] }
   0xd   :  { %9148 = vmatprep.mubr.msk.f32.mxu1 %vm10739_vm4, %v17832_v8  ;;  %v42_v32 = vld [vmem:[%s17822_s0 + $0x38] sm:$0xff]  ;;  %v11016_v34 = vld [vmem:[%s17820_s1 + $0x90] sm:$0xff]  ;;  %v43_v35 = vld [vmem:[%s17822_s0 + $0x40] sm:$0xff] }
   0xe   :  { %805 = vperm.xlu1 %10512, %v10903_v15   ;;  %800 = vperm.xlu0 %10511, %v10908_v16   ;;  %v11011_v33 = vld [vmem:[%s17820_s1 + $0x98] sm:$0xff]  ;;  %v11029_v36 = vld [vmem:[%s17820_s1 + $0xa8] sm:$0xff]  ;;  %v11034_v37 = vld [vmem:[%s17820_s1 + $0xa0] sm:$0xff] }
   0xf   :  { %v44_v38 = vld [vmem:[%s17822_s0 + $0x48] sm:$0xff]  ;;  %v11047_v39 = vld [vmem:[%s17820_s1 + $0xb8] sm:$0xff]  ;;  %v11052_v40 = vld [vmem:[%s17820_s1 + $0xb0] sm:$0xff] }
  0x10   :  { %9149 = vmatmul.mubr.msk.f32.gmra.mrb[4].mxu1 %vm93_vm5, %v37_v17  ;;  %v45_v41 = vld [vmem:[%s17822_s0 + $0x50] sm:$0xff]  ;;  %v11065_v42 = vld [vmem:[%s17820_s1 + $0xc8] sm:$0xff]  ;;  %v11070_v43 = vld [vmem:[%s17820_s1 + $0xc0] sm:$0xff] }
  0x11   :  { %9151 = vmatprep.mubr.msk.f32.mxu1 %vm10739_vm4, %v17832_v8  ;;  %v46_v44 = vld [vmem:[%s17822_s0 + $0x58] sm:$0xff]  ;;  %v11088_v46 = vld [vmem:[%s17820_s1 + $0xd0] sm:$0xff]  ;;  %v47_v47 = vld [vmem:[%s17822_s0 + $0x60] sm:$0xff] }
  0x12   :  { %815 = vperm.xlu1 %10512, %v10921_v18   ;;  %810 = vperm.xlu0 %10511, %v10926_v19   ;;  %v11083_v45 = vld [vmem:[%s17820_s1 + $0xd8] sm:$0xff]  ;;  %v11101_v48 = vld [vmem:[%s17820_s1 + $0xe8] sm:$0xff]  ;;  %v11106_v49 = vld [vmem:[%s17820_s1 + $0xe0] sm:$0xff] }
  0x13   :  { %v48_v50 = vld [vmem:[%s17822_s0 + $0x68] sm:$0xff]  ;;  %v11119_v51 = vld [vmem:[%s17820_s1 + $0xf8] sm:$0xff]  ;;  %v11124_v52 = vld [vmem:[%s17820_s1 + $0xf0] sm:$0xff] }
  0x14   :  { %9152 = vmatmul.mubr.msk.f32.gmra.mrb[6].mxu1 %vm93_vm5, %v38_v20  ;;  %v49_v53 = vld [vmem:[%s17822_s0 + $0x70] sm:$0xff]  ;;  %v11137_v54 = vld [vmem:[%s17820_s1 + $0x108] sm:$0xff]  ;;  %v11142_v55 = vld [vmem:[%s17820_s1 + $0x100] sm:$0xff] }
  0x15   :  { %9154 = vmatprep.mubr.msk.f32.mxu1 %vm10739_vm4, %v17832_v8  ;;  %v50_v56 = vld [vmem:[%s17822_s0 + $0x78] sm:$0xff]  ;;  %v11160_v58 = vld [vmem:[%s17820_s1 + $0x110] sm:$0xff]  ;;  %v51_v59 = vld [vmem:[%s17822_s0 + $0x80] sm:$0xff] }
  0x16   :  { %825 = vperm.xlu1 %10512, %v10939_v21   ;;  %820 = vperm.xlu0 %10511, %v10944_v22   ;;  %v11155_v57 = vld [vmem:[%s17820_s1 + $0x118] sm:$0xff]  ;;  %v11173_v60 = vld [vmem:[%s17820_s1 + $0x128] sm:$0xff]  ;;  %v11178_v61 = vld [vmem:[%s17820_s1 + $0x120] sm:$0xff] }
  0x17   :  { %v52_v62 = vld [vmem:[%s17822_s0 + $0x88] sm:$0xff]  ;;  %v11191_v63 = vld [vmem:[%s17820_s1 + $0x138] sm:$0xff]  ;;  %v11196_v0 = vld [vmem:[%s17820_s1 + $0x130] sm:$0xff] }
  0x18   :  { %9155 = vmatmul.mubr.msk.f32.gmra.mrb[8].mxu1 %vm93_vm5, %v39_v23  ;;  %v53_v3 = vld [vmem:[%s17822_s0 + $0x90] sm:$0xff]  ;;  %v11209_v4 = vld [vmem:[%s17820_s1 + $0x148] sm:$0xff]  ;;  %v11214_v5 = vld [vmem:[%s17820_s1 + $0x140] sm:$0xff] }
  0x19   :  { %9157 = vmatprep.mubr.msk.f32.mxu1 %vm10739_vm4, %v17832_v8  ;;  %v54_v7 = vld [vmem:[%s17822_s0 + $0x98] sm:$0xff]  ;;  %v11232_v14 = vld [vmem:[%s17820_s1 + $0x150] sm:$0xff]  ;;  %v55_v17 = vld [vmem:[%s17822_s0 + $0xa0] sm:$0xff] }
  0x1a   :  { %835 = vperm.xlu1 %10512, %v10957_v24   ;;  %830 = vperm.xlu0 %10511, %v10962_v25   ;;  %v11227_v11 = vld [vmem:[%s17820_s1 + $0x158] sm:$0xff]  ;;  %v11245_v20 = vld [vmem:[%s17820_s1 + $0x168] sm:$0xff]  ;;  %v11250_v23 = vld [vmem:[%s17820_s1 + $0x160] sm:$0xff] }
  0x1c   :  { %9158 = vmatmul.mubr.msk.f32.gmra.mrb[10].mxu1 %vm93_vm5, %v40_v26  ;;  %v56_v26 = vld [vmem:[%s17822_s0 + $0xa8] sm:$0xff] }
  0x1d   :  { %9160 = vmatprep.mubr.msk.f32.mxu1 %vm10739_vm4, %v17832_v8 }
  0x1e   :  { %845 = vperm.xlu1 %10512, %v10975_v27   ;;  %840 = vperm.xlu0 %10511, %v10980_v28  }
  0x20   :  { %9161 = vmatmul.mubr.msk.f32.gmra.mrb[12].mxu1 %vm93_vm5, %v41_v29  ;;  %v11263_v29 = vld [vmem:[%s17820_s1 + $0x178] sm:$0xff] }
  0x21   :  { %9163 = vmatprep.mubr.msk.f32.mxu1 %vm10739_vm4, %v17832_v8 }
  0x22   :  { %855 = vperm.xlu1 %10512, %v10993_v30   ;;  %850 = vperm.xlu0 %10511, %v10998_v31  }
  0x24   :  { %9164 = vmatmul.mubr.msk.f32.gmra.mrb[14].mxu1 %vm93_vm5, %v42_v32  ;;  %v11268_v32 = vld [vmem:[%s17820_s1 + $0x170] sm:$0xff] }
  0x25   :  { %9166 = vmatprep.mubr.msk.f32.mxu1 %vm10739_vm4, %v17832_v8 }
  0x26   :  { %865 = vperm.xlu1 %10512, %v11011_v33   ;;  %860 = vperm.xlu0 %10511, %v11016_v34  }
  0x28   :  { %9167 = vmatmul.mubr.msk.f32.gmra.mrb[16].mxu1 %vm93_vm5, %v43_v35  ;;  %v57_v35 = vld [vmem:[%s17822_s0 + $0xb0] sm:$0xff] }
  0x29   :  { %9169 = vmatprep.mubr.msk.f32.mxu1 %vm10739_vm4, %v17832_v8 }
  0x2a   :  { %875 = vperm.xlu1 %10512, %v11029_v36   ;;  %870 = vperm.xlu0 %10511, %v11034_v37  }
  0x2c   :  { %9170 = vmatmul.mubr.msk.f32.gmra.mrb[18].mxu1 %vm93_vm5, %v44_v38  ;;  %v11281_v38 = vld [vmem:[%s17820_s1 + $0x180] sm:$0xff] }
  0x2d   :  { %9172 = vmatprep.mubr.msk.f32.mxu1 %vm10739_vm4, %v17832_v8 }
  0x2e   :  { %885 = vperm.xlu1 %10512, %v11047_v39   ;;  %880 = vperm.xlu0 %10511, %v11052_v40  }
  0x30   :  { %9173 = vmatmul.mubr.msk.f32.gmra.mrb[20].mxu1 %vm93_vm5, %v45_v41  ;;  %v58_v41 = vld [vmem:[%s17822_s0 + $0xb8] sm:$0xff] }
  0x31   :  { %9175 = vmatprep.mubr.msk.f32.mxu1 %vm10739_vm4, %v17832_v8 }
  0x32   :  { %895 = vperm.xlu1 %10512, %v11065_v42   ;;  %890 = vperm.xlu0 %10511, %v11070_v43  }
  0x34   :  { %9176 = vmatmul.mubr.msk.f32.gmra.mrb[22].mxu1 %vm93_vm5, %v46_v44  ;;  %v10741_v44 = vmov 1  }
  0x35   :  { %9178 = vmatprep.mubr.msk.f32.mxu1 %vm10739_vm4, %v17832_v8 }
  0x36   :  { %905 = vperm.xlu1 %10512, %v11083_v45   ;;  %900 = vperm.xlu0 %10511, %v11088_v46  }
  0x38   :  { %9179 = vmatmul.mubr.msk.f32.gmra.mrb[24].mxu1 %vm93_vm5, %v47_v47  ;;  %v59_v47 = vld [vmem:[%s17822_s0 + $0xc0] sm:$0xff] }
  0x39   :  { %9181 = vmatprep.mubr.msk.f32.mxu1 %vm10739_vm4, %v17832_v8 }
  0x3a   :  { %915 = vperm.xlu1 %10512, %v11101_v48   ;;  %910 = vperm.xlu0 %10511, %v11106_v49  }
  0x3c   :  { %9182 = vmatmul.mubr.msk.f32.gmra.mrb[26].mxu1 %vm93_vm5, %v48_v50  ;;  %v60_v50 = vld [vmem:[%s17822_s0 + $0xc8] sm:$0xff] }
  0x3d   :  { %9184 = vmatprep.mubr.msk.f32.mxu1 %vm10739_vm4, %v17832_v8 }
  0x3e   :  { %925 = vperm.xlu1 %10512, %v11119_v51   ;;  %920 = vperm.xlu0 %10511, %v11124_v52  }
  0x40   :  { %9185 = vmatmul.mubr.msk.f32.gmra.mrb[28].mxu1 %vm93_vm5, %v49_v53  ;;  %v62_v53 = vld [vmem:[%s17822_s0 + $0xd8] sm:$0xff] }
  0x41   :  { %9187 = vmatprep.mubr.msk.f32.mxu1 %vm10739_vm4, %v17832_v8 }
  0x42   :  { %935 = vperm.xlu1 %10512, %v11137_v54   ;;  %930 = vperm.xlu0 %10511, %v11142_v55  }
  0x44   :  { %9188 = vmatmul.mubr.msk.f32.gmra.mrb[30].mxu1 %vm93_vm5, %v50_v56  ;;  %v66_v56 = vld [vmem:[%s17822_s0 + $0xf8] sm:$0xff] }
  0x45   :  { %9190 = vmatprep.mubr.msk.f32.mxu1 %vm10739_vm4, %v17832_v8 }
  0x46   :  { %945 = vperm.xlu1 %10512, %v11155_v57   ;;  %940 = vperm.xlu0 %10511, %v11160_v58  }
  0x48   :  { %9191 = vmatmul.mubr.msk.f32.gmra.mrb[32].mxu1 %vm93_vm5, %v51_v59 }
  0x49   :  { %9193 = vmatprep.mubr.msk.f32.mxu1 %vm10739_vm4, %v17832_v8 }
  0x4a   :  { %955 = vperm.xlu1 %10512, %v11173_v60   ;;  %950 = vperm.xlu0 %10511, %v11178_v61  }
  0x4c   :  { %9194 = vmatmul.mubr.msk.f32.gmra.mrb[34].mxu1 %vm93_vm5, %v52_v62 }
  0x4d   :  { %9196 = vmatprep.mubr.msk.f32.mxu1 %vm10739_vm4, %v17832_v8 }
  0x4e   :  { %965 = vperm.xlu1 %10512, %v11191_v63   ;;  %960 = vperm.xlu0 %10511, %v11196_v0  }
  0x50   :  { %9197 = vmatmul.mubr.msk.f32.gmra.mrb[36].mxu1 %vm93_vm5, %v53_v3 }
  0x51   :  { %9199 = vmatprep.mubr.msk.f32.mxu1 %vm10739_vm4, %v17832_v8 }
  0x52   :  { %975 = vperm.xlu1 %10512, %v11209_v4   ;;  %970 = vperm.xlu0 %10511, %v11214_v5  }
  0x54   :  { %9200 = vmatmul.mubr.msk.f32.gmra.mrb[38].mxu1 %vm93_vm5, %v54_v7 }
  0x55   :  { %9202 = vmatprep.mubr.msk.f32.mxu1 %vm10739_vm4, %v17832_v8 }
  0x56   :  { %985 = vperm.xlu1 %10512, %v11227_v11   ;;  %980 = vperm.xlu0 %10511, %v11232_v14  }
  0x58   :  { %9203 = vmatmul.mubr.msk.f32.gmra.mrb[40].mxu1 %vm93_vm5, %v55_v17 }
  0x59   :  { %9205 = vmatprep.mubr.msk.f32.mxu1 %vm10739_vm4, %v17832_v8 }
  0x5a   :  { %995 = vperm.xlu1 %10512, %v11245_v20   ;;  %990 = vperm.xlu0 %10511, %v11250_v23  }
  0x5c   :  { %9206 = vmatmul.mubr.msk.f32.gmra.mrb[42].mxu1 %vm93_vm5, %v56_v26  ;;  %v11374_v26 = vld [vmem:[#allocation2 + $0x28] sm:$0xff] }
  0x5d   :  { %9208 = vmatprep.mubr.msk.f32.mxu1 %vm10739_vm4, %v17832_v8 }
  0x5e   :  { %1005 = vperm.xlu1 %10512, %v11263_v29   ;;  %1000 = vperm.xlu0 %10511, %v11268_v32  }
  0x60   :  { %9209 = vmatmul.mubr.msk.f32.gmra.mrb[44].mxu1 %vm93_vm5, %v57_v35  ;;  %v11376_v35 = vld [vmem:[#allocation2 + $0x20] sm:$0xff] }
  0x61   :  { %9211 = vmatprep.mubr.msk.f32.mxu1 %vm10739_vm4, %v17832_v8 }
  0x62   :  { %10513 = vset.pattern.permute.xlu1 %v10741_v44  ;;  %1010 = vperm.xlu0 %10511, %v11281_v38  }
  0x63   :  { %1211 = vperm.xlu1 %10513, %v10815_v2  }
  0x64   :  { %9212 = vmatmul.mubr.msk.f32.gmra.mrb[46].mxu1 %vm93_vm5, %v58_v41 }
  0x65   :  { %9214 = vmatprep.mubr.msk.f32.mxu1 %vm10739_vm4, %v17832_v8 }
  0x66   :  { %10514 = vset.pattern.permute.xlu0 %v10741_v44 }
  0x67   :  { %1221 = vperm.xlu1 %10513, %v10810_v1   ;;  %1216 = vperm.xlu0 %10514, %v10840_v10   ;;  %v61_v1 = vld [vmem:[%s17822_s0 + $0xd0] sm:$0xff] }
  0x68   :  { %9215 = vmatmul.mubr.msk.f32.gmra.mrb[48].mxu1 %vm93_vm5, %v59_v47 }
  0x69   :  { %9217 = vmatprep.mubr.msk.f32.mxu1 %vm10739_vm4, %v17832_v8 }
  0x6b   :  { %1226 = vperm.xlu1 %10513, %v10835_v9   ;;  %1231 = vperm.xlu0 %10514, %v10889_v13  }
  0x6c   :  { %9218 = vmatmul.mubr.msk.f32.gmra.mrb[50].mxu1 %vm93_vm5, %v60_v50  ;;  %v11390_v50 = vld [vmem:[#allocation2 + $0x38] sm:$0xff] }
  0x6d   :  { %9220 = vmatprep.mubr.msk.f32.mxu1 %vm10739_vm4, %v17832_v8 }
  0x6f   :  { %1236 = vperm.xlu1 %10513, %v10884_v12   ;;  %1241 = vperm.xlu0 %10514, %v10908_v16   ;;  %v63_v16 = vld [vmem:[%s17822_s0 + $0xe0] sm:$0xff] }
  0x70   :  { %9221 = vmatmul.mubr.msk.f32.gmra.mrb[52].mxu1 %vm93_vm5, %v61_v1  ;;  %v11392_v1 = vld [vmem:[#allocation2 + $0x30] sm:$0xff] }
  0x71   :  { %9223 = vmatprep.mubr.msk.f32.mxu1 %vm10739_vm4, %v17832_v8 }
  0x73   :  { %1246 = vperm.xlu1 %10513, %v10903_v15   ;;  %1251 = vperm.xlu0 %10514, %v10926_v19   ;;  %v64_v15 = vld [vmem:[%s17822_s0 + $0xe8] sm:$0xff]  ;;  %v11347_v19 = vld [vmem:[#allocation2 + $0x10] sm:$0xff] }
  0x74   :  { %9224 = vmatmul.mubr.msk.f32.gmra.mrb[54].mxu1 %vm93_vm5, %v62_v53 }
  0x75   :  { %9226 = vmatprep.mubr.msk.f32.mxu1 %vm10739_vm4, %v17832_v8 }
  0x77   :  { %1256 = vperm.xlu1 %10513, %v10921_v18   ;;  %1261 = vperm.xlu0 %10514, %v10944_v22   ;;  %v65_v18 = vld [vmem:[%s17822_s0 + $0xf0] sm:$0xff]  ;;  %v670_v22 = vld [vmem:[#allocation2] sm:$0xff] }
  0x78   :  { %9227 = vmatmul.mubr.msk.f32.gmra.mrb[56].mxu1 %vm93_vm5, %v63_v16 }
  0x79   :  { %9229 = vmatprep.mubr.msk.f32.mxu1 %vm10739_vm4, %v17832_v8 }
  0x7b   :  { %1266 = vperm.xlu1 %10513, %v10939_v21   ;;  %1271 = vperm.xlu0 %10514, %v10962_v25  }
  0x7c   :  { %9230 = vmatmul.mubr.msk.f32.gmra.mrb[58].mxu1 %vm93_vm5, %v64_v15 }
  0x7d   :  { %9232 = vmatprep.mubr.msk.f32.mxu1 %vm10739_vm4, %v17832_v8 }
  0x7f   :  { %1276 = vperm.xlu1 %10513, %v10957_v24   ;;  %1281 = vperm.xlu0 %10514, %v10980_v28   ;;  %v11358_v24 = vld [vmem:[#allocation2 + $0x18] sm:$0xff]  ;;  %v11360_v28 = vld [vmem:[#allocation2 + $0x8] sm:$0xff] }
  0x80   :  { %9233 = vmatmul.mubr.msk.f32.gmra.mrb[60].mxu1 %vm93_vm5, %v65_v18 }
  0x81   :  { %v781_v21 = vpop.permute.xlu1 %780  ;;  %v771_v25 = vpop.permute.xlu0 %770  ;;  %9235 = vmatprep.mubr.msk.f32.mxu1 %vm10739_vm4, %v17832_v8 }
  0x82   :  { %v1015_v59 = vmul.f32 %v781_v21, %v11347_v19  ;;  %v1013_v62 = vmul.f32 %v771_v25, %v670_v22  ;;  %v70_v21 = vld [vmem:[%s17822_s0 + $0x118] sm:$0xff]  ;;  %v71_v25 = vld [vmem:[%s17822_s0 + $0x120] sm:$0xff] }
  0x83   :  { %1286 = vperm.xlu1 %10513, %v10975_v27   ;;  %1291 = vperm.xlu0 %10514, %v10998_v31   ;;  %v67_v27 = vld [vmem:[%s17822_s0 + $0x100] sm:$0xff] }
  0x84   :  { %1064 = vst.msk [vmem:[#allocation3 + $0x30] sm:$0xff] %vm604_vm3, %v1015_v59  ;;  %1062 = vst.msk [vmem:[#allocation3] sm:$0xff] %vm604_vm3, %v1013_v62  ;;  %9236 = vmatmul.mubr.msk.f32.gmra.mrb[62].mxu1 %vm93_vm5, %v66_v56  ;;  %v72_v56 = vld [vmem:[%s17822_s0 + $0x128] sm:$0xff]  ;;  %v73_v59 = vld [vmem:[%s17822_s0 + $0x130] sm:$0xff] }
  0x85   :  { %v786_v3 = vpop.permute.xlu1 %785  ;;  %v776_v7 = vpop.permute.xlu0 %775  ;;  %9238 = vmatprep.mubr.msk.f32.mxu1 %vm10739_vm4, %v17832_v8  ;;  %v74_v62 = vld [vmem:[%s17822_s0 + $0x138] sm:$0xff] }
  0x86   :  { %v1016_v31 = vmul.f32 %v786_v3, %v11358_v24  ;;  %v1014_v17 = vmul.f32 %v776_v7, %v11360_v28  ;;  %v75_v3 = vld [vmem:[%s17822_s0 + $0x140] sm:$0xff]  ;;  %v76_v7 = vld [vmem:[%s17822_s0 + $0x148] sm:$0xff] }
  0x87   :  { %1296 = vperm.xlu1 %10513, %v10993_v30   ;;  %1301 = vperm.xlu0 %10514, %v11016_v34   ;;  %v68_v30 = vld [vmem:[%s17822_s0 + $0x108] sm:$0xff] }
  0x88   :  { %1065 = vst.msk [vmem:[#allocation3 + $0x48] sm:$0xff] %vm604_vm3, %v1016_v31  ;;  %1063 = vst.msk [vmem:[#allocation3 + $0x18] sm:$0xff] %vm604_vm3, %v1014_v17  ;;  %9239 = vmatmul.mubr.msk.f32.gmra.mrb[64].mxu1 %vm93_vm5, %v67_v27 }
  0x89   :  { %v796_v41 = vpop.permute.xlu1 %795  ;;  %v791_v44 = vpop.permute.xlu0 %790  ;;  %9241 = vmatprep.mubr.msk.f32.mxu1 %vm10739_vm4, %v17832_v8 }
  0x8a   :  { %v1018_v34 = vmul.f32 %v796_v41, %v11374_v26  ;;  %v1017_v47 = vmul.f32 %v791_v44, %v11376_v35 }
  0x8b   :  { %1306 = vperm.xlu1 %10513, %v11011_v33   ;;  %1311 = vperm.xlu0 %10514, %v11034_v37   ;;  %v69_v33 = vld [vmem:[%s17822_s0 + $0x110] sm:$0xff] }
  0x8c   :  { %1067 = vst.msk [vmem:[#allocation3 + $0x78] sm:$0xff] %vm604_vm3, %v1018_v34  ;;  %1066 = vst.msk [vmem:[#allocation3 + $0x60] sm:$0xff] %vm604_vm3, %v1017_v47  ;;  %9242 = vmatmul.mubr.msk.f32.gmra.mrb[66].mxu1 %vm93_vm5, %v68_v30 }
  0x8d   :  { %v806_v53 = vpop.permute.xlu1 %805  ;;  %v801_v16 = vpop.permute.xlu0 %800  ;;  %9244 = vmatprep.mubr.msk.f32.mxu1 %vm10739_vm4, %v17832_v8 }
  0x8e   :  { %v1020_v37 = vmul.f32 %v806_v53, %v11390_v50  ;;  %v1019_v15 = vmul.f32 %v801_v16, %v11392_v1  ;;  %v11560_v16 = vld [vmem:[%s17823_s3] ss:$0 sm:$0xff] }
  0x8f   :  { %1316 = vperm.xlu1 %10513, %v11029_v36   ;;  %1321 = vperm.xlu0 %10514, %v11052_v40  }
  0x90   :  { %1069 = vst.msk [vmem:[#allocation3 + $0xa8] sm:$0xff] %vm604_vm3, %v1020_v37  ;;  %1068 = vst.msk [vmem:[#allocation3 + $0x90] sm:$0xff] %vm604_vm3, %v1019_v15  ;;  %9245 = vmatmul.mubr.msk.f32.gmra.mrb[68].mxu1 %vm93_vm5, %v69_v33 }
  0x91   :  { %v11409_v18 = vpop.permute.xlu1 %815  ;;  %v11411_v22 = vpop.permute.xlu0 %810  ;;  %9247 = vmatprep.mubr.msk.f32.mxu1 %vm10739_vm4, %v17832_v8 }
  0x93   :  { %1326 = vperm.xlu1 %10513, %v11047_v39   ;;  %1331 = vperm.xlu0 %10514, %v11070_v43  }
  0x94   :  { %9248 = vmatmul.mubr.msk.f32.gmra.mrb[70].mxu1 %vm93_vm5, %v70_v21 }
  0x95   :  { %v11421_v36 = vpop.permute.xlu1 %825  ;;  %v11423_v40 = vpop.permute.xlu0 %820  ;;  %9250 = vmatprep.mubr.msk.f32.mxu1 %vm10739_vm4, %v17832_v8 }
  0x97   :  { %1336 = vperm.xlu1 %10513, %v11065_v42   ;;  %1341 = vperm.xlu0 %10514, %v11088_v46  }
  0x98   :  { %9251 = vmatmul.mubr.msk.f32.gmra.mrb[72].mxu1 %vm93_vm5, %v71_v25 }
  0x99   :  { %v11433_v39 = vpop.permute.xlu1 %835  ;;  %v11435_v43 = vpop.permute.xlu0 %830  ;;  %9253 = vmatprep.mubr.msk.f32.mxu1 %vm10739_vm4, %v17832_v8 }
  0x9b   :  { %1346 = vperm.xlu1 %10513, %v11083_v45   ;;  %1351 = vperm.xlu0 %10514, %v11106_v49  }
  0x9c   :  { %9254 = vmatmul.mubr.msk.f32.gmra.mrb[74].mxu1 %vm93_vm5, %v72_v56 }
  0x9d   :  { %v11445_v42 = vpop.permute.xlu1 %845  ;;  %v11447_v46 = vpop.permute.xlu0 %840  ;;  %9256 = vmatprep.mubr.msk.f32.mxu1 %vm10739_vm4, %v17832_v8 }
  0x9f   :  { %1356 = vperm.xlu1 %10513, %v11101_v48   ;;  %1361 = vperm.xlu0 %10514, %v11124_v52  }
  0xa0   :  { %9257 = vmatmul.mubr.msk.f32.gmra.mrb[76].mxu1 %vm93_vm5, %v73_v59 }
  0xa1   :  { %v11457_v45 = vpop.permute.xlu1 %855  ;;  %v11459_v49 = vpop.permute.xlu0 %850  ;;  %9259 = vmatprep.mubr.msk.f32.mxu1 %vm10739_vm4, %v17832_v8 }
  0xa3   :  { %1366 = vperm.xlu1 %10513, %v11119_v51   ;;  %1371 = vperm.xlu0 %10514, %v11142_v55  }
  0xa4   :  { %9260 = vmatmul.mubr.msk.f32.gmra.mrb[78].mxu1 %vm93_vm5, %v74_v62 }
  0xa5   :  { %v11469_v48 = vpop.permute.xlu1 %865  ;;  %v11471_v52 = vpop.permute.xlu0 %860  ;;  %9262 = vmatprep.mubr.msk.f32.mxu1 %vm10739_vm4, %v17832_v8 }
  0xa7   :  { %1376 = vperm.xlu1 %10513, %v11137_v54   ;;  %1381 = vperm.xlu0 %10514, %v11160_v58  }
  0xa8   :  { %9263 = vmatmul.mubr.msk.f32.gmra.mrb[80].mxu1 %vm93_vm5, %v75_v3 }
  0xa9   :  { %v11481_v51 = vpop.permute.xlu1 %875  ;;  %v11483_v55 = vpop.permute.xlu0 %870  ;;  %9265 = vmatprep.mubr.msk.f32.mxu1 %vm10739_vm4, %v17832_v8 }
  0xab   :  { %1386 = vperm.xlu1 %10513, %v11155_v57   ;;  %1391 = vperm.xlu0 %10514, %v11178_v61  }
  0xac   :  { %9266 = vmatmul.mubr.msk.f32.gmra.mrb[82].mxu1 %vm93_vm5, %v76_v7 }
  0xad   :  { %v11493_v54 = vpop.permute.xlu1 %885  ;;  %v11495_v58 = vpop.permute.xlu0 %880  ;;  %9268 = vmatprep.mubr.msk.f32.mxu1 %vm10739_vm4, %v17832_v8 }
  0xaf   :  { %1396 = vperm.xlu1 %10513, %v11173_v60   ;;  %1401 = vperm.xlu0 %10514, %v11196_v0  }
  0xb1   :  { %v11501_v27 = vpop.permute.xlu1 %895  ;;  %v11503_v31 = vpop.permute.xlu0 %890 }
  0xb3   :  { %1406 = vperm.xlu1 %10513, %v11191_v63   ;;  %1411 = vperm.xlu0 %10514, %v11214_v5  }
  0xb5   :  { %v11507_v57 = vpop.permute.xlu1 %905  ;;  %v11509_v61 = vpop.permute.xlu0 %900 }
  0xb7   :  { %1416 = vperm.xlu1 %10513, %v11209_v4   ;;  %1421 = vperm.xlu0 %10514, %v11232_v14  }
  0xb9   :  { %v11513_v17 = vpop.permute.xlu1 %915  ;;  %v11515_v60 = vpop.permute.xlu0 %910 }
  0xbb   :  { %1426 = vperm.xlu1 %10513, %v11227_v11   ;;  %1431 = vperm.xlu0 %10514, %v11250_v23   ;;  %v17831_v23 = vmov 2  }
  0xbd   :  { %v11519_v0 = vpop.permute.xlu1 %925  ;;  %v11521_v63 = vpop.permute.xlu0 %920 }
  0xbf   :  { %1436 = vperm.xlu1 %10513, %v11245_v20   ;;  %1441 = vperm.xlu0 %10514, %v11268_v32  }
  0xc1   :  { %v11525_v5 = vpop.permute.xlu1 %935  ;;  %v11527_v4 = vpop.permute.xlu0 %930 }
  0xc3   :  { %1446 = vperm.xlu1 %10513, %v11263_v29   ;;  %1451 = vperm.xlu0 %10514, %v11281_v38  }
  0xc5   :  { %v11531_v14 = vpop.permute.xlu1 %945  ;;  %v11533_v11 = vpop.permute.xlu0 %940 }
  0xc7   :  { %10516 = vset.pattern.permute.xlu1 %v17831_v23  ;;  %10515 = vset.pattern.permute.xlu0 %v17831_v23 }
  0xc9   :  { %v11537_v20 = vpop.permute.xlu1 %955  ;;  %v11539_v32 = vpop.permute.xlu0 %950 }
  0xcd   :  { %v11541_v41 = vpop.permute.xlu1 %965  ;;  %v11543_v44 = vpop.permute.xlu0 %960 }
  0xd1   :  { %v11545_v29 = vpop.permute.xlu1 %975  ;;  %v11547_v38 = vpop.permute.xlu0 %970 }
  0xd5   :  { %v11549_v30 = vpop.permute.xlu1 %985  ;;  %v11551_v34 = vpop.permute.xlu0 %980 }
  0xd9   :  { %v11553_v47 = vpop.permute.xlu1 %995  ;;  %v11555_v53 = vpop.permute.xlu0 %990 }
  0xda   :  { %17870 = vst [vmem:[#allocation6_spill] sm:$0xff] %v11553_v47 }
  0xdb   :  { %v311_v33 = vpop.f32.mrb[0].mxu1 }
  0xdc   :  { %v312_v37 = vadd.f32 %v11560_v16, %v311_v33  ;;  %v9144_v15 = vpop.f32.mrb[1].mxu1 }
  0xdd   :  { %v11563_v21 = vpop.permute.xlu1 %1005  ;;  %v11565_v25 = vpop.permute.xlu0 %1000 }
  0xde   :  { %17871 = vst [vmem:[#allocation7_spill] sm:$0xff] %v11563_v21  ;;  %v555_v56 = vmax.f32 %v312_v37, 0.0 }
  0xdf   :  { %v316_v59 = vpop.f32.mrb[2].mxu1 }
  0xe0   :  { %621 = vst.msk [vmem:[#allocation2 + $0x40] sm:$0xff] %vm604_vm3, %v555_v56  ;;  %v317_v62 = vadd.f32 %v11560_v16, %v316_v59  ;;  %v9147_v3 = vpop.f32.mrb[3].mxu1 }
  0xe1   :  { %v11569_v7 = vpop.permute.xlu0 %1010 }
  0xe2   :  { %17872 = vst [vmem:[#allocation8_spill] sm:$0xff] %v11569_v7  ;;  %v556_v23 = vmax.f32 %v317_v62, 0.0  ;;  %v1212_v8 = vpop.permute.xlu1 %1211 }
  0xe3   :  { %v1454_v6 = vmul.f32 %v1212_v8, %v11360_v28  ;;  %v321_v47 = vpop.f32.mrb[4].mxu1 }
  0xe4   :  { %622 = vst.msk [vmem:[#allocation2 + $0x48] sm:$0xff] %vm604_vm3, %v556_v23  ;;  %v322_v33 = vadd.f32 %v11560_v16, %v321_v47  ;;  %v9150_v15 = vpop.f32.mrb[5].mxu1 }
  0xe5   :  { %1552 = vrot.lane.b32.xlu1 %v1454_v6, %s10743_s12 }
  0xe6   :  { %v557_v37 = vmax.f32 %v322_v33, 0.0  ;;  %v1222_v56 = vpop.permute.xlu1 %1221  ;;  %v1217_v21 = vpop.permute.xlu0 %1216 }
  0xe7   :  { %v1456_v59 = vmul.f32 %v1222_v56, %v11358_v24  ;;  %v1455_v3 = vmul.f32 %v1217_v21, %v11347_v19  ;;  %v326_v62 = vpop.f32.mrb[6].mxu1  ;;  %v11577_v7 = vld [vmem:[#allocation2 + $0x40] sm:$0xff] }
  0xe8   :  { %623 = vst.msk [vmem:[#allocation2 + $0x50] sm:$0xff] %vm604_vm3, %v557_v37  ;;  %v327_v8 = vadd.f32 %v11560_v16, %v326_v62  ;;  %v9153_v28 = vpop.f32.mrb[7].mxu1  ;;  %v1021_v23 = vmul.f32 %v11577_v7, %v11411_v22 }
  0xe9   :  { %1556 = vrot.lane.b32.xlu1 %v1456_v59, %s10743_s12  ;;  %1554 = vrot.lane.b32.xlu0 %v1455_v3, %s10743_s12 }
  0xea   :  { %v558_v6 = vmax.f32 %v327_v8, 0.0  ;;  %v1227_v47 = vpop.permute.xlu1 %1226  ;;  %v1232_v24 = vpop.permute.xlu0 %1231  ;;  %1070 = vst.msk [vmem:[#allocation3 + $0xc0] sm:$0xff] %vm604_vm3, %v1021_v23 }
  0xeb   :  { %v1457_v19 = vmul.f32 %v1227_v47, %v11376_v35  ;;  %v1458_v21 = vmul.f32 %v1232_v24, %v11374_v26  ;;  %v331_v33 = vpop.f32.mrb[8].mxu1  ;;  %v11588_v15 = vld [vmem:[#allocation2 + $0x48] sm:$0xff] }
  0xec   :  { %624 = vst.msk [vmem:[#allocation2 + $0x58] sm:$0xff] %vm604_vm3, %v558_v6  ;;  %v332_v22 = vadd.f32 %v11560_v16, %v331_v33  ;;  %v9156_v37 = vpop.f32.mrb[9].mxu1  ;;  %v1022_v56 = vmul.f32 %v11588_v15, %v11409_v18 }
  0xed   :  { %1558 = vrot.lane.b32.xlu0 %v1457_v19, %s10743_s12  ;;  %1560 = vrot.lane.b32.xlu1 %v1458_v21, %s10743_s12 }
  0xee   :  { %v559_v59 = vmax.f32 %v332_v22, 0.0  ;;  %v1237_v3 = vpop.permute.xlu1 %1236  ;;  %v1242_v35 = vpop.permute.xlu0 %1241  ;;  %1071 = vst.msk [vmem:[#allocation3 + $0xd8] sm:$0xff] %vm604_vm3, %v1022_v56 }
  0xef   :  { %v1459_v26 = vmul.f32 %v1237_v3, %v11392_v1  ;;  %v1460_v62 = vmul.f32 %v1242_v35, %v11390_v50  ;;  %v336_v8 = vpop.f32.mrb[10].mxu1  ;;  %v11599_v28 = vld [vmem:[#allocation2 + $0x50] sm:$0xff] }
  0xf0   :  { %625 = vst.msk [vmem:[#allocation2 + $0x60] sm:$0xff] %vm604_vm3, %v559_v59  ;;  %v337_v18 = vadd.f32 %v11560_v16, %v336_v8  ;;  %v9159_v23 = vpop.f32.mrb[11].mxu1  ;;  %v1023_v6 = vmul.f32 %v11599_v28, %v11423_v40  ;;  %v11625_v59 = vld [vmem:[%s17820_s1 + $0x10] sm:$0xff] }
  0xf1   :  { %1562 = vrot.lane.b32.xlu0 %v1459_v26, %s10743_s12  ;;  %1564 = vrot.lane.b32.xlu1 %v1460_v62, %s10743_s12 }
  0xf2   :  { %v560_v47 = vmax.f32 %v337_v18, 0.0  ;;  %v1247_v24 = vpop.permute.xlu1 %1246  ;;  %v11607_v1 = vpop.permute.xlu0 %1251  ;;  %1072 = vst.msk [vmem:[#allocation3 + $0xf0] sm:$0xff] %vm604_vm3, %v1023_v6 }
  0xf3   :  { %v341_v50 = vpop.f32.mrb[12].mxu1  ;;  %v11610_v19 = vld [vmem:[#allocation2 + $0x58] sm:$0xff] }
  0xf4   :  { %626 = vst.msk [vmem:[#allocation2 + $0x68] sm:$0xff] %vm604_vm3, %v560_v47  ;;  %v342_v21 = vadd.f32 %v11560_v16, %v341_v50  ;;  %v9162_v33 = vpop.f32.mrb[13].mxu1  ;;  %v1024_v40 = vmul.f32 %v11610_v19, %v11421_v36 }
  0xf5   :  { %1849 = vperm.xlu0 %10515, %v10815_v2   ;;  %1854 = vperm.xlu1 %10516, %v10840_v10   ;;  %v1805_v33 = vld [vmem:[%s17820_s1 + $0x38] sm:$0xff] }
  0xf6   :  { %v561_v22 = vmax.f32 %v342_v21, 0.0  ;;  %v11618_v37 = vpop.permute.xlu1 %1256  ;;  %v11620_v56 = vpop.permute.xlu0 %1261  ;;  %1073 = vst.msk [vmem:[#allocation3 + $0x108] sm:$0xff] %vm604_vm3, %v1024_v40  ;;  %v1804_v40 = vld [vmem:[%s17820_s1 + $0x30] sm:$0xff] }
  0xf7   :  { %v346_v3 = vpop.f32.mrb[14].mxu1  ;;  %v11628_v35 = vld [vmem:[#allocation2 + $0x60] sm:$0xff] }
  0xf8   :  { %627 = vst.msk [vmem:[#allocation2 + $0x70] sm:$0xff] %vm604_vm3, %v561_v22  ;;  %v347_v2 = vadd.f32 %v11560_v16, %v346_v3  ;;  %v9165_v10 = vpop.f32.mrb[15].mxu1  ;;  %v1025_v36 = vmul.f32 %v11628_v35, %v11435_v43 }
  0xf9   :  { %1864 = vperm.xlu0 %10515, %v10835_v9   ;;  %1859 = vperm.xlu1 %10516, %v11625_v59  }
  0xfa   :  { %v562_v26 = vmax.f32 %v347_v2, 0.0  ;;  %v11636_v62 = vpop.permute.xlu1 %1266  ;;  %v11638_v8 = vpop.permute.xlu0 %1271  ;;  %1074 = vst.msk [vmem:[#allocation3 + $0x120] sm:$0xff] %vm604_vm3, %v1025_v36 }
  0xfb   :  { %v11641_v18 = vld [vmem:[#allocation2 + $0x68] sm:$0xff]  ;;  %v351_v23 = vpop.f32.mrb[16].mxu1 }
  0xfc   :  { %628 = vst.msk [vmem:[#allocation2 + $0x78] sm:$0xff] %vm604_vm3, %v562_v26  ;;  %v352_v6 = vadd.f32 %v11560_v16, %v351_v23  ;;  %v9168_v47 = vpop.f32.mrb[17].mxu1  ;;  %v1026_v9 = vmul.f32 %v11641_v18, %v11433_v39  ;;  %v11673_v26 = vld [vmem:[%s17820_s1 + $0x40] sm:$0xff]  ;;  %v1461_v23 = vmul.f32 %v1247_v24, %v11577_v7  ;;  %v11692_v7 = vld [vmem:[%s17820_s1 + $0x50] sm:$0xff]  ;;  %v1807_v24 = vld [vmem:[%s17820_s1 + $0x48] sm:$0xff] }
  0xfd   :  { %1874 = vperm.xlu0 %10515, %v10884_v12   ;;  %1869 = vperm.xlu1 %10516, %v10889_v13   ;;  %17873 = vst [vmem:[#allocation9_spill] sm:$0xff] %v11692_v7 }
  0xfe   :  { %v563_v43 = vmax.f32 %v352_v6, 0.0  ;;  %v11649_v50 = vpop.permute.xlu1 %1276  ;;  %v11651_v21 = vpop.permute.xlu0 %1281  ;;  %1075 = vst.msk [vmem:[#allocation3 + $0x138] sm:$0xff] %vm604_vm3, %v1026_v9 }
  0xff   :  { %v11660_v39 = vld [vmem:[#allocation2 + $0x70] sm:$0xff]  ;;  %v356_v12 = vpop.f32.mrb[18].mxu1 }
 0x100   :  { %629 = vst.msk [vmem:[#allocation2 + $0x80] sm:$0xff] %vm604_vm3, %v563_v43  ;;  %v357_v13 = vadd.f32 %v11560_v16, %v356_v12  ;;  %v9171_v22 = vpop.f32.mrb[19].mxu1  ;;  %v1027_v3 = vmul.f32 %v11660_v39, %v11447_v46 }
 0x101   :  { %1884 = vperm.xlu0 %10515, %v1805_v33   ;;  %1879 = vperm.xlu1 %10516, %v1804_v40  }
 0x102   :  { %v564_v2 = vmax.f32 %v357_v13, 0.0  ;;  %v11666_v10 = vpop.permute.xlu1 %1286  ;;  %v11668_v36 = vpop.permute.xlu0 %1291  ;;  %1076 = vst.msk [vmem:[#allocation3 + $0x150] sm:$0xff] %vm604_vm3, %v1027_v3 }
 0x103   :  { %v11677_v6 = vld [vmem:[#allocation2 + $0x78] sm:$0xff]  ;;  %v361_v47 = vpop.f32.mrb[20].mxu1 }
 0x104   :  { %630 = vst.msk [vmem:[#allocation2 + $0x88] sm:$0xff] %vm604_vm3, %v564_v2  ;;  %v362_v46 = vadd.f32 %v11560_v16, %v361_v47  ;;  %v9174_v9 = vpop.f32.mrb[21].mxu1  ;;  %v1028_v43 = vmul.f32 %v11677_v6, %v11445_v42 }
 0x105   :  { %1889 = vperm.xlu1 %10516, %v11673_v26   ;;  %1566 = vrot.lane.b32.xlu0 %v1461_v23, %s10743_s12  ;;  %v1462_v9 = vmul.f32 %v11607_v1, %v11588_v15 }
 0x106   :  { %v565_v33 = vmax.f32 %v362_v46, 0.0  ;;  %v11685_v40 = vpop.permute.xlu1 %1296  ;;  %v11687_v12 = vpop.permute.xlu0 %1301  ;;  %1077 = vst.msk [vmem:[#allocation3 + $0x168] sm:$0xff] %vm604_vm3, %v1028_v43  ;;  %v1463_v43 = vmul.f32 %v11618_v37, %v11599_v28  ;;  %v1810_v28 = vld [vmem:[%s17820_s1 + $0x60] sm:$0xff]  ;;  %v11732_v37 = vld [vmem:[%s17820_s1 + $0x58] sm:$0xff] }
 0x107   :  { %v11698_v42 = vld [vmem:[#allocation2 + $0x80] sm:$0xff]  ;;  %v366_v13 = vpop.f32.mrb[22].mxu1 }
 0x108   :  { %631 = vst.msk [vmem:[#allocation2 + $0x90] sm:$0xff] %vm604_vm3, %v565_v33  ;;  %v367_v22 = vadd.f32 %v11560_v16, %v366_v13  ;;  %v9177_v3 = vpop.f32.mrb[23].mxu1  ;;  %v1029_v2 = vmul.f32 %v11698_v42, %v11459_v49 }
 0x109   :  { %1899 = vperm.xlu1 %10516, %v11692_v7   ;;  %1894 = vperm.xlu0 %10515, %v1807_v24  }
 0x10a   :  { %v566_v23 = vmax.f32 %v367_v22, 0.0  ;;  %v11705_v47 = vpop.permute.xlu1 %1306  ;;  %v11707_v46 = vpop.permute.xlu0 %1311  ;;  %1078 = vst.msk [vmem:[#allocation3 + $0x180] sm:$0xff] %vm604_vm3, %v1029_v2 }
 0x10b   :  { %v11714_v33 = vld [vmem:[#allocation2 + $0x88] sm:$0xff]  ;;  %v371_v13 = vpop.f32.mrb[24].mxu1 }
 0x10c   :  { %632 = vst.msk [vmem:[#allocation2 + $0x98] sm:$0xff] %vm604_vm3, %v566_v23  ;;  %v372_v49 = vadd.f32 %v11560_v16, %v371_v13  ;;  %v9180_v24 = vpop.f32.mrb[25].mxu1  ;;  %v1030_v22 = vmul.f32 %v11714_v33, %v11457_v45 }
 0x10d   :  { %1568 = vrot.lane.b32.xlu1 %v1462_v9, %s10743_s12  ;;  %1570 = vrot.lane.b32.xlu0 %v1463_v43, %s10743_s12 }
 0x10e   :  { %v567_v3 = vmax.f32 %v372_v49, 0.0  ;;  %v11722_v15 = vpop.permute.xlu1 %1316  ;;  %v11724_v1 = vpop.permute.xlu0 %1321  ;;  %1079 = vst.msk [vmem:[#allocation3 + $0x198] sm:$0xff] %vm604_vm3, %v1030_v22  ;;  %v1464_v22 = vmul.f32 %v11620_v56, %v11610_v19 }
 0x10f   :  { %v376_v45 = vpop.f32.mrb[26].mxu1  ;;  %v688_v2 = vld [vmem:[#allocation2 + $0x90] sm:$0xff] }
 0x110   :  { %633 = vst.msk [vmem:[#allocation2 + $0xa0] sm:$0xff] %vm604_vm3, %v567_v3  ;;  %v377_v23 = vadd.f32 %v11560_v16, %v376_v45  ;;  %v9183_v9 = vpop.f32.mrb[27].mxu1  ;;  %v1031_v43 = vmul.f32 %v11471_v52, %v688_v2  ;;  %v1465_v3 = vmul.f32 %v11636_v62, %v11628_v35  ;;  %v1812_v35 = vld [vmem:[%s17820_s1 + $0x70] sm:$0xff]  ;;  %v11766_v62 = vld [vmem:[%s17820_s1 + $0x68] sm:$0xff] }
 0x111   :  { %1909 = vperm.xlu1 %10516, %v1810_v28   ;;  %1904 = vperm.xlu0 %10515, %v11732_v37   ;;  %17874 = vst [vmem:[#allocation10_spill] sm:$0xff] %v11766_v62 }
 0x112   :  { %v568_v13 = vmax.f32 %v377_v23, 0.0  ;;  %v11739_v49 = vpop.permute.xlu1 %1326  ;;  %v11741_v24 = vpop.permute.xlu0 %1331  ;;  %1080 = vst.msk [vmem:[#allocation3 + $0x1b0] sm:$0xff] %vm604_vm3, %v1031_v43 }
 0x113   :  { %v381_v45 = vpop.f32.mrb[28].mxu1  ;;  %v11748_v9 = vld [vmem:[#allocation2 + $0x98] sm:$0xff] }
 0x114   :  { %634 = vst.msk [vmem:[#allocation2 + $0xa8] sm:$0xff] %vm604_vm3, %v568_v13  ;;  %v382_v52 = vadd.f32 %v11560_v16, %v381_v45  ;;  %v9186_v28 = vpop.f32.mrb[29].mxu1  ;;  %v1032_v2 = vmul.f32 %v11748_v9, %v11469_v48 }
 0x115   :  { %1572 = vrot.lane.b32.xlu1 %v1464_v22, %s10743_s12  ;;  %1574 = vrot.lane.b32.xlu0 %v1465_v3, %s10743_s12  ;;  %v1466_v28 = vmul.f32 %v11638_v8, %v11641_v18 }
 0x116   :  { %v569_v23 = vmax.f32 %v382_v52, 0.0  ;;  %v11756_v19 = vpop.permute.xlu1 %1336  ;;  %v11758_v56 = vpop.permute.xlu0 %1341  ;;  %1081 = vst.msk [vmem:[#allocation3 + $0x1c8] sm:$0xff] %vm604_vm3, %v1032_v2  ;;  %v1467_v2 = vmul.f32 %v11649_v50, %v11660_v39  ;;  %v11798_v50 = vld [vmem:[%s17820_s1 + $0x80] sm:$0xff]  ;;  %v11803_v39 = vld [vmem:[%s17820_s1 + $0x78] sm:$0xff] }
 0x117   :  { %v386_v48 = vpop.f32.mrb[30].mxu1  ;;  %v11769_v43 = vld [vmem:[#allocation2 + $0xa0] sm:$0xff]  ;;  %17875 = vst [vmem:[#allocation11_spill] sm:$0xff] %v11798_v50 }
 0x118   :  { %635 = vst.msk [vmem:[#allocation2 + $0xb0] sm:$0xff] %vm604_vm3, %v569_v23  ;;  %v387_v13 = vadd.f32 %v11560_v16, %v386_v48  ;;  %v9189_v22 = vpop.f32.mrb[31].mxu1  ;;  %v1033_v3 = vmul.f32 %v11769_v43, %v11483_v55 }
 0x119   :  { %1919 = vperm.xlu1 %10516, %v1812_v35   ;;  %1914 = vperm.xlu0 %10515, %v11766_v62  }
 0x11a   :  { %v570_v45 = vmax.f32 %v387_v13, 0.0  ;;  %v11776_v52 = vpop.permute.xlu1 %1346  ;;  %1082 = vst.msk [vmem:[#allocation3 + $0x1e0] sm:$0xff] %vm604_vm3, %v1033_v3  ;;  %v11786_v55 = vpop.permute.xlu0 %1351 }
 0x11b   :  { %v391_v23 = vpop.f32.mrb[32].mxu1  ;;  %v11783_v48 = vld [vmem:[#allocation2 + $0xa8] sm:$0xff] }
 0x11c   :  { %636 = vst.msk [vmem:[#allocation2 + $0xb8] sm:$0xff] %vm604_vm3, %v570_v45  ;;  %v392_v35 = vadd.f32 %v11560_v16, %v391_v23  ;;  %v9192_v13 = vpop.f32.mrb[33].mxu1  ;;  %v1034_v22 = vmul.f32 %v11783_v48, %v11481_v51 }
 0x11d   :  { %1576 = vrot.lane.b32.xlu1 %v1466_v28, %s10743_s12  ;;  %1578 = vrot.lane.b32.xlu0 %v1467_v2, %s10743_s12  ;;  %v1468_v13 = vmul.f32 %v11651_v21, %v11677_v6  ;;  %v1815_v6 = vld [vmem:[%s17820_s1 + $0x88] sm:$0xff] }
 0x11e   :  { %v571_v8 = vmax.f32 %v392_v35, 0.0  ;;  %v11793_v18 = vpop.permute.xlu1 %1356  ;;  %1083 = vst.msk [vmem:[#allocation3 + $0x1f8] sm:$0xff] %vm604_vm3, %v1034_v22  ;;  %v11814_v23 = vpop.permute.xlu0 %1361  ;;  %v1469_v22 = vmul.f32 %v11666_v10, %v11698_v42  ;;  %v1816_v10 = vld [vmem:[%s17820_s1 + $0x90] sm:$0xff] }
 0x11f   :  { %v396_v51 = vpop.f32.mrb[34].mxu1  ;;  %v11806_v3 = vld [vmem:[#allocation2 + $0xb0] sm:$0xff] }
 0x120   :  { %637 = vst.msk [vmem:[#allocation2 + $0xc0] sm:$0xff] %vm604_vm3, %v571_v8  ;;  %v397_v45 = vadd.f32 %v11560_v16, %v396_v51  ;;  %v9195_v28 = vpop.f32.mrb[35].mxu1  ;;  %v1035_v2 = vmul.f32 %v11806_v3, %v11495_v58 }
 0x121   :  { %1929 = vperm.xlu1 %10516, %v11798_v50   ;;  %1924 = vperm.xlu0 %10515, %v11803_v39  }
 0x122   :  { %v572_v35 = vmax.f32 %v397_v45, 0.0  ;;  %1084 = vst.msk [vmem:[#allocation3 + $0x210] sm:$0xff] %vm604_vm3, %v1035_v2  ;;  %v11821_v8 = vpop.permute.xlu1 %1366  ;;  %v1128_v2 = vld [vmem:[#allocation2 + $0x90] sm:$0xff] }
 0x123   :  { %v401_v51 = vpop.f32.mrb[36].mxu1  ;;  %v11823_v28 = vld [vmem:[#allocation2 + $0xb8] sm:$0xff]  ;;  %v1471_v62 = vmul.f32 %v11685_v40, %v1128_v2  ;;  %v1818_v40 = vld [vmem:[%s17820_s1 + $0xa0] sm:$0xff] }
 0x124   :  { %638 = vst.msk [vmem:[#allocation2 + $0xc8] sm:$0xff] %vm604_vm3, %v572_v35  ;;  %v402_v58 = vadd.f32 %v11560_v16, %v401_v51  ;;  %v9198_v50 = vpop.f32.mrb[37].mxu1  ;;  %v1036_v45 = vmul.f32 %v11823_v28, %v11493_v54  ;;  %v11840_v54 = vpop.permute.xlu0 %1371 }
 0x125   :  { %1580 = vrot.lane.b32.xlu1 %v1468_v13, %s10743_s12  ;;  %1582 = vrot.lane.b32.xlu0 %v1469_v22, %s10743_s12 }
 0x126   :  { %v573_v21 = vmax.f32 %v402_v58, 0.0  ;;  %1085 = vst.msk [vmem:[#allocation3 + $0x228] sm:$0xff] %vm604_vm3, %v1036_v45  ;;  %v11846_v51 = vpop.permute.xlu1 %1376  ;;  %v1470_v45 = vmul.f32 %v11668_v36, %v11714_v33  ;;  %v1817_v33 = vld [vmem:[%s17820_s1 + $0x98] sm:$0xff] }
 0x127   :  { %v406_v42 = vpop.f32.mrb[38].mxu1  ;;  %v11838_v50 = vld [vmem:[#allocation2 + $0xc0] sm:$0xff] }
 0x128   :  { %639 = vst.msk [vmem:[#allocation2 + $0xd0] sm:$0xff] %vm604_vm3, %v573_v21  ;;  %v407_v35 = vadd.f32 %v11560_v16, %v406_v42  ;;  %v9201_v13 = vpop.f32.mrb[39].mxu1  ;;  %v1037_v22 = vmul.f32 %v11838_v50, %v11503_v31 }
 0x129   :  { %1939 = vperm.xlu1 %10516, %v1816_v10   ;;  %1934 = vperm.xlu0 %10515, %v1815_v6   ;;  %v11860_v6 = vpop.permute.xlu0 %1381 }
 0x12a   :  { %v574_v58 = vmax.f32 %v407_v35, 0.0  ;;  %1086 = vst.msk [vmem:[#allocation3 + $0x240] sm:$0xff] %vm604_vm3, %v1037_v22 }
 0x12b   :  { %v411_v7 = vpop.f32.mrb[40].mxu1  ;;  %v11852_v21 = vld [vmem:[#allocation2 + $0xc8] sm:$0xff] }
 0x12c   :  { %640 = vst.msk [vmem:[#allocation2 + $0xd8] sm:$0xff] %vm604_vm3, %v574_v58  ;;  %v412_v42 = vadd.f32 %v11560_v16, %v411_v7  ;;  %v9204_v31 = vpop.f32.mrb[41].mxu1  ;;  %v1038_v10 = vmul.f32 %v11852_v21, %v11501_v27  ;;  %v11869_v7 = vpop.permute.xlu1 %1386 }
 0x12d   :  { %1584 = vrot.lane.b32.xlu1 %v1470_v45, %s10743_s12  ;;  %1586 = vrot.lane.b32.xlu0 %v1471_v62, %s10743_s12  ;;  %v1472_v45 = vmul.f32 %v11687_v12, %v11748_v9  ;;  %v1819_v9 = vld [vmem:[%s17820_s1 + $0xa8] sm:$0xff] }
 0x12e   :  { %v575_v36 = vmax.f32 %v412_v42, 0.0  ;;  %1087 = vst.msk [vmem:[#allocation3 + $0x258] sm:$0xff] %vm604_vm3, %v1038_v10  ;;  %v1473_v42 = vmul.f32 %v11705_v47, %v11769_v43  ;;  %v11884_v10 = vpop.permute.xlu0 %1391  ;;  %v1820_v47 = vld [vmem:[%s17820_s1 + $0xb0] sm:$0xff] }
 0x12f   :  { %v416_v27 = vpop.f32.mrb[42].mxu1  ;;  %v11871_v2 = vld [vmem:[#allocation2 + $0xd0] sm:$0xff] }
 0x130   :  { %641 = vst.msk [vmem:[#allocation2 + $0xe0] sm:$0xff] %vm604_vm3, %v575_v36  ;;  %v417_v62 = vadd.f32 %v11560_v16, %v416_v27  ;;  %v9207_v35 = vpop.f32.mrb[43].mxu1  ;;  %v1039_v13 = vmul.f32 %v11871_v2, %v11509_v61 }
 0x131   :  { %1949 = vperm.xlu1 %10516, %v1818_v40   ;;  %1944 = vperm.xlu0 %10515, %v1817_v33   ;;  %v11890_v33 = vpop.permute.xlu1 %1396 }
 0x132   :  { %v576_v22 = vmax.f32 %v417_v62, 0.0  ;;  %1088 = vst.msk [vmem:[#allocation3 + $0x270] sm:$0xff] %vm604_vm3, %v1039_v13  ;;  %v11907_v13 = vpop.permute.xlu0 %1401 }
 0x133   :  { %v421_v58 = vpop.f32.mrb[44].mxu1  ;;  %v11882_v31 = vld [vmem:[#allocation2 + $0xd8] sm:$0xff] }
 0x134   :  { %642 = vst.msk [vmem:[#allocation2 + $0xe8] sm:$0xff] %vm604_vm3, %v576_v22  ;;  %v422_v61 = vadd.f32 %v11560_v16, %v421_v58  ;;  %v9210_v36 = vpop.f32.mrb[45].mxu1  ;;  %v1040_v40 = vmul.f32 %v11882_v31, %v11507_v57 }
 0x135   :  { %1588 = vrot.lane.b32.xlu1 %v1472_v45, %s10743_s12  ;;  %1590 = vrot.lane.b32.xlu0 %v1473_v42, %s10743_s12  ;;  %v11910_v58 = vpop.permute.xlu1 %1406  ;;  %v1474_v42 = vmul.f32 %v11707_v46, %v11783_v48  ;;  %v1822_v46 = vld [vmem:[%s17820_s1 + $0xc0] sm:$0xff] }
 0x136   :  { %v577_v12 = vmax.f32 %v422_v61, 0.0  ;;  %1089 = vst.msk [vmem:[#allocation3 + $0x288] sm:$0xff] %vm604_vm3, %v1040_v40  ;;  %v1475_v61 = vmul.f32 %v11722_v15, %v11806_v3  ;;  %v1821_v15 = vld [vmem:[%s17820_s1 + $0xb8] sm:$0xff] }
 0x137   :  { %v426_v43 = vpop.f32.mrb[46].mxu1  ;;  %v11901_v27 = vld [vmem:[#allocation2 + $0xe0] sm:$0xff] }
 0x138   :  { %643 = vst.msk [vmem:[#allocation2 + $0xf0] sm:$0xff] %vm604_vm3, %v577_v12  ;;  %v427_v57 = vadd.f32 %v11560_v16, %v426_v43  ;;  %v9213_v62 = vpop.f32.mrb[47].mxu1  ;;  %v1041_v35 = vmul.f32 %v11901_v27, %v11515_v60 }
 0x139   :  { %1959 = vperm.xlu1 %10516, %v1820_v47   ;;  %1954 = vperm.xlu0 %10515, %v1819_v9   ;;  %v11933_v9 = vpop.permute.xlu0 %1411  ;;  %v11939_v62 = vpop.permute.xlu1 %1416 }
 0x13a   :  { %v578_v22 = vmax.f32 %v427_v57, 0.0  ;;  %1090 = vst.msk [vmem:[#allocation3 + $0x2a0] sm:$0xff] %vm604_vm3, %v1041_v35 }
 0x13b   :  { %v431_v45 = vpop.f32.mrb[48].mxu1  ;;  %v11916_v36 = vld [vmem:[#allocation2 + $0xe8] sm:$0xff] }
 0x13c   :  { %644 = vst.msk [vmem:[#allocation2 + $0xf8] sm:$0xff] %vm604_vm3, %v578_v22  ;;  %v432_v60 = vadd.f32 %v11560_v16, %v431_v45  ;;  %v9216_v40 = vpop.f32.mrb[49].mxu1  ;;  %v1042_v12 = vmul.f32 %v11916_v36, %v11513_v17  ;;  %v1476_v45 = vmul.f32 %v11724_v1, %v11823_v28  ;;  %v1823_v28 = vld [vmem:[%s17820_s1 + $0xc8] sm:$0xff] }
 0x13d   :  { %1592 = vrot.lane.b32.xlu1 %v1474_v42, %s10743_s12  ;;  %1594 = vrot.lane.b32.xlu0 %v1475_v61, %s10743_s12  ;;  %v1477_v42 = vmul.f32 %v11739_v49, %v11838_v50  ;;  %v1824_v49 = vld [vmem:[%s17820_s1 + $0xd0] sm:$0xff]  ;;  %v11963_v50 = vpop.permute.xlu1 %1426 }
 0x13e   :  { %v579_v47 = vmax.f32 %v432_v60, 0.0  ;;  %1091 = vst.msk [vmem:[#allocation3 + $0x2b8] sm:$0xff] %vm604_vm3, %v1042_v12  ;;  %v11954_v12 = vpop.permute.xlu0 %1421 }
 0x13f   :  { %v436_v48 = vpop.f32.mrb[50].mxu1  ;;  %v11931_v3 = vld [vmem:[#allocation2 + $0xf0] sm:$0xff] }
 0x140   :  { %645 = vst.msk [vmem:[#allocation2 + $0x100] sm:$0xff] %vm604_vm3, %v579_v47  ;;  %v437_v17 = vadd.f32 %v11560_v16, %v436_v48  ;;  %v9219_v43 = vpop.f32.mrb[51].mxu1  ;;  %v1043_v57 = vmul.f32 %v11931_v3, %v11521_v63 }
 0x141   :  { %1969 = vperm.xlu1 %10516, %v1822_v46   ;;  %1964 = vperm.xlu0 %10515, %v1821_v15  }
 0x142   :  { %v580_v35 = vmax.f32 %v437_v17, 0.0  ;;  %1092 = vst.msk [vmem:[#allocation3 + $0x2d0] sm:$0xff] %vm604_vm3, %v1043_v57  ;;  %v1478_v57 = vmul.f32 %v11741_v24, %v11852_v21  ;;  %v1825_v21 = vld [vmem:[%s17820_s1 + $0xd8] sm:$0xff] }
 0x143   :  { %v441_v22 = vpop.f32.mrb[52].mxu1  ;;  %v11946_v61 = vld [vmem:[#allocation2 + $0xf8] sm:$0xff] }
 0x144   :  { %646 = vst.msk [vmem:[#allocation2 + $0x108] sm:$0xff] %vm604_vm3, %v580_v35  ;;  %v442_v63 = vadd.f32 %v11560_v16, %v441_v22  ;;  %v9222_v60 = vpop.f32.mrb[53].mxu1  ;;  %v1044_v40 = vmul.f32 %v11946_v61, %v11519_v0  ;;  %v1479_v35 = vmul.f32 %v11756_v19, %v11871_v2  ;;  %v1826_v19 = vld [vmem:[%s17820_s1 + $0xe0] sm:$0xff] }
 0x145   :  { %1596 = vrot.lane.b32.xlu1 %v1476_v45, %s10743_s12  ;;  %1598 = vrot.lane.b32.xlu0 %v1477_v42, %s10743_s12  ;;  %v11978_v45 = vpop.permute.xlu0 %1431  ;;  %v11984_v60 = vpop.permute.xlu1 %1436 }
 0x146   :  { %v581_v1 = vmax.f32 %v442_v63, 0.0  ;;  %1093 = vst.msk [vmem:[#allocation3 + $0x2e8] sm:$0xff] %vm604_vm3, %v1044_v40 }
 0x147   :  { %v446_v0 = vpop.f32.mrb[54].mxu1  ;;  %v11965_v47 = vld [vmem:[#allocation2 + $0x100] sm:$0xff] }
 0x148   :  { %647 = vst.msk [vmem:[#allocation2 + $0x110] sm:$0xff] %vm604_vm3, %v581_v1  ;;  %v447_v46 = vadd.f32 %v11560_v16, %v446_v0  ;;  %v9225_v15 = vpop.f32.mrb[55].mxu1  ;;  %v1045_v48 = vmul.f32 %v11965_v47, %v11527_v4 }
 0x149   :  { %1979 = vperm.xlu1 %10516, %v1824_v49   ;;  %1974 = vperm.xlu0 %10515, %v1823_v28   ;;  %v12001_v28 = vpop.permute.xlu0 %1441 }
 0x14a   :  { %v582_v17 = vmax.f32 %v447_v46, 0.0  ;;  %1094 = vst.msk [vmem:[#allocation3 + $0x300] sm:$0xff] %vm604_vm3, %v1045_v48  ;;  %v12004_v46 = vpop.permute.xlu1 %1446  ;;  %v1480_v48 = vmul.f32 %v11758_v56, %v11882_v31  ;;  %v1828_v56 = vld [vmem:[%s17820_s1 + $0xf0] sm:$0xff] }
 0x14b   :  { %v451_v43 = vpop.f32.mrb[56].mxu1  ;;  %v11976_v22 = vld [vmem:[#allocation2 + $0x108] sm:$0xff] }
 0x14c   :  { %648 = vst.msk [vmem:[#allocation2 + $0x118] sm:$0xff] %vm604_vm3, %v582_v17  ;;  %v452_v4 = vadd.f32 %v11560_v16, %v451_v43  ;;  %v9228_v42 = vpop.f32.mrb[57].mxu1  ;;  %v1046_v63 = vmul.f32 %v11976_v22, %v11525_v5  ;;  %v1481_v17 = vmul.f32 %v11776_v52, %v11901_v27  ;;  %v1827_v52 = vld [vmem:[%s17820_s1 + $0xe8] sm:$0xff] }
 0x14d   :  { %1600 = vrot.lane.b32.xlu1 %v1478_v57, %s10743_s12  ;;  %1602 = vrot.lane.b32.xlu0 %v1479_v35, %s10743_s12 }
 0x14e   :  { %v583_v24 = vmax.f32 %v452_v4, 0.0  ;;  %1095 = vst.msk [vmem:[#allocation3 + $0x318] sm:$0xff] %vm604_vm3, %v1046_v63 }
 0x14f   :  { %v456_v2 = vpop.f32.mrb[58].mxu1  ;;  %v11995_v40 = vld [vmem:[#allocation2 + $0x110] sm:$0xff] }
 0x150   :  { %649 = vst.msk [vmem:[#allocation2 + $0x120] sm:$0xff] %vm604_vm3, %v583_v24  ;;  %v457_v5 = vadd.f32 %v11560_v16, %v456_v2  ;;  %v9231_v1 = vpop.f32.mrb[59].mxu1  ;;  %v1047_v49 = vmul.f32 %v11995_v40, %v11533_v11 }
 0x151   :  { %1989 = vperm.xlu1 %10516, %v1826_v19   ;;  %1984 = vperm.xlu0 %10515, %v1825_v21   ;;  %v1482_v1 = vmul.f32 %v11786_v55, %v11916_v36  ;;  %v1829_v36 = vld [vmem:[%s17820_s1 + $0xf8] sm:$0xff] }
 0x152   :  { %v584_v0 = vmax.f32 %v457_v5, 0.0  ;;  %1096 = vst.msk [vmem:[#allocation3 + $0x330] sm:$0xff] %vm604_vm3, %v1047_v49  ;;  %v1483_v49 = vmul.f32 %v11793_v18, %v11931_v3  ;;  %v1830_v18 = vld [vmem:[%s17820_s1 + $0x100] sm:$0xff] }
 0x153   :  { %v461_v15 = vpop.f32.mrb[60].mxu1  ;;  %v12010_v43 = vld [vmem:[#allocation2 + $0x118] sm:$0xff] }
 0x154   :  { %650 = vst.msk [vmem:[#allocation2 + $0x128] sm:$0xff] %vm604_vm3, %v584_v0  ;;  %v462_v11 = vadd.f32 %v11560_v16, %v461_v15  ;;  %v9234_v57 = vpop.f32.mrb[61].mxu1  ;;  %v1048_v35 = vmul.f32 %v12010_v43, %v11531_v14  ;;  %v12027_v14 = vpop.permute.xlu0 %1451 }
 0x155   :  { %1604 = vrot.lane.b32.xlu1 %v1480_v48, %s10743_s12  ;;  %1606 = vrot.lane.b32.xlu0 %v1481_v17, %s10743_s12 }
 0x156   :  { %v585_v4 = vmax.f32 %v462_v11, 0.0  ;;  %1097 = vst.msk [vmem:[#allocation3 + $0x348] sm:$0xff] %vm604_vm3, %v1048_v35 }
 0x157   :  { %v466_v31 = vpop.f32.mrb[62].mxu1  ;;  %v1553_v27 = vpop.permute.xlu1 %1552  ;;  %v12025_v42 = vld [vmem:[#allocation2 + $0x120] sm:$0xff] }
 0x158   :  { %651 = vst.msk [vmem:[#allocation2 + $0x130] sm:$0xff] %vm604_vm3, %v585_v4  ;;  %v467_v63 = vadd.f32 %v11560_v16, %v466_v31  ;;  %v9237_v24 = vpop.f32.mrb[63].mxu1  ;;  %v1049_v19 = vmul.f32 %v12025_v42, %v11539_v32 }
 0x159   :  { %1700 = vst.msk [vmem:[#allocation3] sm:$0xff] %vm1699_vm6, %v1553_v27  ;;  %1999 = vperm.xlu1 %10516, %v1828_v56   ;;  %1994 = vperm.xlu0 %10515, %v1827_v52   ;;  %v1485_v24 = vmul.f32 %v11821_v8, %v11965_v47  ;;  %v1832_v8 = vld [vmem:[%s17820_s1 + $0x110] sm:$0xff] }
 0x15a   :  { %v586_v21 = vmax.f32 %v467_v63, 0.0  ;;  %1098 = vst.msk [vmem:[#allocation3 + $0x360] sm:$0xff] %vm604_vm3, %v1049_v19  ;;  %v1484_v63 = vmul.f32 %v11814_v23, %v11946_v61  ;;  %v17845_v61 = vmov 6  }
 0x15b   :  { %v471_v2 = vpop.f32.mrb[64].mxu1  ;;  %v1557_v5 = vpop.permute.xlu1 %1556  ;;  %v12039_v0 = vld [vmem:[#allocation2 + $0x128] sm:$0xff] }
 0x15c   :  { %652 = vst.msk [vmem:[#allocation2 + $0x138] sm:$0xff] %vm604_vm3, %v586_v21  ;;  %v472_v15 = vadd.f32 %v11560_v16, %v471_v2  ;;  %v1555_v32 = vpop.permute.xlu0 %1554  ;;  %v9240_v48 = vpop.f32.mrb[65].mxu1  ;;  %v1050_v17 = vmul.f32 %v12039_v0, %v11537_v20 }
 0x15d   :  { %1702 = vst.msk [vmem:[#allocation3 + $0x30] sm:$0xff] %vm1699_vm6, %v1557_v5  ;;  %1701 = vst.msk [vmem:[#allocation3 + $0x18] sm:$0xff] %vm1699_vm6, %v1555_v32  ;;  %1608 = vrot.lane.b32.xlu1 %v1482_v1, %s10743_s12  ;;  %1610 = vrot.lane.b32.xlu0 %v1483_v49, %s10743_s12 }
 0x15e   :  { %v587_v55 = vmax.f32 %v472_v15, 0.0  ;;  %1099 = vst.msk [vmem:[#allocation3 + $0x378] sm:$0xff] %vm604_vm3, %v1050_v17 }
 0x15f   :  { %v476_v3 = vpop.f32.mrb[66].mxu1  ;;  %v1561_v11 = vpop.permute.xlu1 %1560  ;;  %v1148_v20 = vld [vmem:[#allocation2 + $0x130] sm:$0xff] }
 0x160   :  { %653 = vst.msk [vmem:[#allocation2 + $0x140] sm:$0xff] %vm604_vm3, %v587_v55  ;;  %v477_v57 = vadd.f32 %v11560_v16, %v476_v3  ;;  %v1559_v35 = vpop.permute.xlu0 %1558  ;;  %v9243_v4 = vpop.f32.mrb[67].mxu1  ;;  %v1051_v56 = vmul.f32 %v1148_v20, %v11543_v44  ;;  %v1486_v55 = vmul.f32 %v11840_v54, %v11976_v22  ;;  %v1834_v54 = vld [vmem:[%s17820_s1 + $0x120] sm:$0xff]  ;;  %v1491_v22 = vmul.f32 %v11890_v33, %v1148_v20 }
 0x161   :  { %1704 = vst.msk [vmem:[#allocation3 + $0x60] sm:$0xff] %vm1699_vm6, %v1561_v11  ;;  %1703 = vst.msk [vmem:[#allocation3 + $0x48] sm:$0xff] %vm1699_vm6, %v1559_v35  ;;  %2009 = vperm.xlu1 %10516, %v1830_v18   ;;  %2004 = vperm.xlu0 %10515, %v1829_v36  }
 0x162   :  { %v588_v52 = vmax.f32 %v477_v57, 0.0  ;;  %1100 = vst.msk [vmem:[#allocation3 + $0x390] sm:$0xff] %vm604_vm3, %v1051_v56  ;;  %v1488_v56 = vmul.f32 %v11860_v6, %v12010_v43 }
 0x163   :  { %v481_v31 = vpop.f32.mrb[68].mxu1  ;;  %v1565_v27 = vpop.permute.xlu1 %1564  ;;  %v12066_v19 = vld [vmem:[#allocation2 + $0x138] sm:$0xff] }
 0x164   :  { %654 = vst.msk [vmem:[#allocation2 + $0x148] sm:$0xff] %vm604_vm3, %v588_v52  ;;  %v482_v44 = vadd.f32 %v11560_v16, %v481_v31  ;;  %v1563_v21 = vpop.permute.xlu0 %1562  ;;  %v9246_v2 = vpop.f32.mrb[69].mxu1  ;;  %v1052_v5 = vmul.f32 %v12066_v19, %v11541_v41  ;;  %v1487_v41 = vmul.f32 %v11846_v51, %v11995_v40  ;;  %v1489_v51 = vmul.f32 %v11869_v7, %v12025_v42 }
 0x165   :  { %1706 = vst.msk [vmem:[#allocation3 + $0x90] sm:$0xff] %vm1699_vm6, %v1565_v27  ;;  %1705 = vst.msk [vmem:[#allocation3 + $0x78] sm:$0xff] %vm1699_vm6, %v1563_v21  ;;  %1612 = vrot.lane.b32.xlu1 %v1484_v63, %s10743_s12  ;;  %1614 = vrot.lane.b32.xlu0 %v1485_v24, %s10743_s12 }
 0x166   :  { %v589_v23 = vmax.f32 %v482_v44, 0.0  ;;  %10523 = vset.pattern.permute.xlu0 %v17845_v61  ;;  %1101 = vst.msk [vmem:[#allocation3 + $0x3a8] sm:$0xff] %vm604_vm3, %v1052_v5 }
 0x167   :  { %v486_v47 = vpop.f32.mrb[70].mxu1  ;;  %v1150_v1 = vld [vmem:[#allocation2 + $0x140] sm:$0xff] }
 0x168   :  { %655 = vst.msk [vmem:[#allocation2 + $0x150] sm:$0xff] %vm604_vm3, %v589_v23  ;;  %v487_v49 = vadd.f32 %v11560_v16, %v486_v47  ;;  %v9249_v15 = vpop.f32.mrb[71].mxu1  ;;  %v1053_v32 = vmul.f32 %v1150_v1, %v11547_v38  ;;  %v1493_v33 = vmul.f32 %v11910_v58, %v1150_v1  ;;  %v1836_v58 = vld [vmem:[%s17820_s1 + $0x130] sm:$0xff]  ;;  %v1490_v47 = vmul.f32 %v11884_v10, %v12039_v0 }
 0x169   :  { %2019 = vperm.xlu1 %10516, %v1832_v8   ;;  %1618 = vrot.lane.b32.xlu0 %v1487_v41, %s10743_s12 }
 0x16a   :  { %v590_v48 = vmax.f32 %v487_v49, 0.0  ;;  %1102 = vst.msk [vmem:[#allocation3 + $0x3c0] sm:$0xff] %vm604_vm3, %v1053_v32  ;;  %v17876_v32 = vld [vmem:[#allocation6_spill] sm:$0xff] }
 0x16b   :  { %v491_v17 = vpop.f32.mrb[72].mxu1  ;;  %v12092_v40 = vld [vmem:[#allocation2 + $0x148] sm:$0xff] }
 0x16c   :  { %656 = vst.msk [vmem:[#allocation2 + $0x158] sm:$0xff] %vm604_vm3, %v590_v48  ;;  %v492_v18 = vadd.f32 %v11560_v16, %v491_v17  ;;  %v9252_v38 = vpop.f32.mrb[73].mxu1  ;;  %v1054_v36 = vmul.f32 %v12092_v40, %v11545_v29 }
 0x16d   :  { %1616 = vrot.lane.b32.xlu1 %v1486_v55, %s10743_s12  ;;  %1622 = vrot.lane.b32.xlu0 %v1489_v51, %s10743_s12 }
 0x16e   :  { %v591_v3 = vmax.f32 %v492_v18, 0.0  ;;  %1103 = vst.msk [vmem:[#allocation3 + $0x3d8] sm:$0xff] %vm604_vm3, %v1054_v36 }
 0x16f   :  { %v496_v7 = vpop.f32.mrb[74].mxu1  ;;  %v1152_v42 = vld [vmem:[#allocation2 + $0x150] sm:$0xff] }
 0x170   :  { %657 = vst.msk [vmem:[#allocation2 + $0x160] sm:$0xff] %vm604_vm3, %v591_v3  ;;  %v497_v11 = vadd.f32 %v11560_v16, %v496_v7  ;;  %v9255_v29 = vpop.f32.mrb[75].mxu1  ;;  %v1055_v57 = vmul.f32 %v1152_v42, %v11551_v34  ;;  %v1495_v63 = vmul.f32 %v11939_v62, %v1152_v42 }
 0x171   :  { %2029 = vperm.xlu1 %10516, %v1834_v54   ;;  %1626 = vrot.lane.b32.xlu0 %v1491_v22, %s10743_s12  ;;  %v1492_v22 = vmul.f32 %v11907_v13, %v12066_v19 }
 0x172   :  { %v592_v35 = vmax.f32 %v497_v11, 0.0  ;;  %1104 = vst.msk [vmem:[#allocation3 + $0x3f0] sm:$0xff] %vm604_vm3, %v1055_v57  ;;  %v17878_v57 = vld [vmem:[#allocation7_spill] sm:$0xff] }
 0x173   :  { %v501_v4 = vpop.f32.mrb[76].mxu1  ;;  %v12113_v20 = vld [vmem:[#allocation2 + $0x158] sm:$0xff] }
 0x174   :  { %658 = vst.msk [vmem:[#allocation2 + $0x168] sm:$0xff] %vm604_vm3, %v592_v35  ;;  %v502_v52 = vadd.f32 %v11560_v16, %v501_v4  ;;  %v12117_v31 = vpop.permute.xlu1 %1854  ;;  %v12119_v34 = vpop.permute.xlu0 %1849  ;;  %v1056_v27 = vmul.f32 %v12113_v20, %v11549_v30  ;;  %v10669_v30 = vld [vmem:[%s17823_s3] ss:$0 sm:$0xff] }
 0x175   :  { %1620 = vrot.lane.b32.xlu1 %v1488_v56, %s10743_s12  ;;  %1630 = vrot.lane.b32.xlu0 %v1493_v33, %s10743_s12  ;;  %v9258_v6 = vpop.f32.mrb[77].mxu1  ;;  %v17881_v56 = vld [vmem:[#allocation8_spill] sm:$0xff] }
 0x176   :  { %v593_v43 = vmax.f32 %v502_v52, 0.0  ;;  %1105 = vst.msk [vmem:[#allocation3 + $0x408] sm:$0xff] %vm604_vm3, %v1056_v27  ;;  %v1494_v52 = vmul.f32 %v11933_v9, %v12092_v40 }
 0x177   :  { %v506_v16 = vpop.f32.mrb[78].mxu1  ;;  %v1154_v24 = vld [vmem:[#allocation2 + $0x160] sm:$0xff] }
 0x178   :  { %659 = vst.msk [vmem:[#allocation2 + $0x170] sm:$0xff] %vm604_vm3, %v593_v43  ;;  %v507_v44 = vadd.f32 %v10669_v30, %v506_v16  ;;  %v12134_v21 = vpop.permute.xlu1 %1859  ;;  %v12136_v2 = vpop.permute.xlu0 %1864  ;;  %v1057_v5 = vmul.f32 %v1154_v24, %v11555_v53  ;;  %v1497_v41 = vmul.f32 %v11963_v50, %v1154_v24  ;;  %v1838_v50 = vld [vmem:[%s17820_s1 + $0x140] sm:$0xff]  ;;  %v12200_v43 = vld [vmem:[%s17820_s1 + $0x28] sm:$0xff] }
 0x179   :  { %2039 = vperm.xlu1 %10516, %v1836_v58   ;;  %1634 = vrot.lane.b32.xlu0 %v1495_v63, %s10743_s12  ;;  %v9261_v23 = vpop.f32.mrb[79].mxu1  ;;  %v1496_v58 = vmul.f32 %v11954_v12, %v12113_v20  ;;  %v1844_v63 = vld [vmem:[%s17820_s1 + $0x170] sm:$0xff] }
 0x17a   :  { %v594_v8 = vmax.f32 %v507_v44, 0.0  ;;  %1106 = vst.msk [vmem:[#allocation3 + $0x420] sm:$0xff] %vm604_vm3, %v1057_v5  ;;  %v4790_v5 = vld [vmem:[%s17820_s1 + $0x8] sm:$0xff]  ;;  %v17839_v23 = vmov 7  }
 0x17b   :  { %v511_v62 = vpop.f32.mrb[80].mxu1  ;;  %v12144_v1 = vld [vmem:[#allocation2 + $0x168] sm:$0xff] }
 0x17c   :  { %660 = vst.msk [vmem:[#allocation2 + $0x178] sm:$0xff] %vm604_vm3, %v594_v8  ;;  %v512_v49 = vadd.f32 %v10669_v30, %v511_v62  ;;  %v12147_v15 = vpop.permute.xlu1 %1869  ;;  %v12149_v53 = vpop.permute.xlu0 %1874  ;;  %v1058_v48 = vmul.f32 %v12144_v1, %v17876_v32  ;;  %v1498_v12 = vmul.f32 %v11978_v45, %v12144_v1 }
 0x17d   :  { %1624 = vrot.lane.b32.xlu1 %v1490_v47, %s10743_s12  ;;  %1638 = vrot.lane.b32.xlu0 %v1497_v41, %s10743_s12  ;;  %v9264_v17 = vpop.f32.mrb[81].mxu1  ;;  %v12246_v47 = vld [vmem:[%s17820_s1 + $0x20] sm:$0xff] }
 0x17e   :  { %v595_v10 = vmax.f32 %v512_v49, 0.0  ;;  %1107 = vst.msk [vmem:[#allocation3 + $0x438] sm:$0xff] %vm604_vm3, %v1058_v48  ;;  %v10670_v49 = vld [vmem:[%s17820_s1 + $0x38] sm:$0xff] }
 0x17f   :  { %v516_v0 = vpop.f32.mrb[82].mxu1  ;;  %v1156_v55 = vld [vmem:[#allocation2 + $0x170] sm:$0xff] }
 0x180   :  { %661 = vst.msk [vmem:[#allocation2 + $0x180] sm:$0xff] %vm604_vm3, %v595_v10  ;;  %v517_v51 = vadd.f32 %v10669_v30, %v516_v0  ;;  %v12160_v18 = vpop.permute.xlu1 %1879  ;;  %v12162_v38 = vpop.permute.xlu0 %1884  ;;  %v1499_v36 = vmul.f32 %v11984_v60, %v1156_v55  ;;  %v1059_v3 = vmul.f32 %v1156_v55, %v11565_v25  ;;  %v1840_v25 = vld [vmem:[%s17820_s1 + $0x150] sm:$0xff]  ;;  %v17843_v10 = vmov 5  }
 0x181   :  { %2049 = vperm.xlu1 %10516, %v1838_v50   ;;  %v9267_v54 = vpop.f32.mrb[83].mxu1  ;;  %v17890_v50 = vld [vmem:[#allocation9_spill] sm:$0xff] }
 0x182   :  { %v596_v7 = vmax.f32 %v517_v51, 0.0  ;;  %1642 = vrot.lane.b32.xlu0 %v1499_v36, %s10743_s12  ;;  %1108 = vst.msk [vmem:[#allocation3 + $0x450] sm:$0xff] %vm604_vm3, %v1059_v3  ;;  %v17893_v51 = vld [vmem:[#allocation10_spill] sm:$0xff]  ;;  %v17894_v3 = vld [vmem:[#allocation11_spill] sm:$0xff] }
 0x183   :  { %v1157_v42 = vld [vmem:[#allocation2 + $0x178] sm:$0xff] }
 0x184   :  { %662 = vst.msk [vmem:[#allocation2 + $0x188] sm:$0xff] %vm604_vm3, %v596_v7  ;;  %v12171_v11 = vpop.permute.xlu1 %1889  ;;  %v1567_v29 = vpop.permute.xlu0 %1566  ;;  %v1060_v60 = vmul.f32 %v1157_v42, %v17878_v57  ;;  %v3518_v57 = vld [vmem:[%s17820_s1 + $0x18] sm:$0xff] }
 0x185   :  { %17877 = vst [vmem:[#allocation6_spill] sm:$0xff] %v12171_v11  ;;  %1707 = vst.msk [vmem:[#allocation3 + $0xa8] sm:$0xff] %vm1699_vm6, %v1567_v29  ;;  %1628 = vrot.lane.b32.xlu1 %v1492_v22, %s10743_s12  ;;  %v17841_v22 = vmov 3  }
 0x186   :  { %1109 = vst.msk [vmem:[#allocation3 + $0x468] sm:$0xff] %vm604_vm3, %v1060_v60  ;;  %v12291_v60 = vld [vmem:[%s17820_s1 + $0x10] sm:$0xff] }
 0x187   :  { %v1158_v35 = vld [vmem:[#allocation2 + $0x180] sm:$0xff] }
 0x188   :  { %v12180_v13 = vpop.permute.xlu1 %1899  ;;  %v12182_v19 = vpop.permute.xlu0 %1894  ;;  %v1501_v4 = vmul.f32 %v12004_v46, %v1158_v35  ;;  %v1061_v33 = vmul.f32 %v1158_v35, %v17881_v56  ;;  %v1842_v46 = vld [vmem:[%s17820_s1 + $0x160] sm:$0xff] }
 0x189   :  { %17879 = vst [vmem:[#allocation7_spill] sm:$0xff] %v12180_v13  ;;  %17880 = vst [vmem:[#allocation12_spill] sm:$0xff] %v12182_v19  ;;  %2059 = vperm.xlu1 %10516, %v1840_v25   ;;  %v12638_v19 = vld [vmem:[#allocation2 + $0x60] sm:$0xff] }
 0x18a   :  { %1646 = vrot.lane.b32.xlu0 %v1501_v4, %s10743_s12  ;;  %1110 = vst.msk [vmem:[#allocation3 + $0x480] sm:$0xff] %vm604_vm3, %v1061_v33  ;;  %v12302_v4 = vld [vmem:[%s17820_s1 + $0x30] sm:$0xff] }
 0x18b   :  { %v1159_v1 = vld [vmem:[#allocation2 + $0x188] sm:$0xff] }
 0x18c   :  { %v1569_v27 = vpop.permute.xlu1 %1568  ;;  %v1571_v6 = vpop.permute.xlu0 %1570  ;;  %v1502_v32 = vmul.f32 %v12027_v14, %v1159_v1 }
 0x18d   :  { %1708 = vst.msk [vmem:[#allocation3 + $0xc0] sm:$0xff] %vm1699_vm6, %v1569_v27  ;;  %1709 = vst.msk [vmem:[#allocation3 + $0xd8] sm:$0xff] %vm1699_vm6, %v1571_v6  ;;  %1632 = vrot.lane.b32.xlu1 %v1494_v52, %s10743_s12  ;;  %v12312_v52 = vld [vmem:[%s17820_s1 + $0x48] sm:$0xff] }
 0x18e   :  { %4213 = vperm.xlu0 %10523, %v11625_v59  }
 0x190   :  { %v12202_v9 = vpop.permute.xlu1 %1909  ;;  %v12204_v40 = vpop.permute.xlu0 %1904 }
 0x191   :  { %17882 = vst [vmem:[#allocation8_spill] sm:$0xff] %v12202_v9  ;;  %17883 = vst [vmem:[#allocation13_spill] sm:$0xff] %v12204_v40  ;;  %2069 = vperm.xlu1 %10516, %v1842_v46   ;;  %v12323_v46 = vld [vmem:[%s17820_s1 + $0x60] sm:$0xff] }
 0x192   :  { %4228 = vperm.xlu0 %10523, %v12200_v43  }
 0x194   :  { %v1573_v59 = vpop.permute.xlu1 %1572  ;;  %v1575_v16 = vpop.permute.xlu0 %1574 }
 0x195   :  { %1710 = vst.msk [vmem:[#allocation3 + $0xf0] sm:$0xff] %vm1699_vm6, %v1573_v59  ;;  %1711 = vst.msk [vmem:[#allocation3 + $0x108] sm:$0xff] %vm1699_vm6, %v1575_v16  ;;  %1636 = vrot.lane.b32.xlu1 %v1496_v58, %s10743_s12  ;;  %v12332_v16 = vld [vmem:[%s17820_s1 + $0x80] sm:$0xff] }
 0x196   :  { %4243 = vperm.xlu0 %10523, %v11673_v26   ;;  %v12231_v26 = vld [vmem:[%s17820_s1] sm:$0xff] }
 0x198   :  { %v12216_v24 = vpop.permute.xlu1 %1919  ;;  %v12218_v30 = vpop.permute.xlu0 %1914 }
 0x199   :  { %17884 = vst [vmem:[#allocation14_spill] sm:$0xff] %v12216_v24  ;;  %17885 = vst [vmem:[#allocation15_spill] sm:$0xff] %v12218_v30  ;;  %2079 = vperm.xlu1 %10516, %v1844_v63   ;;  %v17847_v24 = vmov 4  }
 0x19a   :  { %4258 = vperm.xlu0 %10523, %v11732_v37  }
 0x19c   :  { %v1577_v20 = vpop.permute.xlu1 %1576  ;;  %v1579_v44 = vpop.permute.xlu0 %1578 }
 0x19d   :  { %1712 = vst.msk [vmem:[#allocation3 + $0x120] sm:$0xff] %vm1699_vm6, %v1577_v20  ;;  %1713 = vst.msk [vmem:[#allocation3 + $0x138] sm:$0xff] %vm1699_vm6, %v1579_v44  ;;  %1640 = vrot.lane.b32.xlu1 %v1498_v12, %s10743_s12  ;;  %v12343_v20 = vld [vmem:[%s17820_s1 + $0x88] sm:$0xff] }
 0x19e   :  { %4278 = vperm.xlu0 %10523, %v11803_v39   ;;  %10517 = vset.pattern.permute.xlu1 %v17845_v61  ;;  %v1500_v39 = vmul.f32 %v12001_v28, %v1157_v42 }
 0x1a0   :  { %v12233_v37 = vpop.permute.xlu1 %1929  ;;  %v12235_v45 = vpop.permute.xlu0 %1924 }
 0x1a1   :  { %17886 = vst [vmem:[#allocation16_spill] sm:$0xff] %v12233_v37  ;;  %17887 = vst [vmem:[#allocation17_spill] sm:$0xff] %v12235_v45  ;;  %4203 = vperm.xlu1 %10517, %v12231_v26   ;;  %v12548_v37 = vld [vmem:[%s17820_s1 + $0x90] sm:$0xff]  ;;  %v3075_v45 = vld [vmem:[%s17820_s1 + $0x8] sm:$0xff] }
 0x1a2   :  { %10560 = vset.pattern.permute.xlu0 %v17839_v23 }
 0x1a3   :  { %4845 = vperm.xlu0 %10560, %v4790_v5  }
 0x1a4   :  { %v1581_v8 = vpop.permute.xlu1 %1580  ;;  %v1583_v62 = vpop.permute.xlu0 %1582 }
 0x1a5   :  { %1714 = vst.msk [vmem:[#allocation3 + $0x150] sm:$0xff] %vm1699_vm6, %v1581_v8  ;;  %1715 = vst.msk [vmem:[#allocation3 + $0x168] sm:$0xff] %vm1699_vm6, %v1583_v62  ;;  %1644 = vrot.lane.b32.xlu1 %v1500_v39, %s10743_s12 }
 0x1a6   :  { %10518 = vset.pattern.permute.xlu1 %v17839_v23 }
 0x1a7   :  { %4860 = vperm.xlu0 %10560, %v12246_v47  }
 0x1a8   :  { %v12253_v41 = vpop.permute.xlu1 %1939  ;;  %v12255_v28 = vpop.permute.xlu0 %1934 }
 0x1a9   :  { %17888 = vst [vmem:[#allocation18_spill] sm:$0xff] %v12253_v41  ;;  %17889 = vst [vmem:[#allocation19_spill] sm:$0xff] %v12255_v28  ;;  %4840 = vperm.xlu1 %10518, %v12231_v26   ;;  %v12535_v28 = vld [vmem:[#allocation2 + $0x78] sm:$0xff] }
 0x1ab   :  { %4875 = vperm.xlu0 %10560, %v10670_v49  }
 0x1ac   :  { %v1585_v48 = vpop.permute.xlu1 %1584  ;;  %v1587_v17 = vpop.permute.xlu0 %1586 }
 0x1ad   :  { %1716 = vst.msk [vmem:[#allocation3 + $0x180] sm:$0xff] %vm1699_vm6, %v1585_v48  ;;  %1717 = vst.msk [vmem:[#allocation3 + $0x198] sm:$0xff] %vm1699_vm6, %v1587_v17  ;;  %1648 = vrot.lane.b32.xlu1 %v1502_v32, %s10743_s12 }
 0x1ae   :  { %10519 = vset.pattern.permute.xlu1 %v17843_v10 }
 0x1af   :  { %4890 = vperm.xlu0 %10560, %v17890_v50  }
 0x1b0   :  { %v12267_v0 = vpop.permute.xlu1 %1949  ;;  %v12269_v55 = vpop.permute.xlu0 %1944 }
 0x1b1   :  { %17891 = vst [vmem:[#allocation9_spill] sm:$0xff] %v12267_v0  ;;  %17892 = vst [vmem:[#allocation20_spill] sm:$0xff] %v12269_v55  ;;  %3571 = vperm.xlu1 %10519, %v4790_v5  }
 0x1b3   :  { %4905 = vperm.xlu0 %10560, %v17893_v51  }
 0x1b4   :  { %v1589_v14 = vpop.permute.xlu1 %1588  ;;  %v1591_v36 = vpop.permute.xlu0 %1590 }
 0x1b5   :  { %1718 = vst.msk [vmem:[#allocation3 + $0x1b0] sm:$0xff] %vm1699_vm6, %v1589_v14  ;;  %1719 = vst.msk [vmem:[#allocation3 + $0x1c8] sm:$0xff] %vm1699_vm6, %v1591_v36  ;;  %10520 = vset.pattern.permute.xlu1 %v17845_v61 }
 0x1b6   :  { %4208 = vperm.xlu1 %10520, %v4790_v5  }
 0x1b7   :  { %4920 = vperm.xlu0 %10560, %v17894_v3  }
 0x1b8   :  { %v12276_v54 = vpop.permute.xlu1 %1959  ;;  %v12278_v7 = vpop.permute.xlu0 %1954 }
 0x1b9   :  { %17895 = vst [vmem:[#allocation10_spill] sm:$0xff] %v12276_v54  ;;  %17896 = vst [vmem:[#allocation11_spill] sm:$0xff] %v12278_v7 }
 0x1ba   :  { %10521 = vset.pattern.permute.xlu1 %v17841_v22 }
 0x1bb   :  { %10565 = vset.pattern.permute.xlu0 %v17843_v10  ;;  %2492 = vperm.xlu1 %10521, %v4790_v5  }
 0x1bc   :  { %3566 = vperm.xlu0 %10565, %v12231_v26   ;;  %v1593_v42 = vpop.permute.xlu1 %1592  ;;  %v1595_v29 = vpop.permute.xlu0 %1594 }
 0x1bd   :  { %1720 = vst.msk [vmem:[#allocation3 + $0x1e0] sm:$0xff] %vm1699_vm6, %v1593_v42  ;;  %1721 = vst.msk [vmem:[#allocation3 + $0x1f8] sm:$0xff] %vm1699_vm6, %v1595_v29 }
 0x1bf   :  { %10522 = vset.pattern.permute.xlu1 %v17843_v10 }
 0x1c0   :  { %3581 = vperm.xlu0 %10565, %v3518_v57   ;;  %v12294_v25 = vpop.permute.xlu1 %1969  ;;  %v12296_v35 = vpop.permute.xlu0 %1964  ;;  %3576 = vperm.xlu1 %10522, %v12291_v60  }
 0x1c1   :  { %17897 = vst [vmem:[#allocation21_spill] sm:$0xff] %v12294_v25  ;;  %17898 = vst [vmem:[#allocation22_spill] sm:$0xff] %v12296_v35 }
 0x1c4   :  { %3596 = vperm.xlu0 %10565, %v12302_v4   ;;  %v1597_v56 = vpop.permute.xlu1 %1596  ;;  %v1599_v33 = vpop.permute.xlu0 %1598  ;;  %10524 = vset.pattern.permute.xlu1 %v17839_v23 }
 0x1c5   :  { %1722 = vst.msk [vmem:[#allocation3 + $0x210] sm:$0xff] %vm1699_vm6, %v1597_v56  ;;  %1723 = vst.msk [vmem:[#allocation3 + $0x228] sm:$0xff] %vm1699_vm6, %v1599_v33  ;;  %4850 = vperm.xlu1 %10524, %v12291_v60  }
 0x1c8   :  { %3611 = vperm.xlu0 %10565, %v12312_v52   ;;  %v12315_v27 = vpop.permute.xlu1 %1979  ;;  %v12317_v6 = vpop.permute.xlu0 %1974 }
 0x1c9   :  { %17899 = vst [vmem:[#allocation23_spill] sm:$0xff] %v12315_v27  ;;  %17900 = vst [vmem:[#allocation24_spill] sm:$0xff] %v12317_v6  ;;  %10525 = vset.pattern.permute.xlu1 %v17841_v22 }
 0x1ca   :  { %2497 = vperm.xlu1 %10525, %v12291_v60  }
 0x1cc   :  { %3626 = vperm.xlu0 %10565, %v12323_v46   ;;  %v1601_v58 = vpop.permute.xlu1 %1600  ;;  %v1603_v59 = vpop.permute.xlu0 %1602 }
 0x1cd   :  { %1724 = vst.msk [vmem:[#allocation3 + $0x240] sm:$0xff] %vm1699_vm6, %v1601_v58  ;;  %1725 = vst.msk [vmem:[#allocation3 + $0x258] sm:$0xff] %vm1699_vm6, %v1603_v59 }
 0x1ce   :  { %10526 = vset.pattern.permute.xlu1 %v17845_v61 }
 0x1cf   :  { %4218 = vperm.xlu1 %10526, %v3518_v57  }
 0x1d0   :  { %3646 = vperm.xlu0 %10565, %v12332_v16   ;;  %v12336_v63 = vpop.permute.xlu1 %1989  ;;  %v12338_v12 = vpop.permute.xlu0 %1984 }
 0x1d1   :  { %17901 = vst [vmem:[#allocation25_spill] sm:$0xff] %v12336_v63  ;;  %17902 = vst [vmem:[#allocation26_spill] sm:$0xff] %v12338_v12  ;;  %v17920_v12 = vmov 6  }
 0x1d3   :  { %10527 = vset.pattern.permute.xlu1 %v17839_v23 }
 0x1d4   :  { %3651 = vperm.xlu0 %10565, %v12343_v20   ;;  %v1605_v44 = vpop.permute.xlu1 %1604  ;;  %v1607_v5 = vpop.permute.xlu0 %1606  ;;  %4855 = vperm.xlu1 %10527, %v3518_v57  }
 0x1d5   :  { %1726 = vst.msk [vmem:[#allocation3 + $0x270] sm:$0xff] %vm1699_vm6, %v1605_v44  ;;  %1727 = vst.msk [vmem:[#allocation3 + $0x288] sm:$0xff] %vm1699_vm6, %v1607_v5 }
 0x1d8   :  { %10567 = vset.pattern.permute.xlu0 %v17841_v22  ;;  %v12350_v39 = vpop.permute.xlu1 %1999  ;;  %v12352_v8 = vpop.permute.xlu0 %1994  ;;  %10528 = vset.pattern.permute.xlu1 %v17843_v10 }
 0x1d9   :  { %17903 = vst [vmem:[#allocation27_spill] sm:$0xff] %v12350_v39  ;;  %17904 = vst [vmem:[#allocation28_spill] sm:$0xff] %v12352_v8  ;;  %2487 = vperm.xlu0 %10567, %v12231_v26   ;;  %3586 = vperm.xlu1 %10528, %v12246_v47   ;;  %v17919_v39 = vmov 7  }
 0x1dc   :  { %v1609_v62 = vpop.permute.xlu1 %1608  ;;  %v1611_v1 = vpop.permute.xlu0 %1610 }
 0x1dd   :  { %1728 = vst.msk [vmem:[#allocation3 + $0x2a0] sm:$0xff] %vm1699_vm6, %v1609_v62  ;;  %1729 = vst.msk [vmem:[#allocation3 + $0x2b8] sm:$0xff] %vm1699_vm6, %v1611_v1  ;;  %2502 = vperm.xlu0 %10567, %v3518_v57   ;;  %10529 = vset.pattern.permute.xlu1 %v17845_v61 }
 0x1de   :  { %4223 = vperm.xlu1 %10529, %v12246_v47  }
 0x1e0   :  { %v12361_v49 = vpop.permute.xlu1 %2009  ;;  %v12363_v32 = vpop.permute.xlu0 %2004 }
 0x1e1   :  { %17905 = vst [vmem:[#allocation29_spill] sm:$0xff] %v12361_v49  ;;  %17906 = vst [vmem:[#allocation30_spill] sm:$0xff] %v12363_v32  ;;  %2517 = vperm.xlu0 %10567, %v12302_v4   ;;  %v12516_v49 = vld [vmem:[%s17820_s1 + $0x68] sm:$0xff] }
 0x1e2   :  { %10530 = vset.pattern.permute.xlu1 %v17841_v22 }
 0x1e3   :  { %2507 = vperm.xlu1 %10530, %v12246_v47   ;;  %v12380_v47 = vld [vmem:[%s17820_s1 + $0x70] sm:$0xff] }
 0x1e4   :  { %v1613_v26 = vpop.permute.xlu1 %1612  ;;  %v1615_v48 = vpop.permute.xlu0 %1614 }
 0x1e5   :  { %1730 = vst.msk [vmem:[#allocation3 + $0x2d0] sm:$0xff] %vm1699_vm6, %v1613_v26  ;;  %1731 = vst.msk [vmem:[#allocation3 + $0x2e8] sm:$0xff] %vm1699_vm6, %v1615_v48  ;;  %2532 = vperm.xlu0 %10567, %v12312_v52   ;;  %v12427_v48 = vld [vmem:[%s17820_s1 + $0x40] sm:$0xff] }
 0x1e7   :  { %10531 = vset.pattern.permute.xlu1 %v17843_v10 }
 0x1e8   :  { %v12372_v17 = vpop.permute.xlu1 %2019  ;;  %v1619_v50 = vpop.permute.xlu0 %1618  ;;  %3591 = vperm.xlu1 %10531, %v12200_v43  }
 0x1e9   :  { %17907 = vst [vmem:[#allocation31_spill] sm:$0xff] %v12372_v17  ;;  %1733 = vst.msk [vmem:[#allocation3 + $0x318] sm:$0xff] %vm1699_vm6, %v1619_v50  ;;  %2547 = vperm.xlu0 %10567, %v12323_v46  }
 0x1ec   :  { %v1617_v51 = vpop.permute.xlu1 %1616  ;;  %v1623_v14 = vpop.permute.xlu0 %1622  ;;  %10532 = vset.pattern.permute.xlu1 %v17839_v23 }
 0x1ed   :  { %1732 = vst.msk [vmem:[#allocation3 + $0x300] sm:$0xff] %vm1699_vm6, %v1617_v51  ;;  %1735 = vst.msk [vmem:[#allocation3 + $0x348] sm:$0xff] %vm1699_vm6, %v1623_v14  ;;  %2557 = vperm.xlu0 %10567, %v12380_v47   ;;  %4865 = vperm.xlu1 %10532, %v12200_v43  }
 0x1f0   :  { %v12387_v36 = vpop.permute.xlu1 %2029  ;;  %v1627_v3 = vpop.permute.xlu0 %1626 }
 0x1f1   :  { %17908 = vst [vmem:[#allocation32_spill] sm:$0xff] %v12387_v36  ;;  %1737 = vst.msk [vmem:[#allocation3 + $0x378] sm:$0xff] %vm1699_vm6, %v1627_v3  ;;  %10533 = vset.pattern.permute.xlu1 %v17841_v22 }
 0x1f2   :  { %2512 = vperm.xlu1 %10533, %v12200_v43   ;;  %v12406_v43 = vld [vmem:[%s17820_s1 + $0x38] sm:$0xff] }
 0x1f4   :  { %v1621_v42 = vpop.permute.xlu1 %1620  ;;  %v1631_v29 = vpop.permute.xlu0 %1630 }
 0x1f5   :  { %1734 = vst.msk [vmem:[#allocation3 + $0x330] sm:$0xff] %vm1699_vm6, %v1621_v42  ;;  %1739 = vst.msk [vmem:[#allocation3 + $0x3a8] sm:$0xff] %vm1699_vm6, %v1631_v29 }
 0x1f6   :  { %10534 = vset.pattern.permute.xlu1 %v17845_v61 }
 0x1f7   :  { %4233 = vperm.xlu1 %10534, %v12302_v4  }
 0x1f8   :  { %v12396_v57 = vpop.permute.xlu1 %2039  ;;  %v1635_v56 = vpop.permute.xlu0 %1634 }
 0x1f9   :  { %17909 = vst [vmem:[#allocation33_spill] sm:$0xff] %v12396_v57  ;;  %1741 = vst.msk [vmem:[#allocation3 + $0x3d8] sm:$0xff] %vm1699_vm6, %v1635_v56 }
 0x1fb   :  { %10535 = vset.pattern.permute.xlu1 %v17839_v23 }
 0x1fc   :  { %v1625_v33 = vpop.permute.xlu1 %1624  ;;  %v1639_v58 = vpop.permute.xlu0 %1638  ;;  %4870 = vperm.xlu1 %10535, %v12302_v4  }
 0x1fd   :  { %1736 = vst.msk [vmem:[#allocation3 + $0x360] sm:$0xff] %vm1699_vm6, %v1625_v33  ;;  %1743 = vst.msk [vmem:[#allocation3 + $0x408] sm:$0xff] %vm1699_vm6, %v1639_v58 }
 0x200   :  { %v12408_v59 = vpop.permute.xlu1 %2049  ;;  %v1643_v44 = vpop.permute.xlu0 %1642  ;;  %10536 = vset.pattern.permute.xlu1 %v17843_v10 }
 0x201   :  { %17910 = vst [vmem:[#allocation34_spill] sm:$0xff] %v12408_v59  ;;  %1745 = vst.msk [vmem:[#allocation3 + $0x438] sm:$0xff] %vm1699_vm6, %v1643_v44  ;;  %3601 = vperm.xlu1 %10536, %v12406_v43  }
 0x204   :  { %v1629_v5 = vpop.permute.xlu1 %1628  ;;  %v1647_v4 = vpop.permute.xlu0 %1646 }
 0x205   :  { %1738 = vst.msk [vmem:[#allocation3 + $0x390] sm:$0xff] %vm1699_vm6, %v1629_v5  ;;  %1747 = vst.msk [vmem:[#allocation3 + $0x468] sm:$0xff] %vm1699_vm6, %v1647_v4  ;;  %10537 = vset.pattern.permute.xlu1 %v17845_v61 }
 0x206   :  { %4238 = vperm.xlu1 %10537, %v12406_v43  }
 0x208   :  { %v12417_v62 = vpop.permute.xlu1 %2059 }
 0x209   :  { %17911 = vst [vmem:[#allocation35_spill] sm:$0xff] %v12417_v62 }
 0x20a   :  { %10538 = vset.pattern.permute.xlu1 %v17841_v22 }
 0x20b   :  { %2522 = vperm.xlu1 %10538, %v12406_v43  }
 0x20c   :  { %v1633_v1 = vpop.permute.xlu1 %1632 }
 0x20d   :  { %1740 = vst.msk [vmem:[#allocation3 + $0x3c0] sm:$0xff] %vm1699_vm6, %v1633_v1  ;;  %v12422_v26 = vpop.permute.xlu0 %4213  ;;  %v12463_v1 = vld [vmem:[%s17820_s1 + $0x50] sm:$0xff] }
 0x20f   :  { %10539 = vset.pattern.permute.xlu1 %v17843_v10 }
 0x210   :  { %v12430_v50 = vpop.permute.xlu1 %2069  ;;  %3606 = vperm.xlu1 %10539, %v12427_v48  }
 0x211   :  { %17912 = vst [vmem:[#allocation36_spill] sm:$0xff] %v12430_v50  ;;  %v12433_v51 = vpop.permute.xlu0 %4228  ;;  %v12485_v50 = vld [vmem:[%s17820_s1 + $0x58] sm:$0xff] }
 0x214   :  { %v1637_v14 = vpop.permute.xlu1 %1636  ;;  %10540 = vset.pattern.permute.xlu1 %v17839_v23 }
 0x215   :  { %1742 = vst.msk [vmem:[#allocation3 + $0x3f0] sm:$0xff] %vm1699_vm6, %v1637_v14  ;;  %v12437_v3 = vpop.permute.xlu0 %4243  ;;  %4880 = vperm.xlu1 %10540, %v12427_v48  }
 0x218   :  { %v12440_v42 = vpop.permute.xlu1 %2079 }
 0x219   :  { %17913 = vst [vmem:[#allocation37_spill] sm:$0xff] %v12440_v42  ;;  %v12442_v29 = vpop.permute.xlu0 %4258  ;;  %10541 = vset.pattern.permute.xlu1 %v17841_v22  ;;  %v17916_v42 = vmov 3  }
 0x21a   :  { %2527 = vperm.xlu1 %10541, %v12427_v48  }
 0x21c   :  { %v1641_v56 = vpop.permute.xlu1 %1640 }
 0x21d   :  { %1744 = vst.msk [vmem:[#allocation3 + $0x420] sm:$0xff] %vm1699_vm6, %v1641_v56  ;;  %v12447_v33 = vpop.permute.xlu0 %4278 }
 0x21e   :  { %10542 = vset.pattern.permute.xlu1 %v17845_v61 }
 0x21f   :  { %4248 = vperm.xlu1 %10542, %v12312_v52  }
 0x220   :  { %v12451_v58 = vpop.permute.xlu1 %4203 }
 0x222   :  { %v12453_v44 = vpop.permute.xlu0 %4845 }
 0x223   :  { %10543 = vset.pattern.permute.xlu1 %v17839_v23 }
 0x224   :  { %v1645_v5 = vpop.permute.xlu1 %1644  ;;  %4885 = vperm.xlu1 %10543, %v12312_v52  }
 0x225   :  { %1746 = vst.msk [vmem:[#allocation3 + $0x450] sm:$0xff] %vm1699_vm6, %v1645_v5 }
 0x226   :  { %v12458_v4 = vpop.permute.xlu0 %4860 }
 0x228   :  { %v12465_v14 = vpop.permute.xlu1 %4840  ;;  %10544 = vset.pattern.permute.xlu1 %v17843_v10 }
 0x229   :  { %3616 = vperm.xlu1 %10544, %v12463_v1  }
 0x22a   :  { %v12469_v56 = vpop.permute.xlu0 %4875 }
 0x22c   :  { %v1649_v23 = vpop.permute.xlu1 %1648 }
 0x22d   :  { %1748 = vst.msk [vmem:[#allocation3 + $0x480] sm:$0xff] %vm1699_vm6, %v1649_v23  ;;  %10545 = vset.pattern.permute.xlu1 %v17845_v61  ;;  %v17918_v61 = vmov 5  }
 0x22e   :  { %v12473_v52 = vpop.permute.xlu0 %4890  ;;  %4253 = vperm.xlu1 %10545, %v12463_v1  }
 0x22f   :  { %17914 = vst [vmem:[#allocation38_spill] sm:$0xff] %v12473_v52 }
 0x230   :  { %v12476_v5 = vpop.permute.xlu1 %3571 }
 0x232   :  { %v12478_v22 = vpop.permute.xlu0 %4905  ;;  %10546 = vset.pattern.permute.xlu1 %v17916_v42 }
 0x233   :  { %17915 = vst [vmem:[#allocation39_spill] sm:$0xff] %v12478_v22  ;;  %2537 = vperm.xlu1 %10546, %v12463_v1  }
 0x235   :  { %v4209_v10 = vpop.permute.xlu1 %4208 }
 0x236   :  { %v12487_v23 = vpop.permute.xlu0 %4920 }
 0x237   :  { %17917 = vst [vmem:[#allocation40_spill] sm:$0xff] %v12487_v23  ;;  %10547 = vset.pattern.permute.xlu1 %v17918_v61 }
 0x238   :  { %3621 = vperm.xlu1 %10547, %v12485_v50  }
 0x23a   :  { %v2493_v32 = vpop.permute.xlu1 %2492 }
 0x23b   :  { %v12491_v62 = vpop.permute.xlu0 %3566 }
 0x23c   :  { %10548 = vset.pattern.permute.xlu1 %v17919_v39 }
 0x23d   :  { %4895 = vperm.xlu1 %10548, %v12485_v50  }
 0x23f   :  { %v12495_v8 = vpop.permute.xlu0 %3581  ;;  %v12497_v59 = vpop.permute.xlu1 %3576 }
 0x241   :  { %10549 = vset.pattern.permute.xlu1 %v17916_v42 }
 0x242   :  { %2542 = vperm.xlu1 %10549, %v12485_v50  }
 0x243   :  { %v12501_v63 = vpop.permute.xlu0 %3596 }
 0x244   :  { %v12503_v57 = vpop.permute.xlu1 %4850 }
 0x246   :  { %10550 = vset.pattern.permute.xlu1 %v17920_v12 }
 0x247   :  { %v12506_v36 = vpop.permute.xlu0 %3611  ;;  %4263 = vperm.xlu1 %10550, %v12323_v46  }
 0x248   :  { %17921 = vst [vmem:[#allocation41_spill] sm:$0xff] %v12506_v36 }
 0x249   :  { %v2498_v27 = vpop.permute.xlu1 %2497 }
 0x24b   :  { %v12509_v17 = vpop.permute.xlu0 %3626  ;;  %10551 = vset.pattern.permute.xlu1 %v17919_v39 }
 0x24c   :  { %17922 = vst [vmem:[#allocation42_spill] sm:$0xff] %v12509_v17  ;;  %4900 = vperm.xlu1 %10551, %v12323_v46   ;;  %v2387_v46 = vld [vmem:[#allocation2 + $0x38] sm:$0xff] }
 0x24e   :  { %v4219_v6 = vpop.permute.xlu1 %4218 }
 0x24f   :  { %v12518_v25 = vpop.permute.xlu0 %3646 }
 0x250   :  { %17923 = vst [vmem:[#allocation43_spill] sm:$0xff] %v12518_v25  ;;  %10552 = vset.pattern.permute.xlu1 %v17918_v61 }
 0x251   :  { %3631 = vperm.xlu1 %10552, %v12516_v49  }
 0x253   :  { %v12522_v35 = vpop.permute.xlu0 %3651  ;;  %v12524_v54 = vpop.permute.xlu1 %4855 }
 0x254   :  { %17924 = vst [vmem:[#allocation44_spill] sm:$0xff] %v12522_v35  ;;  %v4447_v35 = vmul.f32 %v12535_v28, %v4209_v10  ;;  %v12553_v10 = vld [vmem:[#allocation2 + $0x80] sm:$0xff] }
 0x255   :  { %10553 = vset.pattern.permute.xlu1 %v17920_v12 }
 0x256   :  { %4268 = vperm.xlu1 %10553, %v12516_v49  }
 0x258   :  { %v2488_v7 = vpop.permute.xlu0 %2487  ;;  %v12528_v0 = vpop.permute.xlu1 %3586 }
 0x259   :  { %v2730_v55 = vmul.f32 %v2488_v7, %v2387_v46  ;;  %v2388_v7 = vld [vmem:[#allocation2 + $0x40] sm:$0xff] }
 0x25a   :  { %10554 = vset.pattern.permute.xlu1 %v17916_v42 }
 0x25b   :  { %2828 = vrot.lane.b32.xlu0 %v2730_v55, %s10748_s21  ;;  %2552 = vperm.xlu1 %10554, %v12516_v49   ;;  %v2731_v55 = vmul.f32 %v2493_v32, %v2388_v7  ;;  %v12560_v32 = vld [vmem:[%s17820_s1 + $0x78] sm:$0xff]  ;;  %v4448_v7 = vmul.f32 %v12422_v26, %v12553_v10 }
 0x25c   :  { %v12578_v26 = vld [vmem:[%s17820_s1 + $0x98] sm:$0xff] }
 0x25d   :  { %v4224_v41 = vpop.permute.xlu1 %4223 }
 0x25f   :  { %2572 = vperm.xlu0 %10567, %v12343_v20   ;;  %10555 = vset.pattern.permute.xlu1 %v17918_v61 }
 0x260   :  { %3636 = vperm.xlu1 %10555, %v12380_v47  }
 0x262   :  { %v2508_v23 = vpop.permute.xlu1 %2507 }
 0x263   :  { %4546 = vrot.lane.b32.xlu0 %v4447_v35, %s10749_s22 }
 0x264   :  { %10556 = vset.pattern.permute.xlu1 %v17920_v12 }
 0x265   :  { %4273 = vperm.xlu1 %10556, %v12380_v47  }
 0x267   :  { %2830 = vrot.lane.b32.xlu0 %v2731_v55, %s10748_s21  ;;  %v12543_v46 = vpop.permute.xlu1 %3591 }
 0x269   :  { %10557 = vset.pattern.permute.xlu1 %v17919_v39 }
 0x26a   :  { %4910 = vperm.xlu1 %10557, %v12380_v47   ;;  %v12567_v47 = vld [vmem:[#allocation2 + $0x48] sm:$0xff] }
 0x26b   :  { %2577 = vperm.xlu0 %10567, %v12548_v37   ;;  %v2732_v55 = vmul.f32 %v12567_v47, %v2498_v27  ;;  %v12581_v27 = vld [vmem:[#allocation2 + $0x88] sm:$0xff] }
 0x26c   :  { %v12555_v35 = vpop.permute.xlu1 %4865  ;;  %v4449_v22 = vmul.f32 %v12581_v27, %v4219_v6  ;;  %v12600_v6 = vld [vmem:[%s17820_s1 + $0xa0] sm:$0xff] }
 0x26e   :  { %10558 = vset.pattern.permute.xlu1 %v17918_v61 }
 0x26f   :  { %4548 = vrot.lane.b32.xlu0 %v4448_v7, %s10749_s22  ;;  %3641 = vperm.xlu1 %10558, %v12560_v32  }
 0x271   :  { %v2513_v25 = vpop.permute.xlu1 %2512 }
 0x272   :  { %v2735_v11 = vmul.f32 %v12638_v19, %v2513_v25 }
 0x273   :  { %2832 = vrot.lane.b32.xlu0 %v2732_v55, %s10748_s21  ;;  %10559 = vset.pattern.permute.xlu1 %v17847_v24  ;;  %v2503_v55 = vpop.permute.xlu0 %2502  ;;  %v12589_v24 = vld [vmem:[#allocation2 + $0x50] sm:$0xff] }
 0x274   :  { %3130 = vperm.xlu1 %10559, %v3075_v45   ;;  %v2733_v30 = vmul.f32 %v12589_v24, %v2503_v55  ;;  %v12605_v55 = vld [vmem:[#allocation2 + $0x90] sm:$0xff] }
 0x275   :  { %v4450_v17 = vmul.f32 %v12605_v55, %v4224_v41  ;;  %v12619_v41 = vld [vmem:[%s17820_s1 + $0xa8] sm:$0xff] }
 0x276   :  { %v4234_v7 = vpop.permute.xlu1 %4233 }
 0x277   :  { %2582 = vperm.xlu0 %10567, %v12578_v26  }
 0x278   :  { %10561 = vset.pattern.permute.xlu1 %v17919_v39 }
 0x279   :  { %4915 = vperm.xlu1 %10561, %v12560_v32  }
 0x27b   :  { %4550 = vrot.lane.b32.xlu0 %v4449_v22, %s10749_s22  ;;  %v12587_v45 = vpop.permute.xlu1 %4870  ;;  %v17925_v22 = vmov 4  }
 0x27d   :  { %10562 = vset.pattern.permute.xlu1 %v17916_v42 }
 0x27e   :  { %2562 = vperm.xlu1 %10562, %v12560_v32  }
 0x27f   :  { %2834 = vrot.lane.b32.xlu0 %v2733_v30, %s10748_s21  ;;  %v12610_v30 = vld [vmem:[#allocation2 + $0x58] sm:$0xff] }
 0x280   :  { %v12595_v9 = vpop.permute.xlu1 %3601  ;;  %v2734_v52 = vmul.f32 %v12610_v30, %v2508_v23  ;;  %v12627_v23 = vld [vmem:[#allocation2 + $0x98] sm:$0xff] }
 0x282   :  { %10563 = vset.pattern.permute.xlu1 %v17925_v22 }
 0x283   :  { %2587 = vperm.xlu0 %10567, %v12600_v6   ;;  %3135 = vperm.xlu1 %10563, %v12291_v60   ;;  %v3809_v60 = vmul.f32 %v12491_v62, %v12567_v47  ;;  %v1749_v62 = vld [vmem:[#allocation2 + $0x10] sm:$0xff] }
 0x285   :  { %v4239_v40 = vpop.permute.xlu1 %4238 }
 0x287   :  { %4552 = vrot.lane.b32.xlu0 %v4450_v17, %s10749_s22  ;;  %10564 = vset.pattern.permute.xlu1 %v17920_v12 }
 0x288   :  { %4283 = vperm.xlu1 %10564, %v12332_v16  }
 0x28a   :  { %v2523_v13 = vpop.permute.xlu1 %2522 }
 0x28b   :  { %2836 = vrot.lane.b32.xlu0 %v2734_v52, %s10748_s21  ;;  %v4451_v52 = vmul.f32 %v12433_v51, %v12627_v23  ;;  %v2092_v51 = vmul.f32 %v12119_v34, %v1749_v62  ;;  %v12660_v62 = vld [vmem:[#allocation2 + $0x68] sm:$0xff] }
 0x28c   :  { %10566 = vset.pattern.permute.xlu1 %v17916_v42  ;;  %v12632_v42 = vld [vmem:[#allocation2 + $0x70] sm:$0xff] }
 0x28d   :  { %2567 = vperm.xlu1 %10566, %v12332_v16   ;;  %v4446_v16 = vmul.f32 %v12451_v58, %v12632_v42 }
 0x28f   :  { %2592 = vperm.xlu0 %10567, %v12619_v41   ;;  %v12625_v17 = vpop.permute.xlu1 %3606 }
 0x291   :  { %3907 = vrot.lane.b32.xlu1 %v3809_v60, %s10743_s12  ;;  %v12649_v60 = vld [vmem:[%s17820_s1 + $0xb0] sm:$0xff] }
 0x292   :  { %10568 = vset.pattern.permute.xlu1 %v17920_v12 }
 0x293   :  { %4554 = vrot.lane.b32.xlu0 %v4451_v52, %s10749_s22  ;;  %v12653_v52 = vld [vmem:[#allocation2 + $0xa0] sm:$0xff] }
 0x294   :  { %v12640_v36 = vpop.permute.xlu1 %4880  ;;  %v4452_v25 = vmul.f32 %v12653_v52, %v4234_v7 }
 0x295   :  { %17926 = vst [vmem:[#allocation45_spill] sm:$0xff] %v12640_v36  ;;  %4544 = vrot.lane.b32.xlu1 %v4446_v16, %s10749_s22  ;;  %v2518_v16 = vpop.permute.xlu0 %2517  ;;  %v12671_v36 = vld [vmem:[%s17820_s1 + $0xb8] sm:$0xff] }
 0x297   :  { %2838 = vrot.lane.b32.xlu0 %v2735_v11, %s10748_s21  ;;  %v5083_v11 = vmul.f32 %v12465_v14, %v12535_v28  ;;  %v3810_v14 = vmul.f32 %v12476_v5, %v12589_v24 }
 0x299   :  { %2190 = vrot.lane.b32.xlu1 %v2092_v51, %s10749_s22  ;;  %v2528_v58 = vpop.permute.xlu1 %2527  ;;  %v2736_v51 = vmul.f32 %v12660_v62, %v2518_v16 }
 0x29b   :  { %2597 = vperm.xlu0 %10567, %v12649_v60  }
 0x29d   :  { %4288 = vperm.xlu1 %10568, %v12343_v20  }
 0x29e   :  { %v4249_v34 = vpop.permute.xlu1 %4248 }
 0x29f   :  { %4556 = vrot.lane.b32.xlu0 %v4452_v25, %s10749_s22  ;;  %v12677_v25 = vld [vmem:[#allocation2 + $0xa8] sm:$0xff] }
 0x2a1   :  { %5181 = vrot.lane.b32.xlu1 %v5083_v11, %s10748_s21  ;;  %v4453_v11 = vmul.f32 %v4239_v40, %v12677_v25  ;;  %v12692_v40 = vld [vmem:[%s17820_s1 + $0xc0] sm:$0xff] }
 0x2a2   :  { %10569 = vset.pattern.permute.xlu1 %v17919_v39 }
 0x2a3   :  { %2840 = vrot.lane.b32.xlu0 %v2736_v51, %s10748_s21  ;;  %v12666_v7 = vpop.permute.xlu1 %4885  ;;  %v1750_v51 = vld [vmem:[#allocation2 + $0x18] sm:$0xff] }
 0x2a4   :  { %17927 = vst [vmem:[#allocation46_spill] sm:$0xff] %v12666_v7  ;;  %v2093_v7 = vmul.f32 %v12117_v31, %v1750_v51  ;;  %v5084_v31 = vmul.f32 %v12453_v44, %v12553_v10  ;;  %v3811_v44 = vmul.f32 %v12497_v59, %v12610_v30 }
 0x2a5   :  { %4925 = vperm.xlu1 %10569, %v12343_v20   ;;  %v2737_v20 = vmul.f32 %v12632_v42, %v2523_v13  ;;  %v12697_v13 = vld [vmem:[#allocation2 + $0xb0] sm:$0xff] }
 0x2a7   :  { %2602 = vperm.xlu0 %10567, %v12671_v36  }
 0x2a8   :  { %v12679_v16 = vpop.permute.xlu1 %3616 }
 0x2a9   :  { %17928 = vst [vmem:[#allocation47_spill] sm:$0xff] %v12679_v16  ;;  %3909 = vrot.lane.b32.xlu1 %v3810_v14, %s10743_s12 }
 0x2aa   :  { %10570 = vset.pattern.permute.xlu1 %v17918_v61 }
 0x2ab   :  { %4558 = vrot.lane.b32.xlu0 %v4453_v11, %s10749_s22  ;;  %v4454_v11 = vmul.f32 %v12437_v3, %v12697_v13  ;;  %v12716_v3 = vld [vmem:[%s17820_s1 + $0xc8] sm:$0xff] }
 0x2ad   :  { %3656 = vperm.xlu1 %10570, %v12548_v37   ;;  %v4254_v5 = vpop.permute.xlu1 %4253 }
 0x2af   :  { %2842 = vrot.lane.b32.xlu0 %v2737_v20, %s10748_s21 }
 0x2b1   :  { %2192 = vrot.lane.b32.xlu1 %v2093_v7, %s10749_s22  ;;  %v2738_v7 = vmul.f32 %v12535_v28, %v2528_v58  ;;  %v12722_v58 = vld [vmem:[#allocation2 + $0xb8] sm:$0xff] }
 0x2b2   :  { %v2538_v14 = vpop.permute.xlu1 %2537  ;;  %10571 = vset.pattern.permute.xlu1 %v17920_v12  ;;  %17931 = vst [vmem:[#allocation50_spill] sm:$0xff] %v12722_v58 }
 0x2b3   :  { %2607 = vperm.xlu0 %10567, %v12692_v40  }
 0x2b5   :  { %4293 = vperm.xlu1 %10571, %v12548_v37  }
 0x2b7   :  { %4560 = vrot.lane.b32.xlu0 %v4454_v11, %s10749_s22  ;;  %v12705_v51 = vpop.permute.xlu1 %3621  ;;  %v4455_v11 = vmul.f32 %v12722_v58, %v4249_v34  ;;  %v12739_v34 = vld [vmem:[%s17820_s1 + $0xd0] sm:$0xff] }
 0x2b8   :  { %17929 = vst [vmem:[#allocation48_spill] sm:$0xff] %v12705_v51  ;;  %17932 = vst [vmem:[#allocation51_spill] sm:$0xff] %v12739_v34  ;;  %v5967_v58 = vld [vmem:[%s17824_s4 + $0x10] sm:$0xff] }
 0x2b9   :  { %5183 = vrot.lane.b32.xlu1 %v5084_v31, %s10748_s21 }
 0x2ba   :  { %10572 = vset.pattern.permute.xlu1 %v17919_v39 }
 0x2bb   :  { %2844 = vrot.lane.b32.xlu0 %v2738_v7, %s10748_s21  ;;  %v2533_v7 = vpop.permute.xlu0 %2532 }
 0x2bc   :  { %v12711_v20 = vpop.permute.xlu1 %4895  ;;  %v2739_v51 = vmul.f32 %v12553_v10, %v2533_v7 }
 0x2bd   :  { %17930 = vst [vmem:[#allocation49_spill] sm:$0xff] %v12711_v20  ;;  %4930 = vperm.xlu1 %10572, %v12548_v37   ;;  %v1751_v20 = vld [vmem:[#allocation2 + $0x20] sm:$0xff] }
 0x2be   :  { %v2094_v30 = vmul.f32 %v12134_v21, %v1751_v20  ;;  %v5965_v21 = vld [vmem:[%s17824_s4] sm:$0xff] }
 0x2bf   :  { %2612 = vperm.xlu0 %10567, %v12716_v3  }
 0x2c1   :  { %3911 = vrot.lane.b32.xlu1 %v3811_v44, %s10743_s12  ;;  %v12726_v31 = vpop.permute.xlu1 %2542 }
 0x2c2   :  { %10573 = vset.pattern.permute.xlu1 %v17918_v61 }
 0x2c3   :  { %4562 = vrot.lane.b32.xlu0 %v4455_v11, %s10749_s22  ;;  %v12746_v11 = vld [vmem:[#allocation2 + $0xc0] sm:$0xff] }
 0x2c4   :  { %17934 = vst [vmem:[#allocation53_spill] sm:$0xff] %v12746_v11  ;;  %v4456_v20 = vmul.f32 %v12746_v11, %v4254_v5  ;;  %v5968_v5 = vld [vmem:[%s17824_s4 + $0x18] sm:$0xff]  ;;  %v5973_v11 = vld [vmem:[%s17824_s4 + $0x40] sm:$0xff] }
 0x2c5   :  { %3661 = vperm.xlu1 %10573, %v12578_v26  }
 0x2c6   :  { %v12732_v59 = vpop.permute.xlu1 %4263 }
 0x2c7   :  { %2846 = vrot.lane.b32.xlu0 %v2739_v51, %s10748_s21  ;;  %v5966_v51 = vld [vmem:[%s17824_s4 + $0x8] sm:$0xff] }
 0x2c8   :  { %v9449_v7 = vpack.c.bf16 %v5966_v51, %v5965_v21  ;;  %v2740_v21 = vmul.f32 %v12581_v27, %v2538_v14  ;;  %v5969_v14 = vld [vmem:[%s17824_s4 + $0x20] sm:$0xff] }
 0x2c9   :  { %2194 = vrot.lane.b32.xlu1 %v2094_v30, %s10749_s22  ;;  %v12756_v30 = vpop.permute.xlu0 %2547 }
 0x2ca   :  { %10574 = vset.pattern.permute.xlu1 %v17920_v12  ;;  %9450 = vmatpush1.bf16.msra.mxu1 %v9449_v7 }
 0x2cb   :  { %2617 = vperm.xlu0 %10567, %v12739_v34   ;;  %v12744_v44 = vpop.permute.xlu1 %4900  ;;  %v17936_v34 = vmov 0.0|0.0  }
 0x2cc   :  { %17933 = vst [vmem:[#allocation52_spill] sm:$0xff] %v12744_v44  ;;  %v5085_v44 = vmul.f32 %v12503_v57, %v12581_v27  ;;  %9451 = vmatprep.subr.bf16.mxu1 %v17936_v34  ;;  %v9452_v57 = vpack.c.bf16 %v5968_v5, %v5967_v58  ;;  %v5970_v58 = vld [vmem:[%s17824_s4 + $0x28] sm:$0xff]  ;;  %v3812_v5 = vmul.f32 %v12495_v8, %v12638_v19 }
 0x2cd   :  { %4298 = vperm.xlu1 %10574, %v12578_v26   ;;  %v12774_v51 = vpop.permute.xlu0 %2557  ;;  %v9455_v7 = vpack.c.bf16 %v5970_v58, %v5969_v14  ;;  %v5972_v14 = vld [vmem:[%s17824_s4 + $0x38] sm:$0xff] }
 0x2ce   :  { %9453 = vmatpush1.bf16.msra.mxu1 %v9452_v57 }
 0x2cf   :  { %4564 = vrot.lane.b32.xlu0 %v4456_v20, %s10749_s22  ;;  %v12779_v20 = vld [vmem:[%s17820_s1 + $0xd8] sm:$0xff]  ;;  %9454 = vmatprep.subr.bf16.mxu1 %v17936_v34 }
 0x2d0   :  { %v12761_v16 = vpop.permute.xlu1 %3631  ;;  %17937 = vst [vmem:[#allocation55_spill] sm:$0xff] %v12779_v20 }
 0x2d1   :  { %17935 = vst [vmem:[#allocation54_spill] sm:$0xff] %v12761_v16  ;;  %5185 = vrot.lane.b32.xlu1 %v5085_v44, %s10748_s21  ;;  %v12796_v57 = vpop.permute.xlu0 %2828  ;;  %v5971_v16 = vld [vmem:[%s17824_s4 + $0x30] sm:$0xff] }
 0x2d2   :  { %10575 = vset.pattern.permute.xlu1 %v17919_v39  ;;  %9456 = vmatpush1.bf16.msra.mxu1 %v9455_v7  ;;  %v9458_v8 = vpack.c.bf16 %v5972_v14, %v5971_v16  ;;  %v1752_v7 = vld [vmem:[#allocation2 + $0x28] sm:$0xff] }
 0x2d3   :  { %2848 = vrot.lane.b32.xlu0 %v2740_v21, %s10748_s21  ;;  %v12794_v21 = vld [vmem:[#allocation2 + $0xc8] sm:$0xff]  ;;  %9457 = vmatprep.subr.bf16.mxu1 %v17936_v34 }
 0x2d4   :  { %17938 = vst [vmem:[#allocation56_spill] sm:$0xff] %v12794_v21  ;;  %v4457_v19 = vmul.f32 %v12442_v29, %v12794_v21  ;;  %v5974_v29 = vld [vmem:[%s17824_s4 + $0x48] sm:$0xff]  ;;  %v2464_v21 = vld [vmem:[%s17820_s1 + $0xe0] sm:$0xff] }
 0x2d5   :  { %4935 = vperm.xlu1 %10575, %v12578_v26   ;;  %v12789_v44 = vpop.permute.xlu1 %4268 }
 0x2d6   :  { %9459 = vmatpush1.bf16.msra.mxu1 %v9458_v8 }
 0x2d7   :  { %2622 = vperm.xlu0 %10567, %v12779_v20   ;;  %v2398_v20 = vld [vmem:[#allocation2 + $0x90] sm:$0xff]  ;;  %9460 = vmatprep.subr.bf16.mxu1 %v17936_v34 }
 0x2d8   :  { %v2741_v16 = vmul.f32 %v12726_v31, %v2398_v20  ;;  %v5975_v31 = vld [vmem:[%s17824_s4 + $0x50] sm:$0xff] }
 0x2d9   :  { %3913 = vrot.lane.b32.xlu1 %v3812_v5, %s10743_s12  ;;  %v9461_v5 = vpack.c.bf16 %v5974_v29, %v5973_v11  ;;  %v5976_v11 = vld [vmem:[%s17824_s4 + $0x58] sm:$0xff] }
 0x2da   :  { %v12808_v58 = vpop.permute.xlu1 %2552  ;;  %10576 = vset.pattern.permute.xlu1 %v17918_v61 }
 0x2db   :  { %4566 = vrot.lane.b32.xlu0 %v4457_v19, %s10749_s22  ;;  %v2095_v19 = vmul.f32 %v12136_v2, %v1752_v7  ;;  %9462 = vmatpush1.bf16.msra.mxu1 %v9461_v5  ;;  %v9464_v2 = vpack.c.bf16 %v5976_v11, %v5975_v31  ;;  %v12841_v7 = vld [vmem:[#allocation2 + $0xd0] sm:$0xff]  ;;  %v5978_v5 = vld [vmem:[%s17824_s4 + $0x68] sm:$0xff]  ;;  %v5086_v11 = vmul.f32 %v12605_v55, %v12524_v54 }
 0x2dc   :  { %9463 = vmatprep.subr.bf16.mxu1 %v17936_v34  ;;  %17940 = vst [vmem:[#allocation58_spill] sm:$0xff] %v12841_v7 }
 0x2dd   :  { %3666 = vperm.xlu1 %10576, %v12600_v6  }
 0x2de   :  { %v12821_v14 = vpop.permute.xlu0 %2572 }
 0x2df   :  { %2850 = vrot.lane.b32.xlu0 %v2741_v16, %s10748_s21  ;;  %v12825_v8 = vpop.permute.xlu1 %3636  ;;  %9465 = vmatpush1.bf16.msra.mxu1 %v9464_v2  ;;  %v5977_v16 = vld [vmem:[%s17824_s4 + $0x60] sm:$0xff]  ;;  %v5979_v2 = vld [vmem:[%s17824_s4 + $0x70] sm:$0xff] }
 0x2e0   :  { %17939 = vst [vmem:[#allocation57_spill] sm:$0xff] %v12825_v8  ;;  %9466 = vmatprep.subr.bf16.mxu1 %v17936_v34  ;;  %v77_v8 = vld [vmem:[%s17822_s0 + $0x150] sm:$0xff] }
 0x2e1   :  { %2196 = vrot.lane.b32.xlu1 %v2095_v19, %s10749_s22  ;;  %v4458_v19 = vmul.f32 %v12732_v59, %v12841_v7  ;;  %v5980_v59 = vld [vmem:[%s17824_s4 + $0x78] sm:$0xff]  ;;  %9269 = vmatmul.mubr.msk.f32.gmra.mrb[84].mxu1 %vm93_vm5, %v77_v8  ;;  %v1753_v7 = vld [vmem:[#allocation2 + $0x30] sm:$0xff]  ;;  %v5986_v8 = vld [vmem:[%s17824_s4 + $0xa8] sm:$0xff] }
 0x2e2   :  { %v12838_v20 = vpop.permute.xlu0 %4546  ;;  %10577 = vset.pattern.permute.xlu1 %v17920_v12  ;;  %v9470_v54 = vpack.c.bf16 %v5980_v59, %v5979_v2 }
 0x2e3   :  { %2627 = vperm.xlu0 %10567, %v2464_v21   ;;  %v9467_v21 = vpack.c.bf16 %v5978_v5, %v5977_v16  ;;  %v2742_v16 = vmul.f32 %v12627_v23, %v12756_v30  ;;  %v5981_v30 = vld [vmem:[%s17824_s4 + $0x80] sm:$0xff] }
 0x2e4   :  { %v12843_v29 = vpop.permute.xlu1 %4273 }
 0x2e5   :  { %4303 = vperm.xlu1 %10577, %v12600_v6   ;;  %9468 = vmatpush1.bf16.msra.mxu1 %v9467_v21  ;;  %v2465_v21 = vld [vmem:[%s17820_s1 + $0xe8] sm:$0xff] }
 0x2e6   :  { %v12855_v31 = vpop.permute.xlu0 %2830  ;;  %9469 = vmatprep.subr.bf16.mxu1 %v17936_v34 }
 0x2e7   :  { %4568 = vrot.lane.b32.xlu0 %v4458_v19, %s10749_s22 }
 0x2e9   :  { %5187 = vrot.lane.b32.xlu1 %v5086_v11, %s10748_s21  ;;  %v12870_v5 = vpop.permute.xlu1 %4910  ;;  %9471 = vmatpush1.bf16.msra.mxu1 %v9470_v54  ;;  %v5982_v11 = vld [vmem:[%s17824_s4 + $0x88] sm:$0xff]  ;;  %v3813_v54 = vmul.f32 %v12528_v0, %v12660_v62 }
 0x2ea   :  { %17941 = vst [vmem:[#allocation59_spill] sm:$0xff] %v12870_v5  ;;  %v12872_v19 = vpop.permute.xlu0 %2577  ;;  %10578 = vset.pattern.permute.xlu1 %v17919_v39  ;;  %9472 = vmatprep.subr.bf16.mxu1 %v17936_v34  ;;  %v9473_v2 = vpack.c.bf16 %v5982_v11, %v5981_v30  ;;  %v12893_v5 = vld [vmem:[#allocation2 + $0xd8] sm:$0xff]  ;;  %v5983_v30 = vld [vmem:[%s17824_s4 + $0x90] sm:$0xff] }
 0x2eb   :  { %17942 = vst [vmem:[#allocation60_spill] sm:$0xff] %v12872_v19  ;;  %2852 = vrot.lane.b32.xlu0 %v2742_v16, %s10748_s21  ;;  %v5984_v11 = vld [vmem:[%s17824_s4 + $0x98] sm:$0xff]  ;;  %v4459_v0 = vmul.f32 %v12893_v5, %v12789_v44  ;;  %v5985_v44 = vld [vmem:[%s17824_s4 + $0xa0] sm:$0xff] }
 0x2ec   :  { %v9476_v62 = vpack.c.bf16 %v5984_v11, %v5983_v30  ;;  %v78_v30 = vld [vmem:[%s17822_s0 + $0x158] sm:$0xff]  ;;  %v2096_v11 = vmul.f32 %v12147_v15, %v1753_v7  ;;  %v79_v7 = vld [vmem:[%s17822_s0 + $0x160] sm:$0xff] }
 0x2ed   :  { %4940 = vperm.xlu1 %10578, %v12600_v6   ;;  %9474 = vmatpush1.bf16.msra.mxu1 %v9473_v2  ;;  %v17944_v2 = vmov 0.0   ;;  %v5988_v15 = vld [vmem:[%s17824_s4 + $0xb8] sm:$0xff] }
 0x2ee   :  { %v12887_v59 = vpop.permute.xlu0 %4548  ;;  %v12889_v16 = vpop.permute.xlu1 %3641  ;;  %9475 = vmatprep.subr.bf16.mxu1 %v17936_v34  ;;  %9271 = vmatprep.mubr.msk.f32.mxu1 %vm10739_vm4, %v17944_v2 }
 0x2ef   :  { %17943 = vst [vmem:[#allocation61_spill] sm:$0xff] %v12889_v16  ;;  %2632 = vperm.xlu0 %10567, %v2465_v21   ;;  %9272 = vmatmul.mubr.msk.f32.gmra.mrb[86].mxu1 %vm93_vm5, %v78_v30 }
 0x2f0   :  { %9274 = vmatprep.mubr.msk.f32.mxu1 %vm10739_vm4, %v17944_v2 }
 0x2f1   :  { %3915 = vrot.lane.b32.xlu1 %v3813_v54, %s10743_s12  ;;  %9477 = vmatpush1.bf16.msra.mxu1 %v9476_v62  ;;  %v2743_v54 = vmul.f32 %v12653_v52, %v12808_v58  ;;  %v2466_v58 = vld [vmem:[%s17820_s1 + $0xf0] sm:$0xff] }
 0x2f2   :  { %v12909_v21 = vpop.permute.xlu0 %2832  ;;  %10579 = vset.pattern.permute.xlu1 %v17918_v61  ;;  %9478 = vmatprep.subr.bf16.mxu1 %v17936_v34 }
 0x2f3   :  { %4570 = vrot.lane.b32.xlu0 %v4459_v0, %s10749_s22  ;;  %v3131_v16 = vpop.permute.xlu1 %3130  ;;  %9275 = vmatmul.mubr.msk.f32.gmra.mrb[88].mxu1 %vm93_vm5, %v79_v7  ;;  %v5991_v7 = vld [vmem:[%s17824_s4 + $0xd0] sm:$0xff] }
 0x2f4   :  { %v3369_v19 = vmul.f32 %v12567_v47, %v3131_v16  ;;  %v9479_v47 = vpack.c.bf16 %v5986_v8, %v5985_v44  ;;  %9277 = vmatprep.mubr.msk.f32.mxu1 %vm10739_vm4, %v17944_v2  ;;  %v5989_v8 = vld [vmem:[%s17824_s4 + $0xc0] sm:$0xff] }
 0x2f5   :  { %3671 = vperm.xlu1 %10579, %v12619_v41  }
 0x2f6   :  { %3418 = vst.msk [vmem:[#allocation3 + $0x20] sm:$0xff] %vm604_vm3, %v3369_v19  ;;  %v12930_v16 = vpop.permute.xlu0 %2582  ;;  %9480 = vmatpush1.bf16.msra.mxu1 %v9479_v47  ;;  %v5987_v19 = vld [vmem:[%s17824_s4 + $0xb0] sm:$0xff]  ;;  %v3074_v47 = vld [vmem:[%s17820_s1] sm:$0xff] }
 0x2f7   :  { %2854 = vrot.lane.b32.xlu0 %v2743_v54, %s10748_s21  ;;  %9481 = vmatprep.subr.bf16.mxu1 %v17936_v34  ;;  %v9482_v62 = vpack.c.bf16 %v5988_v15, %v5987_v19  ;;  %v5990_v54 = vld [vmem:[%s17824_s4 + $0xc8] sm:$0xff]  ;;  %v5087_v15 = vmul.f32 %v12458_v4, %v12627_v23  ;;  %v3077_v4 = vld [vmem:[%s17820_s1 + $0x18] sm:$0xff] }
 0x2f8   :  { %v12935_v0 = vpop.permute.xlu1 %4915 }
 0x2f9   :  { %2198 = vrot.lane.b32.xlu1 %v2096_v11, %s10749_s22  ;;  %v80_v11 = vld [vmem:[%s17822_s0 + $0x168] sm:$0xff] }
 0x2fa   :  { %v12953_v44 = vpop.permute.xlu0 %4550  ;;  %10580 = vset.pattern.permute.xlu1 %v17920_v12  ;;  %9483 = vmatpush1.bf16.msra.mxu1 %v9482_v62  ;;  %v5992_v62 = vld [vmem:[%s17824_s4 + $0xd8] sm:$0xff] }
 0x2fb   :  { %2637 = vperm.xlu0 %10567, %v2466_v58   ;;  %9484 = vmatprep.subr.bf16.mxu1 %v17936_v34  ;;  %v9485_v58 = vpack.c.bf16 %v5990_v54, %v5989_v8  ;;  %v81_v8 = vld [vmem:[%s17822_s0 + $0x170] sm:$0xff]  ;;  %v9488_v54 = vpack.c.bf16 %v5992_v62, %v5991_v7  ;;  %v5994_v7 = vld [vmem:[%s17824_s4 + $0xe8] sm:$0xff]  ;;  %v82_v62 = vld [vmem:[%s17822_s0 + $0x178] sm:$0xff] }
 0x2fc   :  { %9278 = vmatmul.mubr.msk.f32.gmra.mrb[90].mxu1 %vm93_vm5, %v80_v11 }
 0x2fd   :  { %4308 = vperm.xlu1 %10580, %v12619_v41   ;;  %v12967_v30 = vpop.permute.xlu1 %2562  ;;  %9280 = vmatprep.mubr.msk.f32.mxu1 %vm10739_vm4, %v17944_v2 }
 0x2fe   :  { %v12975_v19 = vpop.permute.xlu0 %2834  ;;  %9486 = vmatpush1.bf16.msra.mxu1 %v9485_v58 }
 0x2ff   :  { %10609 = vset.pattern.permute.xlu0 %v17925_v22  ;;  %9487 = vmatprep.subr.bf16.mxu1 %v17936_v34  ;;  %v17956_v22 = vld [vmem:[#allocation12_spill] sm:$0xff] }
 0x300   :  { %3125 = vperm.xlu0 %10609, %v3074_v47   ;;  %9281 = vmatmul.mubr.msk.f32.gmra.mrb[92].mxu1 %vm93_vm5, %v81_v8 }
 0x301   :  { %5189 = vrot.lane.b32.xlu1 %v5087_v15, %s10748_s21  ;;  %9283 = vmatprep.mubr.msk.f32.mxu1 %vm10739_vm4, %v17944_v2  ;;  %v5993_v15 = vld [vmem:[%s17824_s4 + $0xe0] sm:$0xff] }
 0x302   :  { %v12997_v47 = vpop.permute.xlu0 %2587  ;;  %v3136_v11 = vpop.permute.xlu1 %3135  ;;  %10581 = vset.pattern.permute.xlu1 %v17919_v39  ;;  %9489 = vmatpush1.bf16.msra.mxu1 %v9488_v54  ;;  %v3814_v54 = vmul.f32 %v12632_v42, %v12543_v46  ;;  %v3079_v42 = vld [vmem:[%s17820_s1 + $0x28] sm:$0xff]  ;;  %v83_v46 = vld [vmem:[%s17822_s0 + $0x180] sm:$0xff] }
 0x303   :  { %v3370_v58 = vmul.f32 %v12589_v24, %v3136_v11  ;;  %9490 = vmatprep.subr.bf16.mxu1 %v17936_v34  ;;  %v3078_v24 = vld [vmem:[%s17820_s1 + $0x20] sm:$0xff] }
 0x304   :  { %3140 = vperm.xlu0 %10609, %v3077_v4   ;;  %v9491_v4 = vpack.c.bf16 %v5994_v7, %v5993_v15  ;;  %9284 = vmatmul.mubr.msk.f32.gmra.mrb[94].mxu1 %vm93_vm5, %v82_v62  ;;  %v5996_v15 = vld [vmem:[%s17824_s4 + $0xf8] sm:$0xff] }
 0x305   :  { %3419 = vst.msk [vmem:[#allocation3 + $0x38] sm:$0xff] %vm604_vm3, %v3370_v58  ;;  %4945 = vperm.xlu1 %10581, %v12619_v41   ;;  %9286 = vmatprep.mubr.msk.f32.mxu1 %vm10739_vm4, %v17944_v2  ;;  %v5995_v58 = vld [vmem:[%s17824_s4 + $0xf0] sm:$0xff]  ;;  %v1754_v62 = vld [vmem:[#allocation2 + $0x38] sm:$0xff] }
 0x306   :  { %v13019_v8 = vpop.permute.xlu0 %4552  ;;  %9492 = vmatpush1.bf16.msra.mxu1 %v9491_v4  ;;  %v9494_v7 = vpack.c.bf16 %v5996_v15, %v5995_v58  ;;  %v2097_v15 = vmul.f32 %v12149_v53, %v1754_v62  ;;  %v5088_v53 = vmul.f32 %v12555_v35, %v12653_v52  ;;  %v3815_v52 = vmul.f32 %v12535_v28, %v12501_v63  ;;  %v3086_v28 = vld [vmem:[%s17820_s1 + $0x60] sm:$0xff] }
 0x307   :  { %v13024_v11 = vpop.permute.xlu1 %4283  ;;  %9493 = vmatprep.subr.bf16.mxu1 %v17936_v34 }
 0x308   :  { %3145 = vperm.xlu0 %10609, %v3078_v24   ;;  %9287 = vmatmul.mubr.msk.f32.gmra.mrb[96].mxu1 %vm93_vm5, %v83_v46 }
 0x309   :  { %3917 = vrot.lane.b32.xlu1 %v3814_v54, %s10743_s12  ;;  %v3080_v54 = vld [vmem:[%s17820_s1 + $0x30] sm:$0xff] }
 0x30a   :  { %v13042_v24 = vpop.permute.xlu0 %2836  ;;  %10582 = vset.pattern.permute.xlu1 %v17918_v61  ;;  %9495 = vmatpush1.bf16.msra.mxu1 %v9494_v7 }
 0x30b   :  { %9496 = vmatprep.subr.bf16.mxu1 %v17936_v34 }
 0x30c   :  { %3150 = vperm.xlu0 %10609, %v3079_v42   ;;  %v13046_v4 = vpop.permute.xlu1 %2567 }
 0x30d   :  { %3676 = vperm.xlu1 %10582, %v12649_v60  }
 0x30e   :  { %v13053_v58 = vpop.permute.xlu0 %2592 }
 0x310   :  { %3155 = vperm.xlu0 %10609, %v3080_v54   ;;  %v13056_v2 = vpop.permute.xlu1 %3907 }
 0x311   :  { %2200 = vrot.lane.b32.xlu1 %v2097_v15, %s10749_s22 }
 0x312   :  { %v13059_v42 = vpop.permute.xlu0 %4554  ;;  %10583 = vset.pattern.permute.xlu1 %v17920_v12 }
 0x314   :  { %3160 = vperm.xlu0 %10609, %v12406_v43   ;;  %v13063_v46 = vpop.permute.xlu1 %4544  ;;  %v3083_v43 = vld [vmem:[%s17820_s1 + $0x48] sm:$0xff] }
 0x315   :  { %4313 = vperm.xlu1 %10583, %v12649_v60  }
 0x316   :  { %v13066_v7 = vpop.permute.xlu0 %2838 }
 0x318   :  { %3165 = vperm.xlu0 %10609, %v12427_v48   ;;  %v2191_v62 = vpop.permute.xlu1 %2190 }
 0x319   :  { %2338 = vst.msk [vmem:[#allocation3] sm:$0xff] %vm2337_vm7, %v2191_v62  ;;  %5191 = vrot.lane.b32.xlu1 %v5088_v53, %s10748_s21 }
 0x31a   :  { %2976 = vst.msk [vmem:[#allocation3] sm:$0xff] %vm2975_vm8, %v12796_v57  ;;  %v13078_v54 = vpop.permute.xlu0 %2597  ;;  %10584 = vset.pattern.permute.xlu1 %v17919_v39 }
 0x31c   :  { %3170 = vperm.xlu0 %10609, %v3083_v43   ;;  %v13081_v35 = vpop.permute.xlu1 %4288 }
 0x31d   :  { %4950 = vperm.xlu1 %10584, %v12649_v60  }
 0x31e   :  { %v13084_v48 = vpop.permute.xlu0 %4556 }
 0x320   :  { %3175 = vperm.xlu0 %10609, %v12463_v1   ;;  %v13089_v15 = vpop.permute.xlu1 %5181  ;;  %v10672_v1 = vld [vmem:[#allocation2 + $0x40] sm:$0xff] }
 0x321   :  { %3919 = vrot.lane.b32.xlu1 %v3815_v52, %s10743_s12  ;;  %v2098_v62 = vmul.f32 %v10672_v1, %v12160_v18  ;;  %v3088_v18 = vld [vmem:[%s17820_s1 + $0x70] sm:$0xff]  ;;  %v5089_v1 = vmul.f32 %v12587_v45, %v12677_v25  ;;  %v3090_v45 = vld [vmem:[%s17820_s1 + $0x80] sm:$0xff] }
 0x322   :  { %v13092_v57 = vpop.permute.xlu0 %2840  ;;  %10585 = vset.pattern.permute.xlu1 %v17918_v61 }
 0x324   :  { %3180 = vperm.xlu0 %10609, %v12485_v50   ;;  %v13096_v53 = vpop.permute.xlu1 %4925 }
 0x325   :  { %3681 = vperm.xlu1 %10585, %v12671_v36  }
 0x326   :  { %v13102_v63 = vpop.permute.xlu0 %2602 }
 0x328   :  { %3185 = vperm.xlu0 %10609, %v3086_v28   ;;  %v3910_v43 = vpop.permute.xlu1 %3909 }
 0x329   :  { %4055 = vst.msk [vmem:[#allocation3 + $0x20] sm:$0xff] %vm1699_vm6, %v3910_v43  ;;  %2202 = vrot.lane.b32.xlu1 %v2098_v62, %s10749_s22 }
 0x32a   :  { %4692 = vst.msk [vmem:[#allocation3 + $0x20] sm:$0xff] %vm2337_vm7, %v12838_v20  ;;  %v13109_v50 = vpop.permute.xlu0 %4558  ;;  %10586 = vset.pattern.permute.xlu1 %v17920_v12 }
 0x32c   :  { %3190 = vperm.xlu0 %10609, %v12516_v49   ;;  %v13113_v52 = vpop.permute.xlu1 %3656 }
 0x32d   :  { %4318 = vperm.xlu1 %10586, %v12671_v36  }
 0x32e   :  { %v13119_v28 = vpop.permute.xlu0 %2842 }
 0x330   :  { %3195 = vperm.xlu0 %10609, %v3088_v18   ;;  %v2193_v20 = vpop.permute.xlu1 %2192  ;;  %v3816_v18 = vmul.f32 %v12553_v10, %v12595_v9  ;;  %v3091_v9 = vld [vmem:[%s17820_s1 + $0x88] sm:$0xff] }
 0x331   :  { %2339 = vst.msk [vmem:[#allocation3 + $0x18] sm:$0xff] %vm2337_vm7, %v2193_v20  ;;  %5193 = vrot.lane.b32.xlu1 %v5089_v1, %s10748_s21  ;;  %v13141_v1 = vld [vmem:[#allocation2 + $0xe0] sm:$0xff] }
 0x332   :  { %2977 = vst.msk [vmem:[#allocation3 + $0x18] sm:$0xff] %vm2975_vm8, %v12855_v31  ;;  %v13127_v49 = vpop.permute.xlu0 %2607  ;;  %10587 = vset.pattern.permute.xlu1 %v17919_v39 }
 0x334   :  { %3200 = vperm.xlu0 %10609, %v12560_v32   ;;  %v13131_v62 = vpop.permute.xlu1 %4293 }
 0x335   :  { %4955 = vperm.xlu1 %10587, %v12671_v36   ;;  %v4460_v36 = vmul.f32 %v13141_v1, %v12843_v29 }
 0x336   :  { %v13137_v43 = vpop.permute.xlu0 %4560 }
 0x338   :  { %3205 = vperm.xlu0 %10609, %v3090_v45   ;;  %v5184_v31 = vpop.permute.xlu1 %5183  ;;  %v10673_v45 = vld [vmem:[#allocation2 + $0x48] sm:$0xff] }
 0x339   :  { %5329 = vst.msk [vmem:[#allocation3 + $0x20] sm:$0xff] %vm2975_vm8, %v5184_v31  ;;  %3921 = vrot.lane.b32.xlu1 %v3816_v18, %s10743_s12  ;;  %v2099_v18 = vmul.f32 %v10673_v45, %v12162_v38  ;;  %v2744_v31 = vmul.f32 %v12677_v25, %v12774_v51  ;;  %v13172_v38 = vld [vmem:[#allocation2 + $0xe8] sm:$0xff]  ;;  %v5090_v25 = vmul.f32 %v12469_v56, %v12697_v13 }
 0x33a   :  { %v13147_v32 = vpop.permute.xlu0 %2844  ;;  %10588 = vset.pattern.permute.xlu1 %v17918_v61  ;;  %v2745_v56 = vmul.f32 %v12697_v13, %v12967_v30  ;;  %v17948_v30 = vld [vmem:[#allocation6_spill] sm:$0xff] }
 0x33c   :  { %4572 = vrot.lane.b32.xlu0 %v4460_v36, %s10749_s22  ;;  %v13151_v20 = vpop.permute.xlu1 %4930 }
 0x33d   :  { %17945 = vst [vmem:[#allocation62_spill] sm:$0xff] %v13151_v20  ;;  %3686 = vperm.xlu1 %10588, %v12692_v40  }
 0x33e   :  { %v13157_v10 = vpop.permute.xlu0 %2612 }
 0x340   :  { %3210 = vperm.xlu0 %10609, %v3091_v9   ;;  %v3912_v29 = vpop.permute.xlu1 %3911  ;;  %v4461_v9 = vmul.f32 %v12447_v33, %v13172_v38 }
 0x341   :  { %4056 = vst.msk [vmem:[#allocation3 + $0x38] sm:$0xff] %vm1699_vm6, %v3912_v29  ;;  %2204 = vrot.lane.b32.xlu1 %v2099_v18, %s10749_s22  ;;  %v3817_v29 = vmul.f32 %v12581_v27, %v12625_v17  ;;  %v10674_v17 = vld [vmem:[#allocation2 + $0x50] sm:$0xff] }
 0x342   :  { %4693 = vst.msk [vmem:[#allocation3 + $0x38] sm:$0xff] %vm2337_vm7, %v12887_v59  ;;  %v13166_v36 = vpop.permute.xlu0 %4562  ;;  %10589 = vset.pattern.permute.xlu1 %v17920_v12 }
 0x344   :  { %2856 = vrot.lane.b32.xlu0 %v2744_v31, %s10748_s21  ;;  %v13170_v34 = vpop.permute.xlu1 %3661  ;;  %v13200_v31 = vld [vmem:[#allocation2 + $0xf0] sm:$0xff] }
 0x345   :  { %17946 = vst [vmem:[#allocation63_spill] sm:$0xff] %v13170_v34  ;;  %4323 = vperm.xlu1 %10589, %v12692_v40  }
 0x346   :  { %v13177_v45 = vpop.permute.xlu0 %2846 }
 0x348   :  { %4574 = vrot.lane.b32.xlu0 %v4461_v9, %s10749_s22  ;;  %v2195_v51 = vpop.permute.xlu1 %2194  ;;  %v2100_v9 = vmul.f32 %v10674_v17, %v17948_v30  ;;  %v17951_v17 = vld [vmem:[#allocation45_spill] sm:$0xff] }
 0x349   :  { %2340 = vst.msk [vmem:[#allocation3 + $0x30] sm:$0xff] %vm2337_vm7, %v2195_v51  ;;  %5195 = vrot.lane.b32.xlu1 %v5090_v25, %s10748_s21 }
 0x34a   :  { %2978 = vst.msk [vmem:[#allocation3 + $0x30] sm:$0xff] %vm2975_vm8, %v12909_v21  ;;  %v13186_v59 = vpop.permute.xlu0 %2617  ;;  %10590 = vset.pattern.permute.xlu1 %v17919_v39 }
 0x34c   :  { %3215 = vperm.xlu0 %10609, %v12548_v37   ;;  %v13190_v33 = vpop.permute.xlu1 %4298  ;;  %v4462_v37 = vmul.f32 %v13200_v31, %v13024_v11  ;;  %v17949_v11 = vld [vmem:[#allocation50_spill] sm:$0xff] }
 0x34d   :  { %4960 = vperm.xlu1 %10590, %v12692_v40   ;;  %v2746_v51 = vmul.f32 %v17949_v11, %v13046_v4  ;;  %v5091_v4 = vmul.f32 %v17951_v17, %v17949_v11  ;;  %v17952_v11 = vld [vmem:[#allocation53_spill] sm:$0xff] }
 0x34e   :  { %v13195_v18 = vpop.permute.xlu0 %4564  ;;  %v17953_v17 = vld [vmem:[#allocation41_spill] sm:$0xff] }
 0x350   :  { %2858 = vrot.lane.b32.xlu0 %v2745_v56, %s10748_s21  ;;  %v5186_v21 = vpop.permute.xlu1 %5185 }
 0x351   :  { %5330 = vst.msk [vmem:[#allocation3 + $0x38] sm:$0xff] %vm2975_vm8, %v5186_v21  ;;  %3923 = vrot.lane.b32.xlu1 %v3817_v29, %s10743_s12  ;;  %v13228_v21 = vld [vmem:[#allocation2 + $0xf8] sm:$0xff] }
 0x352   :  { %v13206_v40 = vpop.permute.xlu0 %2848  ;;  %10591 = vset.pattern.permute.xlu1 %v17918_v61 }
 0x354   :  { %4576 = vrot.lane.b32.xlu0 %v4462_v37, %s10749_s22  ;;  %v13210_v13 = vpop.permute.xlu1 %4935 }
 0x355   :  { %17947 = vst [vmem:[#allocation64_spill] sm:$0xff] %v13210_v13  ;;  %3691 = vperm.xlu1 %10591, %v12716_v3   ;;  %v17958_v13 = vld [vmem:[#allocation56_spill] sm:$0xff] }
 0x356   :  { %v13213_v27 = vpop.permute.xlu0 %2622 }
 0x358   :  { %3220 = vperm.xlu0 %10609, %v12578_v26   ;;  %v13217_v25 = vpop.permute.xlu1 %3913  ;;  %v4463_v26 = vmul.f32 %v13228_v21, %v13081_v35 }
 0x359   :  { %2206 = vrot.lane.b32.xlu1 %v2100_v9, %s10749_s22 }
 0x35a   :  { %v13222_v56 = vpop.permute.xlu0 %4566  ;;  %10592 = vset.pattern.permute.xlu1 %v17920_v12 }
 0x35c   :  { %2860 = vrot.lane.b32.xlu0 %v2746_v51, %s10748_s21  ;;  %v13226_v29 = vpop.permute.xlu1 %3666  ;;  %v2747_v51 = vmul.f32 %v17952_v11, %v12821_v14 }
 0x35d   :  { %17950 = vst [vmem:[#allocation6_spill] sm:$0xff] %v13226_v29  ;;  %4328 = vperm.xlu1 %10592, %v12716_v3  }
 0x35e   :  { %v13233_v37 = vpop.permute.xlu0 %2850 }
 0x360   :  { %4578 = vrot.lane.b32.xlu0 %v4463_v26, %s10749_s22  ;;  %v2197_v30 = vpop.permute.xlu1 %2196 }
 0x361   :  { %2341 = vst.msk [vmem:[#allocation3 + $0x48] sm:$0xff] %vm2337_vm7, %v2197_v30  ;;  %5197 = vrot.lane.b32.xlu1 %v5091_v4, %s10748_s21  ;;  %v3818_v4 = vmul.f32 %v12605_v55, %v17953_v17  ;;  %v13256_v30 = vld [vmem:[#allocation2 + $0x100] sm:$0xff]  ;;  %v17955_v55 = vld [vmem:[#allocation51_spill] sm:$0xff] }
 0x362   :  { %2979 = vst.msk [vmem:[#allocation3 + $0x48] sm:$0xff] %vm2975_vm8, %v12975_v19  ;;  %v13242_v9 = vpop.permute.xlu0 %2627  ;;  %10593 = vset.pattern.permute.xlu1 %v17919_v39  ;;  %v10675_v17 = vld [vmem:[#allocation2 + $0x58] sm:$0xff] }
 0x363   :  { %v2101_v29 = vmul.f32 %v10675_v17, %v17956_v22 }
 0x364   :  { %3225 = vperm.xlu0 %10609, %v12600_v6   ;;  %v4304_v35 = vpop.permute.xlu1 %4303  ;;  %v4464_v6 = vmul.f32 %v13256_v30, %v13131_v62  ;;  %v17957_v62 = vld [vmem:[#allocation60_spill] sm:$0xff] }
 0x365   :  { %4965 = vperm.xlu1 %10593, %v12716_v3   ;;  %v2748_v34 = vmul.f32 %v17958_v13, %v17957_v62 }
 0x366   :  { %v13249_v26 = vpop.permute.xlu0 %4568 }
 0x368   :  { %2862 = vrot.lane.b32.xlu0 %v2747_v51, %s10748_s21  ;;  %v13254_v19 = vpop.permute.xlu1 %5187 }
 0x369   :  { %3925 = vrot.lane.b32.xlu1 %v3818_v4, %s10743_s12 }
 0x36a   :  { %v13261_v3 = vpop.permute.xlu0 %2852  ;;  %10594 = vset.pattern.permute.xlu1 %v17918_v61 }
 0x36c   :  { %4580 = vrot.lane.b32.xlu0 %v4464_v6, %s10749_s22  ;;  %v13265_v14 = vpop.permute.xlu1 %4940 }
 0x36d   :  { %17954 = vst [vmem:[#allocation50_spill] sm:$0xff] %v13265_v14  ;;  %3696 = vperm.xlu1 %10594, %v17955_v55   ;;  %v13281_v14 = vld [vmem:[#allocation2 + $0x108] sm:$0xff] }
 0x36e   :  { %v13268_v51 = vpop.permute.xlu0 %2632  ;;  %v4465_v22 = vmul.f32 %v13281_v14, %v13190_v33 }
 0x370   :  { %3230 = vperm.xlu0 %10609, %v12619_v41   ;;  %v3916_v4 = vpop.permute.xlu1 %3915 }
 0x371   :  { %2208 = vrot.lane.b32.xlu1 %v2101_v29, %s10749_s22  ;;  %v17961_v29 = vld [vmem:[#allocation46_spill] sm:$0xff] }
 0x372   :  { %v13275_v20 = vpop.permute.xlu0 %4570  ;;  %10595 = vset.pattern.permute.xlu1 %v17920_v12  ;;  %v5092_v17 = vmul.f32 %v17961_v29, %v17952_v11  ;;  %v17963_v11 = vld [vmem:[#allocation58_spill] sm:$0xff]  ;;  %v17964_v29 = vld [vmem:[#allocation47_spill] sm:$0xff] }
 0x374   :  { %2864 = vrot.lane.b32.xlu0 %v2748_v34, %s10748_s21  ;;  %v13279_v6 = vpop.permute.xlu1 %3671 }
 0x375   :  { %17959 = vst [vmem:[#allocation45_spill] sm:$0xff] %v13279_v6  ;;  %4333 = vperm.xlu1 %10595, %v17955_v55   ;;  %v3025_v6 = vld [vmem:[#allocation2 + $0x40] sm:$0xff] }
 0x376   :  { %v13286_v41 = vpop.permute.xlu0 %2854 }
 0x377   :  { %17960 = vst [vmem:[#allocation53_spill] sm:$0xff] %v13286_v41 }
 0x378   :  { %4582 = vrot.lane.b32.xlu0 %v4465_v22, %s10749_s22  ;;  %v2199_v62 = vpop.permute.xlu1 %2198  ;;  %v2749_v22 = vmul.f32 %v17963_v11, %v12930_v16 }
 0x379   :  { %2342 = vst.msk [vmem:[#allocation3 + $0x60] sm:$0xff] %vm2337_vm7, %v2199_v62  ;;  %5199 = vrot.lane.b32.xlu1 %v5092_v17, %s10748_s21  ;;  %v3819_v62 = vmul.f32 %v12627_v23, %v17964_v29  ;;  %v3028_v23 = vld [vmem:[#allocation2 + $0x58] sm:$0xff] }
 0x37a   :  { %2980 = vst.msk [vmem:[#allocation3 + $0x60] sm:$0xff] %vm2975_vm8, %v13042_v24  ;;  %v13295_v34 = vpop.permute.xlu0 %2637  ;;  %10596 = vset.pattern.permute.xlu1 %v17919_v39 }
 0x37b   :  { %17962 = vst [vmem:[#allocation41_spill] sm:$0xff] %v13295_v34  ;;  %v13305_v34 = vld [vmem:[#allocation2 + $0x110] sm:$0xff] }
 0x37c   :  { %3235 = vperm.xlu0 %10609, %v12649_v60   ;;  %v4309_v33 = vpop.permute.xlu1 %4308  ;;  %v4466_v60 = vmul.f32 %v13305_v34, %v4304_v35  ;;  %v17965_v35 = vld [vmem:[#allocation55_spill] sm:$0xff] }
 0x37d   :  { %4970 = vperm.xlu1 %10596, %v17955_v55  }
 0x37f   :  { %v3126_v17 = vpop.permute.xlu0 %3125 }
 0x380   :  { %v3368_v41 = vmul.f32 %v3126_v17, %v3025_v6  ;;  %2866 = vrot.lane.b32.xlu0 %v2749_v22, %s10748_s21  ;;  %v5190_v24 = vpop.permute.xlu1 %5189  ;;  %v17966_v22 = vld [vmem:[#allocation7_spill] sm:$0xff] }
 0x381   :  { %3927 = vrot.lane.b32.xlu1 %v3819_v62, %s10743_s12 }
 0x382   :  { %3417 = vst.msk [vmem:[#allocation3 + $0x8] sm:$0xff] %vm604_vm3, %v3368_v41  ;;  %10597 = vset.pattern.permute.xlu1 %v17918_v61  ;;  %v3097_v41 = vld [vmem:[%s17820_s1 + $0xb8] sm:$0xff] }
 0x383   :  { %4054 = vst.msk [vmem:[#allocation3 + $0x8] sm:$0xff] %vm1699_vm6, %v13056_v2  ;;  %v3141_v16 = vpop.permute.xlu0 %3140  ;;  %v10676_v2 = vld [vmem:[#allocation2 + $0x60] sm:$0xff] }
 0x384   :  { %4691 = vst.msk [vmem:[#allocation3 + $0x8] sm:$0xff] %vm2337_vm7, %v13063_v46  ;;  %v3371_v55 = vmul.f32 %v3141_v16, %v3028_v23  ;;  %4584 = vrot.lane.b32.xlu0 %v4466_v60, %s10749_s22  ;;  %v13316_v6 = vpop.permute.xlu1 %4945  ;;  %v2102_v29 = vmul.f32 %v10676_v2, %v17966_v22  ;;  %v3029_v46 = vld [vmem:[#allocation2 + $0x60] sm:$0xff]  ;;  %v2750_v60 = vmul.f32 %v12893_v5, %v12997_v47  ;;  %v3031_v22 = vld [vmem:[#allocation2 + $0x70] sm:$0xff] }
 0x385   :  { %5328 = vst.msk [vmem:[#allocation3 + $0x8] sm:$0xff] %vm2975_vm8, %v13089_v15  ;;  %3701 = vperm.xlu1 %10597, %v17965_v35  }
 0x386   :  { %3420 = vst.msk [vmem:[#allocation3 + $0x50] sm:$0xff] %vm604_vm3, %v3371_v55 }
 0x387   :  { %4057 = vst.msk [vmem:[#allocation3 + $0x50] sm:$0xff] %vm1699_vm6, %v13217_v25  ;;  %v3146_v62 = vpop.permute.xlu0 %3145  ;;  %v3030_v25 = vld [vmem:[#allocation2 + $0x68] sm:$0xff] }
 0x388   :  { %4694 = vst.msk [vmem:[#allocation3 + $0x50] sm:$0xff] %vm2337_vm7, %v12953_v44  ;;  %v3372_v15 = vmul.f32 %v3146_v62, %v3029_v46  ;;  %3240 = vperm.xlu0 %10609, %v3097_v41   ;;  %v3918_v17 = vpop.permute.xlu1 %3917  ;;  %v5818_v44 = vld [vmem:[#allocation3] sm:$0xff]  ;;  %v13343_v41 = vld [vmem:[#allocation2 + $0x118] sm:$0xff] }
 0x389   :  { %5331 = vst.msk [vmem:[#allocation3 + $0x50] sm:$0xff] %vm2975_vm8, %v13254_v19  ;;  %2210 = vrot.lane.b32.xlu1 %v2102_v29, %s10749_s22  ;;  %v4467_v47 = vmul.f32 %v4309_v33, %v13343_v41  ;;  %v5821_v33 = vld [vmem:[#allocation3 + $0x18] sm:$0xff]  ;;  %v3032_v62 = vld [vmem:[#allocation2 + $0x78] sm:$0xff] }
 0x38a   :  { %3421 = vst.msk [vmem:[#allocation3 + $0x68] sm:$0xff] %vm604_vm3, %v3372_v15  ;;  %10598 = vset.pattern.permute.xlu1 %v17920_v12 }
 0x38b   :  { %4058 = vst.msk [vmem:[#allocation3 + $0x68] sm:$0xff] %vm1699_vm6, %v3916_v4  ;;  %v3151_v23 = vpop.permute.xlu0 %3150  ;;  %v5822_v4 = vld [vmem:[#allocation3 + $0x20] sm:$0xff] }
 0x38c   :  { %4695 = vst.msk [vmem:[#allocation3 + $0x68] sm:$0xff] %vm2337_vm7, %v13019_v8  ;;  %v3373_v16 = vmul.f32 %v3151_v23, %v3030_v25  ;;  %2868 = vrot.lane.b32.xlu0 %v2750_v60, %s10748_s21  ;;  %v5819_v19 = vld [vmem:[#allocation3 + $0x8] sm:$0xff]  ;;  %v13341_v55 = vpop.permute.xlu1 %3676  ;;  %v5824_v25 = vld [vmem:[#allocation3 + $0x30] sm:$0xff]  ;;  %v2751_v23 = vmul.f32 %v13141_v1, %v13053_v58 }
 0x38d   :  { %5332 = vst.msk [vmem:[#allocation3 + $0x68] sm:$0xff] %vm2975_vm8, %v5190_v24  ;;  %6219 = vmatprep.mubr.f32.mxu1 %v5819_v19  ;;  %4338 = vperm.xlu1 %10598, %v17965_v35   ;;  %v17967_v8 = vld [vmem:[#allocation38_spill] sm:$0xff] }
 0x38e   :  { %3422 = vst.msk [vmem:[#allocation3 + $0x80] sm:$0xff] %vm604_vm3, %v3373_v16  ;;  %6220 = vmatmul.mubr.f32.vlgmr.msra.gmra.mrb[98].mxu1 %v5818_v44  ;;  %v5093_v2 = vmul.f32 %v17967_v8, %v17958_v13  ;;  %v3098_v13 = vld [vmem:[%s17820_s1 + $0xc0] sm:$0xff]  ;;  %v5827_v58 = vld [vmem:[#allocation3 + $0x48] sm:$0xff] }
 0x38f   :  { %4059 = vst.msk [vmem:[#allocation3 + $0x80] sm:$0xff] %vm1699_vm6, %v3918_v17  ;;  %v3156_v29 = vpop.permute.xlu0 %3155  ;;  %6224 = vmatprep.mubr.f32.mxu1 %v5822_v4  ;;  %v10677_v44 = vld [vmem:[#allocation2 + $0xa0] sm:$0xff] }
 0x390   :  { %4696 = vst.msk [vmem:[#allocation3 + $0x80] sm:$0xff] %vm2337_vm7, %v13059_v42  ;;  %v3374_v24 = vmul.f32 %v3156_v29, %v3031_v22  ;;  %4586 = vrot.lane.b32.xlu0 %v4467_v47, %s10749_s22  ;;  %v2201_v46 = vpop.permute.xlu1 %2200  ;;  %v5825_v42 = vld [vmem:[#allocation3 + $0x38] sm:$0xff] }
 0x391   :  { %2343 = vst.msk [vmem:[#allocation3 + $0x78] sm:$0xff] %vm2337_vm7, %v2201_v46  ;;  %5201 = vrot.lane.b32.xlu1 %v5093_v2, %s10748_s21  ;;  %v17968_v16 = vld [vmem:[#allocation48_spill] sm:$0xff]  ;;  %v3034_v46 = vld [vmem:[#allocation2 + $0x88] sm:$0xff] }
 0x392   :  { %3423 = vst.msk [vmem:[#allocation3 + $0x98] sm:$0xff] %vm604_vm3, %v3374_v24  ;;  %6225 = vmatmul.mubr.f32.gmra.mrb[100].mxu1 %v5821_v33  ;;  %10599 = vset.pattern.permute.xlu1 %v17919_v39  ;;  %v3820_v19 = vmul.f32 %v10677_v44, %v17968_v16  ;;  %v3033_v47 = vld [vmem:[#allocation2 + $0x80] sm:$0xff] }
 0x393   :  { %2981 = vst.msk [vmem:[#allocation3 + $0x78] sm:$0xff] %vm2975_vm8, %v13066_v7  ;;  %v3161_v15 = vpop.permute.xlu0 %3160  ;;  %6229 = vmatprep.mubr.f32.mxu1 %v5825_v42  ;;  %v5828_v7 = vld [vmem:[#allocation3 + $0x50] sm:$0xff]  ;;  %v13370_v22 = vld [vmem:[#allocation2 + $0x120] sm:$0xff] }
 0x394   :  { %v3375_v17 = vmul.f32 %v3161_v15, %v3032_v62  ;;  %3245 = vperm.xlu0 %10609, %v3098_v13   ;;  %v4314_v60 = vpop.permute.xlu1 %4313  ;;  %v5831_v29 = vld [vmem:[#allocation3 + $0x68] sm:$0xff]  ;;  %v13380_v24 = vld [vmem:[%s17820_s1 + $0xe0] sm:$0xff]  ;;  %v5830_v62 = vld [vmem:[#allocation3 + $0x60] sm:$0xff] }
 0x395   :  { %4975 = vperm.xlu1 %10599, %v17965_v35   ;;  %v4468_v35 = vmul.f32 %v4314_v60, %v13370_v22  ;;  %v3099_v15 = vld [vmem:[%s17820_s1 + $0xc8] sm:$0xff] }
 0x396   :  { %3424 = vst.msk [vmem:[#allocation3 + $0xb0] sm:$0xff] %vm604_vm3, %v3375_v17  ;;  %6230 = vmatmul.mubr.f32.gmra.mrb[102].mxu1 %v5824_v25  ;;  %v10678_v17 = vld [vmem:[#allocation2 + $0x68] sm:$0xff] }
 0x397   :  { %v3166_v4 = vpop.permute.xlu0 %3165  ;;  %6234 = vmatprep.mubr.f32.mxu1 %v5828_v7  ;;  %v17969_v60 = vld [vmem:[#allocation13_spill] sm:$0xff] }
 0x398   :  { %v3376_v8 = vmul.f32 %v3166_v4, %v3033_v47  ;;  %2870 = vrot.lane.b32.xlu0 %v2751_v23, %s10748_s21  ;;  %v5192_v2 = vpop.permute.xlu1 %5191  ;;  %v2103_v25 = vmul.f32 %v10678_v17, %v17969_v60  ;;  %v3035_v23 = vld [vmem:[#allocation2 + $0x90] sm:$0xff]  ;;  %v2752_v4 = vmul.f32 %v13172_v38, %v13078_v54  ;;  %v17970_v54 = vld [vmem:[#allocation49_spill] sm:$0xff] }
 0x399   :  { %5333 = vst.msk [vmem:[#allocation3 + $0x80] sm:$0xff] %vm2975_vm8, %v5192_v2  ;;  %3929 = vrot.lane.b32.xlu1 %v3820_v19, %s10743_s12  ;;  %v13412_v17 = vld [vmem:[#allocation2 + $0x128] sm:$0xff] }
 0x39a   :  { %3425 = vst.msk [vmem:[#allocation3 + $0xc8] sm:$0xff] %vm604_vm3, %v3376_v8  ;;  %6235 = vmatmul.mubr.f32.gmra.mrb[104].mxu1 %v5827_v58  ;;  %10600 = vset.pattern.permute.xlu1 %v17918_v61  ;;  %v5833_v47 = vld [vmem:[#allocation3 + $0x78] sm:$0xff]  ;;  %v3036_v8 = vld [vmem:[#allocation2 + $0x98] sm:$0xff] }
 0x39b   :  { %v3171_v33 = vpop.permute.xlu0 %3170  ;;  %6239 = vmatprep.mubr.f32.mxu1 %v5831_v29  ;;  %v5094_v29 = vmul.f32 %v17970_v54, %v17963_v11 }
 0x39c   :  { %v3377_v13 = vmul.f32 %v3171_v33, %v3034_v46  ;;  %4588 = vrot.lane.b32.xlu0 %v4468_v35, %s10749_s22  ;;  %v13383_v42 = vpop.permute.xlu1 %4950  ;;  %v3037_v46 = vld [vmem:[#allocation2 + $0xa0] sm:$0xff] }
 0x39d   :  { %3706 = vperm.xlu1 %10600, %v13380_v24  }
 0x39e   :  { %3426 = vst.msk [vmem:[#allocation3 + $0xe0] sm:$0xff] %vm604_vm3, %v3377_v13  ;;  %6240 = vmatmul.mubr.f32.gmra.mrb[106].mxu1 %v5830_v62  ;;  %v3038_v62 = vld [vmem:[#allocation2 + $0xa8] sm:$0xff] }
 0x39f   :  { %v3176_v7 = vpop.permute.xlu0 %3175 }
 0x3a0   :  { %v3378_v44 = vmul.f32 %v3176_v7, %v3035_v23  ;;  %3250 = vperm.xlu0 %10609, %v3099_v15   ;;  %v3920_v16 = vpop.permute.xlu1 %3919  ;;  %v5834_v19 = vld [vmem:[#allocation3 + $0x80] sm:$0xff]  ;;  %v17971_v7 = vld [vmem:[#allocation42_spill] sm:$0xff] }
 0x3a1   :  { %4060 = vst.msk [vmem:[#allocation3 + $0x98] sm:$0xff] %vm1699_vm6, %v3920_v16  ;;  %2212 = vrot.lane.b32.xlu1 %v2103_v25, %s10749_s22  ;;  %6244 = vmatprep.mubr.f32.mxu1 %v5834_v19  ;;  %v10679_v23 = vld [vmem:[#allocation2 + $0xa8] sm:$0xff]  ;;  %v3039_v16 = vld [vmem:[#allocation2 + $0xb0] sm:$0xff] }
 0x3a2   :  { %3427 = vst.msk [vmem:[#allocation3 + $0xf8] sm:$0xff] %vm604_vm3, %v3378_v44  ;;  %6245 = vmatmul.mubr.f32.gmra.mrb[108].mxu1 %v5833_v47  ;;  %10601 = vset.pattern.permute.xlu1 %v17920_v12  ;;  %v3821_v44 = vmul.f32 %v10679_v23, %v17971_v7 }
 0x3a3   :  { %4697 = vst.msk [vmem:[#allocation3 + $0x98] sm:$0xff] %vm2337_vm7, %v13084_v48  ;;  %v3181_v2 = vpop.permute.xlu0 %3180 }
 0x3a4   :  { %v3379_v58 = vmul.f32 %v3181_v2, %v3036_v8  ;;  %2872 = vrot.lane.b32.xlu0 %v2752_v4, %s10748_s21  ;;  %v13400_v35 = vpop.permute.xlu1 %3681  ;;  %v3100_v4 = vld [vmem:[%s17820_s1 + $0xd0] sm:$0xff]  ;;  %v13429_v8 = vld [vmem:[%s17820_s1 + $0xe8] sm:$0xff]  ;;  %v3040_v2 = vld [vmem:[#allocation2 + $0xb8] sm:$0xff] }
 0x3a5   :  { %4343 = vperm.xlu1 %10601, %v13380_v24  }
 0x3a6   :  { %3428 = vst.msk [vmem:[#allocation3 + $0x110] sm:$0xff] %vm604_vm3, %v3379_v58 }
 0x3a7   :  { %v3186_v33 = vpop.permute.xlu0 %3185 }
 0x3a8   :  { %v3380_v48 = vmul.f32 %v3186_v33, %v3037_v46  ;;  %v2203_v13 = vpop.permute.xlu1 %2202  ;;  %v2753_v46 = vmul.f32 %v13200_v31, %v13102_v63  ;;  %v10680_v33 = vld [vmem:[#allocation2 + $0x70] sm:$0xff] }
 0x3a9   :  { %2344 = vst.msk [vmem:[#allocation3 + $0x90] sm:$0xff] %vm2337_vm7, %v2203_v13  ;;  %5203 = vrot.lane.b32.xlu1 %v5094_v29, %s10748_s21 }
 0x3aa   :  { %3429 = vst.msk [vmem:[#allocation3 + $0x128] sm:$0xff] %vm604_vm3, %v3380_v48  ;;  %10602 = vset.pattern.permute.xlu1 %v17919_v39  ;;  %v17972_v48 = vld [vmem:[#allocation8_spill] sm:$0xff] }
 0x3ab   :  { %2982 = vst.msk [vmem:[#allocation3 + $0x90] sm:$0xff] %vm2975_vm8, %v13092_v57  ;;  %v3191_v15 = vpop.permute.xlu0 %3190  ;;  %v2104_v13 = vmul.f32 %v10680_v33, %v17972_v48 }
 0x3ac   :  { %v3381_v11 = vmul.f32 %v3191_v15, %v3038_v62  ;;  %v4319_v60 = vpop.permute.xlu1 %4318  ;;  %v3041_v62 = vld [vmem:[#allocation2 + $0xc0] sm:$0xff] }
 0x3ad   :  { %v4469_v25 = vmul.f32 %v4319_v60, %v13412_v17  ;;  %4980 = vperm.xlu1 %10602, %v13380_v24  }
 0x3ae   :  { %3430 = vst.msk [vmem:[#allocation3 + $0x140] sm:$0xff] %vm604_vm3, %v3381_v11 }
 0x3af   :  { %v3196_v19 = vpop.permute.xlu0 %3195  ;;  %4590 = vrot.lane.b32.xlu0 %v4469_v25, %s10749_s22 }
 0x3b0   :  { %v3382_v57 = vmul.f32 %v3196_v19, %v3039_v16  ;;  %v5194_v47 = vpop.permute.xlu1 %5193  ;;  %v3042_v19 = vld [vmem:[#allocation2 + $0xc8] sm:$0xff] }
 0x3b1   :  { %5334 = vst.msk [vmem:[#allocation3 + $0x98] sm:$0xff] %vm2975_vm8, %v5194_v47  ;;  %3931 = vrot.lane.b32.xlu1 %v3821_v44, %s10743_s12  ;;  %v17973_v44 = vld [vmem:[#allocation52_spill] sm:$0xff] }
 0x3b2   :  { %3431 = vst.msk [vmem:[#allocation3 + $0x158] sm:$0xff] %vm604_vm3, %v3382_v57  ;;  %10603 = vset.pattern.permute.xlu1 %v17918_v61  ;;  %v5836_v63 = vld [vmem:[#allocation3 + $0x90] sm:$0xff]  ;;  %v5095_v16 = vmul.f32 %v17973_v44, %v12893_v5 }
 0x3b3   :  { %v3201_v58 = vpop.permute.xlu0 %3200  ;;  %3255 = vperm.xlu0 %10609, %v3100_v4   ;;  %v10682_v44 = vld [vmem:[#allocation2 + $0x78] sm:$0xff] }
 0x3b4   :  { %v3383_v54 = vmul.f32 %v3201_v58, %v3040_v2  ;;  %v13431_v29 = vpop.permute.xlu1 %4955  ;;  %v13460_v2 = vld [vmem:[#allocation2 + $0x130] sm:$0xff] }
 0x3b5   :  { %3711 = vperm.xlu1 %10603, %v13429_v8  }
 0x3b6   :  { %3432 = vst.msk [vmem:[#allocation3 + $0x170] sm:$0xff] %vm604_vm3, %v3383_v54  ;;  %v10681_v54 = vld [vmem:[#allocation2 + $0xb0] sm:$0xff] }
 0x3b7   :  { %v3206_v15 = vpop.permute.xlu0 %3205  ;;  %2874 = vrot.lane.b32.xlu0 %v2753_v46, %s10748_s21  ;;  %v17974_v46 = vld [vmem:[#allocation54_spill] sm:$0xff] }
 0x3b8   :  { %v3384_v11 = vmul.f32 %v3206_v15, %v3041_v62  ;;  %v3922_v60 = vpop.permute.xlu1 %3921  ;;  %v5837_v25 = vld [vmem:[#allocation3 + $0x98] sm:$0xff]  ;;  %v3822_v33 = vmul.f32 %v10681_v54, %v17974_v46  ;;  %v13477_v62 = vld [vmem:[%s17820_s1 + $0xf0] sm:$0xff]  ;;  %v17976_v54 = vld [vmem:[#allocation39_spill] sm:$0xff] }
 0x3b9   :  { %4061 = vst.msk [vmem:[#allocation3 + $0xb0] sm:$0xff] %vm1699_vm6, %v3922_v60  ;;  %2214 = vrot.lane.b32.xlu1 %v2104_v13, %s10749_s22  ;;  %6249 = vmatprep.mubr.f32.mxu1 %v5837_v25  ;;  %v3043_v15 = vld [vmem:[#allocation2 + $0xd0] sm:$0xff]  ;;  %v5096_v46 = vmul.f32 %v17976_v54, %v13141_v1 }
 0x3ba   :  { %3433 = vst.msk [vmem:[#allocation3 + $0x188] sm:$0xff] %vm604_vm3, %v3384_v11  ;;  %6250 = vmatmul.mubr.f32.gmra.mrb[110].mxu1 %v5836_v63  ;;  %10604 = vset.pattern.permute.xlu1 %v17920_v12  ;;  %v2754_v63 = vmul.f32 %v13228_v21, %v13127_v49 }
 0x3bb   :  { %4698 = vst.msk [vmem:[#allocation3 + $0xb0] sm:$0xff] %vm2337_vm7, %v13109_v50  ;;  %v13445_v23 = vpop.permute.xlu0 %4572 }
 0x3bc   :  { %v13447_v7 = vpop.permute.xlu1 %3686 }
 0x3bd   :  { %4348 = vperm.xlu1 %10604, %v13429_v8  }
 0x3bf   :  { %v3211_v57 = vpop.permute.xlu0 %3210 }
 0x3c0   :  { %v3385_v47 = vmul.f32 %v3211_v57, %v3042_v19  ;;  %v2205_v4 = vpop.permute.xlu1 %2204 }
 0x3c1   :  { %2345 = vst.msk [vmem:[#allocation3 + $0xa8] sm:$0xff] %vm2337_vm7, %v2205_v4  ;;  %5205 = vrot.lane.b32.xlu1 %v5095_v16, %s10748_s21  ;;  %v17975_v16 = vld [vmem:[#allocation15_spill] sm:$0xff] }
 0x3c2   :  { %3434 = vst.msk [vmem:[#allocation3 + $0x1a0] sm:$0xff] %vm604_vm3, %v3385_v47  ;;  %10605 = vset.pattern.permute.xlu1 %v17919_v39  ;;  %v2105_v19 = vmul.f32 %v10682_v44, %v17975_v16  ;;  %v17977_v44 = vld [vmem:[#allocation57_spill] sm:$0xff] }
 0x3c3   :  { %2983 = vst.msk [vmem:[#allocation3 + $0xa8] sm:$0xff] %vm2975_vm8, %v13119_v28  ;;  %v13458_v50 = vpop.permute.xlu0 %2856  ;;  %v3101_v28 = vld [vmem:[%s17820_s1 + $0xd8] sm:$0xff] }
 0x3c4   :  { %v4324_v5 = vpop.permute.xlu1 %4323 }
 0x3c5   :  { %v4470_v58 = vmul.f32 %v13460_v2, %v4324_v5  ;;  %4985 = vperm.xlu1 %10605, %v13429_v8  }
 0x3c7   :  { %v13465_v48 = vpop.permute.xlu0 %4574  ;;  %4592 = vrot.lane.b32.xlu0 %v4470_v58, %s10749_s22 }
 0x3c8   :  { %v5196_v13 = vpop.permute.xlu1 %5195 }
 0x3c9   :  { %5335 = vst.msk [vmem:[#allocation3 + $0xb0] sm:$0xff] %vm2975_vm8, %v5196_v13  ;;  %3933 = vrot.lane.b32.xlu1 %v3822_v33, %s10743_s12  ;;  %v3044_v33 = vld [vmem:[#allocation2 + $0xd8] sm:$0xff] }
 0x3ca   :  { %10606 = vset.pattern.permute.xlu1 %v17918_v61  ;;  %v5839_v5 = vld [vmem:[#allocation3 + $0xa8] sm:$0xff] }
 0x3cb   :  { %v3216_v11 = vpop.permute.xlu0 %3215  ;;  %3260 = vperm.xlu0 %10609, %v3101_v28  }
 0x3cc   :  { %v3386_v60 = vmul.f32 %v3216_v11, %v3043_v15  ;;  %v13479_v25 = vpop.permute.xlu1 %4960  ;;  %v13509_v11 = vld [vmem:[#allocation2 + $0x138] sm:$0xff] }
 0x3cd   :  { %3716 = vperm.xlu1 %10606, %v13477_v62  }
 0x3ce   :  { %3435 = vst.msk [vmem:[#allocation3 + $0x1b8] sm:$0xff] %vm604_vm3, %v3386_v60 }
 0x3cf   :  { %v13486_v57 = vpop.permute.xlu0 %2858  ;;  %2876 = vrot.lane.b32.xlu0 %v2754_v63, %s10748_s21  ;;  %v10683_v63 = vld [vmem:[#allocation2 + $0xb8] sm:$0xff] }
 0x3d0   :  { %v3924_v47 = vpop.permute.xlu1 %3923  ;;  %v5840_v4 = vld [vmem:[#allocation3 + $0xb0] sm:$0xff]  ;;  %v3823_v16 = vmul.f32 %v10683_v63, %v17977_v44 }
 0x3d1   :  { %4062 = vst.msk [vmem:[#allocation3 + $0xc8] sm:$0xff] %vm1699_vm6, %v3924_v47  ;;  %2216 = vrot.lane.b32.xlu1 %v2105_v19, %s10749_s22  ;;  %6254 = vmatprep.mubr.f32.mxu1 %v5840_v4  ;;  %v3045_v4 = vld [vmem:[#allocation2 + $0xe0] sm:$0xff] }
 0x3d2   :  { %4699 = vst.msk [vmem:[#allocation3 + $0xc8] sm:$0xff] %vm2337_vm7, %v13137_v43  ;;  %6255 = vmatmul.mubr.f32.gmra.mrb[112].mxu1 %v5839_v5  ;;  %10607 = vset.pattern.permute.xlu1 %v17920_v12 }
 0x3d3   :  { %v13494_v49 = vpop.permute.xlu0 %4576 }
 0x3d4   :  { %v13496_v58 = vpop.permute.xlu1 %3691 }
 0x3d5   :  { %4353 = vperm.xlu1 %10607, %v13477_v62  }
 0x3d7   :  { %v3221_v13 = vpop.permute.xlu0 %3220 }
 0x3d8   :  { %v3387_v28 = vmul.f32 %v3221_v13, %v3044_v33  ;;  %v2207_v15 = vpop.permute.xlu1 %2206  ;;  %v2755_v33 = vmul.f32 %v13256_v30, %v13157_v10  ;;  %v10684_v13 = vld [vmem:[#allocation2 + $0x80] sm:$0xff] }
 0x3d9   :  { %2346 = vst.msk [vmem:[#allocation3 + $0xc0] sm:$0xff] %vm2337_vm7, %v2207_v15  ;;  %5207 = vrot.lane.b32.xlu1 %v5096_v46, %s10748_s21 }
 0x3da   :  { %3436 = vst.msk [vmem:[#allocation3 + $0x1d0] sm:$0xff] %vm604_vm3, %v3387_v28  ;;  %10608 = vset.pattern.permute.xlu1 %v17919_v39  ;;  %v17978_v28 = vld [vmem:[#allocation14_spill] sm:$0xff] }
 0x3db   :  { %2984 = vst.msk [vmem:[#allocation3 + $0xc0] sm:$0xff] %vm2975_vm8, %v13147_v32  ;;  %v13507_v43 = vpop.permute.xlu0 %2860  ;;  %v13523_v32 = vld [vmem:[%s17820_s1 + $0xf8] sm:$0xff]  ;;  %v2106_v15 = vmul.f32 %v10684_v13, %v17978_v28 }
 0x3dc   :  { %v4329_v1 = vpop.permute.xlu1 %4328 }
 0x3dd   :  { %v4471_v60 = vmul.f32 %v13509_v11, %v4329_v1  ;;  %4990 = vperm.xlu1 %10608, %v13477_v62  }
 0x3df   :  { %v13514_v19 = vpop.permute.xlu0 %4578  ;;  %4594 = vrot.lane.b32.xlu0 %v4471_v60, %s10749_s22 }
 0x3e0   :  { %v5198_v47 = vpop.permute.xlu1 %5197 }
 0x3e1   :  { %5336 = vst.msk [vmem:[#allocation3 + $0xc8] sm:$0xff] %vm2975_vm8, %v5198_v47  ;;  %3935 = vrot.lane.b32.xlu1 %v3823_v16, %s10743_s12  ;;  %v17980_v16 = vld [vmem:[#allocation59_spill] sm:$0xff] }
 0x3e2   :  { %10610 = vset.pattern.permute.xlu1 %v17918_v61  ;;  %v5097_v47 = vmul.f32 %v17980_v16, %v13172_v38  ;;  %v13559_v38 = vld [vmem:[#allocation2 + $0x140] sm:$0xff] }
 0x3e3   :  { %v3226_v5 = vpop.permute.xlu0 %3225  ;;  %3265 = vperm.xlu0 %10609, %v13380_v24   ;;  %v5842_v24 = vld [vmem:[#allocation3 + $0xc0] sm:$0xff] }
 0x3e4   :  { %v3388_v54 = vmul.f32 %v3226_v5, %v3045_v4  ;;  %v13526_v46 = vpop.permute.xlu1 %4965  ;;  %v13548_v4 = vld [vmem:[#allocation2 + $0xe8] sm:$0xff] }
 0x3e5   :  { %3721 = vperm.xlu1 %10610, %v13523_v32  }
 0x3e6   :  { %3437 = vst.msk [vmem:[#allocation3 + $0x1e8] sm:$0xff] %vm604_vm3, %v3388_v54 }
 0x3e7   :  { %v13533_v1 = vpop.permute.xlu0 %2862  ;;  %2878 = vrot.lane.b32.xlu0 %v2755_v33, %s10748_s21 }
 0x3e8   :  { %v3926_v60 = vpop.permute.xlu1 %3925  ;;  %v5843_v63 = vld [vmem:[#allocation3 + $0xc8] sm:$0xff] }
 0x3e9   :  { %4063 = vst.msk [vmem:[#allocation3 + $0xe0] sm:$0xff] %vm1699_vm6, %v3926_v60  ;;  %2218 = vrot.lane.b32.xlu1 %v2106_v15, %s10749_s22  ;;  %6259 = vmatprep.mubr.f32.mxu1 %v5843_v63  ;;  %v10685_v15 = vld [vmem:[#allocation2 + $0xc0] sm:$0xff]  ;;  %v17981_v60 = vld [vmem:[#allocation61_spill] sm:$0xff] }
 0x3ea   :  { %4700 = vst.msk [vmem:[#allocation3 + $0xe0] sm:$0xff] %vm2337_vm7, %v13166_v36  ;;  %6260 = vmatmul.mubr.f32.gmra.mrb[114].mxu1 %v5842_v24  ;;  %10611 = vset.pattern.permute.xlu1 %v17920_v12  ;;  %v3824_v63 = vmul.f32 %v10685_v15, %v17981_v60  ;;  %v17983_v15 = vld [vmem:[#allocation17_spill] sm:$0xff] }
 0x3eb   :  { %v13541_v10 = vpop.permute.xlu0 %4580 }
 0x3ec   :  { %v13543_v44 = vpop.permute.xlu1 %3696 }
 0x3ed   :  { %17979 = vst [vmem:[#allocation51_spill] sm:$0xff] %v13543_v44  ;;  %4358 = vperm.xlu1 %10611, %v13523_v32  }
 0x3ef   :  { %v3231_v5 = vpop.permute.xlu0 %3230 }
 0x3f0   :  { %v3389_v54 = vmul.f32 %v13548_v4, %v3231_v5  ;;  %v2209_v33 = vpop.permute.xlu1 %2208 }
 0x3f1   :  { %2347 = vst.msk [vmem:[#allocation3 + $0xd8] sm:$0xff] %vm2337_vm7, %v2209_v33  ;;  %5209 = vrot.lane.b32.xlu1 %v5097_v47, %s10748_s21  ;;  %v3047_v47 = vld [vmem:[#allocation2 + $0xf0] sm:$0xff] }
 0x3f2   :  { %3438 = vst.msk [vmem:[#allocation3 + $0x200] sm:$0xff] %vm604_vm3, %v3389_v54  ;;  %10612 = vset.pattern.permute.xlu1 %v17919_v39 }
 0x3f3   :  { %2985 = vst.msk [vmem:[#allocation3 + $0xd8] sm:$0xff] %vm2975_vm8, %v13177_v45  ;;  %v13557_v36 = vpop.permute.xlu0 %2864  ;;  %v13573_v45 = vld [vmem:[%s17820_s1 + $0x100] sm:$0xff] }
 0x3f4   :  { %v4334_v13 = vpop.permute.xlu1 %4333 }
 0x3f5   :  { %v4472_v28 = vmul.f32 %v13559_v38, %v4334_v13  ;;  %4995 = vperm.xlu1 %10612, %v13523_v32   ;;  %v2756_v13 = vmul.f32 %v13281_v14, %v13186_v59 }
 0x3f7   :  { %v13564_v24 = vpop.permute.xlu0 %4582  ;;  %4596 = vrot.lane.b32.xlu0 %v4472_v28, %s10749_s22  ;;  %v10686_v28 = vld [vmem:[#allocation2 + $0x88] sm:$0xff] }
 0x3f8   :  { %v5200_v16 = vpop.permute.xlu1 %5199  ;;  %v2107_v60 = vmul.f32 %v10686_v28, %v17983_v15 }
 0x3f9   :  { %5337 = vst.msk [vmem:[#allocation3 + $0xe0] sm:$0xff] %vm2975_vm8, %v5200_v16  ;;  %3937 = vrot.lane.b32.xlu1 %v3824_v63, %s10743_s12 }
 0x3fa   :  { %10613 = vset.pattern.permute.xlu1 %v17918_v61 }
 0x3fb   :  { %v3236_v5 = vpop.permute.xlu0 %3235  ;;  %3270 = vperm.xlu0 %10609, %v13429_v8   ;;  %v5845_v8 = vld [vmem:[#allocation3 + $0xd8] sm:$0xff] }
 0x3fc   :  { %v3390_v54 = vmul.f32 %v3236_v5, %v3047_v47  ;;  %v13576_v33 = vpop.permute.xlu1 %4970  ;;  %v5098_v5 = vmul.f32 %v12935_v0, %v13200_v31  ;;  %v13609_v0 = vld [vmem:[#allocation2 + $0x148] sm:$0xff] }
 0x3fd   :  { %17982 = vst [vmem:[#allocation12_spill] sm:$0xff] %v13576_v33  ;;  %3726 = vperm.xlu1 %10613, %v13573_v45  }
 0x3fe   :  { %3439 = vst.msk [vmem:[#allocation3 + $0x218] sm:$0xff] %vm604_vm3, %v3390_v54  ;;  %v13598_v54 = vld [vmem:[#allocation2 + $0xf8] sm:$0xff] }
 0x3ff   :  { %v13583_v63 = vpop.permute.xlu0 %2866  ;;  %2880 = vrot.lane.b32.xlu0 %v2756_v13, %s10748_s21 }
 0x400   :  { %v3928_v16 = vpop.permute.xlu1 %3927  ;;  %v5846_v44 = vld [vmem:[#allocation3 + $0xe0] sm:$0xff] }
 0x401   :  { %4064 = vst.msk [vmem:[#allocation3 + $0xf8] sm:$0xff] %vm1699_vm6, %v3928_v16  ;;  %2220 = vrot.lane.b32.xlu1 %v2107_v60, %s10749_s22  ;;  %6264 = vmatprep.mubr.f32.mxu1 %v5846_v44  ;;  %v10687_v60 = vld [vmem:[#allocation2 + $0xc8] sm:$0xff]  ;;  %v17985_v16 = vld [vmem:[#allocation43_spill] sm:$0xff] }
 0x402   :  { %4701 = vst.msk [vmem:[#allocation3 + $0xf8] sm:$0xff] %vm2337_vm7, %v13195_v18  ;;  %6265 = vmatmul.mubr.f32.gmra.mrb[116].mxu1 %v5845_v8  ;;  %10614 = vset.pattern.permute.xlu1 %v17920_v12  ;;  %v3825_v8 = vmul.f32 %v10687_v60, %v17985_v16  ;;  %v10688_v16 = vld [vmem:[#allocation2 + $0x90] sm:$0xff] }
 0x403   :  { %v13591_v59 = vpop.permute.xlu0 %4584 }
 0x404   :  { %v13593_v47 = vpop.permute.xlu1 %3701 }
 0x405   :  { %17984 = vst [vmem:[#allocation60_spill] sm:$0xff] %v13593_v47  ;;  %4363 = vperm.xlu1 %10614, %v13573_v45  }
 0x407   :  { %v3241_v13 = vpop.permute.xlu0 %3240 }
 0x408   :  { %v3391_v44 = vmul.f32 %v13598_v54, %v3241_v13  ;;  %v2211_v28 = vpop.permute.xlu1 %2210 }
 0x409   :  { %2348 = vst.msk [vmem:[#allocation3 + $0xf0] sm:$0xff] %vm2337_vm7, %v2211_v28  ;;  %5211 = vrot.lane.b32.xlu1 %v5098_v5, %s10748_s21 }
 0x40a   :  { %3440 = vst.msk [vmem:[#allocation3 + $0x230] sm:$0xff] %vm604_vm3, %v3391_v44  ;;  %10615 = vset.pattern.permute.xlu1 %v17919_v39  ;;  %v3049_v44 = vld [vmem:[#allocation2 + $0x100] sm:$0xff] }
 0x40b   :  { %2986 = vst.msk [vmem:[#allocation3 + $0xf0] sm:$0xff] %vm2975_vm8, %v13206_v40  ;;  %v13607_v18 = vpop.permute.xlu0 %2868  ;;  %v13623_v40 = vld [vmem:[%s17820_s1 + $0x108] sm:$0xff] }
 0x40c   :  { %v4339_v31 = vpop.permute.xlu1 %4338 }
 0x40d   :  { %v4473_v15 = vmul.f32 %v13609_v0, %v4339_v31  ;;  %5000 = vperm.xlu1 %10615, %v13573_v45  }
 0x40f   :  { %v13614_v5 = vpop.permute.xlu0 %4586  ;;  %4598 = vrot.lane.b32.xlu0 %v4473_v15, %s10749_s22  ;;  %v2757_v15 = vmul.f32 %v13305_v34, %v13213_v27 }
 0x410   :  { %17986 = vst [vmem:[#allocation56_spill] sm:$0xff] %v13614_v5  ;;  %v5202_v13 = vpop.permute.xlu1 %5201 }
 0x411   :  { %5338 = vst.msk [vmem:[#allocation3 + $0xf8] sm:$0xff] %vm2975_vm8, %v5202_v13  ;;  %3939 = vrot.lane.b32.xlu1 %v3825_v8, %s10743_s12  ;;  %v17987_v8 = vld [vmem:[#allocation16_spill] sm:$0xff] }
 0x412   :  { %10616 = vset.pattern.permute.xlu1 %v17918_v61  ;;  %v2108_v13 = vmul.f32 %v10688_v16, %v17987_v8 }
 0x413   :  { %v3246_v28 = vpop.permute.xlu0 %3245  ;;  %3275 = vperm.xlu0 %10609, %v13477_v62   ;;  %v5848_v62 = vld [vmem:[#allocation3 + $0xf0] sm:$0xff] }
 0x414   :  { %v3392_v31 = vmul.f32 %v3246_v28, %v3049_v44  ;;  %v13626_v60 = vpop.permute.xlu1 %4975  ;;  %v17988_v28 = vld [vmem:[#allocation40_spill] sm:$0xff] }
 0x415   :  { %3731 = vperm.xlu1 %10616, %v13623_v40  }
 0x416   :  { %3441 = vst.msk [vmem:[#allocation3 + $0x248] sm:$0xff] %vm604_vm3, %v3392_v31  ;;  %v5099_v31 = vmul.f32 %v17988_v28, %v13228_v21 }
 0x417   :  { %v13633_v47 = vpop.permute.xlu0 %2870  ;;  %2882 = vrot.lane.b32.xlu0 %v2757_v15, %s10748_s21 }
 0x418   :  { %v3930_v33 = vpop.permute.xlu1 %3929  ;;  %v5849_v5 = vld [vmem:[#allocation3 + $0xf8] sm:$0xff] }
 0x419   :  { %4065 = vst.msk [vmem:[#allocation3 + $0x110] sm:$0xff] %vm1699_vm6, %v3930_v33  ;;  %2222 = vrot.lane.b32.xlu1 %v2108_v13, %s10749_s22  ;;  %6269 = vmatprep.mubr.f32.mxu1 %v5849_v5  ;;  %v3050_v33 = vld [vmem:[#allocation2 + $0x108] sm:$0xff]  ;;  %v10689_v13 = vld [vmem:[#allocation2 + $0xd0] sm:$0xff] }
 0x41a   :  { %4702 = vst.msk [vmem:[#allocation3 + $0x110] sm:$0xff] %vm2337_vm7, %v13222_v56  ;;  %6270 = vmatmul.mubr.f32.gmra.mrb[118].mxu1 %v5848_v62  ;;  %10617 = vset.pattern.permute.xlu1 %v17920_v12  ;;  %v13654_v56 = vld [vmem:[#allocation2 + $0x150] sm:$0xff]  ;;  %v17989_v62 = vld [vmem:[#allocation44_spill] sm:$0xff] }
 0x41b   :  { %v13641_v27 = vpop.permute.xlu0 %4588  ;;  %v3826_v28 = vmul.f32 %v10689_v13, %v17989_v62 }
 0x41c   :  { %v13643_v44 = vpop.permute.xlu1 %3706 }
 0x41d   :  { %4368 = vperm.xlu1 %10617, %v13623_v40  }
 0x41f   :  { %v3251_v15 = vpop.permute.xlu0 %3250 }
 0x420   :  { %v3393_v16 = vmul.f32 %v3251_v15, %v3050_v33  ;;  %v2213_v5 = vpop.permute.xlu1 %2212 }
 0x421   :  { %2349 = vst.msk [vmem:[#allocation3 + $0x108] sm:$0xff] %vm2337_vm7, %v2213_v5  ;;  %5213 = vrot.lane.b32.xlu1 %v5099_v31, %s10748_s21 }
 0x422   :  { %3442 = vst.msk [vmem:[#allocation3 + $0x260] sm:$0xff] %vm604_vm3, %v3393_v16  ;;  %10618 = vset.pattern.permute.xlu1 %v17919_v39  ;;  %v2758_v16 = vmul.f32 %v13242_v9, %v13343_v41  ;;  %v3051_v9 = vld [vmem:[#allocation2 + $0x110] sm:$0xff] }
 0x423   :  { %2987 = vst.msk [vmem:[#allocation3 + $0x108] sm:$0xff] %vm2975_vm8, %v13233_v37  ;;  %v13660_v31 = vpop.permute.xlu0 %2872  ;;  %v13668_v37 = vld [vmem:[%s17820_s1 + $0x110] sm:$0xff] }
 0x424   :  { %v4344_v8 = vpop.permute.xlu1 %4343 }
 0x425   :  { %v4474_v21 = vmul.f32 %v13654_v56, %v4344_v8  ;;  %5005 = vperm.xlu1 %10618, %v13623_v40   ;;  %v10690_v8 = vld [vmem:[#allocation2 + $0x98] sm:$0xff] }
 0x427   :  { %4600 = vrot.lane.b32.xlu0 %v4474_v21, %s10749_s22  ;;  %v13676_v5 = vpop.permute.xlu0 %4590  ;;  %v17992_v21 = vld [vmem:[#allocation19_spill] sm:$0xff] }
 0x428   :  { %v5204_v33 = vpop.permute.xlu1 %5203  ;;  %17991 = vst [vmem:[#allocation58_spill] sm:$0xff] %v13676_v5  ;;  %v2109_v13 = vmul.f32 %v10690_v8, %v17992_v21 }
 0x429   :  { %5339 = vst.msk [vmem:[#allocation3 + $0x110] sm:$0xff] %vm2975_vm8, %v5204_v33  ;;  %3941 = vrot.lane.b32.xlu1 %v3826_v28, %s10743_s12 }
 0x42a   :  { %10619 = vset.pattern.permute.xlu1 %v17918_v61  ;;  %v5851_v33 = vld [vmem:[#allocation3 + $0x108] sm:$0xff] }
 0x42b   :  { %3280 = vperm.xlu0 %10609, %v13523_v32  }
 0x42c   :  { %v13671_v15 = vpop.permute.xlu1 %4980 }
 0x42d   :  { %17990 = vst [vmem:[#allocation46_spill] sm:$0xff] %v13671_v15  ;;  %3736 = vperm.xlu1 %10619, %v13668_v37  }
 0x42f   :  { %2884 = vrot.lane.b32.xlu0 %v2758_v16, %s10748_s21  ;;  %v5100_v16 = vmul.f32 %v13096_v53, %v13256_v30 }
 0x430   :  { %v3932_v62 = vpop.permute.xlu1 %3931  ;;  %v5852_v28 = vld [vmem:[#allocation3 + $0x110] sm:$0xff] }
 0x431   :  { %4066 = vst.msk [vmem:[#allocation3 + $0x128] sm:$0xff] %vm1699_vm6, %v3932_v62  ;;  %2224 = vrot.lane.b32.xlu1 %v2109_v13, %s10749_s22  ;;  %6274 = vmatprep.mubr.f32.mxu1 %v5852_v28  ;;  %v10691_v13 = vld [vmem:[#allocation2 + $0xd8] sm:$0xff] }
 0x432   :  { %4703 = vst.msk [vmem:[#allocation3 + $0x128] sm:$0xff] %vm2337_vm7, %v13249_v26  ;;  %v3256_v15 = vpop.permute.xlu0 %3255  ;;  %6275 = vmatmul.mubr.f32.gmra.mrb[120].mxu1 %v5851_v33  ;;  %10620 = vset.pattern.permute.xlu1 %v17920_v12  ;;  %v13696_v26 = vld [vmem:[#allocation2 + $0x158] sm:$0xff]  ;;  %v3827_v53 = vmul.f32 %v10691_v13, %v13113_v52  ;;  %v2759_v52 = vmul.f32 %v13268_v51, %v13370_v22 }
 0x433   :  { %v3394_v5 = vmul.f32 %v3256_v15, %v3051_v9  ;;  %v10692_v9 = vld [vmem:[#allocation2 + $0xa0] sm:$0xff]  ;;  %v13726_v51 = vld [vmem:[#allocation2 + $0x118] sm:$0xff] }
 0x434   :  { %v13685_v8 = vpop.permute.xlu1 %3711 }
 0x435   :  { %3443 = vst.msk [vmem:[#allocation3 + $0x278] sm:$0xff] %vm604_vm3, %v3394_v5  ;;  %4373 = vperm.xlu1 %10620, %v13668_v37  }
 0x436   :  { %v13702_v30 = vpop.permute.xlu0 %2874 }
 0x438   :  { %v2215_v21 = vpop.permute.xlu1 %2214 }
 0x439   :  { %2350 = vst.msk [vmem:[#allocation3 + $0x120] sm:$0xff] %vm2337_vm7, %v2215_v21  ;;  %5215 = vrot.lane.b32.xlu1 %v5100_v16, %s10748_s21  ;;  %v17995_v16 = vld [vmem:[#allocation18_spill] sm:$0xff] }
 0x43a   :  { %2988 = vst.msk [vmem:[#allocation3 + $0x120] sm:$0xff] %vm2975_vm8, %v13261_v3  ;;  %10621 = vset.pattern.permute.xlu1 %v17919_v39  ;;  %v13710_v3 = vld [vmem:[%s17820_s1 + $0x118] sm:$0xff]  ;;  %v13718_v33 = vpop.permute.xlu0 %4592  ;;  %v2110_v21 = vmul.f32 %v10692_v9, %v17995_v16 }
 0x43b   :  { %17994 = vst [vmem:[#allocation55_spill] sm:$0xff] %v13718_v33 }
 0x43c   :  { %v4349_v15 = vpop.permute.xlu1 %4348 }
 0x43d   :  { %v4475_v5 = vmul.f32 %v13696_v26, %v4349_v15  ;;  %5010 = vperm.xlu1 %10621, %v13668_v37  }
 0x43f   :  { %4602 = vrot.lane.b32.xlu0 %v4475_v5, %s10749_s22 }
 0x440   :  { %v5206_v62 = vpop.permute.xlu1 %5205 }
 0x441   :  { %5340 = vst.msk [vmem:[#allocation3 + $0x128] sm:$0xff] %vm2975_vm8, %v5206_v62  ;;  %3943 = vrot.lane.b32.xlu1 %v3827_v53, %s10743_s12  ;;  %v5854_v13 = vld [vmem:[#allocation3 + $0x120] sm:$0xff]  ;;  %v521_v53 = vpop.f32.mrb[84].mxu1  ;;  %v13732_v62 = vld [vmem:[%s17823_s3] ss:$0 sm:$0xff] }
 0x442   :  { %10622 = vset.pattern.permute.xlu1 %v17918_v61  ;;  %v9270_v9 = vpop.f32.mrb[85].mxu1 }
 0x443   :  { %3285 = vperm.xlu0 %10609, %v13573_v45  }
 0x444   :  { %v13713_v28 = vpop.permute.xlu1 %4985 }
 0x445   :  { %17993 = vst [vmem:[#allocation47_spill] sm:$0xff] %v13713_v28  ;;  %3741 = vperm.xlu1 %10622, %v13710_v3  }
 0x447   :  { %2886 = vrot.lane.b32.xlu0 %v2759_v52, %s10748_s21  ;;  %v522_v52 = vadd.f32 %v13732_v62, %v521_v53  ;;  %v17998_v53 = vld [vmem:[#allocation53_spill] sm:$0xff] }
 0x448   :  { %v3934_v15 = vpop.permute.xlu1 %3933  ;;  %v5855_v5 = vld [vmem:[#allocation3 + $0x128] sm:$0xff] }
 0x449   :  { %4067 = vst.msk [vmem:[#allocation3 + $0x140] sm:$0xff] %vm1699_vm6, %v3934_v15  ;;  %2226 = vrot.lane.b32.xlu1 %v2110_v21, %s10749_s22  ;;  %6279 = vmatprep.mubr.f32.mxu1 %v5855_v5  ;;  %v597_v15 = vmax.f32 %v522_v52, 0.0 }
 0x44a   :  { %4704 = vst.msk [vmem:[#allocation3 + $0x140] sm:$0xff] %vm2337_vm7, %v13275_v20  ;;  %v3261_v22 = vpop.permute.xlu0 %3260  ;;  %6280 = vmatmul.mubr.f32.gmra.mrb[122].mxu1 %v5854_v13  ;;  %10623 = vset.pattern.permute.xlu1 %v17920_v12  ;;  %v17997_v20 = vld [vmem:[#allocation62_spill] sm:$0xff] }
 0x44b   :  { %v3395_v16 = vmul.f32 %v3261_v22, %v13726_v51  ;;  %663 = vst.msk [vmem:[#allocation2 + $0x190] sm:$0xff] %vm604_vm3, %v597_v15  ;;  %v5101_v5 = vmul.f32 %v17997_v20, %v13281_v14  ;;  %v13748_v22 = vld [vmem:[#allocation2 + $0x160] sm:$0xff]  ;;  %v17999_v15 = vld [vmem:[#allocation63_spill] sm:$0xff] }
 0x44c   :  { %v13736_v21 = vpop.permute.xlu1 %3716 }
 0x44d   :  { %17996 = vst [vmem:[#allocation7_spill] sm:$0xff] %v13736_v21  ;;  %3444 = vst.msk [vmem:[#allocation3 + $0x290] sm:$0xff] %vm604_vm3, %v3395_v16  ;;  %4378 = vperm.xlu1 %10623, %v13710_v3   ;;  %v10694_v16 = vld [vmem:[#allocation2 + $0xe0] sm:$0xff] }
 0x44e   :  { %v3828_v14 = vmul.f32 %v10694_v16, %v17999_v15  ;;  %v13754_v20 = vpop.permute.xlu0 %2876  ;;  %v18003_v16 = vld [vmem:[#allocation20_spill] sm:$0xff] }
 0x44f   :  { %18000 = vst [vmem:[#allocation38_spill] sm:$0xff] %v13754_v20  ;;  %v526_v20 = vpop.f32.mrb[86].mxu1 }
 0x450   :  { %v2217_v13 = vpop.permute.xlu1 %2216 }
 0x451   :  { %2351 = vst.msk [vmem:[#allocation3 + $0x138] sm:$0xff] %vm2337_vm7, %v2217_v13  ;;  %5217 = vrot.lane.b32.xlu1 %v5101_v5, %s10748_s21  ;;  %v13762_v13 = vld [vmem:[%s17820_s1 + $0x120] sm:$0xff] }
 0x452   :  { %2989 = vst.msk [vmem:[#allocation3 + $0x138] sm:$0xff] %vm2975_vm8, %v17998_v53  ;;  %10624 = vset.pattern.permute.xlu1 %v17919_v39 }
 0x454   :  { %v4354_v52 = vpop.permute.xlu1 %4353 }
 0x455   :  { %v4476_v9 = vmul.f32 %v13748_v22, %v4354_v52  ;;  %5015 = vperm.xlu1 %10624, %v13710_v3   ;;  %v13768_v52 = vpop.permute.xlu0 %4594 }
 0x456   :  { %18002 = vst [vmem:[#allocation13_spill] sm:$0xff] %v13768_v52  ;;  %v527_v52 = vadd.f32 %v13732_v62, %v526_v20 }
 0x457   :  { %4604 = vrot.lane.b32.xlu0 %v4476_v9, %s10749_s22  ;;  %v10695_v9 = vld [vmem:[#allocation2 + $0xa8] sm:$0xff] }
 0x458   :  { %v5208_v5 = vpop.permute.xlu1 %5207  ;;  %v2111_v15 = vmul.f32 %v10695_v9, %v18003_v16  ;;  %v9273_v9 = vpop.f32.mrb[87].mxu1 }
 0x459   :  { %5341 = vst.msk [vmem:[#allocation3 + $0x140] sm:$0xff] %vm2975_vm8, %v5208_v5  ;;  %3945 = vrot.lane.b32.xlu1 %v3828_v14, %s10743_s12  ;;  %v5857_v21 = vld [vmem:[#allocation3 + $0x138] sm:$0xff] }
 0x45a   :  { %10625 = vset.pattern.permute.xlu1 %v17918_v61 }
 0x45b   :  { %3290 = vperm.xlu0 %10609, %v13623_v40  }
 0x45c   :  { %v13765_v53 = vpop.permute.xlu1 %4990 }
 0x45d   :  { %18001 = vst [vmem:[#allocation48_spill] sm:$0xff] %v13765_v53  ;;  %3746 = vperm.xlu1 %10625, %v13762_v13   ;;  %v3053_v53 = vld [vmem:[#allocation2 + $0x120] sm:$0xff] }
 0x460   :  { %v3936_v5 = vpop.permute.xlu1 %3935  ;;  %v5858_v14 = vld [vmem:[#allocation3 + $0x140] sm:$0xff] }
 0x461   :  { %4068 = vst.msk [vmem:[#allocation3 + $0x158] sm:$0xff] %vm1699_vm6, %v3936_v5  ;;  %2228 = vrot.lane.b32.xlu1 %v2111_v15, %s10749_s22  ;;  %6284 = vmatprep.mubr.f32.mxu1 %v5858_v14  ;;  %v598_v5 = vmax.f32 %v527_v52, 0.0 }
 0x462   :  { %4705 = vst.msk [vmem:[#allocation3 + $0x158] sm:$0xff] %vm2337_vm7, %v13445_v23  ;;  %v3266_v28 = vpop.permute.xlu0 %3265  ;;  %6285 = vmatmul.mubr.f32.gmra.mrb[124].mxu1 %v5857_v21  ;;  %10626 = vset.pattern.permute.xlu1 %v17920_v12  ;;  %v18005_v23 = vld [vmem:[#allocation64_spill] sm:$0xff] }
 0x463   :  { %v3396_v16 = vmul.f32 %v3266_v28, %v3053_v53  ;;  %664 = vst.msk [vmem:[#allocation2 + $0x198] sm:$0xff] %vm604_vm3, %v598_v5  ;;  %v5102_v15 = vmul.f32 %v18005_v23, %v13305_v34  ;;  %v13789_v28 = vld [vmem:[#allocation2 + $0x168] sm:$0xff]  ;;  %v18006_v53 = vld [vmem:[#allocation6_spill] sm:$0xff] }
 0x464   :  { %v13777_v33 = vpop.permute.xlu1 %3721  ;;  %v3829_v34 = vmul.f32 %v18006_v53, %v13548_v4  ;;  %v10696_v5 = vld [vmem:[#allocation2 + $0xb0] sm:$0xff]  ;;  %v18010_v23 = vld [vmem:[#allocation9_spill] sm:$0xff] }
 0x465   :  { %18004 = vst [vmem:[#allocation49_spill] sm:$0xff] %v13777_v33  ;;  %3445 = vst.msk [vmem:[#allocation3 + $0x2a8] sm:$0xff] %vm604_vm3, %v3396_v16  ;;  %4383 = vperm.xlu1 %10626, %v13762_v13   ;;  %v13887_v33 = vld [vmem:[%s17820_s1 + $0x178] sm:$0xff] }
 0x466   :  { %v13796_v52 = vpop.permute.xlu0 %2878 }
 0x467   :  { %18007 = vst [vmem:[#allocation42_spill] sm:$0xff] %v13796_v52 }
 0x468   :  { %v2219_v14 = vpop.permute.xlu1 %2218 }
 0x469   :  { %2352 = vst.msk [vmem:[#allocation3 + $0x150] sm:$0xff] %vm2337_vm7, %v2219_v14  ;;  %5219 = vrot.lane.b32.xlu1 %v5102_v15, %s10748_s21  ;;  %v2112_v15 = vmul.f32 %v10696_v5, %v18010_v23  ;;  %v18011_v14 = vmov 2  }
 0x46a   :  { %2990 = vst.msk [vmem:[#allocation3 + $0x150] sm:$0xff] %vm2975_vm8, %v13458_v50  ;;  %10627 = vset.pattern.permute.xlu1 %v17919_v39  ;;  %v13804_v50 = vld [vmem:[%s17820_s1 + $0x128] sm:$0xff]  ;;  %v13810_v4 = vpop.permute.xlu0 %4596 }
 0x46b   :  { %18009 = vst [vmem:[#allocation52_spill] sm:$0xff] %v13810_v4 }
 0x46c   :  { %v4359_v21 = vpop.permute.xlu1 %4358 }
 0x46d   :  { %v4477_v20 = vmul.f32 %v13789_v28, %v4359_v21  ;;  %5020 = vperm.xlu1 %10627, %v13762_v13  }
 0x46f   :  { %4606 = vrot.lane.b32.xlu0 %v4477_v20, %s10749_s22 }
 0x470   :  { %v5210_v9 = vpop.permute.xlu1 %5209 }
 0x471   :  { %5342 = vst.msk [vmem:[#allocation3 + $0x158] sm:$0xff] %vm2975_vm8, %v5210_v9  ;;  %3947 = vrot.lane.b32.xlu1 %v3829_v34, %s10743_s12  ;;  %v5860_v53 = vld [vmem:[#allocation3 + $0x150] sm:$0xff]  ;;  %v531_v34 = vpop.f32.mrb[88].mxu1  ;;  %v13819_v9 = vld [vmem:[#allocation2 + $0x128] sm:$0xff] }
 0x472   :  { %10628 = vset.pattern.permute.xlu1 %v17918_v61  ;;  %v532_v5 = vadd.f32 %v13732_v62, %v531_v34  ;;  %v9276_v23 = vpop.f32.mrb[89].mxu1  ;;  %v13850_v34 = vld [vmem:[%s17820_s1 + $0x148] sm:$0xff] }
 0x473   :  { %3295 = vperm.xlu0 %10609, %v13668_v37   ;;  %v18015_v23 = vld [vmem:[#allocation45_spill] sm:$0xff]  ;;  %v536_v52 = vpop.f32.mrb[90].mxu1 }
 0x474   :  { %v13807_v16 = vpop.permute.xlu1 %4995 }
 0x475   :  { %18008 = vst [vmem:[#allocation8_spill] sm:$0xff] %v13807_v16  ;;  %3751 = vperm.xlu1 %10628, %v13804_v50  }
 0x477   :  { %10662 = vset.pattern.permute.xlu0 %v18011_v14 }
 0x478   :  { %2014 = vperm.xlu0 %10662, %v13623_v40   ;;  %v3938_v21 = vpop.permute.xlu1 %3937  ;;  %v5861_v20 = vld [vmem:[#allocation3 + $0x158] sm:$0xff] }
 0x479   :  { %4069 = vst.msk [vmem:[#allocation3 + $0x170] sm:$0xff] %vm1699_vm6, %v3938_v21  ;;  %2230 = vrot.lane.b32.xlu1 %v2112_v15, %s10749_s22  ;;  %6289 = vmatprep.mubr.f32.mxu1 %v5861_v20  ;;  %v599_v21 = vmax.f32 %v532_v5, 0.0  ;;  %v10697_v5 = vld [vmem:[#allocation2 + $0xf0] sm:$0xff] }
 0x47a   :  { %4706 = vst.msk [vmem:[#allocation3 + $0x170] sm:$0xff] %vm2337_vm7, %v13465_v48  ;;  %v3271_v16 = vpop.permute.xlu0 %3270  ;;  %6290 = vmatmul.mubr.f32.gmra.mrb[126].mxu1 %v5860_v53  ;;  %10629 = vset.pattern.permute.xlu1 %v17920_v12  ;;  %v18013_v48 = vld [vmem:[#allocation50_spill] sm:$0xff] }
 0x47b   :  { %v3397_v14 = vmul.f32 %v3271_v16, %v13819_v9  ;;  %665 = vst.msk [vmem:[#allocation2 + $0x1a0] sm:$0xff] %vm604_vm3, %v599_v21  ;;  %v5103_v20 = vmul.f32 %v18013_v48, %v13343_v41  ;;  %v13838_v16 = vld [vmem:[%s17820_s1 + $0x138] sm:$0xff] }
 0x47c   :  { %2024 = vperm.xlu0 %10662, %v13710_v3   ;;  %v13825_v15 = vpop.permute.xlu1 %3726  ;;  %v13861_v48 = vld [vmem:[%s17820_s1 + $0x158] sm:$0xff] }
 0x47d   :  { %18012 = vst [vmem:[#allocation54_spill] sm:$0xff] %v13825_v15  ;;  %3446 = vst.msk [vmem:[#allocation3 + $0x2c0] sm:$0xff] %vm604_vm3, %v3397_v14  ;;  %4388 = vperm.xlu1 %10629, %v13804_v50   ;;  %v3830_v14 = vmul.f32 %v10697_v5, %v18015_v23  ;;  %v13876_v5 = vld [vmem:[%s17820_s1 + $0x168] sm:$0xff] }
 0x47e   :  { %v13853_v21 = vpop.permute.xlu0 %2880 }
 0x47f   :  { %18016 = vst [vmem:[#allocation39_spill] sm:$0xff] %v13853_v21 }
 0x480   :  { %2034 = vperm.xlu0 %10662, %v13804_v50   ;;  %v2221_v53 = vpop.permute.xlu1 %2220 }
 0x481   :  { %2353 = vst.msk [vmem:[#allocation3 + $0x168] sm:$0xff] %vm2337_vm7, %v2221_v53  ;;  %5221 = vrot.lane.b32.xlu1 %v5103_v20, %s10748_s21  ;;  %v13867_v20 = vld [vmem:[%s17820_s1 + $0x130] sm:$0xff] }
 0x482   :  { %2991 = vst.msk [vmem:[#allocation3 + $0x168] sm:$0xff] %vm2975_vm8, %v13486_v57  ;;  %10630 = vset.pattern.permute.xlu1 %v17919_v39  ;;  %v13878_v23 = vpop.permute.xlu0 %4598 }
 0x483   :  { %18017 = vst [vmem:[#allocation57_spill] sm:$0xff] %v13878_v23 }
 0x484   :  { %2044 = vperm.xlu0 %10662, %v13838_v16   ;;  %v13844_v41 = vpop.permute.xlu1 %4363 }
 0x485   :  { %18014 = vst [vmem:[#allocation15_spill] sm:$0xff] %v13844_v41  ;;  %5025 = vperm.xlu1 %10630, %v13804_v50  }
 0x488   :  { %2054 = vperm.xlu0 %10662, %v13850_v34   ;;  %v5212_v57 = vpop.permute.xlu1 %5211 }
 0x489   :  { %5343 = vst.msk [vmem:[#allocation3 + $0x170] sm:$0xff] %vm2975_vm8, %v5212_v57  ;;  %3949 = vrot.lane.b32.xlu1 %v3830_v14, %s10743_s12  ;;  %v10698_v14 = vld [vmem:[#allocation2 + $0xb8] sm:$0xff]  ;;  %v5863_v4 = vld [vmem:[#allocation3 + $0x168] sm:$0xff] }
 0x48a   :  { %10631 = vset.pattern.permute.xlu1 %v17918_v61  ;;  %v18018_v57 = vld [vmem:[#allocation11_spill] sm:$0xff] }
 0x48b   :  { %v2113_v41 = vmul.f32 %v10698_v14, %v18018_v57  ;;  %v537_v57 = vadd.f32 %v13732_v62, %v536_v52  ;;  %v13905_v52 = vld [vmem:[#allocation2 + $0x120] sm:$0xff] }
 0x48c   :  { %2064 = vperm.xlu0 %10662, %v13861_v48   ;;  %v13870_v53 = vpop.permute.xlu1 %5000 }
 0x48d   :  { %3756 = vperm.xlu1 %10631, %v13867_v20   ;;  %v600_v23 = vmax.f32 %v537_v57, 0.0  ;;  %v18019_v57 = vmov 3  }
 0x48f   :  { %666 = vst.msk [vmem:[#allocation2 + $0x1a8] sm:$0xff] %vm604_vm3, %v600_v23 }
 0x490   :  { %2074 = vperm.xlu0 %10662, %v13876_v5   ;;  %v3940_v15 = vpop.permute.xlu1 %3939  ;;  %v5864_v21 = vld [vmem:[#allocation3 + $0x170] sm:$0xff] }
 0x491   :  { %4070 = vst.msk [vmem:[#allocation3 + $0x188] sm:$0xff] %vm1699_vm6, %v3940_v15  ;;  %2232 = vrot.lane.b32.xlu1 %v2113_v41, %s10749_s22  ;;  %6294 = vmatprep.mubr.f32.mxu1 %v5864_v21  ;;  %v9279_v15 = vpop.f32.mrb[91].mxu1 }
 0x492   :  { %4707 = vst.msk [vmem:[#allocation3 + $0x188] sm:$0xff] %vm2337_vm7, %v13494_v49  ;;  %v3276_v14 = vpop.permute.xlu0 %3275  ;;  %6295 = vmatmul.mubr.f32.gmra.mrb[128].mxu1 %v5863_v4  ;;  %10632 = vset.pattern.permute.xlu1 %v17920_v12  ;;  %v13902_v49 = vld [vmem:[%s17820_s1 + $0x180] sm:$0xff]  ;;  %v5104_v4 = vmul.f32 %v13905_v52, %v13316_v6  ;;  %v3831_v6 = vmul.f32 %v13341_v55, %v13598_v54  ;;  %v18020_v54 = vld [vmem:[#allocation10_spill] sm:$0xff] }
 0x493   :  { %v3398_v41 = vmul.f32 %v13460_v2, %v3276_v14  ;;  %v10700_v55 = vld [vmem:[#allocation2 + $0xc0] sm:$0xff] }
 0x494   :  { %2084 = vperm.xlu0 %10662, %v13887_v33   ;;  %v13895_v21 = vpop.permute.xlu1 %3731 }
 0x495   :  { %3447 = vst.msk [vmem:[#allocation3 + $0x2d8] sm:$0xff] %vm604_vm3, %v3398_v41  ;;  %4393 = vperm.xlu1 %10632, %v13867_v20  }
 0x496   :  { %v13922_v15 = vpop.permute.xlu0 %2882 }
 0x498   :  { %2089 = vperm.xlu0 %10662, %v13902_v49   ;;  %v2223_v14 = vpop.permute.xlu1 %2222 }
 0x499   :  { %2354 = vst.msk [vmem:[#allocation3 + $0x180] sm:$0xff] %vm2337_vm7, %v2223_v14  ;;  %5223 = vrot.lane.b32.xlu1 %v5104_v4, %s10748_s21  ;;  %v2114_v4 = vmul.f32 %v10700_v55, %v18020_v54 }
 0x49a   :  { %2992 = vst.msk [vmem:[#allocation3 + $0x180] sm:$0xff] %vm2975_vm8, %v13507_v43  ;;  %10633 = vset.pattern.permute.xlu1 %v17919_v39 }
 0x49c   :  { %10664 = vset.pattern.permute.xlu0 %v18019_v57  ;;  %v13916_v23 = vpop.permute.xlu1 %4368 }
 0x49d   :  { %5030 = vperm.xlu1 %10633, %v13867_v20   ;;  %2642 = vperm.xlu0 %10664, %v13523_v32   ;;  %v13932_v32 = vpop.permute.xlu0 %4600 }
 0x4a0   :  { %v5214_v41 = vpop.permute.xlu1 %5213 }
 0x4a1   :  { %5344 = vst.msk [vmem:[#allocation3 + $0x188] sm:$0xff] %vm2975_vm8, %v5214_v41  ;;  %3951 = vrot.lane.b32.xlu1 %v3831_v6, %s10743_s12  ;;  %2647 = vperm.xlu0 %10664, %v13573_v45   ;;  %v541_v45 = vpop.f32.mrb[92].mxu1 }
 0x4a2   :  { %10634 = vset.pattern.permute.xlu1 %v17918_v61  ;;  %v542_v41 = vadd.f32 %v13732_v62, %v541_v45  ;;  %v9282_v55 = vpop.f32.mrb[93].mxu1 }
 0x4a3   :  { %v546_v55 = vpop.f32.mrb[94].mxu1 }
 0x4a4   :  { %v13928_v43 = vpop.permute.xlu1 %5005 }
 0x4a5   :  { %3761 = vperm.xlu1 %10634, %v13838_v16   ;;  %2652 = vperm.xlu0 %10664, %v13623_v40   ;;  %v5866_v40 = vld [vmem:[#allocation3 + $0x180] sm:$0xff] }
 0x4a8   :  { %v3942_v14 = vpop.permute.xlu1 %3941  ;;  %v5867_v57 = vld [vmem:[#allocation3 + $0x188] sm:$0xff] }
 0x4a9   :  { %4071 = vst.msk [vmem:[#allocation3 + $0x1a0] sm:$0xff] %vm1699_vm6, %v3942_v14  ;;  %2234 = vrot.lane.b32.xlu1 %v2114_v4, %s10749_s22  ;;  %2657 = vperm.xlu0 %10664, %v13668_v37   ;;  %v601_v4 = vmax.f32 %v542_v41, 0.0 }
 0x4aa   :  { %4708 = vst.msk [vmem:[#allocation3 + $0x1a0] sm:$0xff] %vm2337_vm7, %v13514_v19  ;;  %6299 = vmatprep.mubr.f32.mxu1 %v5867_v57  ;;  %v3281_v6 = vpop.permute.xlu0 %3280  ;;  %10635 = vset.pattern.permute.xlu1 %v17920_v12  ;;  %v5105_v19 = vmul.f32 %v13383_v42, %v13412_v17 }
 0x4ab   :  { %v3399_v54 = vmul.f32 %v13509_v11, %v3281_v6  ;;  %6300 = vmatmul.mubr.f32.gmra.mrb[130].mxu1 %v5866_v40  ;;  %667 = vst.msk [vmem:[#allocation2 + $0x1b0] sm:$0xff] %vm604_vm3, %v601_v4  ;;  %v18021_v6 = vld [vmem:[#allocation22_spill] sm:$0xff]  ;;  %v547_v4 = vadd.f32 %v13732_v62, %v546_v55 }
 0x4ac   :  { %v13943_v14 = vpop.permute.xlu1 %3736  ;;  %v10704_v55 = vld [vmem:[#allocation2 + $0xd0] sm:$0xff] }
 0x4ad   :  { %3448 = vst.msk [vmem:[#allocation3 + $0x2f0] sm:$0xff] %vm604_vm3, %v3399_v54  ;;  %4398 = vperm.xlu1 %10635, %v13838_v16   ;;  %2662 = vperm.xlu0 %10664, %v13710_v3   ;;  %v10701_v3 = vld [vmem:[#allocation2 + $0x100] sm:$0xff] }
 0x4ae   :  { %v3832_v42 = vmul.f32 %v10701_v3, %v13400_v35  ;;  %v13962_v17 = vpop.permute.xlu0 %2884 }
 0x4b0   :  { %v2225_v37 = vpop.permute.xlu1 %2224 }
 0x4b1   :  { %2355 = vst.msk [vmem:[#allocation3 + $0x198] sm:$0xff] %vm2337_vm7, %v2225_v37  ;;  %2667 = vperm.xlu0 %10664, %v13762_v13   ;;  %5225 = vrot.lane.b32.xlu1 %v5105_v19, %s10748_s21  ;;  %v9285_v19 = vpop.f32.mrb[95].mxu1 }
 0x4b2   :  { %2993 = vst.msk [vmem:[#allocation3 + $0x198] sm:$0xff] %vm2975_vm8, %v13533_v1  ;;  %10636 = vset.pattern.permute.xlu1 %v17919_v39  ;;  %v3555_v1 = vld [vmem:[%s17820_s1 + $0x140] sm:$0xff]  ;;  %v13974_v35 = vpop.permute.xlu0 %4602 }
 0x4b4   :  { %v13957_v57 = vpop.permute.xlu1 %4373 }
 0x4b5   :  { %2672 = vperm.xlu0 %10664, %v13804_v50   ;;  %5035 = vperm.xlu1 %10636, %v13838_v16   ;;  %v10702_v50 = vld [vmem:[#allocation2 + $0xc8] sm:$0xff] }
 0x4b6   :  { %v2115_v40 = vmul.f32 %v10702_v50, %v18021_v6 }
 0x4b8   :  { %v5216_v45 = vpop.permute.xlu1 %5215 }
 0x4b9   :  { %5345 = vst.msk [vmem:[#allocation3 + $0x1a0] sm:$0xff] %vm2975_vm8, %v5216_v45  ;;  %2677 = vperm.xlu0 %10664, %v13867_v20   ;;  %3953 = vrot.lane.b32.xlu1 %v3832_v42, %s10743_s12  ;;  %v602_v42 = vmax.f32 %v547_v4, 0.0  ;;  %v5106_v45 = vmul.f32 %v13431_v29, %v13460_v2  ;;  %v14008_v29 = vld [vmem:[%s17820_s1 + $0x160] sm:$0xff]  ;;  %v10703_v2 = vld [vmem:[#allocation2 + $0x108] sm:$0xff] }
 0x4ba   :  { %10637 = vset.pattern.permute.xlu1 %v17918_v61 }
 0x4bb   :  { %668 = vst.msk [vmem:[#allocation2 + $0x1b8] sm:$0xff] %vm604_vm3, %v602_v42 }
 0x4bc   :  { %v13971_v13 = vpop.permute.xlu1 %5010 }
 0x4bd   :  { %2682 = vperm.xlu0 %10664, %v13838_v16   ;;  %3766 = vperm.xlu1 %10637, %v3555_v1   ;;  %v5869_v16 = vld [vmem:[#allocation3 + $0x198] sm:$0xff] }
 0x4c0   :  { %v3944_v41 = vpop.permute.xlu1 %3943  ;;  %v5870_v20 = vld [vmem:[#allocation3 + $0x1a0] sm:$0xff] }
 0x4c1   :  { %4072 = vst.msk [vmem:[#allocation3 + $0x1b8] sm:$0xff] %vm1699_vm6, %v3944_v41  ;;  %2687 = vperm.xlu0 %10664, %v3555_v1   ;;  %2236 = vrot.lane.b32.xlu1 %v2115_v40, %s10749_s22  ;;  %v3833_v40 = vmul.f32 %v10703_v2, %v13447_v7  ;;  %v14026_v7 = vld [vmem:[%s17820_s1 + $0x170] sm:$0xff] }
 0x4c2   :  { %4709 = vst.msk [vmem:[#allocation3 + $0x1b8] sm:$0xff] %vm2337_vm7, %v13541_v10  ;;  %6304 = vmatprep.mubr.f32.mxu1 %v5870_v20  ;;  %v3286_v54 = vpop.permute.xlu0 %3285  ;;  %10638 = vset.pattern.permute.xlu1 %v17920_v12  ;;  %v13991_v10 = vld [vmem:[%s17820_s1 + $0x150] sm:$0xff] }
 0x4c3   :  { %v3400_v37 = vmul.f32 %v13559_v38, %v3286_v54  ;;  %6305 = vmatmul.mubr.f32.gmra.mrb[132].mxu1 %v5869_v16  ;;  %v18022_v54 = vld [vmem:[#allocation21_spill] sm:$0xff] }
 0x4c4   :  { %v13984_v3 = vpop.permute.xlu1 %3741  ;;  %v2116_v16 = vmul.f32 %v10704_v55, %v18022_v54 }
 0x4c5   :  { %3449 = vst.msk [vmem:[#allocation3 + $0x308] sm:$0xff] %vm604_vm3, %v3400_v37  ;;  %2692 = vperm.xlu0 %10664, %v13850_v34   ;;  %4403 = vperm.xlu1 %10638, %v3555_v1   ;;  %v551_v37 = vpop.f32.mrb[96].mxu1 }
 0x4c6   :  { %v14011_v41 = vpop.permute.xlu0 %2886  ;;  %v9288_v2 = vpop.f32.mrb[97].mxu1 }
 0x4c8   :  { %v2227_v50 = vpop.permute.xlu1 %2226 }
 0x4c9   :  { %2356 = vst.msk [vmem:[#allocation3 + $0x1b0] sm:$0xff] %vm2337_vm7, %v2227_v50  ;;  %2697 = vperm.xlu0 %10664, %v13991_v10   ;;  %5227 = vrot.lane.b32.xlu1 %v5106_v45, %s10748_s21  ;;  %v552_v50 = vadd.f32 %v13732_v62, %v551_v37  ;;  %v10705_v62 = vld [vmem:[#allocation2 + $0x110] sm:$0xff] }
 0x4ca   :  { %2994 = vst.msk [vmem:[#allocation3 + $0x1b0] sm:$0xff] %vm2975_vm8, %v13557_v36  ;;  %10639 = vset.pattern.permute.xlu1 %v17919_v39 }
 0x4cb   :  { %v603_v55 = vmax.f32 %v552_v50, 0.0 }
 0x4cc   :  { %v14002_v6 = vpop.permute.xlu1 %4378 }
 0x4cd   :  { %2702 = vperm.xlu0 %10664, %v13861_v48   ;;  %5040 = vperm.xlu1 %10639, %v3555_v1   ;;  %v14021_v1 = vpop.permute.xlu0 %4604  ;;  %669 = vst.msk [vmem:[#allocation2 + $0x1c0] sm:$0xff] %vm604_vm3, %v603_v55 }
 0x4d0   :  { %v5218_v20 = vpop.permute.xlu1 %5217 }
 0x4d1   :  { %5346 = vst.msk [vmem:[#allocation3 + $0x1b8] sm:$0xff] %vm2975_vm8, %v5218_v20  ;;  %2707 = vperm.xlu0 %10664, %v14008_v29   ;;  %3955 = vrot.lane.b32.xlu1 %v3833_v40, %s10743_s12  ;;  %v5872_v45 = vld [vmem:[#allocation3 + $0x1b0] sm:$0xff] }
 0x4d2   :  { %10640 = vset.pattern.permute.xlu1 %v17918_v61 }
 0x4d4   :  { %v14017_v36 = vpop.permute.xlu1 %5015 }
 0x4d5   :  { %2712 = vperm.xlu0 %10664, %v13876_v5   ;;  %3771 = vperm.xlu1 %10640, %v13850_v34  }
 0x4d8   :  { %v3946_v4 = vpop.permute.xlu1 %3945  ;;  %v5873_v19 = vld [vmem:[#allocation3 + $0x1b8] sm:$0xff] }
 0x4d9   :  { %4073 = vst.msk [vmem:[#allocation3 + $0x1d0] sm:$0xff] %vm1699_vm6, %v3946_v4  ;;  %2717 = vperm.xlu0 %10664, %v14026_v7   ;;  %2238 = vrot.lane.b32.xlu1 %v2116_v16, %s10749_s22  ;;  %v18023_v16 = vld [vmem:[#allocation29_spill] sm:$0xff] }
 0x4da   :  { %4710 = vst.msk [vmem:[#allocation3 + $0x1d0] sm:$0xff] %vm2337_vm7, %v13564_v24  ;;  %6309 = vmatprep.mubr.f32.mxu1 %v5873_v19  ;;  %v3291_v42 = vpop.permute.xlu0 %3290  ;;  %10641 = vset.pattern.permute.xlu1 %v17920_v12  ;;  %v5107_v24 = vmul.f32 %v13479_v25, %v13509_v11  ;;  %v2124_v4 = vmul.f32 %v10705_v62, %v18023_v16  ;;  %v14056_v25 = vld [vmem:[#allocation2 + $0x178] sm:$0xff]  ;;  %v10706_v11 = vld [vmem:[#allocation2 + $0x110] sm:$0xff] }
 0x4db   :  { %v3401_v40 = vmul.f32 %v13609_v0, %v3291_v42  ;;  %6310 = vmatmul.mubr.f32.gmra.mrb[134].mxu1 %v5872_v45  ;;  %v5115_v37 = vmul.f32 %v13870_v53, %v14056_v25  ;;  %v10707_v53 = vld [vmem:[#allocation2 + $0xd8] sm:$0xff]  ;;  %v18024_v45 = vld [vmem:[#allocation24_spill] sm:$0xff]  ;;  %v5108_v62 = vmul.f32 %v13526_v46, %v13559_v38 }
 0x4dc   :  { %v14037_v20 = vpop.permute.xlu1 %3746  ;;  %v2117_v50 = vmul.f32 %v10707_v53, %v18024_v45  ;;  %v18026_v45 = vld [vmem:[#allocation31_spill] sm:$0xff] }
 0x4dd   :  { %3450 = vst.msk [vmem:[#allocation3 + $0x320] sm:$0xff] %vm604_vm3, %v3401_v40  ;;  %2722 = vperm.xlu0 %10664, %v13887_v33   ;;  %4408 = vperm.xlu1 %10641, %v13850_v34  }
 0x4e0   :  { %v2229_v54 = vpop.permute.xlu1 %2228 }
 0x4e1   :  { %2357 = vst.msk [vmem:[#allocation3 + $0x1c8] sm:$0xff] %vm2337_vm7, %v2229_v54  ;;  %2727 = vperm.xlu0 %10664, %v13902_v49   ;;  %5229 = vrot.lane.b32.xlu1 %v5107_v24, %s10748_s21  ;;  %v3834_v49 = vmul.f32 %v10706_v11, %v13496_v58  ;;  %v14071_v58 = vpop.permute.xlu0 %4606 }
 0x4e2   :  { %2995 = vst.msk [vmem:[#allocation3 + $0x1c8] sm:$0xff] %vm2975_vm8, %v13583_v63  ;;  %10642 = vset.pattern.permute.xlu1 %v17919_v39 }
 0x4e4   :  { %v14052_v19 = vpop.permute.xlu1 %4383 }
 0x4e5   :  { %2254 = vrot.lane.b32.xlu0 %v2124_v4, %s10749_s22  ;;  %5045 = vperm.xlu1 %10642, %v13850_v34   ;;  %v3842_v34 = vmul.f32 %v13654_v56, %v13895_v21 }
 0x4e8   :  { %v5220_v63 = vpop.permute.xlu1 %5219 }
 0x4e9   :  { %5347 = vst.msk [vmem:[#allocation3 + $0x1d0] sm:$0xff] %vm2975_vm8, %v5220_v63  ;;  %5245 = vrot.lane.b32.xlu0 %v5115_v37, %s10748_s21  ;;  %3957 = vrot.lane.b32.xlu1 %v3834_v49, %s10743_s12  ;;  %v5875_v55 = vld [vmem:[#allocation3 + $0x1c8] sm:$0xff]  ;;  %v18025_v37 = vld [vmem:[#allocation51_spill] sm:$0xff] }
 0x4ea   :  { %10643 = vset.pattern.permute.xlu1 %v17918_v61 }
 0x4ec   :  { %v14067_v42 = vpop.permute.xlu1 %5020 }
 0x4ed   :  { %3973 = vrot.lane.b32.xlu0 %v3842_v34, %s10743_s12  ;;  %3776 = vperm.xlu1 %10643, %v13991_v10   ;;  %v3843_v34 = vmul.f32 %v13696_v26, %v13943_v14  ;;  %v10710_v14 = vld [vmem:[#allocation2 + $0xe0] sm:$0xff] }
 0x4f0   :  { %v3948_v2 = vpop.permute.xlu1 %3947  ;;  %v5876_v40 = vld [vmem:[#allocation3 + $0x1d0] sm:$0xff] }
 0x4f1   :  { %4074 = vst.msk [vmem:[#allocation3 + $0x1e8] sm:$0xff] %vm1699_vm6, %v3948_v2  ;;  %2240 = vrot.lane.b32.xlu1 %v2117_v50, %s10749_s22  ;;  %6314 = vmatprep.mubr.f32.mxu1 %v5876_v40  ;;  %v18027_v40 = vld [vmem:[#allocation23_spill] sm:$0xff] }
 0x4f2   :  { %4711 = vst.msk [vmem:[#allocation3 + $0x1e8] sm:$0xff] %vm2337_vm7, %v13591_v59  ;;  %v3296_v21 = vpop.permute.xlu0 %3295  ;;  %6315 = vmatmul.mubr.f32.gmra.mrb[136].mxu1 %v5875_v55  ;;  %10644 = vset.pattern.permute.xlu1 %v17920_v12  ;;  %v14093_v59 = vld [vmem:[#allocation2 + $0x180] sm:$0xff]  ;;  %v2118_v55 = vmul.f32 %v10710_v14, %v18027_v40 }
 0x4f3   :  { %v3402_v24 = vmul.f32 %v13654_v56, %v3296_v21  ;;  %v5116_v46 = vmul.f32 %v13928_v43, %v14093_v59  ;;  %v14118_v21 = vld [vmem:[#allocation2 + $0x188] sm:$0xff] }
 0x4f4   :  { %v14080_v54 = vpop.permute.xlu1 %3751 }
 0x4f5   :  { %3451 = vst.msk [vmem:[#allocation3 + $0x338] sm:$0xff] %vm604_vm3, %v3402_v24  ;;  %4413 = vperm.xlu1 %10644, %v13991_v10  }
 0x4f7   :  { %v2015_v16 = vpop.permute.xlu0 %2014 }
 0x4f8   :  { %v2125_v4 = vmul.f32 %v13726_v51, %v2015_v16  ;;  %v2231_v11 = vpop.permute.xlu1 %2230  ;;  %v10708_v51 = vld [vmem:[#allocation2 + $0x118] sm:$0xff] }
 0x4f9   :  { %2358 = vst.msk [vmem:[#allocation3 + $0x1e0] sm:$0xff] %vm2337_vm7, %v2231_v11  ;;  %5231 = vrot.lane.b32.xlu1 %v5108_v62, %s10748_s21  ;;  %v3835_v63 = vmul.f32 %v10708_v51, %v18025_v37  ;;  %v5117_v62 = vmul.f32 %v13971_v13, %v14118_v21  ;;  %v3844_v13 = vmul.f32 %v13748_v22, %v13984_v3 }
 0x4fa   :  { %2996 = vst.msk [vmem:[#allocation3 + $0x1e0] sm:$0xff] %vm2975_vm8, %v13607_v18  ;;  %2256 = vrot.lane.b32.xlu0 %v2125_v4, %s10749_s22  ;;  %10645 = vset.pattern.permute.xlu1 %v17919_v39 }
 0x4fb   :  { %v2025_v49 = vpop.permute.xlu0 %2024 }
 0x4fc   :  { %v14097_v38 = vpop.permute.xlu1 %4388 }
 0x4fd   :  { %5050 = vperm.xlu1 %10645, %v13991_v10   ;;  %v10709_v10 = vld [vmem:[#allocation2 + $0x120] sm:$0xff] }
 0x4fe   :  { %5247 = vrot.lane.b32.xlu0 %v5116_v46, %s10748_s21  ;;  %v2126_v50 = vmul.f32 %v10709_v10, %v18026_v45  ;;  %v18028_v46 = vld [vmem:[#allocation56_spill] sm:$0xff]  ;;  %v2127_v10 = vmul.f32 %v13819_v9, %v2025_v49 }
 0x4ff   :  { %v14102_v18 = vpop.permute.xlu0 %2034  ;;  %v18031_v49 = vld [vmem:[#allocation60_spill] sm:$0xff] }
 0x500   :  { %v5222_v53 = vpop.permute.xlu1 %5221  ;;  %v3836_v14 = vmul.f32 %v13905_v52, %v18031_v49 }
 0x501   :  { %5348 = vst.msk [vmem:[#allocation3 + $0x1e8] sm:$0xff] %vm2975_vm8, %v5222_v53  ;;  %3959 = vrot.lane.b32.xlu1 %v3835_v63, %s10743_s12  ;;  %v5878_v11 = vld [vmem:[#allocation3 + $0x1e0] sm:$0xff]  ;;  %v18029_v63 = vld [vmem:[#allocation12_spill] sm:$0xff] }
 0x502   :  { %3975 = vrot.lane.b32.xlu0 %v3843_v34, %s10743_s12  ;;  %10646 = vset.pattern.permute.xlu1 %v17918_v61  ;;  %v5109_v34 = vmul.f32 %v18029_v63, %v13609_v0 }
 0x503   :  { %v14110_v43 = vpop.permute.xlu0 %2044 }
 0x504   :  { %v14113_v2 = vpop.permute.xlu1 %5025 }
 0x505   :  { %3781 = vperm.xlu1 %10646, %v13861_v48  }
 0x506   :  { %2258 = vrot.lane.b32.xlu0 %v2126_v50, %s10749_s22  ;;  %v14143_v50 = vld [vmem:[#allocation2 + $0x190] sm:$0xff] }
 0x507   :  { %v14120_v24 = vpop.permute.xlu0 %2054  ;;  %v5118_v0 = vmul.f32 %v14017_v36, %v14143_v50  ;;  %v18033_v36 = vld [vmem:[#allocation32_spill] sm:$0xff] }
 0x508   :  { %v3950_v16 = vpop.permute.xlu1 %3949  ;;  %v5879_v4 = vld [vmem:[#allocation3 + $0x1e8] sm:$0xff] }
 0x509   :  { %4075 = vst.msk [vmem:[#allocation3 + $0x200] sm:$0xff] %vm1699_vm6, %v3950_v16  ;;  %2242 = vrot.lane.b32.xlu1 %v2118_v55, %s10749_s22  ;;  %6319 = vmatprep.mubr.f32.mxu1 %v5879_v4  ;;  %v14172_v4 = vld [vmem:[#allocation2 + $0x198] sm:$0xff] }
 0x50a   :  { %4712 = vst.msk [vmem:[#allocation3 + $0x200] sm:$0xff] %vm2337_vm7, %v18028_v46  ;;  %5249 = vrot.lane.b32.xlu0 %v5117_v62, %s10748_s21  ;;  %6320 = vmatmul.mubr.f32.gmra.mrb[138].mxu1 %v5878_v11  ;;  %v18034_v11 = vld [vmem:[#allocation26_spill] sm:$0xff] }
 0x50b   :  { %v14129_v51 = vpop.permute.xlu0 %2064  ;;  %10647 = vset.pattern.permute.xlu1 %v17920_v12 }
 0x50c   :  { %v14134_v37 = vpop.permute.xlu1 %3756 }
 0x50d   :  { %4418 = vperm.xlu1 %10647, %v13861_v48  }
 0x50e   :  { %3977 = vrot.lane.b32.xlu0 %v3844_v13, %s10743_s12  ;;  %v5119_v13 = vmul.f32 %v14067_v42, %v14172_v4 }
 0x50f   :  { %v14140_v53 = vpop.permute.xlu0 %2074 }
 0x510   :  { %v2233_v45 = vpop.permute.xlu1 %2232 }
 0x511   :  { %2359 = vst.msk [vmem:[#allocation3 + $0x1f8] sm:$0xff] %vm2337_vm7, %v2233_v45  ;;  %5233 = vrot.lane.b32.xlu1 %v5109_v34, %s10748_s21 }
 0x512   :  { %2997 = vst.msk [vmem:[#allocation3 + $0x1f8] sm:$0xff] %vm2975_vm8, %v13633_v47  ;;  %2260 = vrot.lane.b32.xlu0 %v2127_v10, %s10749_s22  ;;  %10648 = vset.pattern.permute.xlu1 %v17919_v39  ;;  %v3845_v47 = vmul.f32 %v13789_v28, %v14037_v20  ;;  %v10712_v20 = vld [vmem:[#allocation2 + $0xe8] sm:$0xff] }
 0x513   :  { %v14151_v3 = vpop.permute.xlu0 %2084  ;;  %v2119_v46 = vmul.f32 %v10712_v20, %v18034_v11  ;;  %v3847_v20 = vmul.f32 %v14056_v25, %v14134_v37  ;;  %v10715_v37 = vld [vmem:[#allocation2 + $0xf0] sm:$0xff] }
 0x514   :  { %18030 = vst [vmem:[#allocation14_spill] sm:$0xff] %v14151_v3  ;;  %v14155_v9 = vpop.permute.xlu1 %4393 }
 0x515   :  { %5055 = vperm.xlu1 %10648, %v13861_v48   ;;  %v10711_v48 = vld [vmem:[#allocation2 + $0x130] sm:$0xff] }
 0x516   :  { %5251 = vrot.lane.b32.xlu0 %v5118_v0, %s10748_s21  ;;  %v2128_v62 = vmul.f32 %v10711_v48, %v18033_v36  ;;  %v14186_v0 = vld [vmem:[#allocation2 + $0x170] sm:$0xff] }
 0x517   :  { %v14161_v40 = vpop.permute.xlu0 %2089  ;;  %v3846_v42 = vmul.f32 %v14186_v0, %v14080_v54 }
 0x518   :  { %18032 = vst [vmem:[#allocation59_spill] sm:$0xff] %v14161_v40  ;;  %v5224_v55 = vpop.permute.xlu1 %5223 }
 0x519   :  { %5349 = vst.msk [vmem:[#allocation3 + $0x200] sm:$0xff] %vm2975_vm8, %v5224_v55  ;;  %3961 = vrot.lane.b32.xlu1 %v3836_v14, %s10743_s12  ;;  %v5881_v45 = vld [vmem:[#allocation3 + $0x1f8] sm:$0xff] }
 0x51a   :  { %3979 = vrot.lane.b32.xlu0 %v3845_v47, %s10743_s12  ;;  %10649 = vset.pattern.permute.xlu1 %v17918_v61  ;;  %v14197_v47 = vld [vmem:[#allocation2 + $0x138] sm:$0xff] }
 0x51b   :  { %v2129_v55 = vmul.f32 %v14102_v18, %v14197_v47  ;;  %v14219_v18 = vld [vmem:[#allocation2 + $0x128] sm:$0xff] }
 0x51c   :  { %v14170_v16 = vpop.permute.xlu0 %2642  ;;  %v5031_v52 = vpop.permute.xlu1 %5030 }
 0x51d   :  { %3786 = vperm.xlu1 %10649, %v14008_v29  }
 0x51e   :  { %2262 = vrot.lane.b32.xlu0 %v2128_v62, %s10749_s22  ;;  %v14203_v62 = vld [vmem:[#allocation2 + $0x1a0] sm:$0xff] }
 0x520   :  { %v14179_v63 = vpop.permute.xlu0 %2647  ;;  %v3952_v34 = vpop.permute.xlu1 %3951  ;;  %v5882_v10 = vld [vmem:[#allocation3 + $0x200] sm:$0xff] }
 0x521   :  { %4076 = vst.msk [vmem:[#allocation3 + $0x218] sm:$0xff] %vm1699_vm6, %v3952_v34  ;;  %2244 = vrot.lane.b32.xlu1 %v2119_v46, %s10749_s22  ;;  %6324 = vmatprep.mubr.f32.mxu1 %v5882_v10  ;;  %v14234_v10 = vld [vmem:[#allocation2 + $0x1a8] sm:$0xff] }
 0x522   :  { %4713 = vst.msk [vmem:[#allocation3 + $0x218] sm:$0xff] %vm2337_vm7, %v13641_v27  ;;  %6325 = vmatmul.mubr.f32.gmra.mrb[140].mxu1 %v5881_v45  ;;  %5253 = vrot.lane.b32.xlu0 %v5119_v13, %s10748_s21  ;;  %v5110_v27 = vmul.f32 %v13626_v60, %v13654_v56  ;;  %v5120_v60 = vmul.f32 %v14113_v2, %v14203_v62  ;;  %v18035_v2 = vld [vmem:[#allocation33_spill] sm:$0xff] }
 0x523   :  { %10650 = vset.pattern.permute.xlu1 %v17920_v12  ;;  %v18036_v45 = vld [vmem:[#allocation25_spill] sm:$0xff] }
 0x524   :  { %v14191_v49 = vpop.permute.xlu0 %2652  ;;  %v3762_v14 = vpop.permute.xlu1 %3761 }
 0x525   :  { %4423 = vperm.xlu1 %10650, %v14008_v29  }
 0x526   :  { %3981 = vrot.lane.b32.xlu0 %v3846_v42, %s10743_s12  ;;  %v2120_v42 = vmul.f32 %v10715_v37, %v18036_v45  ;;  %v14255_v37 = vld [vmem:[#allocation2 + $0x148] sm:$0xff] }
 0x527   :  { %v2131_v45 = vmul.f32 %v14110_v43, %v14255_v37 }
 0x528   :  { %v14201_v48 = vpop.permute.xlu0 %2657  ;;  %v2235_v36 = vpop.permute.xlu1 %2234 }
 0x529   :  { %2360 = vst.msk [vmem:[#allocation3 + $0x210] sm:$0xff] %vm2337_vm7, %v2235_v36  ;;  %5235 = vrot.lane.b32.xlu1 %v5110_v27, %s10748_s21  ;;  %v5121_v27 = vmul.f32 %v5031_v52, %v14234_v10  ;;  %v3848_v52 = vmul.f32 %v14093_v59, %v3762_v14 }
 0x52a   :  { %2998 = vst.msk [vmem:[#allocation3 + $0x210] sm:$0xff] %vm2975_vm8, %v13660_v31  ;;  %2264 = vrot.lane.b32.xlu0 %v2129_v55, %s10749_s22  ;;  %10651 = vset.pattern.permute.xlu1 %v17919_v39  ;;  %v3837_v31 = vmul.f32 %v14219_v18, %v13643_v44 }
 0x52c   :  { %v14213_v56 = vpop.permute.xlu0 %2662  ;;  %v14215_v54 = vpop.permute.xlu1 %4398 }
 0x52d   :  { %5060 = vperm.xlu1 %10651, %v14008_v29   ;;  %v10714_v29 = vld [vmem:[#allocation2 + $0x140] sm:$0xff] }
 0x52e   :  { %5255 = vrot.lane.b32.xlu0 %v5120_v60, %s10748_s21  ;;  %v2130_v13 = vmul.f32 %v10714_v29, %v18035_v2  ;;  %v18038_v2 = vld [vmem:[#allocation46_spill] sm:$0xff] }
 0x530   :  { %v14225_v11 = vpop.permute.xlu0 %2667  ;;  %v5226_v46 = vpop.permute.xlu1 %5225 }
 0x531   :  { %5350 = vst.msk [vmem:[#allocation3 + $0x218] sm:$0xff] %vm2975_vm8, %v5226_v46  ;;  %3963 = vrot.lane.b32.xlu1 %v3837_v31, %s10743_s12  ;;  %v5884_v31 = vld [vmem:[#allocation3 + $0x210] sm:$0xff] }
 0x532   :  { %3983 = vrot.lane.b32.xlu0 %v3847_v20, %s10743_s12  ;;  %10652 = vset.pattern.permute.xlu1 %v17918_v61  ;;  %v18037_v20 = vld [vmem:[#allocation58_spill] sm:$0xff] }
 0x534   :  { %v14232_v34 = vpop.permute.xlu0 %2672  ;;  %v5036_v44 = vpop.permute.xlu1 %5035 }
 0x535   :  { %3791 = vperm.xlu1 %10652, %v13876_v5  }
 0x536   :  { %2266 = vrot.lane.b32.xlu0 %v2130_v13, %s10749_s22  ;;  %v5111_v13 = vmul.f32 %v18038_v2, %v13696_v26 }
 0x538   :  { %v14240_v55 = vpop.permute.xlu0 %2677  ;;  %v3954_v36 = vpop.permute.xlu1 %3953  ;;  %v5885_v60 = vld [vmem:[#allocation3 + $0x218] sm:$0xff] }
 0x539   :  { %4077 = vst.msk [vmem:[#allocation3 + $0x230] sm:$0xff] %vm1699_vm6, %v3954_v36  ;;  %2246 = vrot.lane.b32.xlu1 %v2120_v42, %s10749_s22  ;;  %6329 = vmatprep.mubr.f32.mxu1 %v5885_v60  ;;  %v14261_v36 = vld [vmem:[#allocation2 + $0x1b0] sm:$0xff] }
 0x53a   :  { %4714 = vst.msk [vmem:[#allocation3 + $0x230] sm:$0xff] %vm2337_vm7, %v18037_v20  ;;  %6330 = vmatmul.mubr.f32.gmra.mrb[142].mxu1 %v5884_v31  ;;  %5257 = vrot.lane.b32.xlu0 %v5121_v27, %s10748_s21  ;;  %v5122_v26 = vmul.f32 %v5036_v44, %v14261_v36  ;;  %v10716_v60 = vld [vmem:[#allocation2 + $0x130] sm:$0xff] }
 0x53b   :  { %10653 = vset.pattern.permute.xlu1 %v17920_v12  ;;  %v3838_v31 = vmul.f32 %v10716_v60, %v13685_v8  ;;  %v10717_v44 = vld [vmem:[#allocation2 + $0x150] sm:$0xff]  ;;  %v14287_v8 = vld [vmem:[#allocation2 + $0x1b8] sm:$0xff] }
 0x53c   :  { %v14249_v46 = vpop.permute.xlu0 %2682  ;;  %v3767_v29 = vpop.permute.xlu1 %3766 }
 0x53d   :  { %4428 = vperm.xlu1 %10653, %v13876_v5   ;;  %v3849_v20 = vmul.f32 %v14118_v21, %v3767_v29  ;;  %v10718_v29 = vld [vmem:[#allocation2 + $0xf8] sm:$0xff] }
 0x53e   :  { %3985 = vrot.lane.b32.xlu0 %v3848_v52, %s10743_s12 }
 0x540   :  { %v14259_v42 = vpop.permute.xlu0 %2687  ;;  %v2237_v27 = vpop.permute.xlu1 %2236 }
 0x541   :  { %2361 = vst.msk [vmem:[#allocation3 + $0x228] sm:$0xff] %vm2337_vm7, %v2237_v27  ;;  %5237 = vrot.lane.b32.xlu1 %v5111_v13, %s10748_s21  ;;  %v18040_v27 = vld [vmem:[#allocation28_spill] sm:$0xff] }
 0x542   :  { %2999 = vst.msk [vmem:[#allocation3 + $0x228] sm:$0xff] %vm2975_vm8, %v13702_v30  ;;  %2268 = vrot.lane.b32.xlu0 %v2131_v45, %s10749_s22  ;;  %10654 = vset.pattern.permute.xlu1 %v17919_v39 }
 0x544   :  { %v14270_v14 = vpop.permute.xlu0 %2692  ;;  %v14272_v43 = vpop.permute.xlu1 %4403 }
 0x545   :  { %5065 = vperm.xlu1 %10654, %v13876_v5   ;;  %v18039_v5 = vld [vmem:[#allocation34_spill] sm:$0xff] }
 0x546   :  { %5259 = vrot.lane.b32.xlu0 %v5122_v26, %s10748_s21  ;;  %v2132_v2 = vmul.f32 %v10717_v44, %v18039_v5  ;;  %v2121_v26 = vmul.f32 %v10718_v29, %v18040_v27  ;;  %v18042_v5 = vld [vmem:[#allocation55_spill] sm:$0xff] }
 0x547   :  { %v18044_v27 = vld [vmem:[#allocation47_spill] sm:$0xff] }
 0x548   :  { %v14278_v30 = vpop.permute.xlu0 %2697  ;;  %v5228_v52 = vpop.permute.xlu1 %5227 }
 0x549   :  { %5351 = vst.msk [vmem:[#allocation3 + $0x230] sm:$0xff] %vm2975_vm8, %v5228_v52  ;;  %3965 = vrot.lane.b32.xlu1 %v3838_v31, %s10743_s12  ;;  %v5887_v44 = vld [vmem:[#allocation3 + $0x228] sm:$0xff] }
 0x54a   :  { %3987 = vrot.lane.b32.xlu0 %v3849_v20, %s10743_s12  ;;  %10655 = vset.pattern.permute.xlu1 %v17918_v61 }
 0x54c   :  { %v14285_v13 = vpop.permute.xlu0 %2702  ;;  %v5041_v45 = vpop.permute.xlu1 %5040 }
 0x54d   :  { %3796 = vperm.xlu1 %10655, %v14026_v7   ;;  %v5123_v60 = vmul.f32 %v5041_v45, %v14287_v8 }
 0x54e   :  { %2270 = vrot.lane.b32.xlu0 %v2132_v2, %s10749_s22 }
 0x550   :  { %v14293_v31 = vpop.permute.xlu0 %2707  ;;  %v3956_v20 = vpop.permute.xlu1 %3955  ;;  %v5888_v52 = vld [vmem:[#allocation3 + $0x230] sm:$0xff] }
 0x551   :  { %18041 = vst [vmem:[#allocation61_spill] sm:$0xff] %v14293_v31  ;;  %4078 = vst.msk [vmem:[#allocation3 + $0x248] sm:$0xff] %vm1699_vm6, %v3956_v20  ;;  %2248 = vrot.lane.b32.xlu1 %v2121_v26, %s10749_s22  ;;  %6334 = vmatprep.mubr.f32.mxu1 %v5888_v52  ;;  %v5112_v26 = vmul.f32 %v18044_v27, %v13748_v22  ;;  %v18046_v27 = vld [vmem:[#allocation7_spill] sm:$0xff] }
 0x552   :  { %4715 = vst.msk [vmem:[#allocation3 + $0x248] sm:$0xff] %vm2337_vm7, %v18042_v5  ;;  %6335 = vmatmul.mubr.f32.gmra.mrb[144].mxu1 %v5887_v44  ;;  %5261 = vrot.lane.b32.xlu0 %v5123_v60, %s10748_s21  ;;  %v10719_v44 = vld [vmem:[#allocation2 + $0x158] sm:$0xff]  ;;  %v18045_v5 = vld [vmem:[#allocation38_spill] sm:$0xff] }
 0x553   :  { %10656 = vset.pattern.permute.xlu1 %v17920_v12  ;;  %v2133_v60 = vmul.f32 %v10719_v44, %v14120_v24 }
 0x554   :  { %v14301_v2 = vpop.permute.xlu0 %2712  ;;  %v3772_v45 = vpop.permute.xlu1 %3771 }
 0x555   :  { %18043 = vst [vmem:[#allocation17_spill] sm:$0xff] %v14301_v2  ;;  %v3850_v29 = vmul.f32 %v14143_v50, %v3772_v45  ;;  %4433 = vperm.xlu1 %10656, %v14026_v7  }
 0x557   :  { %3989 = vrot.lane.b32.xlu0 %v3850_v29, %s10743_s12  ;;  %v10720_v29 = vld [vmem:[#allocation2 + $0x138] sm:$0xff] }
 0x558   :  { %v14308_v20 = vpop.permute.xlu0 %2717  ;;  %v2239_v52 = vpop.permute.xlu1 %2238  ;;  %v3839_v24 = vmul.f32 %v10720_v29, %v18046_v27  ;;  %v10721_v29 = vld [vmem:[#allocation2 + $0x100] sm:$0xff]  ;;  %v18047_v27 = vld [vmem:[#allocation27_spill] sm:$0xff] }
 0x559   :  { %2362 = vst.msk [vmem:[#allocation3 + $0x240] sm:$0xff] %vm2337_vm7, %v2239_v52  ;;  %5239 = vrot.lane.b32.xlu1 %v5112_v26, %s10748_s21  ;;  %v14328_v26 = vld [vmem:[#allocation2 + $0x1c0] sm:$0xff]  ;;  %v2122_v40 = vmul.f32 %v10721_v29, %v18047_v27 }
 0x55a   :  { %3000 = vst.msk [vmem:[#allocation3 + $0x240] sm:$0xff] %vm2975_vm8, %v18045_v5  ;;  %10657 = vset.pattern.permute.xlu1 %v17919_v39 }
 0x55b   :  { %2272 = vrot.lane.b32.xlu0 %v2133_v60, %s10749_s22 }
 0x55c   :  { %v14317_v22 = vpop.permute.xlu0 %2722  ;;  %v14319_v45 = vpop.permute.xlu1 %4408 }
 0x55d   :  { %5070 = vperm.xlu1 %10657, %v14026_v7  }
 0x560   :  { %v14323_v44 = vpop.permute.xlu0 %2727  ;;  %v5230_v52 = vpop.permute.xlu1 %5229 }
 0x561   :  { %5352 = vst.msk [vmem:[#allocation3 + $0x248] sm:$0xff] %vm2975_vm8, %v5230_v52  ;;  %3967 = vrot.lane.b32.xlu1 %v3839_v24, %s10743_s12  ;;  %v5890_v2 = vld [vmem:[#allocation3 + $0x240] sm:$0xff] }
 0x562   :  { %10658 = vset.pattern.permute.xlu1 %v17918_v61 }
 0x564   :  { %v2255_v60 = vpop.permute.xlu0 %2254  ;;  %v5046_v5 = vpop.permute.xlu1 %5045 }
 0x565   :  { %2370 = vst.msk [vmem:[#allocation3 + $0x300] sm:$0xff] %vm2337_vm7, %v2255_v60  ;;  %v5124_v7 = vmul.f32 %v5046_v5, %v14328_v26  ;;  %3801 = vperm.xlu1 %10658, %v13887_v33   ;;  %v18048_v60 = vld [vmem:[#allocation13_spill] sm:$0xff]  ;;  %v14345_v33 = vld [vmem:[%s17820_s1 + $0x178] sm:$0xff] }
 0x566   :  { %18049 = vst [vmem:[#allocation43_spill] sm:$0xff] %v14345_v33 }
 0x567   :  { %5263 = vrot.lane.b32.xlu0 %v5124_v7, %s10748_s21 }
 0x568   :  { %v14335_v52 = vpop.permute.xlu0 %5245  ;;  %v3958_v24 = vpop.permute.xlu1 %3957  ;;  %v5891_v3 = vld [vmem:[#allocation3 + $0x248] sm:$0xff] }
 0x569   :  { %4079 = vst.msk [vmem:[#allocation3 + $0x260] sm:$0xff] %vm1699_vm6, %v3958_v24  ;;  %2250 = vrot.lane.b32.xlu1 %v2122_v40, %s10749_s22  ;;  %6339 = vmatprep.mubr.f32.mxu1 %v5891_v3  ;;  %v18050_v3 = vld [vmem:[#allocation48_spill] sm:$0xff] }
 0x56a   :  { %4716 = vst.msk [vmem:[#allocation3 + $0x260] sm:$0xff] %vm2337_vm7, %v18048_v60  ;;  %6340 = vmatmul.mubr.f32.gmra.mrb[146].mxu1 %v5890_v2  ;;  %10659 = vset.pattern.permute.xlu1 %v17920_v12  ;;  %v5113_v40 = vmul.f32 %v18050_v3, %v13789_v28  ;;  %v10722_v24 = vld [vmem:[#allocation2 + $0x160] sm:$0xff]  ;;  %v18051_v60 = vld [vmem:[#allocation35_spill] sm:$0xff] }
 0x56b   :  { %v2134_v31 = vmul.f32 %v10722_v24, %v18051_v60  ;;  %v10723_v24 = vld [vmem:[#allocation2 + $0x140] sm:$0xff] }
 0x56c   :  { %v3974_v5 = vpop.permute.xlu0 %3973  ;;  %v3777_v7 = vpop.permute.xlu1 %3776 }
 0x56d   :  { %4087 = vst.msk [vmem:[#allocation3 + $0x320] sm:$0xff] %vm1699_vm6, %v3974_v5  ;;  %v3851_v29 = vmul.f32 %v14172_v4, %v3777_v7  ;;  %4438 = vperm.xlu1 %10659, %v14345_v33   ;;  %v18052_v5 = vld [vmem:[#allocation42_spill] sm:$0xff]  ;;  %v18053_v7 = vld [vmem:[#allocation41_spill] sm:$0xff] }
 0x56e   :  { %v2760_v28 = vmul.f32 %v14219_v18, %v18053_v7  ;;  %v18055_v18 = vld [vmem:[#allocation49_spill] sm:$0xff] }
 0x56f   :  { %3991 = vrot.lane.b32.xlu0 %v3851_v29, %s10743_s12  ;;  %v3840_v60 = vmul.f32 %v10723_v24, %v18055_v18 }
 0x570   :  { %v2257_v2 = vpop.permute.xlu0 %2256  ;;  %v2241_v27 = vpop.permute.xlu1 %2240 }
 0x571   :  { %2371 = vst.msk [vmem:[#allocation3 + $0x318] sm:$0xff] %vm2337_vm7, %v2257_v2  ;;  %2363 = vst.msk [vmem:[#allocation3 + $0x258] sm:$0xff] %vm2337_vm7, %v2241_v27  ;;  %5241 = vrot.lane.b32.xlu1 %v5113_v40, %s10748_s21  ;;  %v14371_v40 = vld [vmem:[#allocation2 + $0x1c8] sm:$0xff] }
 0x572   :  { %3001 = vst.msk [vmem:[#allocation3 + $0x258] sm:$0xff] %vm2975_vm8, %v18052_v5  ;;  %10660 = vset.pattern.permute.xlu1 %v17919_v39 }
 0x573   :  { %2274 = vrot.lane.b32.xlu0 %v2134_v31, %s10749_s22 }
 0x574   :  { %v14363_v29 = vpop.permute.xlu0 %5247  ;;  %v14365_v3 = vpop.permute.xlu1 %4413 }
 0x575   :  { %18054 = vst [vmem:[#allocation16_spill] sm:$0xff] %v14363_v29  ;;  %2888 = vrot.lane.b32.xlu1 %v2760_v28, %s10748_s21  ;;  %v14381_v28 = vld [vmem:[%s17820_s1 + $0x180] sm:$0xff]  ;;  %v14397_v29 = vld [vmem:[#allocation2 + $0x168] sm:$0xff] }
 0x576   :  { %18056 = vst [vmem:[#allocation40_spill] sm:$0xff] %v14381_v28 }
 0x578   :  { %v3976_v2 = vpop.permute.xlu0 %3975  ;;  %v5232_v27 = vpop.permute.xlu1 %5231 }
 0x579   :  { %4088 = vst.msk [vmem:[#allocation3 + $0x338] sm:$0xff] %vm1699_vm6, %v3976_v2  ;;  %5075 = vperm.xlu1 %10660, %v14345_v33   ;;  %v5893_v18 = vld [vmem:[#allocation3 + $0x258] sm:$0xff] }
 0x57a   :  { %5353 = vst.msk [vmem:[#allocation3 + $0x260] sm:$0xff] %vm2975_vm8, %v5232_v27 }
 0x57c   :  { %v2259_v31 = vpop.permute.xlu0 %2258  ;;  %v5051_v5 = vpop.permute.xlu1 %5050 }
 0x57d   :  { %2372 = vst.msk [vmem:[#allocation3 + $0x330] sm:$0xff] %vm2337_vm7, %v2259_v31  ;;  %v5125_v7 = vmul.f32 %v5051_v5, %v14371_v40  ;;  %3969 = vrot.lane.b32.xlu1 %v3840_v60, %s10743_s12  ;;  %v18058_v60 = vld [vmem:[#allocation52_spill] sm:$0xff]  ;;  %v18059_v31 = vld [vmem:[#allocation30_spill] sm:$0xff] }
 0x57e   :  { %10661 = vset.pattern.permute.xlu1 %v17918_v61  ;;  %v10724_v61 = vld [vmem:[#allocation2 + $0x108] sm:$0xff] }
 0x57f   :  { %5265 = vrot.lane.b32.xlu0 %v5125_v7, %s10748_s21  ;;  %v2123_v5 = vmul.f32 %v10724_v61, %v18059_v31 }
 0x580   :  { %v14384_v2 = vpop.permute.xlu0 %5249  ;;  %v3960_v27 = vpop.permute.xlu1 %3959 }
 0x581   :  { %18057 = vst [vmem:[#allocation44_spill] sm:$0xff] %v14384_v2  ;;  %v5894_v24 = vld [vmem:[#allocation3 + $0x260] sm:$0xff]  ;;  %4080 = vst.msk [vmem:[#allocation3 + $0x278] sm:$0xff] %vm1699_vm6, %v3960_v27  ;;  %3806 = vperm.xlu1 %10661, %v14381_v28  }
 0x582   :  { %6344 = vmatprep.mubr.f32.mxu1 %v5894_v24  ;;  %4717 = vst.msk [vmem:[#allocation3 + $0x278] sm:$0xff] %vm2337_vm7, %v18058_v60  ;;  %v18060_v60 = vld [vmem:[#allocation39_spill] sm:$0xff] }
 0x583   :  { %6345 = vmatmul.mubr.f32.gmra.mrb[148].mxu1 %v5893_v18  ;;  %v2135_v18 = vmul.f32 %v14397_v29, %v14129_v51  ;;  %v2418_v51 = vld [vmem:[#allocation2 + $0x130] sm:$0xff] }
 0x584   :  { %v14391_v33 = vpop.permute.xlu0 %3977  ;;  %v3782_v7 = vpop.permute.xlu1 %3781 }
 0x585   :  { %v3852_v2 = vmul.f32 %v14203_v62, %v3782_v7  ;;  %2252 = vrot.lane.b32.xlu1 %v2123_v5, %s10749_s22  ;;  %v2761_v5 = vmul.f32 %v14170_v16, %v2418_v51 }
 0x586   :  { %10663 = vset.pattern.permute.xlu1 %v17920_v12  ;;  %v18061_v12 = vld [vmem:[#allocation8_spill] sm:$0xff] }
 0x587   :  { %3993 = vrot.lane.b32.xlu0 %v3852_v2, %s10743_s12  ;;  %v5114_v61 = vmul.f32 %v18061_v12, %v14186_v0 }
 0x588   :  { %v2261_v27 = vpop.permute.xlu0 %2260  ;;  %v2243_v24 = vpop.permute.xlu1 %2242 }
 0x589   :  { %2373 = vst.msk [vmem:[#allocation3 + $0x348] sm:$0xff] %vm2337_vm7, %v2261_v27  ;;  %2364 = vst.msk [vmem:[#allocation3 + $0x270] sm:$0xff] %vm2337_vm7, %v2243_v24  ;;  %4443 = vperm.xlu1 %10663, %v14381_v28   ;;  %v14420_v24 = vld [vmem:[#allocation2 + $0x1d0] sm:$0xff] }
 0x58a   :  { %3002 = vst.msk [vmem:[#allocation3 + $0x270] sm:$0xff] %vm2975_vm8, %v18060_v60 }
 0x58b   :  { %2276 = vrot.lane.b32.xlu0 %v2135_v18, %s10749_s22 }
 0x58c   :  { %v14409_v2 = vpop.permute.xlu1 %4418  ;;  %v14411_v31 = vpop.permute.xlu0 %5251 }
 0x58d   :  { %18062 = vst [vmem:[#allocation19_spill] sm:$0xff] %v14411_v31  ;;  %5243 = vrot.lane.b32.xlu1 %v5114_v61, %s10748_s21  ;;  %v18063_v61 = vld [vmem:[#allocation54_spill] sm:$0xff] }
 0x58e   :  { %10665 = vset.pattern.permute.xlu1 %v17919_v39  ;;  %v10726_v39 = vld [vmem:[#allocation2 + $0x148] sm:$0xff] }
 0x58f   :  { %v3841_v16 = vmul.f32 %v10726_v39, %v18063_v61 }
 0x590   :  { %v5234_v7 = vpop.permute.xlu1 %5233  ;;  %v14416_v27 = vpop.permute.xlu0 %3979 }
 0x591   :  { %5354 = vst.msk [vmem:[#allocation3 + $0x278] sm:$0xff] %vm2975_vm8, %v5234_v7  ;;  %2890 = vrot.lane.b32.xlu1 %v2761_v5, %s10748_s21  ;;  %v5896_v5 = vld [vmem:[#allocation3 + $0x270] sm:$0xff] }
 0x594   :  { %v5056_v18 = vpop.permute.xlu1 %5055  ;;  %v2263_v60 = vpop.permute.xlu0 %2262 }
 0x595   :  { %v5126_v12 = vmul.f32 %v5056_v18, %v14420_v24  ;;  %2374 = vst.msk [vmem:[#allocation3 + $0x360] sm:$0xff] %vm2337_vm7, %v2263_v60  ;;  %5080 = vperm.xlu1 %10665, %v14381_v28   ;;  %v18065_v18 = vld [vmem:[#allocation57_spill] sm:$0xff]  ;;  %v18066_v60 = vmov 4   ;;  %v18067_v28 = vld [vmem:[#allocation15_spill] sm:$0xff] }
 0x596   :  { %v4478_v39 = vmul.f32 %v14186_v0, %v18067_v28  ;;  %v18068_v28 = vld [vmem:[#allocation36_spill] sm:$0xff] }
 0x597   :  { %5267 = vrot.lane.b32.xlu0 %v5126_v12, %s10748_s21 }
 0x598   :  { %v3962_v51 = vpop.permute.xlu1 %3961  ;;  %v14427_v31 = vpop.permute.xlu0 %5253  ;;  %v5897_v7 = vld [vmem:[#allocation3 + $0x278] sm:$0xff] }
 0x599   :  { %18064 = vst [vmem:[#allocation18_spill] sm:$0xff] %v14427_v31  ;;  %4081 = vst.msk [vmem:[#allocation3 + $0x290] sm:$0xff] %vm1699_vm6, %v3962_v51  ;;  %3971 = vrot.lane.b32.xlu1 %v3841_v16, %s10743_s12  ;;  %6349 = vmatprep.mubr.f32.mxu1 %v5897_v7  ;;  %v3109_v16 = vld [vmem:[%s17820_s1 + $0x118] sm:$0xff] }
 0x59a   :  { %4718 = vst.msk [vmem:[#allocation3 + $0x290] sm:$0xff] %vm2337_vm7, %v18065_v18  ;;  %6350 = vmatmul.mubr.f32.gmra.mrb[150].mxu1 %v5896_v5  ;;  %10666 = vset.pattern.permute.xlu1 %v18066_v60  ;;  %v17867_v5 = vmov 8   ;;  %v10727_v18 = vld [vmem:[#allocation2 + $0x170] sm:$0xff] }
 0x59b   :  { %10668 = vset.pattern.permute.xlu0 %v17867_v5  ;;  %v2136_v60 = vmul.f32 %v10727_v18, %v18068_v28  ;;  %v14470_v18 = vld [vmem:[#allocation2 + $0x1d8] sm:$0xff]  ;;  %v3110_v28 = vld [vmem:[%s17820_s1 + $0x120] sm:$0xff] }
 0x59c   :  { %v3787_v12 = vpop.permute.xlu1 %3786  ;;  %v14436_v61 = vpop.permute.xlu0 %3981 }
 0x59d   :  { %v3853_v31 = vmul.f32 %v14234_v10, %v3787_v12  ;;  %4608 = vrot.lane.b32.xlu1 %v4478_v39, %s10749_s22  ;;  %v2762_v39 = vmul.f32 %v14179_v63, %v14197_v47 }
 0x59f   :  { %3995 = vrot.lane.b32.xlu0 %v3853_v31, %s10743_s12 }
 0x5a0   :  { %v2245_v51 = vpop.permute.xlu1 %2244  ;;  %v2265_v7 = vpop.permute.xlu0 %2264 }
 0x5a1   :  { %2365 = vst.msk [vmem:[#allocation3 + $0x288] sm:$0xff] %vm2337_vm7, %v2245_v51  ;;  %2375 = vst.msk [vmem:[#allocation3 + $0x378] sm:$0xff] %vm2337_vm7, %v2265_v7  ;;  %3300 = vperm.xlu1 %10666, %v3109_v16   ;;  %v5997_v51 = vld [vmem:[%s17824_s4 + $0x100] sm:$0xff]  ;;  %v5998_v16 = vld [vmem:[%s17824_s4 + $0x108] sm:$0xff] }
 0x5a2   :  { %3003 = vst.msk [vmem:[#allocation3 + $0x288] sm:$0xff] %vm2975_vm8, %v13922_v15  ;;  %v4479_v15 = vmul.f32 %v14056_v25, %v13916_v23  ;;  %v9497_v63 = vpack.c.bf16 %v5998_v16, %v5997_v51  ;;  %v2420_v51 = vld [vmem:[#allocation2 + $0x140] sm:$0xff] }
 0x5a3   :  { %2278 = vrot.lane.b32.xlu0 %v2136_v60, %s10749_s22  ;;  %v18069_v60 = vmov 0.0|0.0   ;;  %v2763_v16 = vmul.f32 %v14191_v49, %v2420_v51 }
 0x5a4   :  { %v14453_v31 = vpop.permute.xlu1 %4423  ;;  %v14455_v12 = vpop.permute.xlu0 %5255  ;;  %9498 = vmatpush3.bf16.msra.mxu1 %v9497_v63 }
 0x5a5   :  { %2892 = vrot.lane.b32.xlu1 %v2762_v39, %s10748_s21  ;;  %9499 = vmatprep.subr.bf16.mxu1 %v18069_v60 }
 0x5a8   :  { %v5236_v47 = vpop.permute.xlu1 %5235  ;;  %v14466_v7 = vpop.permute.xlu0 %3983 }
 0x5a9   :  { %5355 = vst.msk [vmem:[#allocation3 + $0x290] sm:$0xff] %vm2975_vm8, %v5236_v47  ;;  %4610 = vrot.lane.b32.xlu1 %v4479_v15, %s10749_s22  ;;  %v5899_v60 = vld [vmem:[#allocation3 + $0x288] sm:$0xff] }
 0x5ac   :  { %v5061_v39 = vpop.permute.xlu1 %5060  ;;  %v2267_v5 = vpop.permute.xlu0 %2266 }
 0x5ad   :  { %v5127_v23 = vmul.f32 %v5061_v39, %v14470_v18  ;;  %2376 = vst.msk [vmem:[#allocation3 + $0x390] sm:$0xff] %vm2337_vm7, %v2267_v5  ;;  %3305 = vperm.xlu1 %10666, %v3110_v28   ;;  %v4480_v5 = vmul.f32 %v14093_v59, %v13957_v57  ;;  %v2764_v57 = vmul.f32 %v14201_v48, %v14255_v37  ;;  %v3112_v48 = vld [vmem:[%s17820_s1 + $0x130] sm:$0xff] }
 0x5af   :  { %5269 = vrot.lane.b32.xlu0 %v5127_v23, %s10748_s21  ;;  %v3111_v23 = vld [vmem:[%s17820_s1 + $0x128] sm:$0xff] }
 0x5b0   :  { %v3964_v15 = vpop.permute.xlu1 %3963  ;;  %v14480_v63 = vpop.permute.xlu0 %5257  ;;  %v5900_v47 = vld [vmem:[#allocation3 + $0x290] sm:$0xff] }
 0x5b1   :  { %4082 = vst.msk [vmem:[#allocation3 + $0x2a8] sm:$0xff] %vm1699_vm6, %v3964_v15  ;;  %2894 = vrot.lane.b32.xlu1 %v2763_v16, %s10748_s21  ;;  %6354 = vmatprep.mubr.f32.mxu1 %v5900_v47 }
 0x5b2   :  { %4719 = vst.msk [vmem:[#allocation3 + $0x2a8] sm:$0xff] %vm2337_vm7, %v13932_v32  ;;  %6355 = vmatmul.mubr.f32.gmra.mrb[152].mxu1 %v5899_v60  ;;  %v2137_v32 = vmul.f32 %v14056_v25, %v14140_v53  ;;  %v4481_v25 = vmul.f32 %v14118_v21, %v14002_v6  ;;  %v2422_v6 = vld [vmem:[#allocation2 + $0x150] sm:$0xff] }
 0x5b4   :  { %v3792_v49 = vpop.permute.xlu1 %3791  ;;  %v14488_v28 = vpop.permute.xlu0 %3985 }
 0x5b5   :  { %v3854_v39 = vmul.f32 %v14261_v36, %v3792_v49  ;;  %4612 = vrot.lane.b32.xlu1 %v4480_v5, %s10749_s22 }
 0x5b7   :  { %3997 = vrot.lane.b32.xlu0 %v3854_v39, %s10743_s12  ;;  %v2765_v39 = vmul.f32 %v14213_v56, %v2422_v6 }
 0x5b8   :  { %v2247_v51 = vpop.permute.xlu1 %2246  ;;  %v2269_v16 = vpop.permute.xlu0 %2268 }
 0x5b9   :  { %2366 = vst.msk [vmem:[#allocation3 + $0x2a0] sm:$0xff] %vm2337_vm7, %v2247_v51  ;;  %2377 = vst.msk [vmem:[#allocation3 + $0x3a8] sm:$0xff] %vm2337_vm7, %v2269_v16  ;;  %3310 = vperm.xlu1 %10666, %v3111_v23  }
 0x5ba   :  { %3004 = vst.msk [vmem:[#allocation3 + $0x2a0] sm:$0xff] %vm2975_vm8, %v13962_v17  ;;  %v14516_v17 = vld [vmem:[#allocation2 + $0x1e0] sm:$0xff] }
 0x5bb   :  { %2280 = vrot.lane.b32.xlu0 %v2137_v32, %s10749_s22 }
 0x5bc   :  { %v14505_v60 = vpop.permute.xlu1 %4428  ;;  %v14507_v15 = vpop.permute.xlu0 %5259 }
 0x5bd   :  { %2896 = vrot.lane.b32.xlu1 %v2764_v57, %s10748_s21  ;;  %v4482_v57 = vmul.f32 %v14143_v50, %v14052_v19  ;;  %v14544_v19 = vld [vmem:[#allocation2 + $0x158] sm:$0xff] }
 0x5c0   :  { %v5238_v53 = vpop.permute.xlu1 %5237  ;;  %v14512_v47 = vpop.permute.xlu0 %3987 }
 0x5c1   :  { %5356 = vst.msk [vmem:[#allocation3 + $0x2a8] sm:$0xff] %vm2975_vm8, %v5238_v53  ;;  %4614 = vrot.lane.b32.xlu1 %v4481_v25, %s10749_s22  ;;  %v5902_v32 = vld [vmem:[#allocation3 + $0x2a0] sm:$0xff] }
 0x5c4   :  { %v5066_v37 = vpop.permute.xlu1 %5065  ;;  %v2271_v5 = vpop.permute.xlu0 %2270 }
 0x5c5   :  { %v5128_v49 = vmul.f32 %v5066_v37, %v14516_v17  ;;  %2378 = vst.msk [vmem:[#allocation3 + $0x3c0] sm:$0xff] %vm2337_vm7, %v2271_v5  ;;  %3315 = vperm.xlu1 %10666, %v3112_v48   ;;  %v3113_v48 = vld [vmem:[%s17820_s1 + $0x138] sm:$0xff] }
 0x5c7   :  { %5271 = vrot.lane.b32.xlu0 %v5128_v49, %s10748_s21  ;;  %v18070_v49 = vld [vmem:[#allocation37_spill] sm:$0xff] }
 0x5c8   :  { %v3966_v23 = vpop.permute.xlu1 %3965  ;;  %v14525_v51 = vpop.permute.xlu0 %5261  ;;  %v5903_v16 = vld [vmem:[#allocation3 + $0x2a8] sm:$0xff] }
 0x5c9   :  { %4083 = vst.msk [vmem:[#allocation3 + $0x2c0] sm:$0xff] %vm1699_vm6, %v3966_v23  ;;  %2898 = vrot.lane.b32.xlu1 %v2765_v39, %s10748_s21  ;;  %6359 = vmatprep.mubr.f32.mxu1 %v5903_v16  ;;  %v2766_v39 = vmul.f32 %v14225_v11, %v14544_v19  ;;  %v2776_v16 = vmul.f32 %v14234_v10, %v14308_v20  ;;  %v14568_v20 = vld [vmem:[#allocation2 + $0x160] sm:$0xff] }
 0x5ca   :  { %4720 = vst.msk [vmem:[#allocation3 + $0x2c0] sm:$0xff] %vm2337_vm7, %v13974_v35  ;;  %6360 = vmatmul.mubr.f32.gmra.mrb[154].mxu1 %v5902_v32  ;;  %v10728_v35 = vld [vmem:[#allocation2 + $0x180] sm:$0xff]  ;;  %v4483_v32 = vmul.f32 %v14172_v4, %v14097_v38  ;;  %v2767_v38 = vmul.f32 %v14232_v34, %v14568_v20 }
 0x5cb   :  { %v2138_v6 = vmul.f32 %v10728_v35, %v18070_v49  ;;  %v3115_v49 = vld [vmem:[%s17820_s1 + $0x148] sm:$0xff] }
 0x5cc   :  { %v3797_v56 = vpop.permute.xlu1 %3796  ;;  %v14533_v25 = vpop.permute.xlu0 %3989 }
 0x5cd   :  { %v3855_v53 = vmul.f32 %v14287_v8, %v3797_v56  ;;  %4616 = vrot.lane.b32.xlu1 %v4482_v57, %s10749_s22 }
 0x5cf   :  { %3999 = vrot.lane.b32.xlu0 %v3855_v53, %s10743_s12 }
 0x5d0   :  { %v2249_v37 = vpop.permute.xlu1 %2248  ;;  %v2273_v5 = vpop.permute.xlu0 %2272 }
 0x5d1   :  { %2367 = vst.msk [vmem:[#allocation3 + $0x2b8] sm:$0xff] %vm2337_vm7, %v2249_v37  ;;  %2379 = vst.msk [vmem:[#allocation3 + $0x3d8] sm:$0xff] %vm2337_vm7, %v2273_v5  ;;  %3320 = vperm.xlu1 %10666, %v3113_v48   ;;  %v4484_v5 = vmul.f32 %v14203_v62, %v14155_v9 }
 0x5d2   :  { %3005 = vst.msk [vmem:[#allocation3 + $0x2b8] sm:$0xff] %vm2975_vm8, %v14011_v41  ;;  %v3114_v41 = vld [vmem:[%s17820_s1 + $0x140] sm:$0xff] }
 0x5d3   :  { %2282 = vrot.lane.b32.xlu0 %v2138_v6, %s10749_s22 }
 0x5d4   :  { %v14551_v23 = vpop.permute.xlu1 %4433 }
 0x5d5   :  { %2900 = vrot.lane.b32.xlu1 %v2766_v39, %s10748_s21  ;;  %v14590_v39 = vld [vmem:[#allocation2 + $0x1e8] sm:$0xff] }
 0x5d7   :  { %2920 = vrot.lane.b32.xlu0 %v2776_v16, %s10748_s21  ;;  %v4485_v16 = vmul.f32 %v14234_v10, %v14215_v54  ;;  %v2769_v54 = vmul.f32 %v14186_v0, %v14249_v46  ;;  %v3117_v46 = vld [vmem:[%s17820_s1 + $0x158] sm:$0xff] }
 0x5d8   :  { %v5240_v57 = vpop.permute.xlu1 %5239 }
 0x5d9   :  { %5357 = vst.msk [vmem:[#allocation3 + $0x2c0] sm:$0xff] %vm2975_vm8, %v5240_v57  ;;  %4618 = vrot.lane.b32.xlu1 %v4483_v32, %s10749_s22  ;;  %v14566_v56 = vpop.permute.xlu0 %5263  ;;  %v5905_v37 = vld [vmem:[#allocation3 + $0x2b8] sm:$0xff] }
 0x5dc   :  { %v14564_v11 = vpop.permute.xlu1 %5070 }
 0x5dd   :  { %3325 = vperm.xlu1 %10666, %v3114_v41   ;;  %v4787_v41 = vld [vmem:[#allocation2 + $0x1f0] sm:$0xff] }
 0x5e0   :  { %v3968_v4 = vpop.permute.xlu1 %3967  ;;  %v5906_v53 = vld [vmem:[#allocation3 + $0x2c0] sm:$0xff] }
 0x5e1   :  { %4084 = vst.msk [vmem:[#allocation3 + $0x2d8] sm:$0xff] %vm1699_vm6, %v3968_v4  ;;  %6364 = vmatprep.mubr.f32.mxu1 %v5906_v53  ;;  %2902 = vrot.lane.b32.xlu1 %v2767_v38, %s10748_s21  ;;  %v14574_v48 = vpop.permute.xlu0 %3991 }
 0x5e2   :  { %4721 = vst.msk [vmem:[#allocation3 + $0x2d8] sm:$0xff] %vm2337_vm7, %v14021_v1  ;;  %6365 = vmatmul.mubr.f32.gmra.mrb[156].mxu1 %v5905_v37  ;;  %v2768_v1 = vmul.f32 %v14397_v29, %v14240_v55  ;;  %v3116_v55 = vld [vmem:[%s17820_s1 + $0x150] sm:$0xff]  ;;  %v4486_v37 = vmul.f32 %v14261_v36, %v14272_v43 }
 0x5e4   :  { %v14580_v35 = vpop.permute.xlu1 %3801 }
 0x5e5   :  { %4620 = vrot.lane.b32.xlu1 %v4484_v5, %s10749_s22  ;;  %v2275_v34 = vpop.permute.xlu0 %2274 }
 0x5e6   :  { %2380 = vst.msk [vmem:[#allocation3 + $0x3f0] sm:$0xff] %vm2337_vm7, %v2275_v34 }
 0x5e8   :  { %v2251_v6 = vpop.permute.xlu1 %2250 }
 0x5e9   :  { %2368 = vst.msk [vmem:[#allocation3 + $0x2d0] sm:$0xff] %vm2337_vm7, %v2251_v6  ;;  %3330 = vperm.xlu1 %10666, %v3115_v49   ;;  %v2777_v49 = vmul.f32 %v14261_v36, %v14317_v22  ;;  %v10729_v36 = vld [vmem:[#allocation2 + $0x178] sm:$0xff] }
 0x5ea   :  { %v2770_v22 = vmul.f32 %v10729_v36, %v14259_v42  ;;  %v3118_v42 = vld [vmem:[%s17820_s1 + $0x160] sm:$0xff]  ;;  %v5429_v36 = vld [vmem:[%s17820_s1 + $0x18] sm:$0xff] }
 0x5ec   :  { %v4439_v9 = vpop.permute.xlu1 %4438 }
 0x5ed   :  { %v4493_v62 = vmul.f32 %v14590_v39, %v4439_v9  ;;  %2904 = vrot.lane.b32.xlu1 %v2768_v1, %s10748_s21  ;;  %v6000_v1 = vld [vmem:[%s17824_s4 + $0x118] sm:$0xff]  ;;  %v4487_v9 = vmul.f32 %v14287_v8, %v14319_v45  ;;  %v2771_v45 = vmul.f32 %v14093_v59, %v14270_v14  ;;  %v3119_v59 = vld [vmem:[%s17820_s1 + $0x168] sm:$0xff] }
 0x5ef   :  { %4638 = vrot.lane.b32.xlu0 %v4493_v62, %s10749_s22 }
 0x5f0   :  { %v5242_v32 = vpop.permute.xlu1 %5241 }
 0x5f1   :  { %5358 = vst.msk [vmem:[#allocation3 + $0x2d8] sm:$0xff] %vm2975_vm8, %v5242_v32  ;;  %4622 = vrot.lane.b32.xlu1 %v4485_v16, %s10749_s22  ;;  %v14602_v57 = vpop.permute.xlu0 %5265 }
 0x5f4   :  { %v2889_v29 = vpop.permute.xlu1 %2888 }
 0x5f5   :  { %3006 = vst.msk [vmem:[#allocation3 + $0x2d0] sm:$0xff] %vm2975_vm8, %v2889_v29  ;;  %3335 = vperm.xlu1 %10666, %v3116_v55  }
 0x5f8   :  { %v5076_v10 = vpop.permute.xlu1 %5075  ;;  %v5909_v38 = vld [vmem:[#allocation3 + $0x2d8] sm:$0xff] }
 0x5f9   :  { %v5130_v4 = vmul.f32 %v5076_v10, %v4787_v41  ;;  %6369 = vmatprep.mubr.f32.mxu1 %v5909_v38  ;;  %2906 = vrot.lane.b32.xlu1 %v2769_v54, %s10748_s21  ;;  %v14608_v53 = vpop.permute.xlu0 %3993  ;;  %v4788_v10 = vld [vmem:[#allocation2 + $0x1f8] sm:$0xff]  ;;  %v4488_v38 = vmul.f32 %v14328_v26, %v14365_v3  ;;  %v2778_v3 = vmul.f32 %v14287_v8, %v14323_v44 }
 0x5fa   :  { %v4489_v8 = vmul.f32 %v14371_v40, %v14409_v2  ;;  %v5434_v2 = vld [vmem:[%s17820_s1 + $0x40] sm:$0xff] }
 0x5fb   :  { %5275 = vrot.lane.b32.xlu0 %v5130_v4, %s10748_s21 }
 0x5fc   :  { %v3970_v5 = vpop.permute.xlu1 %3969  ;;  %v5908_v34 = vld [vmem:[#allocation3 + $0x2d0] sm:$0xff] }
 0x5fd   :  { %4085 = vst.msk [vmem:[#allocation3 + $0x2f0] sm:$0xff] %vm1699_vm6, %v3970_v5  ;;  %6370 = vmatmul.mubr.f32.gmra.mrb[158].mxu1 %v5908_v34  ;;  %4624 = vrot.lane.b32.xlu1 %v4486_v37, %s10749_s22  ;;  %v2277_v0 = vpop.permute.xlu0 %2276 }
 0x5fe   :  { %4722 = vst.msk [vmem:[#allocation3 + $0x2f0] sm:$0xff] %vm2337_vm7, %v14071_v58  ;;  %2381 = vst.msk [vmem:[#allocation3 + $0x408] sm:$0xff] %vm2337_vm7, %v2277_v0  ;;  %v5999_v58 = vld [vmem:[%s17824_s4 + $0x110] sm:$0xff]  ;;  %v2772_v0 = vmul.f32 %v14118_v21, %v14278_v30 }
 0x5ff   :  { %2922 = vrot.lane.b32.xlu0 %v2777_v49, %s10748_s21  ;;  %v9500_v62 = vpack.c.bf16 %v6000_v1, %v5999_v58  ;;  %v5432_v21 = vld [vmem:[%s17820_s1 + $0x30] sm:$0xff]  ;;  %v2773_v58 = vmul.f32 %v14143_v50, %v14285_v13 }
 0x600   :  { %v14624_v43 = vpop.permute.xlu1 %3806 }
 0x601   :  { %3340 = vperm.xlu1 %10666, %v3117_v46   ;;  %9501 = vmatpush3.bf16.msra.mxu1 %v9500_v62  ;;  %v18071_v62 = vld [vmem:[#allocation16_spill] sm:$0xff] }
 0x604   :  { %v2253_v6 = vpop.permute.xlu1 %2252 }
 0x605   :  { %2369 = vst.msk [vmem:[#allocation3 + $0x2e8] sm:$0xff] %vm2337_vm7, %v2253_v6  ;;  %2908 = vrot.lane.b32.xlu1 %v2770_v22, %s10748_s21  ;;  %v3120_v22 = vld [vmem:[%s17820_s1 + $0x170] sm:$0xff] }
 0x608   :  { %v4444_v16 = vpop.permute.xlu1 %4443 }
 0x609   :  { %v4494_v32 = vmul.f32 %v4787_v41, %v4444_v16  ;;  %4626 = vrot.lane.b32.xlu1 %v4487_v9, %s10749_s22  ;;  %v14642_v29 = vpop.permute.xlu0 %5267  ;;  %v4490_v16 = vmul.f32 %v14420_v24, %v14453_v31  ;;  %v5440_v31 = vld [vmem:[%s17820_s1 + $0x70] sm:$0xff] }
 0x60b   :  { %4640 = vrot.lane.b32.xlu0 %v4494_v32, %s10749_s22  ;;  %v5438_v32 = vld [vmem:[%s17820_s1 + $0x60] sm:$0xff] }
 0x60c   :  { %v5244_v55 = vpop.permute.xlu1 %5243 }
 0x60d   :  { %5359 = vst.msk [vmem:[#allocation3 + $0x2f0] sm:$0xff] %vm2975_vm8, %v5244_v55  ;;  %3345 = vperm.xlu1 %10666, %v3118_v42  }
 0x610   :  { %v2891_v54 = vpop.permute.xlu1 %2890 }
 0x611   :  { %3007 = vst.msk [vmem:[#allocation3 + $0x2e8] sm:$0xff] %vm2975_vm8, %v2891_v54  ;;  %2910 = vrot.lane.b32.xlu1 %v2771_v45, %s10748_s21  ;;  %v14649_v41 = vpop.permute.xlu0 %3995  ;;  %v10730_v54 = vld [vmem:[#allocation2 + $0x198] sm:$0xff] }
 0x614   :  { %v5081_v4 = vpop.permute.xlu1 %5080  ;;  %v5912_v37 = vld [vmem:[#allocation3 + $0x2f0] sm:$0xff] }
 0x615   :  { %v5131_v5 = vmul.f32 %v5081_v4, %v4788_v10  ;;  %6374 = vmatprep.mubr.f32.mxu1 %v5912_v37  ;;  %v2279_v34 = vpop.permute.xlu0 %2278  ;;  %4628 = vrot.lane.b32.xlu1 %v4488_v38, %s10749_s22  ;;  %v18073_v10 = vld [vmem:[#allocation61_spill] sm:$0xff]  ;;  %v18074_v37 = vld [vmem:[#allocation44_spill] sm:$0xff] }
 0x616   :  { %2382 = vst.msk [vmem:[#allocation3 + $0x420] sm:$0xff] %vm2337_vm7, %v2279_v34  ;;  %v2774_v38 = vmul.f32 %v10730_v54, %v18073_v10  ;;  %v3062_v34 = vld [vmem:[#allocation2 + $0x168] sm:$0xff]  ;;  %v3857_v10 = vmul.f32 %v14371_v40, %v14624_v43 }
 0x617   :  { %5277 = vrot.lane.b32.xlu0 %v5131_v5, %s10748_s21  ;;  %v4491_v5 = vmul.f32 %v14470_v18, %v14505_v60  ;;  %v5446_v18 = vld [vmem:[%s17820_s1 + $0xa0] sm:$0xff]  ;;  %v5427_v40 = vld [vmem:[%s17820_s1 + $0x8] sm:$0xff] }
 0x618   :  { %v3972_v14 = vpop.permute.xlu1 %3971  ;;  %v5911_v49 = vld [vmem:[#allocation3 + $0x2e8] sm:$0xff] }
 0x619   :  { %4086 = vst.msk [vmem:[#allocation3 + $0x308] sm:$0xff] %vm1699_vm6, %v3972_v14  ;;  %6375 = vmatmul.mubr.f32.gmra.mrb[160].mxu1 %v5911_v49  ;;  %3350 = vperm.xlu1 %10666, %v3119_v59   ;;  %v5444_v49 = vld [vmem:[%s17820_s1 + $0x90] sm:$0xff] }
 0x61b   :  { %2924 = vrot.lane.b32.xlu0 %v2778_v3, %s10748_s21 }
 0x61c   :  { %v4609_v46 = vpop.permute.xlu1 %4608 }
 0x61d   :  { %4723 = vst.msk [vmem:[#allocation3 + $0x308] sm:$0xff] %vm2337_vm7, %v4609_v46  ;;  %2912 = vrot.lane.b32.xlu1 %v2772_v0, %s10748_s21  ;;  %v18075_v46 = vld [vmem:[#allocation40_spill] sm:$0xff] }
 0x61e   :  { %5360 = vst.msk [vmem:[#allocation3 + $0x308] sm:$0xff] %vm2975_vm8, %v14335_v52 }
 0x61f   :  { %5492 = vperm.xlu0 %10668, %v5429_v36  }
 0x620   :  { %v3301_v44 = vpop.permute.xlu1 %3300 }
 0x621   :  { %v3403_v30 = vmul.f32 %v3301_v44, %v14544_v19  ;;  %4630 = vrot.lane.b32.xlu1 %v4489_v8, %s10749_s22  ;;  %v14688_v6 = vpop.permute.xlu0 %5269  ;;  %v10731_v8 = vld [vmem:[#allocation2 + $0x1a0] sm:$0xff]  ;;  %v18076_v44 = vld [vmem:[#allocation17_spill] sm:$0xff] }
 0x623   :  { %3452 = vst.msk [vmem:[#allocation3 + $0x350] sm:$0xff] %vm604_vm3, %v3403_v30  ;;  %5507 = vperm.xlu0 %10668, %v5432_v21   ;;  %v2775_v21 = vmul.f32 %v10731_v8, %v18076_v44  ;;  %v5433_v44 = vld [vmem:[%s17820_s1 + $0x38] sm:$0xff] }
 0x624   :  { %4089 = vst.msk [vmem:[#allocation3 + $0x350] sm:$0xff] %vm1699_vm6, %v14391_v33  ;;  %v2893_v52 = vpop.permute.xlu1 %2892  ;;  %v5436_v33 = vld [vmem:[%s17820_s1 + $0x50] sm:$0xff] }
 0x625   :  { %3008 = vst.msk [vmem:[#allocation3 + $0x300] sm:$0xff] %vm2975_vm8, %v2893_v52  ;;  %3355 = vperm.xlu1 %10666, %v3120_v22   ;;  %v5915_v19 = vld [vmem:[#allocation3 + $0x308] sm:$0xff]  ;;  %v18077_v52 = vld [vmem:[#allocation19_spill] sm:$0xff] }
 0x626   :  { %6379 = vmatprep.mubr.f32.mxu1 %v5915_v19  ;;  %v4492_v19 = vmul.f32 %v14516_v17, %v14551_v23 }
 0x627   :  { %5517 = vperm.xlu0 %10668, %v5434_v2   ;;  %v18078_v2 = vmov 8  }
 0x628   :  { %v4611_v1 = vpop.permute.xlu1 %4610 }
 0x629   :  { %4724 = vst.msk [vmem:[#allocation3 + $0x320] sm:$0xff] %vm2337_vm7, %v4611_v1  ;;  %v14697_v9 = vpop.permute.xlu0 %3997  ;;  %2914 = vrot.lane.b32.xlu1 %v2773_v58, %s10748_s21  ;;  %v3063_v58 = vld [vmem:[#allocation2 + $0x170] sm:$0xff] }
 0x62a   :  { %5361 = vst.msk [vmem:[#allocation3 + $0x320] sm:$0xff] %vm2975_vm8, %v18071_v62 }
 0x62b   :  { %5527 = vperm.xlu0 %10668, %v5436_v33  }
 0x62c   :  { %v3306_v50 = vpop.permute.xlu1 %3305  ;;  %v5914_v13 = vld [vmem:[#allocation3 + $0x300] sm:$0xff] }
 0x62d   :  { %v3404_v42 = vmul.f32 %v3306_v50, %v14568_v20  ;;  %6380 = vmatmul.mubr.f32.gmra.mrb[162].mxu1 %v5914_v13  ;;  %v2281_v55 = vpop.permute.xlu0 %2280  ;;  %4632 = vrot.lane.b32.xlu1 %v4490_v16, %s10749_s22  ;;  %v18072_v20 = vld [vmem:[#allocation43_spill] sm:$0xff]  ;;  %v5129_v50 = vmul.f32 %v14564_v11, %v14590_v39  ;;  %v18079_v11 = vld [vmem:[#allocation18_spill] sm:$0xff] }
 0x62e   :  { %2383 = vst.msk [vmem:[#allocation3 + $0x438] sm:$0xff] %vm2337_vm7, %v2281_v55  ;;  %v18080_v39 = vld [vmem:[#allocation14_spill] sm:$0xff] }
 0x62f   :  { %3453 = vst.msk [vmem:[#allocation3 + $0x368] sm:$0xff] %vm604_vm3, %v3404_v42  ;;  %5537 = vperm.xlu0 %10668, %v5438_v32   ;;  %v3856_v32 = vmul.f32 %v14328_v26, %v14580_v35  ;;  %v5426_v26 = vld [vmem:[%s17820_s1] sm:$0xff] }
 0x630   :  { %4090 = vst.msk [vmem:[#allocation3 + $0x368] sm:$0xff] %vm1699_vm6, %v14416_v27  ;;  %v2895_v24 = vpop.permute.xlu1 %2894  ;;  %v5442_v27 = vld [vmem:[%s17820_s1 + $0x80] sm:$0xff] }
 0x631   :  { %3009 = vst.msk [vmem:[#allocation3 + $0x318] sm:$0xff] %vm2975_vm8, %v2895_v24  ;;  %3360 = vperm.xlu1 %10666, %v18072_v20   ;;  %v5918_v45 = vld [vmem:[#allocation3 + $0x320] sm:$0xff]  ;;  %v3064_v24 = vld [vmem:[#allocation2 + $0x178] sm:$0xff] }
 0x632   :  { %6384 = vmatprep.mubr.f32.mxu1 %v5918_v45 }
 0x633   :  { %5547 = vperm.xlu0 %10668, %v5440_v31  }
 0x634   :  { %v4613_v4 = vpop.permute.xlu1 %4612 }
 0x635   :  { %4725 = vst.msk [vmem:[#allocation3 + $0x338] sm:$0xff] %vm2337_vm7, %v4613_v4  ;;  %2916 = vrot.lane.b32.xlu1 %v2774_v38, %s10748_s21  ;;  %v10733_v4 = vld [vmem:[#allocation2 + $0x190] sm:$0xff] }
 0x636   :  { %5362 = vst.msk [vmem:[#allocation3 + $0x338] sm:$0xff] %vm2975_vm8, %v18074_v37  ;;  %v3065_v37 = vld [vmem:[#allocation2 + $0x180] sm:$0xff] }
 0x637   :  { %5557 = vperm.xlu0 %10668, %v5442_v27   ;;  %v18081_v27 = vld [vmem:[#allocation59_spill] sm:$0xff] }
 0x638   :  { %v3311_v59 = vpop.permute.xlu1 %3310  ;;  %v5917_v14 = vld [vmem:[#allocation3 + $0x318] sm:$0xff] }
 0x639   :  { %v3405_v3 = vmul.f32 %v3311_v59, %v3062_v34  ;;  %6385 = vmatmul.mubr.f32.gmra.mrb[164].mxu1 %v5917_v14  ;;  %4634 = vrot.lane.b32.xlu1 %v4491_v5, %s10749_s22  ;;  %v14738_v60 = vpop.permute.xlu0 %5271  ;;  %v5428_v14 = vld [vmem:[%s17820_s1 + $0x10] sm:$0xff] }
 0x63b   :  { %3454 = vst.msk [vmem:[#allocation3 + $0x380] sm:$0xff] %vm604_vm3, %v3405_v3  ;;  %5567 = vperm.xlu0 %10668, %v5444_v49   ;;  %v3066_v3 = vld [vmem:[#allocation2 + $0x188] sm:$0xff] }
 0x63c   :  { %4091 = vst.msk [vmem:[#allocation3 + $0x380] sm:$0xff] %vm1699_vm6, %v14436_v61  ;;  %v2897_v0 = vpop.permute.xlu1 %2896  ;;  %v5448_v61 = vld [vmem:[%s17820_s1 + $0xb0] sm:$0xff] }
 0x63d   :  { %3010 = vst.msk [vmem:[#allocation3 + $0x330] sm:$0xff] %vm2975_vm8, %v2897_v0  ;;  %3365 = vperm.xlu1 %10666, %v18075_v46   ;;  %v5921_v36 = vld [vmem:[#allocation3 + $0x338] sm:$0xff] }
 0x63e   :  { %6389 = vmatprep.mubr.f32.mxu1 %v5921_v36  ;;  %v5431_v36 = vld [vmem:[%s17820_s1 + $0x28] sm:$0xff] }
 0x63f   :  { %5577 = vperm.xlu0 %10668, %v5446_v18  }
 0x640   :  { %v4615_v30 = vpop.permute.xlu1 %4614 }
 0x641   :  { %4726 = vst.msk [vmem:[#allocation3 + $0x350] sm:$0xff] %vm2337_vm7, %v4615_v30  ;;  %v14747_v22 = vpop.permute.xlu0 %3999  ;;  %2918 = vrot.lane.b32.xlu1 %v2775_v21, %s10748_s21  ;;  %v3067_v30 = vld [vmem:[#allocation2 + $0x190] sm:$0xff] }
 0x642   :  { %5363 = vst.msk [vmem:[#allocation3 + $0x350] sm:$0xff] %vm2975_vm8, %v18077_v52  ;;  %10667 = vset.pattern.permute.xlu1 %v18078_v2 }
 0x643   :  { %5587 = vperm.xlu0 %10668, %v5448_v61  }
 0x644   :  { %v3316_v1 = vpop.permute.xlu1 %3315  ;;  %v5920_v33 = vld [vmem:[#allocation3 + $0x330] sm:$0xff] }
 0x645   :  { %v3406_v62 = vmul.f32 %v3316_v1, %v3063_v58  ;;  %6390 = vmatmul.mubr.f32.gmra.mrb[166].mxu1 %v5920_v33  ;;  %v2283_v16 = vpop.permute.xlu0 %2282  ;;  %4636 = vrot.lane.b32.xlu1 %v4492_v19, %s10749_s22  ;;  %v5437_v19 = vld [vmem:[%s17820_s1 + $0x58] sm:$0xff]  ;;  %v5439_v1 = vld [vmem:[%s17820_s1 + $0x68] sm:$0xff] }
 0x646   :  { %2384 = vst.msk [vmem:[#allocation3 + $0x450] sm:$0xff] %vm2337_vm7, %v2283_v16 }
 0x647   :  { %3455 = vst.msk [vmem:[#allocation3 + $0x398] sm:$0xff] %vm604_vm3, %v3406_v62  ;;  %v3068_v62 = vld [vmem:[#allocation2 + $0x198] sm:$0xff] }
 0x648   :  { %4092 = vst.msk [vmem:[#allocation3 + $0x398] sm:$0xff] %vm1699_vm6, %v14466_v7  ;;  %v2899_v17 = vpop.permute.xlu1 %2898  ;;  %v10732_v7 = vld [vmem:[#allocation2 + $0x188] sm:$0xff] }
 0x649   :  { %3011 = vst.msk [vmem:[#allocation3 + $0x348] sm:$0xff] %vm2975_vm8, %v2899_v17  ;;  %v2921_v23 = vpop.permute.xlu0 %2920  ;;  %5273 = vrot.lane.b32.xlu1 %v5129_v50, %s10748_s21  ;;  %v5924_v13 = vld [vmem:[#allocation3 + $0x350] sm:$0xff]  ;;  %v2139_v55 = vmul.f32 %v10732_v7, %v18080_v39 }
 0x64a   :  { %3022 = vst.msk [vmem:[#allocation3 + $0x450] sm:$0xff] %vm2975_vm8, %v2921_v23  ;;  %6394 = vmatprep.mubr.f32.mxu1 %v5924_v13  ;;  %v5443_v13 = vld [vmem:[%s17820_s1 + $0x88] sm:$0xff] }
 0x64c   :  { %v4617_v42 = vpop.permute.xlu1 %4616 }
 0x64d   :  { %4727 = vst.msk [vmem:[#allocation3 + $0x368] sm:$0xff] %vm2337_vm7, %v4617_v42  ;;  %4001 = vrot.lane.b32.xlu1 %v3856_v32, %s10743_s12 }
 0x64e   :  { %5364 = vst.msk [vmem:[#allocation3 + $0x368] sm:$0xff] %vm2975_vm8, %v18079_v11  ;;  %v5445_v11 = vld [vmem:[%s17820_s1 + $0x98] sm:$0xff] }
 0x650   :  { %v3321_v31 = vpop.permute.xlu1 %3320  ;;  %v5923_v20 = vld [vmem:[#allocation3 + $0x348] sm:$0xff] }
 0x651   :  { %v3407_v45 = vmul.f32 %v3321_v31, %v3064_v24  ;;  %6395 = vmatmul.mubr.f32.gmra.mrb[168].mxu1 %v5923_v20  ;;  %2284 = vrot.lane.b32.xlu1 %v2139_v55, %s10749_s22  ;;  %v3069_v55 = vld [vmem:[#allocation2 + $0x1a0] sm:$0xff] }
 0x653   :  { %3456 = vst.msk [vmem:[#allocation3 + $0x3b0] sm:$0xff] %vm604_vm3, %v3407_v45  ;;  %v5449_v45 = vld [vmem:[%s17820_s1 + $0xb8] sm:$0xff] }
 0x654   :  { %4093 = vst.msk [vmem:[#allocation3 + $0x3b0] sm:$0xff] %vm1699_vm6, %v14488_v28  ;;  %v2901_v35 = vpop.permute.xlu1 %2900  ;;  %v2140_v28 = vmul.f32 %v10733_v4, %v18081_v27 }
 0x655   :  { %3012 = vst.msk [vmem:[#allocation3 + $0x360] sm:$0xff] %vm2975_vm8, %v2901_v35  ;;  %5477 = vperm.xlu1 %10667, %v5426_v26   ;;  %v5927_v54 = vld [vmem:[#allocation3 + $0x368] sm:$0xff] }
 0x656   :  { %6399 = vmatprep.mubr.f32.mxu1 %v5927_v54 }
 0x658   :  { %v4619_v38 = vpop.permute.xlu1 %4618 }
 0x659   :  { %4728 = vst.msk [vmem:[#allocation3 + $0x380] sm:$0xff] %vm2337_vm7, %v4619_v38  ;;  %4003 = vrot.lane.b32.xlu1 %v3857_v10, %s10743_s12  ;;  %v3070_v38 = vld [vmem:[#allocation2 + $0x1a8] sm:$0xff] }
 0x65a   :  { %5365 = vst.msk [vmem:[#allocation3 + $0x380] sm:$0xff] %vm2975_vm8, %v14455_v12 }
 0x65c   :  { %v3326_v5 = vpop.permute.xlu1 %3325  ;;  %v5926_v34 = vld [vmem:[#allocation3 + $0x360] sm:$0xff] }
 0x65d   :  { %v3408_v59 = vmul.f32 %v3326_v5, %v3065_v37  ;;  %6400 = vmatmul.mubr.f32.gmra.mrb[170].mxu1 %v5926_v34  ;;  %2286 = vrot.lane.b32.xlu1 %v2140_v28, %s10749_s22  ;;  %v5380_v34 = vld [vmem:[#allocation2 + $0x98] sm:$0xff] }
 0x65f   :  { %3457 = vst.msk [vmem:[#allocation3 + $0x3c8] sm:$0xff] %vm604_vm3, %v3408_v59 }
 0x660   :  { %4094 = vst.msk [vmem:[#allocation3 + $0x3c8] sm:$0xff] %vm1699_vm6, %v14512_v47  ;;  %v2903_v12 = vpop.permute.xlu1 %2902  ;;  %v5430_v47 = vld [vmem:[%s17820_s1 + $0x20] sm:$0xff] }
 0x661   :  { %3013 = vst.msk [vmem:[#allocation3 + $0x378] sm:$0xff] %vm2975_vm8, %v2903_v12  ;;  %5482 = vperm.xlu1 %10667, %v5427_v40   ;;  %v5930_v43 = vld [vmem:[#allocation3 + $0x380] sm:$0xff]  ;;  %v14836_v23 = vpop.permute.xlu0 %4638  ;;  %v5383_v12 = vld [vmem:[#allocation2 + $0xb0] sm:$0xff] }
 0x662   :  { %6404 = vmatprep.mubr.f32.mxu1 %v5930_v43 }
 0x664   :  { %v4621_v49 = vpop.permute.xlu1 %4620 }
 0x665   :  { %4729 = vst.msk [vmem:[#allocation3 + $0x398] sm:$0xff] %vm2337_vm7, %v4621_v49  ;;  %5487 = vperm.xlu1 %10667, %v5428_v14  }
 0x666   :  { %5366 = vst.msk [vmem:[#allocation3 + $0x398] sm:$0xff] %vm2975_vm8, %v14480_v63 }
 0x668   :  { %v3331_v0 = vpop.permute.xlu1 %3330  ;;  %v5929_v18 = vld [vmem:[#allocation3 + $0x378] sm:$0xff] }
 0x669   :  { %v3409_v46 = vmul.f32 %v3331_v0, %v3066_v3  ;;  %6405 = vmatmul.mubr.f32.gmra.mrb[172].mxu1 %v5929_v18  ;;  %5497 = vperm.xlu1 %10667, %v5430_v47   ;;  %v5385_v0 = vld [vmem:[#allocation2 + $0xc0] sm:$0xff] }
 0x66b   :  { %3458 = vst.msk [vmem:[#allocation3 + $0x3e0] sm:$0xff] %vm604_vm3, %v3409_v46 }
 0x66c   :  { %4095 = vst.msk [vmem:[#allocation3 + $0x3e0] sm:$0xff] %vm1699_vm6, %v14533_v25  ;;  %v2905_v63 = vpop.permute.xlu1 %2904  ;;  %v5435_v25 = vld [vmem:[%s17820_s1 + $0x48] sm:$0xff] }
 0x66d   :  { %3014 = vst.msk [vmem:[#allocation3 + $0x390] sm:$0xff] %vm2975_vm8, %v2905_v63  ;;  %5502 = vperm.xlu1 %10667, %v5431_v36   ;;  %v5933_v8 = vld [vmem:[#allocation3 + $0x398] sm:$0xff]  ;;  %v14845_v42 = vpop.permute.xlu0 %5275  ;;  %v5387_v63 = vld [vmem:[#allocation2 + $0xd0] sm:$0xff] }
 0x66e   :  { %6409 = vmatprep.mubr.f32.mxu1 %v5933_v8 }
 0x670   :  { %v4623_v21 = vpop.permute.xlu1 %4622 }
 0x671   :  { %4730 = vst.msk [vmem:[#allocation3 + $0x3b0] sm:$0xff] %vm2337_vm7, %v4623_v21  ;;  %5512 = vperm.xlu1 %10667, %v5433_v44   ;;  %v14856_v39 = vpop.permute.xlu0 %2922 }
 0x672   :  { %5367 = vst.msk [vmem:[#allocation3 + $0x3b0] sm:$0xff] %vm2975_vm8, %v14507_v15 }
 0x674   :  { %v3336_v61 = vpop.permute.xlu1 %3335  ;;  %v5932_v52 = vld [vmem:[#allocation3 + $0x390] sm:$0xff] }
 0x675   :  { %v3410_v2 = vmul.f32 %v3336_v61, %v3067_v30  ;;  %6410 = vmatmul.mubr.f32.gmra.mrb[174].mxu1 %v5932_v52  ;;  %5522 = vperm.xlu1 %10667, %v5435_v25   ;;  %v5389_v25 = vld [vmem:[#allocation2 + $0xe0] sm:$0xff]  ;;  %v3072_v61 = vld [vmem:[#allocation2 + $0x1b8] sm:$0xff] }
 0x677   :  { %3459 = vst.msk [vmem:[#allocation3 + $0x3f8] sm:$0xff] %vm604_vm3, %v3410_v2 }
 0x678   :  { %4096 = vst.msk [vmem:[#allocation3 + $0x3f8] sm:$0xff] %vm1699_vm6, %v14574_v48  ;;  %v2907_v15 = vpop.permute.xlu1 %2906  ;;  %v5441_v48 = vld [vmem:[%s17820_s1 + $0x78] sm:$0xff] }
 0x679   :  { %3015 = vst.msk [vmem:[#allocation3 + $0x3a8] sm:$0xff] %vm2975_vm8, %v2907_v15  ;;  %5532 = vperm.xlu1 %10667, %v5437_v19   ;;  %v5936_v58 = vld [vmem:[#allocation3 + $0x3b0] sm:$0xff]  ;;  %v5391_v15 = vld [vmem:[#allocation2 + $0xf0] sm:$0xff] }
 0x67a   :  { %6414 = vmatprep.mubr.f32.mxu1 %v5936_v58 }
 0x67c   :  { %v4625_v33 = vpop.permute.xlu1 %4624 }
 0x67d   :  { %4731 = vst.msk [vmem:[#allocation3 + $0x3c8] sm:$0xff] %vm2337_vm7, %v4625_v33  ;;  %5542 = vperm.xlu1 %10667, %v5439_v1   ;;  %v14862_v26 = vpop.permute.xlu0 %4640 }
 0x67e   :  { %5368 = vst.msk [vmem:[#allocation3 + $0x3c8] sm:$0xff] %vm2975_vm8, %v14525_v51 }
 0x680   :  { %v3341_v16 = vpop.permute.xlu1 %3340  ;;  %v5935_v50 = vld [vmem:[#allocation3 + $0x3a8] sm:$0xff] }
 0x681   :  { %v3411_v17 = vmul.f32 %v3341_v16, %v3068_v62  ;;  %6415 = vmatmul.mubr.f32.gmra.mrb[176].mxu1 %v5935_v50  ;;  %5552 = vperm.xlu1 %10667, %v5441_v48   ;;  %v5393_v48 = vld [vmem:[#allocation2 + $0x100] sm:$0xff] }
 0x683   :  { %3460 = vst.msk [vmem:[#allocation3 + $0x410] sm:$0xff] %vm604_vm3, %v3411_v17  ;;  %v5395_v17 = vld [vmem:[#allocation2 + $0x110] sm:$0xff] }
 0x684   :  { %4097 = vst.msk [vmem:[#allocation3 + $0x410] sm:$0xff] %vm1699_vm6, %v14608_v53  ;;  %v2909_v51 = vpop.permute.xlu1 %2908  ;;  %v5447_v53 = vld [vmem:[%s17820_s1 + $0xa8] sm:$0xff] }
 0x685   :  { %3016 = vst.msk [vmem:[#allocation3 + $0x3c0] sm:$0xff] %vm2975_vm8, %v2909_v51  ;;  %5562 = vperm.xlu1 %10667, %v5443_v13   ;;  %v5939_v32 = vld [vmem:[#allocation3 + $0x3c8] sm:$0xff] }
 0x686   :  { %6419 = vmatprep.mubr.f32.mxu1 %v5939_v32 }
 0x688   :  { %v4627_v7 = vpop.permute.xlu1 %4626 }
 0x689   :  { %4732 = vst.msk [vmem:[#allocation3 + $0x3e0] sm:$0xff] %vm2337_vm7, %v4627_v7  ;;  %5572 = vperm.xlu1 %10667, %v5445_v11   ;;  %v14867_v54 = vpop.permute.xlu0 %5277  ;;  %v3073_v11 = vld [vmem:[#allocation2 + $0x1c0] sm:$0xff] }
 0x68a   :  { %5369 = vst.msk [vmem:[#allocation3 + $0x3e0] sm:$0xff] %vm2975_vm8, %v14566_v56 }
 0x68c   :  { %v3346_v24 = vpop.permute.xlu1 %3345  ;;  %v5938_v31 = vld [vmem:[#allocation3 + $0x3c0] sm:$0xff] }
 0x68d   :  { %v3412_v20 = vmul.f32 %v3346_v24, %v3069_v55  ;;  %6420 = vmatmul.mubr.f32.gmra.mrb[178].mxu1 %v5938_v31  ;;  %5582 = vperm.xlu1 %10667, %v5447_v53   ;;  %v5397_v55 = vld [vmem:[#allocation2 + $0x120] sm:$0xff] }
 0x68f   :  { %3461 = vst.msk [vmem:[#allocation3 + $0x428] sm:$0xff] %vm604_vm3, %v3412_v20 }
 0x690   :  { %4098 = vst.msk [vmem:[#allocation3 + $0x428] sm:$0xff] %vm1699_vm6, %v14649_v41  ;;  %v2911_v56 = vpop.permute.xlu1 %2910  ;;  %v14872_v41 = vpop.permute.xlu0 %2924 }
 0x691   :  { %3017 = vst.msk [vmem:[#allocation3 + $0x3d8] sm:$0xff] %vm2975_vm8, %v2911_v56  ;;  %5592 = vperm.xlu1 %10667, %v5449_v45   ;;  %v5942_v35 = vld [vmem:[#allocation3 + $0x3e0] sm:$0xff]  ;;  %v5399_v45 = vld [vmem:[#allocation2 + $0x130] sm:$0xff] }
 0x692   :  { %6424 = vmatprep.mubr.f32.mxu1 %v5942_v35 }
 0x694   :  { %v4629_v10 = vpop.permute.xlu1 %4628 }
 0x695   :  { %4733 = vst.msk [vmem:[#allocation3 + $0x3f8] sm:$0xff] %vm2337_vm7, %v4629_v10 }
 0x696   :  { %5370 = vst.msk [vmem:[#allocation3 + $0x3f8] sm:$0xff] %vm2975_vm8, %v14602_v57 }
 0x698   :  { %v3351_v4 = vpop.permute.xlu1 %3350  ;;  %v5941_v27 = vld [vmem:[#allocation3 + $0x3d8] sm:$0xff] }
 0x699   :  { %v3413_v28 = vmul.f32 %v3351_v4, %v3070_v38  ;;  %6425 = vmatmul.mubr.f32.gmra.mrb[180].mxu1 %v5941_v27 }
 0x69b   :  { %3462 = vst.msk [vmem:[#allocation3 + $0x440] sm:$0xff] %vm604_vm3, %v3413_v28 }
 0x69c   :  { %4099 = vst.msk [vmem:[#allocation3 + $0x440] sm:$0xff] %vm1699_vm6, %v14697_v9  ;;  %v2913_v37 = vpop.permute.xlu1 %2912  ;;  %v3071_v9 = vld [vmem:[#allocation2 + $0x1b0] sm:$0xff] }
 0x69d   :  { %3018 = vst.msk [vmem:[#allocation3 + $0x3f0] sm:$0xff] %vm2975_vm8, %v2913_v37  ;;  %v5945_v5 = vld [vmem:[#allocation3 + $0x3f8] sm:$0xff] }
 0x69e   :  { %v5493_v59 = vpop.permute.xlu0 %5492  ;;  %6429 = vmatprep.mubr.f32.mxu1 %v5945_v5  ;;  %v5956_v5 = vld [vmem:[#allocation3 + $0x450] sm:$0xff] }
 0x69f   :  { %v5723_v57 = vmul.f32 %v5493_v59, %v5380_v34  ;;  %v5377_v34 = vld [vmem:[#allocation2 + $0x80] sm:$0xff] }
 0x6a0   :  { %v4631_v40 = vpop.permute.xlu1 %4630 }
 0x6a1   :  { %5772 = vst.msk [vmem:[#allocation3 + $0x58] sm:$0xff] %vm604_vm3, %v5723_v57 }
 0x6a2   :  { %4734 = vst.msk [vmem:[#allocation3 + $0x410] sm:$0xff] %vm2337_vm7, %v4631_v40  ;;  %v5508_v43 = vpop.permute.xlu0 %5507 }
 0x6a3   :  { %5371 = vst.msk [vmem:[#allocation3 + $0x410] sm:$0xff] %vm2975_vm8, %v14642_v29  ;;  %v5726_v14 = vmul.f32 %v5508_v43, %v5383_v12  ;;  %v5378_v12 = vld [vmem:[#allocation2 + $0x88] sm:$0xff] }
 0x6a4   :  { %v3356_v49 = vpop.permute.xlu1 %3355  ;;  %v5944_v47 = vld [vmem:[#allocation3 + $0x3f0] sm:$0xff] }
 0x6a5   :  { %5775 = vst.msk [vmem:[#allocation3 + $0xa0] sm:$0xff] %vm604_vm3, %v5726_v14  ;;  %v3414_v3 = vmul.f32 %v3356_v49, %v3071_v9  ;;  %6430 = vmatmul.mubr.f32.gmra.mrb[182].mxu1 %v5944_v47  ;;  %v5379_v49 = vld [vmem:[#allocation2 + $0x90] sm:$0xff] }
 0x6a6   :  { %v5518_v18 = vpop.permute.xlu0 %5517 }
 0x6a7   :  { %3463 = vst.msk [vmem:[#allocation3 + $0x458] sm:$0xff] %vm604_vm3, %v3414_v3  ;;  %v5728_v46 = vmul.f32 %v5518_v18, %v5385_v0  ;;  %v5381_v0 = vld [vmem:[#allocation2 + $0xa0] sm:$0xff] }
 0x6a8   :  { %4100 = vst.msk [vmem:[#allocation3 + $0x458] sm:$0xff] %vm1699_vm6, %v14747_v22  ;;  %v2915_v36 = vpop.permute.xlu1 %2914 }
 0x6a9   :  { %5777 = vst.msk [vmem:[#allocation3 + $0xd0] sm:$0xff] %vm604_vm3, %v5728_v46 }
 0x6aa   :  { %3019 = vst.msk [vmem:[#allocation3 + $0x408] sm:$0xff] %vm2975_vm8, %v2915_v36  ;;  %v5948_v29 = vld [vmem:[#allocation3 + $0x410] sm:$0xff]  ;;  %v5528_v8 = vpop.permute.xlu0 %5527  ;;  %v5382_v36 = vld [vmem:[#allocation2 + $0xa8] sm:$0xff] }
 0x6ab   :  { %6434 = vmatprep.mubr.f32.mxu1 %v5948_v29  ;;  %v5730_v44 = vmul.f32 %v5528_v8, %v5387_v63 }
 0x6ac   :  { %v4633_v21 = vpop.permute.xlu1 %4632 }
 0x6ad   :  { %5779 = vst.msk [vmem:[#allocation3 + $0x100] sm:$0xff] %vm604_vm3, %v5730_v44  ;;  %v5384_v44 = vld [vmem:[#allocation2 + $0xb8] sm:$0xff] }
 0x6ae   :  { %4735 = vst.msk [vmem:[#allocation3 + $0x428] sm:$0xff] %vm2337_vm7, %v4633_v21  ;;  %v5538_v22 = vpop.permute.xlu0 %5537 }
 0x6af   :  { %5372 = vst.msk [vmem:[#allocation3 + $0x428] sm:$0xff] %vm2975_vm8, %v14688_v6  ;;  %v5732_v30 = vmul.f32 %v5538_v22, %v5389_v25 }
 0x6b0   :  { %v3361_v52 = vpop.permute.xlu1 %3360 }
 0x6b1   :  { %v5947_v2 = vld [vmem:[#allocation3 + $0x408] sm:$0xff]  ;;  %5781 = vst.msk [vmem:[#allocation3 + $0x130] sm:$0xff] %vm604_vm3, %v5732_v30  ;;  %v3415_v19 = vmul.f32 %v3361_v52, %v3072_v61  ;;  %v5386_v30 = vld [vmem:[#allocation2 + $0xc8] sm:$0xff] }
 0x6b2   :  { %6435 = vmatmul.mubr.f32.gmra.mrb[184].mxu1 %v5947_v2  ;;  %v5548_v58 = vpop.permute.xlu0 %5547  ;;  %v5829_v2 = vld [vmem:[#allocation3 + $0x58] sm:$0xff] }
 0x6b3   :  { %3464 = vst.msk [vmem:[#allocation3 + $0x470] sm:$0xff] %vm604_vm3, %v3415_v19  ;;  %v5734_v1 = vmul.f32 %v5548_v58, %v5391_v15  ;;  %v5388_v19 = vld [vmem:[#allocation2 + $0xd8] sm:$0xff] }
 0x6b4   :  { %v2917_v33 = vpop.permute.xlu1 %2916 }
 0x6b5   :  { %5783 = vst.msk [vmem:[#allocation3 + $0x160] sm:$0xff] %vm604_vm3, %v5734_v1 }
 0x6b6   :  { %3020 = vst.msk [vmem:[#allocation3 + $0x420] sm:$0xff] %vm2975_vm8, %v2917_v33  ;;  %v5951_v6 = vld [vmem:[#allocation3 + $0x428] sm:$0xff]  ;;  %v5558_v62 = vpop.permute.xlu0 %5557  ;;  %v5390_v33 = vld [vmem:[#allocation2 + $0xe8] sm:$0xff] }
 0x6b7   :  { %6439 = vmatprep.mubr.f32.mxu1 %v5951_v6  ;;  %v5736_v16 = vmul.f32 %v5558_v62, %v5393_v48 }
 0x6b8   :  { %v4635_v50 = vpop.permute.xlu1 %4634 }
 0x6b9   :  { %5785 = vst.msk [vmem:[#allocation3 + $0x190] sm:$0xff] %vm604_vm3, %v5736_v16  ;;  %v5392_v16 = vld [vmem:[#allocation2 + $0xf8] sm:$0xff] }
 0x6ba   :  { %4736 = vst.msk [vmem:[#allocation3 + $0x440] sm:$0xff] %vm2337_vm7, %v4635_v50  ;;  %v5568_v13 = vpop.permute.xlu0 %5567 }
 0x6bb   :  { %5373 = vst.msk [vmem:[#allocation3 + $0x440] sm:$0xff] %vm2975_vm8, %v14738_v60  ;;  %v5738_v51 = vmul.f32 %v5568_v13, %v5395_v17  ;;  %v5838_v13 = vld [vmem:[#allocation3 + $0xa0] sm:$0xff] }
 0x6bc   :  { %v3366_v32 = vpop.permute.xlu1 %3365 }
 0x6bd   :  { %v5950_v7 = vld [vmem:[#allocation3 + $0x420] sm:$0xff]  ;;  %5787 = vst.msk [vmem:[#allocation3 + $0x1c0] sm:$0xff] %vm604_vm3, %v5738_v51  ;;  %v3416_v53 = vmul.f32 %v3366_v32, %v3073_v11 }
 0x6be   :  { %6440 = vmatmul.mubr.f32.gmra.mrb[186].mxu1 %v5950_v7  ;;  %v5578_v24 = vpop.permute.xlu0 %5577  ;;  %v5394_v51 = vld [vmem:[#allocation2 + $0x108] sm:$0xff] }
 0x6bf   :  { %3465 = vst.msk [vmem:[#allocation3 + $0x488] sm:$0xff] %vm604_vm3, %v3416_v53  ;;  %v5740_v31 = vmul.f32 %v5578_v24, %v5397_v55  ;;  %v5396_v53 = vld [vmem:[#allocation2 + $0x118] sm:$0xff] }
 0x6c0   :  { %v2919_v20 = vpop.permute.xlu1 %2918 }
 0x6c1   :  { %5789 = vst.msk [vmem:[#allocation3 + $0x1f0] sm:$0xff] %vm604_vm3, %v5740_v31  ;;  %v5844_v31 = vld [vmem:[#allocation3 + $0xd0] sm:$0xff] }
 0x6c2   :  { %3021 = vst.msk [vmem:[#allocation3 + $0x438] sm:$0xff] %vm2975_vm8, %v2919_v20  ;;  %v5954_v60 = vld [vmem:[#allocation3 + $0x440] sm:$0xff]  ;;  %v5588_v56 = vpop.permute.xlu0 %5587 }
 0x6c3   :  { %6444 = vmatprep.mubr.f32.mxu1 %v5954_v60  ;;  %v5742_v35 = vmul.f32 %v5588_v56, %v5399_v45  ;;  %v5398_v20 = vld [vmem:[#allocation2 + $0x128] sm:$0xff] }
 0x6c4   :  { %v4637_v10 = vpop.permute.xlu1 %4636 }
 0x6c5   :  { %5791 = vst.msk [vmem:[#allocation3 + $0x220] sm:$0xff] %vm604_vm3, %v5742_v35  ;;  %v5400_v35 = vld [vmem:[#allocation2 + $0x138] sm:$0xff] }
 0x6c6   :  { %4737 = vst.msk [vmem:[#allocation3 + $0x458] sm:$0xff] %vm2337_vm7, %v4637_v10 }
 0x6c8   :  { %v5274_v38 = vpop.permute.xlu1 %5273 }
 0x6c9   :  { %v5953_v4 = vld [vmem:[#allocation3 + $0x438] sm:$0xff]  ;;  %5374 = vst.msk [vmem:[#allocation3 + $0x458] sm:$0xff] %vm2975_vm8, %v5274_v38 }
 0x6ca   :  { %6445 = vmatmul.mubr.f32.gmra.mrb[188].mxu1 %v5953_v4  ;;  %v5850_v4 = vld [vmem:[#allocation3 + $0x100] sm:$0xff] }
 0x6cc   :  { %v4002_v27 = vpop.permute.xlu1 %4001 }
 0x6cd   :  { %4101 = vst.msk [vmem:[#allocation3 + $0x470] sm:$0xff] %vm1699_vm6, %v4002_v27 }
 0x6ce   :  { %4738 = vst.msk [vmem:[#allocation3 + $0x470] sm:$0xff] %vm2337_vm7, %v14836_v23 }
 0x6cf   :  { %5375 = vst.msk [vmem:[#allocation3 + $0x470] sm:$0xff] %vm2975_vm8, %v14845_v42 }
 0x6d0   :  { %v2285_v28 = vpop.permute.xlu1 %2284  ;;  %v5957_v37 = vld [vmem:[#allocation3 + $0x458] sm:$0xff] }
 0x6d1   :  { %2385 = vst.msk [vmem:[#allocation3 + $0x468] sm:$0xff] %vm2337_vm7, %v2285_v28  ;;  %6449 = vmatprep.mubr.f32.mxu1 %v5957_v37  ;;  %v5856_v28 = vld [vmem:[#allocation3 + $0x130] sm:$0xff] }
 0x6d2   :  { %3023 = vst.msk [vmem:[#allocation3 + $0x468] sm:$0xff] %vm2975_vm8, %v14856_v39  ;;  %6450 = vmatmul.mubr.f32.gmra.mrb[190].mxu1 %v5956_v5  ;;  %v5862_v5 = vld [vmem:[#allocation3 + $0x160] sm:$0xff] }
 0x6d4   :  { %v5478_v59 = vpop.permute.xlu1 %5477 }
 0x6d5   :  { %v5720_v57 = vmul.f32 %v5478_v59, %v5377_v34  ;;  %v5868_v59 = vld [vmem:[#allocation3 + $0x190] sm:$0xff] }
 0x6d6   :  { %v5960_v40 = vld [vmem:[#allocation3 + $0x470] sm:$0xff] }
 0x6d7   :  { %5769 = vst.msk [vmem:[#allocation3 + $0x10] sm:$0xff] %vm604_vm3, %v5720_v57  ;;  %6454 = vmatprep.mubr.f32.mxu1 %v5960_v40  ;;  %v5874_v40 = vld [vmem:[#allocation3 + $0x1c0] sm:$0xff] }
 0x6d8   :  { %v4004_v23 = vpop.permute.xlu1 %4003 }
 0x6d9   :  { %4102 = vst.msk [vmem:[#allocation3 + $0x488] sm:$0xff] %vm1699_vm6, %v4004_v23  ;;  %v5959_v42 = vld [vmem:[#allocation3 + $0x468] sm:$0xff] }
 0x6da   :  { %4739 = vst.msk [vmem:[#allocation3 + $0x488] sm:$0xff] %vm2337_vm7, %v14862_v26  ;;  %6455 = vmatmul.mubr.f32.gmra.mrb[192].mxu1 %v5959_v42  ;;  %v5880_v42 = vld [vmem:[#allocation3 + $0x1f0] sm:$0xff] }
 0x6db   :  { %5376 = vst.msk [vmem:[#allocation3 + $0x488] sm:$0xff] %vm2975_vm8, %v14867_v54  ;;  %v18082_v54 = vmov 0.0  }
 0x6dc   :  { %v2287_v39 = vpop.permute.xlu1 %2286 }
 0x6dd   :  { %2386 = vst.msk [vmem:[#allocation3 + $0x480] sm:$0xff] %vm2337_vm7, %v2287_v39 }
 0x6de   :  { %3024 = vst.msk [vmem:[#allocation3 + $0x480] sm:$0xff] %vm2975_vm8, %v14872_v41  ;;  %v5820_v46 = vld [vmem:[#allocation3 + $0x10] sm:$0xff] }
 0x6e0   :  { %v5483_v43 = vpop.permute.xlu1 %5482 }
 0x6e1   :  { %v5721_v14 = vmul.f32 %v5483_v43, %v5378_v12  ;;  %v5886_v12 = vld [vmem:[#allocation3 + $0x220] sm:$0xff] }
 0x6e2   :  { %v5963_v9 = vld [vmem:[#allocation3 + $0x488] sm:$0xff] }
 0x6e3   :  { %5770 = vst.msk [vmem:[#allocation3 + $0x28] sm:$0xff] %vm604_vm3, %v5721_v14  ;;  %6459 = vmatprep.mubr.f32.mxu1 %v5963_v9  ;;  %v7159_v14 = vld [vmem:[%s17825_s6 + $0x208] sm:$0xff]  ;;  %v7161_v9 = vld [vmem:[%s17825_s6 + $0x218] sm:$0xff] }
 0x6e4   :  { %v5488_v47 = vpop.permute.xlu1 %5487 }
 0x6e5   :  { %v5722_v26 = vmul.f32 %v5488_v47, %v5379_v49  ;;  %v5962_v3 = vld [vmem:[#allocation3 + $0x480] sm:$0xff]  ;;  %v7158_v49 = vld [vmem:[%s17825_s6 + $0x200] sm:$0xff]  ;;  %v9566_v47 = vpack.c.bf16 %v7161_v9, %v7159_v14  ;;  %v7196_v14 = vld [vmem:[%s17825_s6 + $0x330] sm:$0xff] }
 0x6e6   :  { %6460 = vmatmul.mubr.f32.gmra.mrb[194].mxu1 %v5962_v3 }
 0x6e7   :  { %5771 = vst.msk [vmem:[#allocation3 + $0x40] sm:$0xff] %vm604_vm3, %v5722_v26  ;;  %9297 = vmatprep.mubr.msk.f32.mxu1 %vm10739_vm4, %v18082_v54  ;;  %v7160_v26 = vld [vmem:[%s17825_s6 + $0x210] sm:$0xff]  ;;  %9567 = vmatprep.subr.bf16.mxu0 %v9566_v47  ;;  %v7201_v47 = vld [vmem:[%s17825_s6 + $0x358] sm:$0xff] }
 0x6e8   :  { %v5498_v18 = vpop.permute.xlu1 %5497  ;;  %v9568_v3 = vpack.c.bf16 %v7160_v26, %v7158_v49  ;;  %v7199_v49 = vld [vmem:[%s17825_s6 + $0x348] sm:$0xff] }
 0x6e9   :  { %v5724_v41 = vmul.f32 %v5498_v18, %v5381_v0  ;;  %v7163_v0 = vld [vmem:[%s17825_s6 + $0x228] sm:$0xff]  ;;  %v7165_v18 = vld [vmem:[%s17825_s6 + $0x238] sm:$0xff] }
 0x6ea   :  { %9298 = vmatmul.mubr.msk.f32.vlgmr.msra.gmra.mrb[98].mxu1 %vm604_vm3, %v5820_v46  ;;  %v5823_v8 = vld [vmem:[#allocation3 + $0x28] sm:$0xff]  ;;  %9569 = vmatpush1.bf16.msra.mxu0 %v9568_v3  ;;  %v9570_v46 = vpack.c.bf16 %v7165_v18, %v7163_v0 }
 0x6eb   :  { %5773 = vst.msk [vmem:[#allocation3 + $0x70] sm:$0xff] %vm604_vm3, %v5724_v41  ;;  %9300 = vmatprep.mubr.msk.f32.mxu1 %vm10739_vm4, %v18082_v54  ;;  %v7162_v41 = vld [vmem:[%s17825_s6 + $0x220] sm:$0xff] }
 0x6ec   :  { %v5503_v29 = vpop.permute.xlu1 %5502  ;;  %9571 = vmatprep.subr.bf16.mxu0 %v9570_v46  ;;  %v7198_v46 = vld [vmem:[%s17825_s6 + $0x340] sm:$0xff] }
 0x6ed   :  { %v5725_v63 = vmul.f32 %v5503_v29, %v5382_v36  ;;  %v7164_v36 = vld [vmem:[%s17825_s6 + $0x230] sm:$0xff] }
 0x6ee   :  { %9301 = vmatmul.mubr.msk.f32.gmra.mrb[100].mxu1 %vm604_vm3, %v5823_v8  ;;  %v5826_v22 = vld [vmem:[#allocation3 + $0x40] sm:$0xff]  ;;  %v9572_v29 = vpack.c.bf16 %v7164_v36, %v7162_v41  ;;  %v7169_v8 = vld [vmem:[%s17825_s6 + $0x258] sm:$0xff]  ;;  %v9606_v41 = vpack.c.bf16 %v7201_v47, %v7199_v49  ;;  %v7200_v36 = vld [vmem:[%s17825_s6 + $0x350] sm:$0xff] }
 0x6ef   :  { %5774 = vst.msk [vmem:[#allocation3 + $0x88] sm:$0xff] %vm604_vm3, %v5725_v63  ;;  %9303 = vmatprep.mubr.msk.f32.mxu1 %vm10739_vm4, %v18082_v54  ;;  %v7167_v63 = vld [vmem:[%s17825_s6 + $0x248] sm:$0xff]  ;;  %v7218_v47 = vld [vmem:[%s17825_s6 + $0x3e0] sm:$0xff] }
 0x6f0   :  { %v5513_v21 = vpop.permute.xlu1 %5512  ;;  %9573 = vmatpush1.bf16.msra.mxu0 %v9572_v29 }
 0x6f1   :  { %v5727_v25 = vmul.f32 %v5513_v21, %v5384_v44  ;;  %v7166_v44 = vld [vmem:[%s17825_s6 + $0x240] sm:$0xff]  ;;  %v9574_v21 = vpack.c.bf16 %v7169_v8, %v7167_v63  ;;  %v7203_v63 = vld [vmem:[%s17825_s6 + $0x368] sm:$0xff]  ;;  %v7205_v8 = vld [vmem:[%s17825_s6 + $0x378] sm:$0xff] }
 0x6f2   :  { %9304 = vmatmul.mubr.msk.f32.gmra.mrb[102].mxu1 %vm604_vm3, %v5826_v22  ;;  %v5832_v1 = vld [vmem:[#allocation3 + $0x70] sm:$0xff] }
 0x6f3   :  { %5776 = vst.msk [vmem:[#allocation3 + $0xb8] sm:$0xff] %vm604_vm3, %v5727_v25  ;;  %9306 = vmatprep.mubr.msk.f32.mxu1 %vm10739_vm4, %v18082_v54  ;;  %v7168_v25 = vld [vmem:[%s17825_s6 + $0x250] sm:$0xff]  ;;  %9575 = vmatprep.subr.bf16.mxu0 %v9574_v21 }
 0x6f4   :  { %v5523_v61 = vpop.permute.xlu1 %5522  ;;  %v9576_v22 = vpack.c.bf16 %v7168_v25, %v7166_v44  ;;  %v9608_v25 = vpack.c.bf16 %v7200_v36, %v7198_v46 }
 0x6f5   :  { %v5729_v52 = vmul.f32 %v5523_v61, %v5386_v30  ;;  %v7171_v30 = vld [vmem:[%s17825_s6 + $0x268] sm:$0xff]  ;;  %v7173_v61 = vld [vmem:[%s17825_s6 + $0x278] sm:$0xff] }
 0x6f6   :  { %9307 = vmatmul.mubr.msk.f32.gmra.mrb[104].mxu1 %vm604_vm3, %v5829_v2  ;;  %v5835_v62 = vld [vmem:[#allocation3 + $0x88] sm:$0xff]  ;;  %9577 = vmatpush1.bf16.msra.mxu0 %v9576_v22  ;;  %v9578_v2 = vpack.c.bf16 %v7173_v61, %v7171_v30  ;;  %v9610_v30 = vpack.c.bf16 %v7205_v8, %v7203_v63  ;;  %v7202_v61 = vld [vmem:[%s17825_s6 + $0x360] sm:$0xff] }
 0x6f7   :  { %5778 = vst.msk [vmem:[#allocation3 + $0xe8] sm:$0xff] %vm604_vm3, %v5729_v52  ;;  %9309 = vmatprep.mubr.msk.f32.mxu1 %vm10739_vm4, %v18082_v54  ;;  %v7170_v52 = vld [vmem:[%s17825_s6 + $0x260] sm:$0xff] }
 0x6f8   :  { %v5533_v15 = vpop.permute.xlu1 %5532  ;;  %9579 = vmatprep.subr.bf16.mxu0 %v9578_v2 }
 0x6f9   :  { %v5731_v58 = vmul.f32 %v5533_v15, %v5388_v19  ;;  %v7172_v19 = vld [vmem:[%s17825_s6 + $0x270] sm:$0xff] }
 0x6fa   :  { %9310 = vmatmul.mubr.msk.f32.gmra.mrb[106].mxu1 %vm604_vm3, %v5832_v1  ;;  %v5841_v7 = vld [vmem:[#allocation3 + $0xb8] sm:$0xff]  ;;  %v9580_v15 = vpack.c.bf16 %v7172_v19, %v7170_v52  ;;  %v7177_v1 = vld [vmem:[%s17825_s6 + $0x298] sm:$0xff]  ;;  %v7204_v52 = vld [vmem:[%s17825_s6 + $0x370] sm:$0xff] }
 0x6fb   :  { %5780 = vst.msk [vmem:[#allocation3 + $0x118] sm:$0xff] %vm604_vm3, %v5731_v58  ;;  %9312 = vmatprep.mubr.msk.f32.mxu1 %vm10739_vm4, %v18082_v54  ;;  %v7175_v58 = vld [vmem:[%s17825_s6 + $0x288] sm:$0xff] }
 0x6fc   :  { %v5543_v6 = vpop.permute.xlu1 %5542  ;;  %9581 = vmatpush1.bf16.msra.mxu0 %v9580_v15 }
 0x6fd   :  { %v5733_v48 = vmul.f32 %v5543_v6, %v5390_v33  ;;  %v7174_v33 = vld [vmem:[%s17825_s6 + $0x280] sm:$0xff]  ;;  %v9582_v6 = vpack.c.bf16 %v7177_v1, %v7175_v58  ;;  %v9612_v1 = vpack.c.bf16 %v7204_v52, %v7202_v61  ;;  %v5453_v52 = vld [vmem:[%s17820_s1 + $0xd8] sm:$0xff] }
 0x6fe   :  { %9313 = vmatmul.mubr.msk.f32.gmra.mrb[108].mxu1 %vm604_vm3, %v5835_v62  ;;  %v5847_v56 = vld [vmem:[#allocation3 + $0xe8] sm:$0xff]  ;;  %v7179_v62 = vld [vmem:[%s17825_s6 + $0x2a8] sm:$0xff] }
 0x6ff   :  { %5782 = vst.msk [vmem:[#allocation3 + $0x148] sm:$0xff] %vm604_vm3, %v5733_v48  ;;  %9315 = vmatprep.mubr.msk.f32.mxu1 %vm10739_vm4, %v18082_v54  ;;  %v7176_v48 = vld [vmem:[%s17825_s6 + $0x290] sm:$0xff]  ;;  %9583 = vmatprep.subr.bf16.mxu0 %v9582_v6 }
 0x700   :  { %v5553_v50 = vpop.permute.xlu1 %5552 }
 0x701   :  { %v5735_v17 = vmul.f32 %v5553_v50, %v5392_v16  ;;  %v7181_v16 = vld [vmem:[%s17825_s6 + $0x2b8] sm:$0xff]  ;;  %v9584_v50 = vpack.c.bf16 %v7176_v48, %v7174_v33 }
 0x702   :  { %9316 = vmatmul.mubr.msk.f32.gmra.mrb[110].mxu1 %vm604_vm3, %v5838_v13  ;;  %v5853_v27 = vld [vmem:[#allocation3 + $0x118] sm:$0xff] }
 0x703   :  { %5784 = vst.msk [vmem:[#allocation3 + $0x178] sm:$0xff] %vm604_vm3, %v5735_v17  ;;  %9318 = vmatprep.mubr.msk.f32.mxu1 %vm10739_vm4, %v18082_v54  ;;  %v9586_v17 = vpack.c.bf16 %v7181_v16, %v7179_v62  ;;  %v7178_v13 = vld [vmem:[%s17825_s6 + $0x2a0] sm:$0xff]  ;;  %9585 = vmatpush1.bf16.msra.mxu0 %v9584_v50  ;;  %v7207_v16 = vld [vmem:[%s17825_s6 + $0x388] sm:$0xff]  ;;  %v7209_v50 = vld [vmem:[%s17825_s6 + $0x398] sm:$0xff] }
 0x704   :  { %v5563_v32 = vpop.permute.xlu1 %5562 }
 0x705   :  { %v5737_v11 = vmul.f32 %v5563_v32, %v5394_v51  ;;  %v7180_v51 = vld [vmem:[%s17825_s6 + $0x2b0] sm:$0xff]  ;;  %v7183_v32 = vld [vmem:[%s17825_s6 + $0x2c8] sm:$0xff]  ;;  %9587 = vmatprep.subr.bf16.mxu0 %v9586_v17 }
 0x706   :  { %9319 = vmatmul.mubr.msk.f32.gmra.mrb[112].mxu1 %vm604_vm3, %v5841_v7  ;;  %v5859_v37 = vld [vmem:[#allocation3 + $0x148] sm:$0xff]  ;;  %v9588_v7 = vpack.c.bf16 %v7180_v51, %v7178_v13  ;;  %v9614_v13 = vpack.c.bf16 %v7209_v50, %v7207_v16  ;;  %v7206_v51 = vld [vmem:[%s17825_s6 + $0x380] sm:$0xff] }
 0x707   :  { %5786 = vst.msk [vmem:[#allocation3 + $0x1a8] sm:$0xff] %vm604_vm3, %v5737_v11  ;;  %9321 = vmatprep.mubr.msk.f32.mxu1 %vm10739_vm4, %v18082_v54  ;;  %v7185_v11 = vld [vmem:[%s17825_s6 + $0x2d8] sm:$0xff] }
 0x708   :  { %v5573_v55 = vpop.permute.xlu1 %5572  ;;  %9589 = vmatpush1.bf16.msra.mxu0 %v9588_v7 }
 0x709   :  { %v5739_v24 = vmul.f32 %v5573_v55, %v5396_v53  ;;  %v9590_v53 = vpack.c.bf16 %v7185_v11, %v7183_v32  ;;  %v7182_v55 = vld [vmem:[%s17825_s6 + $0x2c0] sm:$0xff]  ;;  %v7208_v32 = vld [vmem:[%s17825_s6 + $0x390] sm:$0xff] }
 0x70a   :  { %9322 = vmatmul.mubr.msk.f32.gmra.mrb[114].mxu1 %vm604_vm3, %v5844_v31  ;;  %v5865_v34 = vld [vmem:[#allocation3 + $0x178] sm:$0xff]  ;;  %v7187_v31 = vld [vmem:[%s17825_s6 + $0x2e8] sm:$0xff]  ;;  %v9616_v7 = vpack.c.bf16 %v7208_v32, %v7206_v51 }
 0x70b   :  { %5788 = vst.msk [vmem:[#allocation3 + $0x1d8] sm:$0xff] %vm604_vm3, %v5739_v24  ;;  %9324 = vmatprep.mubr.msk.f32.mxu1 %vm10739_vm4, %v18082_v54  ;;  %v7184_v24 = vld [vmem:[%s17825_s6 + $0x2d0] sm:$0xff]  ;;  %9591 = vmatprep.subr.bf16.mxu0 %v9590_v53  ;;  %v7211_v53 = vld [vmem:[%s17825_s6 + $0x3a8] sm:$0xff] }
 0x70c   :  { %v5583_v60 = vpop.permute.xlu1 %5582 }
 0x70d   :  { %v5741_v45 = vmul.f32 %v5583_v60, %v5398_v20  ;;  %v7189_v20 = vld [vmem:[%s17825_s6 + $0x2f8] sm:$0xff]  ;;  %v9592_v60 = vpack.c.bf16 %v7184_v24, %v7182_v55  ;;  %v7210_v24 = vld [vmem:[%s17825_s6 + $0x3a0] sm:$0xff] }
 0x70e   :  { %9325 = vmatmul.mubr.msk.f32.gmra.mrb[116].mxu1 %vm604_vm3, %v5847_v56  ;;  %v5871_v57 = vld [vmem:[#allocation3 + $0x1a8] sm:$0xff]  ;;  %v7186_v56 = vld [vmem:[%s17825_s6 + $0x2e0] sm:$0xff]  ;;  %v7213_v55 = vld [vmem:[%s17825_s6 + $0x3b8] sm:$0xff] }
 0x70f   :  { %5790 = vst.msk [vmem:[#allocation3 + $0x208] sm:$0xff] %vm604_vm3, %v5741_v45  ;;  %9327 = vmatprep.mubr.msk.f32.mxu1 %vm10739_vm4, %v18082_v54  ;;  %v9594_v45 = vpack.c.bf16 %v7189_v20, %v7187_v31  ;;  %9593 = vmatpush1.bf16.msra.mxu0 %v9592_v60  ;;  %v9618_v60 = vpack.c.bf16 %v7213_v55, %v7211_v53  ;;  %v5455_v53 = vld [vmem:[%s17820_s1 + $0xe8] sm:$0xff] }
 0x710   :  { %v5593_v10 = vpop.permute.xlu1 %5592 }
 0x711   :  { %v5743_v38 = vmul.f32 %v5593_v10, %v5400_v35  ;;  %v7188_v35 = vld [vmem:[%s17825_s6 + $0x2f0] sm:$0xff]  ;;  %v7191_v10 = vld [vmem:[%s17825_s6 + $0x308] sm:$0xff]  ;;  %9595 = vmatprep.subr.bf16.mxu0 %v9594_v45 }
 0x712   :  { %9328 = vmatmul.mubr.msk.f32.gmra.mrb[118].mxu1 %vm604_vm3, %v5850_v4  ;;  %v5877_v23 = vld [vmem:[#allocation3 + $0x1d8] sm:$0xff]  ;;  %v7212_v45 = vld [vmem:[%s17825_s6 + $0x3b0] sm:$0xff] }
 0x713   :  { %5792 = vst.msk [vmem:[#allocation3 + $0x238] sm:$0xff] %vm604_vm3, %v5743_v38  ;;  %9330 = vmatprep.mubr.msk.f32.mxu1 %vm10739_vm4, %v18082_v54  ;;  %v7193_v38 = vld [vmem:[%s17825_s6 + $0x318] sm:$0xff]  ;;  %v15116_v4 = vld [vmem:[%s17826_s5] ss:$0 sm:$0xff] }
 0x716   :  { %9331 = vmatmul.mubr.msk.f32.gmra.mrb[120].mxu1 %vm604_vm3, %v5853_v27  ;;  %v5883_v39 = vld [vmem:[#allocation3 + $0x208] sm:$0xff]  ;;  %v9596_v27 = vpack.c.bf16 %v7188_v35, %v7186_v56  ;;  %v9620_v35 = vpack.c.bf16 %v7212_v45, %v7210_v24  ;;  %v5457_v45 = vld [vmem:[%s17820_s1 + $0xf8] sm:$0xff] }
 0x717   :  { %9333 = vmatprep.mubr.msk.f32.mxu1 %vm10739_vm4, %v18082_v54 }
 0x718   :  { %9597 = vmatpush1.bf16.msra.mxu0 %v9596_v27 }
 0x71a   :  { %9334 = vmatmul.mubr.msk.f32.gmra.mrb[122].mxu1 %vm604_vm3, %v5856_v28  ;;  %v5889_v43 = vld [vmem:[#allocation3 + $0x238] sm:$0xff]  ;;  %v9598_v28 = vpack.c.bf16 %v7193_v38, %v7191_v10 }
 0x71b   :  { %9336 = vmatprep.mubr.msk.f32.mxu1 %vm10739_vm4, %v18082_v54 }
 0x71c   :  { %9599 = vmatprep.subr.bf16.mxu0 %v9598_v28 }
 0x71e   :  { %9337 = vmatmul.mubr.msk.f32.gmra.mrb[124].mxu1 %vm604_vm3, %v5859_v37  ;;  %v7190_v37 = vld [vmem:[%s17825_s6 + $0x300] sm:$0xff] }
 0x71f   :  { %9339 = vmatprep.mubr.msk.f32.mxu1 %vm10739_vm4, %v18082_v54 }
 0x722   :  { %9340 = vmatmul.mubr.msk.f32.gmra.mrb[126].mxu1 %vm604_vm3, %v5862_v5  ;;  %v7192_v5 = vld [vmem:[%s17825_s6 + $0x310] sm:$0xff] }
 0x723   :  { %9342 = vmatprep.mubr.msk.f32.mxu1 %vm10739_vm4, %v18082_v54 }
 0x726   :  { %9343 = vmatmul.mubr.msk.f32.gmra.mrb[128].mxu1 %vm604_vm3, %v5865_v34 }
 0x727   :  { %9345 = vmatprep.mubr.msk.f32.mxu1 %vm10739_vm4, %v18082_v54 }
 0x72a   :  { %9346 = vmatmul.mubr.msk.f32.gmra.mrb[130].mxu1 %vm604_vm3, %v5868_v59  ;;  %v7195_v59 = vld [vmem:[%s17825_s6 + $0x328] sm:$0xff] }
 0x72b   :  { %9348 = vmatprep.mubr.msk.f32.mxu1 %vm10739_vm4, %v18082_v54 }
 0x72e   :  { %9349 = vmatmul.mubr.msk.f32.gmra.mrb[132].mxu1 %vm604_vm3, %v5871_v57  ;;  %v7197_v57 = vld [vmem:[%s17825_s6 + $0x338] sm:$0xff] }
 0x72f   :  { %9351 = vmatprep.mubr.msk.f32.mxu1 %vm10739_vm4, %v18082_v54 }
 0x732   :  { %9352 = vmatmul.mubr.msk.f32.gmra.mrb[134].mxu1 %vm604_vm3, %v5874_v40 }
 0x733   :  { %9354 = vmatprep.mubr.msk.f32.mxu1 %vm10739_vm4, %v18082_v54 }
 0x736   :  { %9355 = vmatmul.mubr.msk.f32.gmra.mrb[136].mxu1 %vm604_vm3, %v5877_v23 }
 0x737   :  { %9357 = vmatprep.mubr.msk.f32.mxu1 %vm10739_vm4, %v18082_v54 }
 0x73a   :  { %9358 = vmatmul.mubr.msk.f32.gmra.mrb[138].mxu1 %vm604_vm3, %v5880_v42  ;;  %v9600_v42 = vpack.c.bf16 %v7192_v5, %v7190_v37  ;;  %v7215_v37 = vld [vmem:[%s17825_s6 + $0x3c8] sm:$0xff]  ;;  %v7217_v5 = vld [vmem:[%s17825_s6 + $0x3d8] sm:$0xff] }
 0x73b   :  { %9360 = vmatprep.mubr.msk.f32.mxu1 %vm10739_vm4, %v18082_v54 }
 0x73c   :  { %9601 = vmatpush1.bf16.msra.mxu0 %v9600_v42 }
 0x73e   :  { %9361 = vmatmul.mubr.msk.f32.gmra.mrb[140].mxu1 %vm604_vm3, %v5883_v39 }
 0x73f   :  { %9363 = vmatprep.mubr.msk.f32.mxu1 %vm10739_vm4, %v18082_v54 }
 0x742   :  { %9364 = vmatmul.mubr.msk.f32.gmra.mrb[142].mxu1 %vm604_vm3, %v5886_v12  ;;  %v9602_v12 = vpack.c.bf16 %v7197_v57, %v7195_v59  ;;  %v9622_v59 = vpack.c.bf16 %v7217_v5, %v7215_v37  ;;  %v7214_v57 = vld [vmem:[%s17825_s6 + $0x3c0] sm:$0xff] }
 0x743   :  { %9366 = vmatprep.mubr.msk.f32.mxu1 %vm10739_vm4, %v18082_v54 }
 0x744   :  { %9603 = vmatprep.subr.bf16.mxu0 %v9602_v12  ;;  %v7219_v12 = vld [vmem:[%s17825_s6 + $0x3e8] sm:$0xff] }
 0x746   :  { %9367 = vmatmul.mubr.msk.f32.gmra.mrb[144].mxu1 %vm604_vm3, %v5889_v43  ;;  %v7194_v43 = vld [vmem:[%s17825_s6 + $0x320] sm:$0xff] }
 0x747   :  { %9369 = vmatprep.mubr.msk.f32.mxu1 %vm10739_vm4, %v18082_v54  ;;  %v9604_v0 = vpack.c.bf16 %v7196_v14, %v7194_v43  ;;  %v7221_v43 = vld [vmem:[%s17825_s6 + $0x3f8] sm:$0xff] }
 0x748   :  { %v9626_v49 = vpack.c.bf16 %v7221_v43, %v7219_v12 }
 0x749   :  { %9605 = vmatpush1.bf16.msra.mxu0 %v9604_v0 }
 0x74a   :  { %9607 = vmatprep.subr.bf16.mxu0 %v9606_v41 }
 0x74d   :  { %9609 = vmatpush1.bf16.msra.mxu0 %v9608_v25 }
 0x74e   :  { %9611 = vmatprep.subr.bf16.mxu0 %v9610_v30 }
 0x751   :  { %9613 = vmatpush1.bf16.msra.mxu0 %v9612_v1 }
 0x752   :  { %9615 = vmatprep.subr.bf16.mxu0 %v9614_v13 }
 0x755   :  { %9617 = vmatpush1.bf16.msra.mxu0 %v9616_v7 }
 0x756   :  { %9619 = vmatprep.subr.bf16.mxu0 %v9618_v60 }
 0x759   :  { %9621 = vmatpush1.bf16.msra.mxu0 %v9620_v35 }
 0x75a   :  { %9623 = vmatprep.subr.bf16.mxu0 %v9622_v59 }
 0x7bd   :  { %v6531_v34 = vpop.f32.mrb[98].mxu1 }
 0x7be   :  { %v10322_v40 = vadd.f32 %v15116_v4, %v6531_v34  ;;  %v9299_v23 = vpop.f32.mrb[99].mxu1 }
 0x7c0   :  { %v6775_v39 = vmax.f32 %v10322_v40, 0.0  ;;  %v7216_v40 = vld [vmem:[%s17825_s6 + $0x3d0] sm:$0xff] }
 0x7c1   :  { %v6536_v9 = vpop.f32.mrb[100].mxu1 }
 0x7c2   :  { %6825 = vst.msk [vmem:[#allocation4] sm:$0xff] %vm6824_vm9, %v6775_v39  ;;  %v10323_v26 = vadd.f32 %v15116_v4, %v6536_v9  ;;  %v9302_v3 = vpop.f32.mrb[101].mxu1  ;;  %v9624_v39 = vpack.c.bf16 %v7216_v40, %v7214_v57  ;;  %v5456_v40 = vld [vmem:[%s17820_s1 + $0xf0] sm:$0xff] }
 0x7c3   :  { %v7223_v3 = vld [vmem:[%s17825_s6 + $0x408] sm:$0xff] }
 0x7c4   :  { %v6776_v18 = vmax.f32 %v10323_v26, 0.0  ;;  %v7220_v26 = vld [vmem:[%s17825_s6 + $0x3f0] sm:$0xff]  ;;  %9625 = vmatpush1.bf16.msra.mxu0 %v9624_v39 }
 0x7c5   :  { %v6541_v29 = vpop.f32.mrb[102].mxu1  ;;  %v9628_v0 = vpack.c.bf16 %v7220_v26, %v7218_v47  ;;  %9627 = vmatprep.subr.bf16.mxu0 %v9626_v49 }
 0x7c6   :  { %6826 = vst.msk [vmem:[#allocation4 + $0x8] sm:$0xff] %vm6824_vm9, %v6776_v18  ;;  %v10324_v44 = vadd.f32 %v15116_v4, %v6541_v29  ;;  %v9305_v21 = vpop.f32.mrb[103].mxu1  ;;  %v7225_v18 = vld [vmem:[%s17825_s6 + $0x418] sm:$0xff] }
 0x7c7   :  { %v9630_v46 = vpack.c.bf16 %v7225_v18, %v7223_v3 }
 0x7c8   :  { %v6777_v22 = vmax.f32 %v10324_v44, 0.0  ;;  %v5451_v44 = vld [vmem:[%s17820_s1 + $0xc8] sm:$0xff]  ;;  %9629 = vmatpush1.bf16.msra.mxu0 %v9628_v0  ;;  %v5461_v0 = vld [vmem:[%s17820_s1 + $0x118] sm:$0xff] }
 0x7c9   :  { %v6546_v2 = vpop.f32.mrb[104].mxu1  ;;  %v6874_v19 = vld [vmem:[#allocation4] sm:$0xff]  ;;  %9631 = vmatprep.subr.bf16.mxu0 %v9630_v46 }
 0x7ca   :  { %6827 = vst.msk [vmem:[#allocation4 + $0x10] sm:$0xff] %vm6824_vm9, %v6777_v22  ;;  %v10325_v15 = vadd.f32 %v15116_v4, %v6546_v2  ;;  %v9308_v58 = vpop.f32.mrb[105].mxu1  ;;  %6875 = vst.msk [vmem:[#allocation5] sm:$0xff] %vm6824_vm9, %v6874_v19 }
 0x7cc   :  { %v6778_v33 = vmax.f32 %v10325_v15, 0.0 }
 0x7cd   :  { %v6551_v6 = vpop.f32.mrb[106].mxu1 }
 0x7ce   :  { %6828 = vst.msk [vmem:[#allocation4 + $0x18] sm:$0xff] %vm6824_vm9, %v6778_v33  ;;  %v10326_v48 = vadd.f32 %v15116_v4, %v6551_v6  ;;  %v9311_v62 = vpop.f32.mrb[107].mxu1  ;;  %v5450_v33 = vld [vmem:[%s17820_s1 + $0xc0] sm:$0xff] }
 0x7d0   :  { %v6779_v17 = vmax.f32 %v10326_v48, 0.0 }
 0x7d1   :  { %v6556_v11 = vpop.f32.mrb[108].mxu1  ;;  %v6883_v56 = vld [vmem:[#allocation4 + $0x10] sm:$0xff] }
 0x7d2   :  { %6829 = vst.msk [vmem:[#allocation4 + $0x20] sm:$0xff] %vm6824_vm9, %v6779_v17  ;;  %v10327_v31 = vadd.f32 %v15116_v4, %v6556_v11  ;;  %v9314_v20 = vpop.f32.mrb[109].mxu1  ;;  %6884 = vst.msk [vmem:[#allocation5 + $0x8] sm:$0xff] %vm6824_vm9, %v6883_v56  ;;  %v5452_v17 = vld [vmem:[%s17820_s1 + $0xd0] sm:$0xff] }
 0x7d4   :  { %v6780_v10 = vmax.f32 %v10327_v31, 0.0 }
 0x7d5   :  { %v6561_v38 = vpop.f32.mrb[110].mxu1 }
 0x7d6   :  { %6830 = vst.msk [vmem:[#allocation4 + $0x28] sm:$0xff] %vm6824_vm9, %v6780_v10  ;;  %v10328_v27 = vadd.f32 %v15116_v4, %v6561_v38  ;;  %v9317_v28 = vpop.f32.mrb[111].mxu1 }
 0x7d7   :  { %v5454_v28 = vld [vmem:[%s17820_s1 + $0xe0] sm:$0xff] }
 0x7d8   :  { %v6781_v34 = vmax.f32 %v10328_v27, 0.0 }
 0x7d9   :  { %v6566_v23 = vpop.f32.mrb[112].mxu1  ;;  %v6891_v42 = vld [vmem:[#allocation4 + $0x20] sm:$0xff] }
 0x7da   :  { %6831 = vst.msk [vmem:[#allocation4 + $0x30] sm:$0xff] %vm6824_vm9, %v6781_v34  ;;  %v10329_v14 = vadd.f32 %v15116_v4, %v6566_v23  ;;  %v9320_v9 = vpop.f32.mrb[113].mxu1  ;;  %6892 = vst.msk [vmem:[#allocation5 + $0x10] sm:$0xff] %vm6824_vm9, %v6891_v42 }
 0x7dc   :  { %v6782_v41 = vmax.f32 %v10329_v14, 0.0  ;;  %v5459_v14 = vld [vmem:[%s17820_s1 + $0x108] sm:$0xff] }
 0x7dd   :  { %v6571_v36 = vpop.f32.mrb[114].mxu1  ;;  %v6893_v29 = vld [vmem:[#allocation4 + $0x28] sm:$0xff] }
 0x7de   :  { %6832 = vst.msk [vmem:[#allocation4 + $0x38] sm:$0xff] %vm6824_vm9, %v6782_v41  ;;  %v10330_v63 = vadd.f32 %v15116_v4, %v6571_v36  ;;  %6895 = vrot.lane.b32.xlu1 %v6893_v29, %s10749_s22  ;;  %v9323_v8 = vpop.f32.mrb[115].mxu1 }
 0x7e0   :  { %v6783_v21 = vmax.f32 %v10330_v63, 0.0  ;;  %v5458_v63 = vld [vmem:[%s17820_s1 + $0x100] sm:$0xff] }
 0x7e1   :  { %v6576_v25 = vpop.f32.mrb[116].mxu1  ;;  %v6899_v22 = vld [vmem:[#allocation4 + $0x30] sm:$0xff] }
 0x7e2   :  { %6833 = vst.msk [vmem:[#allocation4 + $0x40] sm:$0xff] %vm6824_vm9, %v6783_v21  ;;  %v10331_v30 = vadd.f32 %v15116_v4, %v6576_v25  ;;  %5602 = vperm.xlu1 %10667, %v5451_v44   ;;  %v9326_v61 = vpop.f32.mrb[117].mxu1  ;;  %6900 = vst.msk [vmem:[#allocation5 + $0x18] sm:$0xff] %vm6824_vm9, %v6899_v22 }
 0x7e4   :  { %v6784_v2 = vmax.f32 %v10331_v30, 0.0  ;;  %v5460_v30 = vld [vmem:[%s17820_s1 + $0x110] sm:$0xff] }
 0x7e5   :  { %v6581_v19 = vpop.f32.mrb[118].mxu1  ;;  %v6901_v15 = vld [vmem:[#allocation4 + $0x38] sm:$0xff] }
 0x7e6   :  { %6834 = vst.msk [vmem:[#allocation4 + $0x48] sm:$0xff] %vm6824_vm9, %v6784_v2  ;;  %v10332_v58 = vadd.f32 %v15116_v4, %v6581_v19  ;;  %5612 = vperm.xlu1 %10667, %v5453_v52   ;;  %6903 = vrot.lane.b32.xlu0 %v6901_v15, %s10749_s22  ;;  %v9329_v1 = vpop.f32.mrb[119].mxu1 }
 0x7e8   :  { %v6785_v6 = vmax.f32 %v10332_v58, 0.0  ;;  %v5463_v58 = vld [vmem:[%s17820_s1 + $0x128] sm:$0xff] }
 0x7e9   :  { %v6586_v48 = vpop.f32.mrb[120].mxu1  ;;  %v6907_v62 = vld [vmem:[#allocation4 + $0x40] sm:$0xff] }
 0x7ea   :  { %6835 = vst.msk [vmem:[#allocation4 + $0x50] sm:$0xff] %vm6824_vm9, %v6785_v6  ;;  %v10333_v16 = vadd.f32 %v15116_v4, %v6586_v48  ;;  %5597 = vperm.xlu0 %10668, %v5450_v33   ;;  %v9332_v50 = vpop.f32.mrb[121].mxu1  ;;  %6908 = vst.msk [vmem:[#allocation5 + $0x20] sm:$0xff] %vm6824_vm9, %v6907_v62 }
 0x7ec   :  { %v6786_v13 = vmax.f32 %v10333_v16, 0.0  ;;  %v5465_v16 = vld [vmem:[%s17820_s1 + $0x138] sm:$0xff] }
 0x7ed   :  { %v6591_v51 = vpop.f32.mrb[122].mxu1  ;;  %v6909_v32 = vld [vmem:[#allocation4 + $0x48] sm:$0xff] }
 0x7ee   :  { %6836 = vst.msk [vmem:[#allocation4 + $0x58] sm:$0xff] %vm6824_vm9, %v6786_v13  ;;  %v10334_v11 = vadd.f32 %v15116_v4, %v6591_v51  ;;  %5607 = vperm.xlu0 %10668, %v5452_v17   ;;  %6911 = vrot.lane.b32.xlu1 %v6909_v32, %s10749_s22  ;;  %v9335_v7 = vpop.f32.mrb[123].mxu1 }
 0x7f0   :  { %v6787_v55 = vmax.f32 %v10334_v11, 0.0  ;;  %v5462_v11 = vld [vmem:[%s17820_s1 + $0x120] sm:$0xff] }
 0x7f1   :  { %v6596_v24 = vpop.f32.mrb[124].mxu1  ;;  %v6915_v31 = vld [vmem:[#allocation4 + $0x50] sm:$0xff] }
 0x7f2   :  { %6837 = vst.msk [vmem:[#allocation4 + $0x60] sm:$0xff] %vm6824_vm9, %v6787_v55  ;;  %v10335_v20 = vadd.f32 %v15116_v4, %v6596_v24  ;;  %5622 = vperm.xlu1 %10667, %v5455_v53   ;;  %v9338_v60 = vpop.f32.mrb[125].mxu1  ;;  %6916 = vst.msk [vmem:[#allocation5 + $0x28] sm:$0xff] %vm6824_vm9, %v6915_v31 }
 0x7f4   :  { %v6788_v56 = vmax.f32 %v10335_v20, 0.0  ;;  %v5464_v20 = vld [vmem:[%s17820_s1 + $0x130] sm:$0xff] }
 0x7f5   :  { %v6601_v35 = vpop.f32.mrb[126].mxu1  ;;  %v6917_v10 = vld [vmem:[#allocation4 + $0x58] sm:$0xff] }
 0x7f6   :  { %6838 = vst.msk [vmem:[#allocation4 + $0x68] sm:$0xff] %vm6824_vm9, %v6788_v56  ;;  %v10336_v38 = vadd.f32 %v15116_v4, %v6601_v35  ;;  %5632 = vperm.xlu1 %10667, %v5457_v45   ;;  %6919 = vrot.lane.b32.xlu0 %v6917_v10, %s10749_s22  ;;  %v9341_v27 = vpop.f32.mrb[127].mxu1  ;;  %v5467_v56 = vld [vmem:[%s17820_s1 + $0x148] sm:$0xff]  ;;  %v5469_v35 = vld [vmem:[%s17820_s1 + $0x158] sm:$0xff] }
 0x7f7   :  { %v5468_v27 = vld [vmem:[%s17820_s1 + $0x150] sm:$0xff] }
 0x7f8   :  { %v6789_v37 = vmax.f32 %v10336_v38, 0.0  ;;  %v5466_v38 = vld [vmem:[%s17820_s1 + $0x140] sm:$0xff] }
 0x7f9   :  { %v6606_v5 = vpop.f32.mrb[128].mxu1  ;;  %v6923_v34 = vld [vmem:[#allocation4 + $0x60] sm:$0xff] }
 0x7fa   :  { %6839 = vst.msk [vmem:[#allocation4 + $0x70] sm:$0xff] %vm6824_vm9, %v6789_v37  ;;  %v10337_v59 = vadd.f32 %v15116_v4, %v6606_v5  ;;  %5617 = vperm.xlu0 %10668, %v5454_v28   ;;  %v9344_v57 = vpop.f32.mrb[129].mxu1  ;;  %6924 = vst.msk [vmem:[#allocation5 + $0x30] sm:$0xff] %vm6824_vm9, %v6923_v34  ;;  %v7222_v5 = vld [vmem:[%s17825_s6 + $0x400] sm:$0xff]  ;;  %v7224_v34 = vld [vmem:[%s17825_s6 + $0x410] sm:$0xff] }
 0x7fb   :  { %v7229_v57 = vld [vmem:[%s17825_s6 + $0x438] sm:$0xff] }
 0x7fc   :  { %v6790_v23 = vmax.f32 %v10337_v59, 0.0  ;;  %v7227_v59 = vld [vmem:[%s17825_s6 + $0x428] sm:$0xff] }
 0x7fd   :  { %v6611_v42 = vpop.f32.mrb[130].mxu1  ;;  %v6925_v39 = vld [vmem:[#allocation4 + $0x68] sm:$0xff] }
 0x7fe   :  { %6840 = vst.msk [vmem:[#allocation4 + $0x78] sm:$0xff] %vm6824_vm9, %v6790_v23  ;;  %v10338_v12 = vadd.f32 %v15116_v4, %v6611_v42  ;;  %5627 = vperm.xlu0 %10668, %v5456_v40   ;;  %6927 = vrot.lane.b32.xlu1 %v6925_v39, %s10749_s22  ;;  %v9347_v43 = vpop.f32.mrb[131].mxu1  ;;  %v5402_v40 = vld [vmem:[#allocation2 + $0x148] sm:$0xff]  ;;  %v9632_v23 = vpack.c.bf16 %v7224_v34, %v7222_v5 }
 0x7ff   :  { %v9634_v39 = vpack.c.bf16 %v7229_v57, %v7227_v59  ;;  %v7228_v43 = vld [vmem:[%s17825_s6 + $0x430] sm:$0xff]  ;;  %v5405_v59 = vld [vmem:[#allocation2 + $0x160] sm:$0xff] }
 0x800   :  { %v6791_v9 = vmax.f32 %v10338_v12, 0.0  ;;  %v7226_v12 = vld [vmem:[%s17825_s6 + $0x420] sm:$0xff] }
 0x801   :  { %v6616_v49 = vpop.f32.mrb[132].mxu1  ;;  %v6931_v47 = vld [vmem:[#allocation4 + $0x70] sm:$0xff] }
 0x802   :  { %6841 = vst.msk [vmem:[#allocation4 + $0x80] sm:$0xff] %vm6824_vm9, %v6791_v9  ;;  %v10339_v26 = vadd.f32 %v15116_v4, %v6616_v49  ;;  %5642 = vperm.xlu1 %10667, %v5459_v14   ;;  %v9350_v3 = vpop.f32.mrb[133].mxu1  ;;  %6932 = vst.msk [vmem:[#allocation5 + $0x38] sm:$0xff] %vm6824_vm9, %v6931_v47  ;;  %v7231_v49 = vld [vmem:[%s17825_s6 + $0x448] sm:$0xff]  ;;  %v7233_v47 = vld [vmem:[%s17825_s6 + $0x458] sm:$0xff] }
 0x803   :  { %v9636_v3 = vpack.c.bf16 %v7228_v43, %v7226_v12  ;;  %v7255_v43 = vld [vmem:[%s17825_s6 + $0x508] sm:$0xff] }
 0x804   :  { %v6792_v18 = vmax.f32 %v10339_v26, 0.0 }
 0x805   :  { %v6621_v41 = vpop.f32.mrb[134].mxu1  ;;  %v6933_v46 = vld [vmem:[#allocation4 + $0x78] sm:$0xff] }
 0x806   :  { %6842 = vst.msk [vmem:[#allocation4 + $0x88] sm:$0xff] %vm6824_vm9, %v6792_v18  ;;  %v10340_v36 = vadd.f32 %v15116_v4, %v6621_v41  ;;  %5652 = vperm.xlu1 %10667, %v5461_v0   ;;  %6935 = vrot.lane.b32.xlu0 %v6933_v46, %s10749_s22  ;;  %v9353_v29 = vpop.f32.mrb[135].mxu1  ;;  %v9638_v0 = vpack.c.bf16 %v7233_v47, %v7231_v49  ;;  %v7230_v18 = vld [vmem:[%s17825_s6 + $0x440] sm:$0xff]  ;;  %v7232_v41 = vld [vmem:[%s17825_s6 + $0x450] sm:$0xff]  ;;  %v5404_v46 = vld [vmem:[#allocation2 + $0x158] sm:$0xff] }
 0x807   :  { %v7235_v29 = vld [vmem:[%s17825_s6 + $0x468] sm:$0xff] }
 0x808   :  { %v6793_v8 = vmax.f32 %v10340_v36, 0.0 }
 0x809   :  { %v6626_v44 = vpop.f32.mrb[136].mxu1  ;;  %v6939_v21 = vld [vmem:[#allocation4 + $0x80] sm:$0xff] }
 0x80a   :  { %6843 = vst.msk [vmem:[#allocation4 + $0x90] sm:$0xff] %vm6824_vm9, %v6793_v8  ;;  %v10341_v25 = vadd.f32 %v15116_v4, %v6626_v44  ;;  %5637 = vperm.xlu0 %10668, %v5458_v63   ;;  %v9356_v22 = vpop.f32.mrb[137].mxu1  ;;  %6940 = vst.msk [vmem:[#allocation5 + $0x40] sm:$0xff] %vm6824_vm9, %v6939_v21  ;;  %v7237_v63 = vld [vmem:[%s17825_s6 + $0x478] sm:$0xff]  ;;  %v9640_v44 = vpack.c.bf16 %v7232_v41, %v7230_v18  ;;  %v5407_v18 = vld [vmem:[#allocation2 + $0x170] sm:$0xff] }
 0x80b   :  { %v9642_v21 = vpack.c.bf16 %v7237_v63, %v7235_v29  ;;  %v7236_v22 = vld [vmem:[%s17825_s6 + $0x470] sm:$0xff] }
 0x80c   :  { %v6794_v61 = vmax.f32 %v10341_v25, 0.0  ;;  %v7234_v25 = vld [vmem:[%s17825_s6 + $0x460] sm:$0xff] }
 0x80d   :  { %v6631_v52 = vpop.f32.mrb[138].mxu1  ;;  %v6941_v2 = vld [vmem:[#allocation4 + $0x88] sm:$0xff] }
 0x80e   :  { %6844 = vst.msk [vmem:[#allocation4 + $0x98] sm:$0xff] %vm6824_vm9, %v6794_v61  ;;  %v10342_v19 = vadd.f32 %v15116_v4, %v6631_v52  ;;  %5647 = vperm.xlu0 %10668, %v5460_v30   ;;  %6943 = vrot.lane.b32.xlu1 %v6941_v2, %s10749_s22  ;;  %v9359_v15 = vpop.f32.mrb[139].mxu1  ;;  %v5401_v30 = vld [vmem:[#allocation2 + $0x140] sm:$0xff]  ;;  %v7239_v2 = vld [vmem:[%s17825_s6 + $0x488] sm:$0xff] }
 0x810   :  { %v6795_v1 = vmax.f32 %v10342_v19, 0.0  ;;  %v7241_v19 = vld [vmem:[%s17825_s6 + $0x498] sm:$0xff] }
 0x811   :  { %v6636_v33 = vpop.f32.mrb[140].mxu1  ;;  %v6947_v6 = vld [vmem:[#allocation4 + $0x90] sm:$0xff] }
 0x812   :  { %6845 = vst.msk [vmem:[#allocation4 + $0xa0] sm:$0xff] %vm6824_vm9, %v6795_v1  ;;  %v10343_v48 = vadd.f32 %v15116_v4, %v6636_v33  ;;  %5662 = vperm.xlu1 %10667, %v5463_v58   ;;  %v9362_v62 = vpop.f32.mrb[141].mxu1  ;;  %6948 = vst.msk [vmem:[#allocation5 + $0x48] sm:$0xff] %vm6824_vm9, %v6947_v6  ;;  %v9644_v58 = vpack.c.bf16 %v7236_v22, %v7234_v25  ;;  %v9646_v1 = vpack.c.bf16 %v7241_v19, %v7239_v2  ;;  %v7238_v33 = vld [vmem:[%s17825_s6 + $0x480] sm:$0xff]  ;;  %v7240_v6 = vld [vmem:[%s17825_s6 + $0x490] sm:$0xff] }
 0x813   :  { %v7260_v25 = vld [vmem:[%s17825_s6 + $0x530] sm:$0xff]  ;;  %v5410_v22 = vld [vmem:[#allocation2 + $0x188] sm:$0xff]  ;;  %v7265_v2 = vld [vmem:[%s17825_s6 + $0x558] sm:$0xff] }
 0x814   :  { %v6796_v50 = vmax.f32 %v10343_v48, 0.0  ;;  %v5403_v48 = vld [vmem:[#allocation2 + $0x150] sm:$0xff] }
 0x815   :  { %v6641_v17 = vpop.f32.mrb[142].mxu1  ;;  %v6949_v13 = vld [vmem:[#allocation4 + $0x98] sm:$0xff] }
 0x816   :  { %6846 = vst.msk [vmem:[#allocation4 + $0xa8] sm:$0xff] %vm6824_vm9, %v6796_v50  ;;  %v10344_v51 = vadd.f32 %v15116_v4, %v6641_v17  ;;  %5672 = vperm.xlu1 %10667, %v5465_v16   ;;  %6951 = vrot.lane.b32.xlu0 %v6949_v13, %s10749_s22  ;;  %v9365_v32 = vpop.f32.mrb[143].mxu1  ;;  %v7243_v16 = vld [vmem:[%s17825_s6 + $0x4a8] sm:$0xff]  ;;  %v7245_v50 = vld [vmem:[%s17825_s6 + $0x4b8] sm:$0xff]  ;;  %v9648_v13 = vpack.c.bf16 %v7240_v6, %v7238_v33  ;;  %v7262_v33 = vld [vmem:[%s17825_s6 + $0x540] sm:$0xff] }
 0x817   :  { %v7242_v32 = vld [vmem:[%s17825_s6 + $0x4a0] sm:$0xff]  ;;  %v7264_v6 = vld [vmem:[%s17825_s6 + $0x550] sm:$0xff] }
 0x818   :  { %v6797_v7 = vmax.f32 %v10344_v51, 0.0  ;;  %v9650_v51 = vpack.c.bf16 %v7245_v50, %v7243_v16  ;;  %v7267_v16 = vld [vmem:[%s17825_s6 + $0x568] sm:$0xff]  ;;  %v7269_v50 = vld [vmem:[%s17825_s6 + $0x578] sm:$0xff] }
 0x819   :  { %v6646_v53 = vpop.f32.mrb[144].mxu1  ;;  %v6955_v55 = vld [vmem:[#allocation4 + $0xa0] sm:$0xff] }
 0x81a   :  { %6847 = vst.msk [vmem:[#allocation4 + $0xb0] sm:$0xff] %vm6824_vm9, %v6797_v7  ;;  %v10345_v24 = vadd.f32 %v15116_v4, %v6646_v53  ;;  %5657 = vperm.xlu0 %10668, %v5462_v11   ;;  %v9368_v31 = vpop.f32.mrb[145].mxu1  ;;  %6956 = vst.msk [vmem:[#allocation5 + $0x50] sm:$0xff] %vm6824_vm9, %v6955_v55  ;;  %v7244_v11 = vld [vmem:[%s17825_s6 + $0x4b0] sm:$0xff]  ;;  %v5406_v7 = vld [vmem:[#allocation2 + $0x168] sm:$0xff] }
 0x81b   :  { %v7249_v31 = vld [vmem:[%s17825_s6 + $0x4d8] sm:$0xff] }
 0x81c   :  { %v6798_v60 = vmax.f32 %v10345_v24, 0.0  ;;  %v7247_v24 = vld [vmem:[%s17825_s6 + $0x4c8] sm:$0xff] }
 0x81d   :  { %v6957_v45 = vld [vmem:[#allocation4 + $0xa8] sm:$0xff] }
 0x81e   :  { %6848 = vst.msk [vmem:[#allocation4 + $0xb8] sm:$0xff] %vm6824_vm9, %v6798_v60  ;;  %5667 = vperm.xlu0 %10668, %v5464_v20   ;;  %6959 = vrot.lane.b32.xlu1 %v6957_v45, %s10749_s22  ;;  %v9652_v45 = vpack.c.bf16 %v7244_v11, %v7242_v32  ;;  %v9674_v32 = vpack.c.bf16 %v7269_v50, %v7267_v16  ;;  %v7266_v11 = vld [vmem:[%s17825_s6 + $0x560] sm:$0xff]  ;;  %v7291_v16 = vld [vmem:[%s17825_s6 + $0x628] sm:$0xff]  ;;  %v7293_v50 = vld [vmem:[%s17825_s6 + $0x638] sm:$0xff] }
 0x821   :  { %v6963_v4 = vld [vmem:[#allocation4 + $0xb0] sm:$0xff] }
 0x822   :  { %5682 = vperm.xlu1 %10667, %v5467_v56   ;;  %6964 = vst.msk [vmem:[#allocation5 + $0x58] sm:$0xff] %vm6824_vm9, %v6963_v4  ;;  %v9654_v56 = vpack.c.bf16 %v7249_v31, %v7247_v24  ;;  %v7246_v4 = vld [vmem:[%s17825_s6 + $0x4c0] sm:$0xff]  ;;  %v7271_v31 = vld [vmem:[%s17825_s6 + $0x588] sm:$0xff] }
 0x825   :  { %v6965_v10 = vld [vmem:[#allocation4 + $0xb8] sm:$0xff] }
 0x826   :  { %5692 = vperm.xlu1 %10667, %v5469_v35   ;;  %6967 = vrot.lane.b32.xlu0 %v6965_v10, %s10749_s22  ;;  %v7248_v35 = vld [vmem:[%s17825_s6 + $0x4d0] sm:$0xff]  ;;  %v5408_v10 = vld [vmem:[#allocation2 + $0x178] sm:$0xff] }
 0x827   :  { %v9656_v34 = vpack.c.bf16 %v7248_v35, %v7246_v4  ;;  %v7270_v35 = vld [vmem:[%s17825_s6 + $0x580] sm:$0xff] }
 0x82a   :  { %5677 = vperm.xlu0 %10668, %v5466_v38  }
 0x82e   :  { %5687 = vperm.xlu0 %10668, %v5468_v27   ;;  %v7251_v27 = vld [vmem:[%s17825_s6 + $0x4e8] sm:$0xff] }
 0x850   :  { %v6896_v28 = vpop.permute.xlu1 %6895 }
 0x851   :  { %6898 = vst.msk [vmem:[#allocation5 + $0x10] sm:$0xff] %vm6881_vm10, %v6896_v28  ;;  %v7253_v28 = vld [vmem:[%s17825_s6 + $0x4f8] sm:$0xff] }
 0x852   :  { %v9658_v57 = vpack.c.bf16 %v7253_v28, %v7251_v27  ;;  %v7275_v28 = vld [vmem:[%s17825_s6 + $0x5a8] sm:$0xff] }
 0x858   :  { %v6904_v37 = vpop.permute.xlu0 %6903  ;;  %v7071_v9 = vld [vmem:[#allocation5 + $0x10] sm:$0xff] }
 0x859   :  { %6906 = vst.msk [vmem:[#allocation5 + $0x18] sm:$0xff] %vm6881_vm10, %v6904_v37 }
 0x860   :  { %v7072_v42 = vld [vmem:[#allocation5 + $0x18] sm:$0xff] }
 0x861   :  { %v5603_v14 = vpop.permute.xlu1 %5602  ;;  %8028 = vmatprep.mubr.f32.mxu0 %v7072_v42 }
 0x862   :  { %v5745_v26 = vmul.f32 %v5603_v14, %v5402_v40  ;;  %8029 = vmatmul.mubr.f32.vlgmr.msra.gmra.mrb[0].mxu0 %v7071_v9  ;;  %v7250_v40 = vld [vmem:[%s17825_s6 + $0x4e0] sm:$0xff]  ;;  %v7257_v14 = vld [vmem:[%s17825_s6 + $0x518] sm:$0xff] }
 0x863   :  { %9633 = vmatpush1.bf16.msra.mxu0 %v9632_v23  ;;  %v7252_v23 = vld [vmem:[%s17825_s6 + $0x4f0] sm:$0xff] }
 0x864   :  { %5794 = vst.msk [vmem:[#allocation3 + $0x268] sm:$0xff] %vm604_vm3, %v5745_v26  ;;  %9635 = vmatprep.subr.bf16.mxu0 %v9634_v39  ;;  %v9660_v47 = vpack.c.bf16 %v7252_v23, %v7250_v40  ;;  %v9662_v26 = vpack.c.bf16 %v7257_v14, %v7255_v43  ;;  %v7274_v40 = vld [vmem:[%s17825_s6 + $0x5a0] sm:$0xff]  ;;  %v7276_v23 = vld [vmem:[%s17825_s6 + $0x5b0] sm:$0xff]  ;;  %v7279_v43 = vld [vmem:[%s17825_s6 + $0x5c8] sm:$0xff] }
 0x865   :  { %v5613_v36 = vpop.permute.xlu1 %5612  ;;  %v7281_v14 = vld [vmem:[%s17825_s6 + $0x5d8] sm:$0xff] }
 0x866   :  { %v5747_v8 = vmul.f32 %v5613_v36, %v5404_v46  ;;  %v7259_v46 = vld [vmem:[%s17825_s6 + $0x528] sm:$0xff]  ;;  %v7261_v36 = vld [vmem:[%s17825_s6 + $0x538] sm:$0xff] }
 0x867   :  { %9637 = vmatpush1.bf16.msra.mxu0 %v9636_v3  ;;  %v7254_v3 = vld [vmem:[%s17825_s6 + $0x500] sm:$0xff] }
 0x868   :  { %5796 = vst.msk [vmem:[#allocation3 + $0x298] sm:$0xff] %vm604_vm3, %v5747_v8  ;;  %9639 = vmatprep.subr.bf16.mxu0 %v9638_v0  ;;  %v7256_v0 = vld [vmem:[%s17825_s6 + $0x510] sm:$0xff] }
 0x869   :  { %v5598_v61 = vpop.permute.xlu0 %5597  ;;  %v6912_v52 = vpop.permute.xlu1 %6911  ;;  %v9664_v8 = vpack.c.bf16 %v7256_v0, %v7254_v3  ;;  %v7278_v3 = vld [vmem:[%s17825_s6 + $0x5c0] sm:$0xff]  ;;  %v7280_v0 = vld [vmem:[%s17825_s6 + $0x5d0] sm:$0xff] }
 0x86a   :  { %v5744_v15 = vmul.f32 %v5598_v61, %v5401_v30  ;;  %6914 = vst.msk [vmem:[#allocation5 + $0x20] sm:$0xff] %vm6881_vm10, %v6912_v52  ;;  %v7263_v52 = vld [vmem:[%s17825_s6 + $0x548] sm:$0xff] }
 0x86b   :  { %9641 = vmatpush1.bf16.msra.mxu0 %v9640_v44  ;;  %v5895_v5 = vld [vmem:[#allocation3 + $0x268] sm:$0xff]  ;;  %v9666_v44 = vpack.c.bf16 %v7261_v36, %v7259_v46  ;;  %v7283_v46 = vld [vmem:[%s17825_s6 + $0x5e8] sm:$0xff]  ;;  %v7285_v36 = vld [vmem:[%s17825_s6 + $0x5f8] sm:$0xff] }
 0x86c   :  { %5793 = vst.msk [vmem:[#allocation3 + $0x250] sm:$0xff] %vm604_vm3, %v5744_v15  ;;  %9643 = vmatprep.subr.bf16.mxu0 %v9642_v21  ;;  %v7258_v21 = vld [vmem:[%s17825_s6 + $0x520] sm:$0xff] }
 0x86d   :  { %v5608_v62 = vpop.permute.xlu0 %5607 }
 0x86e   :  { %v5746_v17 = vmul.f32 %v5608_v62, %v5403_v48  ;;  %v5412_v48 = vld [vmem:[#allocation2 + $0x198] sm:$0xff] }
 0x86f   :  { %9645 = vmatpush1.bf16.msra.mxu0 %v9644_v58  ;;  %v5901_v63 = vld [vmem:[#allocation3 + $0x298] sm:$0xff]  ;;  %v9668_v58 = vpack.c.bf16 %v7260_v25, %v7258_v21  ;;  %v7284_v25 = vld [vmem:[%s17825_s6 + $0x5f0] sm:$0xff] }
 0x870   :  { %5795 = vst.msk [vmem:[#allocation3 + $0x280] sm:$0xff] %vm604_vm3, %v5746_v17  ;;  %9647 = vmatprep.subr.bf16.mxu0 %v9646_v1  ;;  %v9670_v1 = vpack.c.bf16 %v7265_v2, %v7263_v52  ;;  %v7282_v21 = vld [vmem:[%s17825_s6 + $0x5e0] sm:$0xff]  ;;  %v7287_v52 = vld [vmem:[%s17825_s6 + $0x608] sm:$0xff]  ;;  %v7289_v2 = vld [vmem:[%s17825_s6 + $0x618] sm:$0xff] }
 0x871   :  { %v5623_v53 = vpop.permute.xlu1 %5622  ;;  %v6920_v55 = vpop.permute.xlu0 %6919 }
 0x872   :  { %v5749_v20 = vmul.f32 %v5623_v53, %v5406_v7  ;;  %6922 = vst.msk [vmem:[#allocation5 + $0x28] sm:$0xff] %vm6881_vm10, %v6920_v55  ;;  %v7268_v7 = vld [vmem:[%s17825_s6 + $0x570] sm:$0xff]  ;;  %v5409_v53 = vld [vmem:[#allocation2 + $0x180] sm:$0xff] }
 0x873   :  { %9649 = vmatpush1.bf16.msra.mxu0 %v9648_v13  ;;  %v5892_v60 = vld [vmem:[#allocation3 + $0x250] sm:$0xff] }
 0x874   :  { %5798 = vst.msk [vmem:[#allocation3 + $0x2c8] sm:$0xff] %vm604_vm3, %v5749_v20  ;;  %9370 = vmatmul.mubr.msk.f32.gmra.mrb[146].mxu1 %vm604_vm3, %v5892_v60  ;;  %9651 = vmatprep.subr.bf16.mxu0 %v9650_v51  ;;  %v9672_v51 = vpack.c.bf16 %v7264_v6, %v7262_v33  ;;  %v7273_v20 = vld [vmem:[%s17825_s6 + $0x598] sm:$0xff]  ;;  %v7286_v33 = vld [vmem:[%s17825_s6 + $0x600] sm:$0xff]  ;;  %v7288_v6 = vld [vmem:[%s17825_s6 + $0x610] sm:$0xff] }
 0x875   :  { %v5633_v38 = vpop.permute.xlu1 %5632  ;;  %9372 = vmatprep.mubr.msk.f32.mxu1 %vm10739_vm4, %v18082_v54  ;;  %v9678_v4 = vpack.c.bf16 %v7273_v20, %v7271_v31  ;;  %v7295_v20 = vld [vmem:[%s17825_s6 + $0x648] sm:$0xff] }
 0x876   :  { %v5751_v37 = vmul.f32 %v5633_v38, %v5408_v10  ;;  %v7272_v10 = vld [vmem:[%s17825_s6 + $0x590] sm:$0xff] }
 0x877   :  { %9653 = vmatpush1.bf16.msra.mxu0 %v9652_v45  ;;  %v5898_v49 = vld [vmem:[#allocation3 + $0x280] sm:$0xff]  ;;  %v5411_v38 = vld [vmem:[#allocation2 + $0x190] sm:$0xff] }
 0x878   :  { %5800 = vst.msk [vmem:[#allocation3 + $0x2f8] sm:$0xff] %vm604_vm3, %v5751_v37  ;;  %9373 = vmatmul.mubr.msk.f32.gmra.mrb[148].mxu1 %vm604_vm3, %v5895_v5  ;;  %9655 = vmatprep.subr.bf16.mxu0 %v9654_v56  ;;  %v9676_v56 = vpack.c.bf16 %v7268_v7, %v7266_v11  ;;  %v7277_v37 = vld [vmem:[%s17825_s6 + $0x5b8] sm:$0xff]  ;;  %v9698_v11 = vpack.c.bf16 %v7293_v50, %v7291_v16  ;;  %v7290_v7 = vld [vmem:[%s17825_s6 + $0x620] sm:$0xff]  ;;  %v7316_v50 = vld [vmem:[%s17825_s6 + $0x6f0] sm:$0xff] }
 0x879   :  { %v5618_v42 = vpop.permute.xlu0 %5617  ;;  %v6928_v39 = vpop.permute.xlu1 %6927  ;;  %v7074_v12 = vld [vmem:[#allocation5 + $0x28] sm:$0xff]  ;;  %9375 = vmatprep.mubr.msk.f32.mxu1 %vm10739_vm4, %v18082_v54  ;;  %v7314_v16 = vld [vmem:[%s17825_s6 + $0x6e0] sm:$0xff] }
 0x87a   :  { %v5748_v9 = vmul.f32 %v5618_v42, %v5405_v59  ;;  %6930 = vst.msk [vmem:[#allocation5 + $0x30] sm:$0xff] %vm6881_vm10, %v6928_v39  ;;  %8099 = vmatprep.mubr.f32.mxu0 %v7074_v12  ;;  %v9680_v59 = vpack.c.bf16 %v7272_v10, %v7270_v35  ;;  %v5414_v42 = vld [vmem:[#allocation2 + $0x1a8] sm:$0xff]  ;;  %v5420_v35 = vld [vmem:[#allocation2 + $0x1d8] sm:$0xff] }
 0x87b   :  { %9657 = vmatpush1.bf16.msra.mxu0 %v9656_v34  ;;  %v5907_v13 = vld [vmem:[#allocation3 + $0x2c8] sm:$0xff] }
 0x87c   :  { %5797 = vst.msk [vmem:[#allocation3 + $0x2b0] sm:$0xff] %vm604_vm3, %v5748_v9  ;;  %9376 = vmatmul.mubr.msk.f32.gmra.mrb[150].mxu1 %vm604_vm3, %v5898_v49  ;;  %9659 = vmatprep.subr.bf16.mxu0 %v9658_v57  ;;  %v9682_v57 = vpack.c.bf16 %v7277_v37, %v7275_v28  ;;  %v7296_v28 = vld [vmem:[%s17825_s6 + $0x650] sm:$0xff] }
 0x87d   :  { %v5628_v41 = vpop.permute.xlu0 %5627  ;;  %9378 = vmatprep.mubr.msk.f32.mxu1 %vm10739_vm4, %v18082_v54 }
 0x87e   :  { %v5750_v29 = vmul.f32 %v5628_v41, %v5407_v18  ;;  %v5416_v18 = vld [vmem:[#allocation2 + $0x1b8] sm:$0xff] }
 0x87f   :  { %9661 = vmatpush1.bf16.msra.mxu0 %v9660_v47  ;;  %v5913_v34 = vld [vmem:[#allocation3 + $0x2f8] sm:$0xff]  ;;  %v9684_v47 = vpack.c.bf16 %v7276_v23, %v7274_v40 }
 0x880   :  { %5799 = vst.msk [vmem:[#allocation3 + $0x2e0] sm:$0xff] %vm604_vm3, %v5750_v29  ;;  %9379 = vmatmul.mubr.msk.f32.gmra.mrb[152].mxu1 %vm604_vm3, %v5901_v63  ;;  %9663 = vmatprep.subr.bf16.mxu0 %v9662_v26  ;;  %v9686_v26 = vpack.c.bf16 %v7281_v14, %v7279_v43  ;;  %v7303_v14 = vld [vmem:[%s17825_s6 + $0x688] sm:$0xff] }
 0x881   :  { %v5643_v30 = vpop.permute.xlu1 %5642  ;;  %v6936_v61 = vpop.permute.xlu0 %6935  ;;  %9381 = vmatprep.mubr.msk.f32.mxu1 %vm10739_vm4, %v18082_v54 }
 0x882   :  { %v5753_v19 = vmul.f32 %v5643_v30, %v5410_v22  ;;  %6938 = vst.msk [vmem:[#allocation5 + $0x38] sm:$0xff] %vm6881_vm10, %v6936_v61  ;;  %v5413_v22 = vld [vmem:[#allocation2 + $0x1a0] sm:$0xff] }
 0x883   :  { %9665 = vmatpush1.bf16.msra.mxu0 %v9664_v8  ;;  %v5904_v15 = vld [vmem:[#allocation3 + $0x2b0] sm:$0xff]  ;;  %v9688_v8 = vpack.c.bf16 %v7280_v0, %v7278_v3 }
 0x884   :  { %5802 = vst.msk [vmem:[#allocation3 + $0x328] sm:$0xff] %vm604_vm3, %v5753_v19  ;;  %9382 = vmatmul.mubr.msk.f32.gmra.mrb[154].mxu1 %vm604_vm3, %v5904_v15  ;;  %9667 = vmatprep.subr.bf16.mxu0 %v9666_v44  ;;  %v9690_v44 = vpack.c.bf16 %v7285_v36, %v7283_v46  ;;  %v7307_v36 = vld [vmem:[%s17825_s6 + $0x6a8] sm:$0xff] }
 0x885   :  { %v5653_v62 = vpop.permute.xlu1 %5652  ;;  %9384 = vmatprep.mubr.msk.f32.mxu1 %vm10739_vm4, %v18082_v54 }
 0x886   :  { %v5755_v17 = vmul.f32 %v5653_v62, %v5412_v48  ;;  %v5415_v48 = vld [vmem:[#allocation2 + $0x1b0] sm:$0xff] }
 0x887   :  { %9669 = vmatpush1.bf16.msra.mxu0 %v9668_v58  ;;  %v5910_v45 = vld [vmem:[#allocation3 + $0x2e0] sm:$0xff]  ;;  %v9692_v58 = vpack.c.bf16 %v7284_v25, %v7282_v21  ;;  %v7306_v25 = vld [vmem:[%s17825_s6 + $0x6a0] sm:$0xff] }
 0x888   :  { %5804 = vst.msk [vmem:[#allocation3 + $0x358] sm:$0xff] %vm604_vm3, %v5755_v17  ;;  %9385 = vmatmul.mubr.msk.f32.gmra.mrb[156].mxu1 %vm604_vm3, %v5907_v13  ;;  %9671 = vmatprep.subr.bf16.mxu0 %v9670_v1  ;;  %v9694_v1 = vpack.c.bf16 %v7289_v2, %v7287_v52 }
 0x889   :  { %v5638_v55 = vpop.permute.xlu0 %5637  ;;  %v6944_v24 = vpop.permute.xlu1 %6943  ;;  %9387 = vmatprep.mubr.msk.f32.mxu1 %vm10739_vm4, %v18082_v54 }
 0x88a   :  { %v5752_v60 = vmul.f32 %v5638_v55, %v5409_v53  ;;  %6946 = vst.msk [vmem:[#allocation5 + $0x40] sm:$0xff] %vm6881_vm10, %v6944_v24  ;;  %v7292_v53 = vld [vmem:[%s17825_s6 + $0x630] sm:$0xff]  ;;  %v7073_v55 = vld [vmem:[#allocation5 + $0x20] sm:$0xff] }
 0x88b   :  { %9673 = vmatpush1.bf16.msra.mxu0 %v9672_v51  ;;  %v5919_v63 = vld [vmem:[#allocation3 + $0x328] sm:$0xff]  ;;  %v5418_v51 = vld [vmem:[#allocation2 + $0x1c8] sm:$0xff]  ;;  %v9700_v10 = vpack.c.bf16 %v7292_v53, %v7290_v7  ;;  %v7318_v7 = vld [vmem:[%s17825_s6 + $0x700] sm:$0xff] }
 0x88c   :  { %5801 = vst.msk [vmem:[#allocation3 + $0x310] sm:$0xff] %vm604_vm3, %v5752_v60  ;;  %9388 = vmatmul.mubr.msk.f32.gmra.mrb[158].mxu1 %vm604_vm3, %v5910_v45  ;;  %9675 = vmatprep.subr.bf16.mxu0 %v9674_v32  ;;  %v9696_v32 = vpack.c.bf16 %v7288_v6, %v7286_v33  ;;  %v7297_v60 = vld [vmem:[%s17825_s6 + $0x658] sm:$0xff]  ;;  %v7320_v53 = vld [vmem:[%s17825_s6 + $0x710] sm:$0xff] }
 0x88d   :  { %v5648_v27 = vpop.permute.xlu0 %5647  ;;  %9390 = vmatprep.mubr.msk.f32.mxu1 %vm10739_vm4, %v18082_v54  ;;  %v7317_v33 = vld [vmem:[%s17825_s6 + $0x6f8] sm:$0xff] }
 0x88e   :  { %v5754_v5 = vmul.f32 %v5648_v27, %v5411_v38  ;;  %v9702_v38 = vpack.c.bf16 %v7297_v60, %v7295_v20  ;;  %v7294_v27 = vld [vmem:[%s17825_s6 + $0x640] sm:$0xff]  ;;  %v9728_v20 = vpack.c.bf16 %v7320_v53, %v7318_v7  ;;  %v7360_v53 = vld [vmem:[%s17825_s6 + $0x850] sm:$0xff] }
 0x88f   :  { %9677 = vmatpush1.bf16.msra.mxu0 %v9676_v56  ;;  %v5925_v13 = vld [vmem:[#allocation3 + $0x358] sm:$0xff]  ;;  %v9704_v40 = vpack.c.bf16 %v7296_v28, %v7294_v27  ;;  %v7328_v28 = vld [vmem:[%s17825_s6 + $0x750] sm:$0xff] }
 0x890   :  { %5803 = vst.msk [vmem:[#allocation3 + $0x340] sm:$0xff] %vm604_vm3, %v5754_v5  ;;  %9391 = vmatmul.mubr.msk.f32.gmra.mrb[160].mxu1 %vm604_vm3, %v5913_v34  ;;  %9679 = vmatprep.subr.bf16.mxu0 %v9678_v4  ;;  %v7076_v56 = vld [vmem:[#allocation5 + $0x38] sm:$0xff]  ;;  %v7299_v5 = vld [vmem:[%s17825_s6 + $0x668] sm:$0xff]  ;;  %v7301_v34 = vld [vmem:[%s17825_s6 + $0x678] sm:$0xff] }
 0x891   :  { %v5663_v39 = vpop.permute.xlu1 %5662  ;;  %v6952_v12 = vpop.permute.xlu0 %6951  ;;  %9393 = vmatprep.mubr.msk.f32.mxu1 %vm10739_vm4, %v18082_v54  ;;  %v9706_v23 = vpack.c.bf16 %v7301_v34, %v7299_v5  ;;  %v7326_v27 = vld [vmem:[%s17825_s6 + $0x740] sm:$0xff]  ;;  %v7333_v5 = vld [vmem:[%s17825_s6 + $0x778] sm:$0xff] }
 0x892   :  { %v5757_v9 = vmul.f32 %v5663_v39, %v5414_v42  ;;  %6954 = vst.msk [vmem:[#allocation5 + $0x48] sm:$0xff] %vm6881_vm10, %v6952_v12  ;;  %v7298_v42 = vld [vmem:[%s17825_s6 + $0x660] sm:$0xff]  ;;  %v7300_v39 = vld [vmem:[%s17825_s6 + $0x670] sm:$0xff]  ;;  %v9736_v34 = vpack.c.bf16 %v7328_v28, %v7326_v27  ;;  %v7371_v28 = vld [vmem:[%s17825_s6 + $0x8a8] sm:$0xff] }
 0x893   :  { %9681 = vmatpush1.bf16.msra.mxu0 %v9680_v59  ;;  %v5916_v49 = vld [vmem:[#allocation3 + $0x310] sm:$0xff]  ;;  %v5417_v12 = vld [vmem:[#allocation2 + $0x1c0] sm:$0xff]  ;;  %v9708_v3 = vpack.c.bf16 %v7300_v39, %v7298_v42  ;;  %v7368_v27 = vld [vmem:[%s17825_s6 + $0x890] sm:$0xff] }
 0x894   :  { %5806 = vst.msk [vmem:[#allocation3 + $0x388] sm:$0xff] %vm604_vm3, %v5757_v9  ;;  %9394 = vmatmul.mubr.msk.f32.gmra.mrb[162].mxu1 %vm604_vm3, %v5916_v49  ;;  %9683 = vmatprep.subr.bf16.mxu0 %v9682_v57  ;;  %v7305_v9 = vld [vmem:[%s17825_s6 + $0x698] sm:$0xff]  ;;  %v7358_v7 = vld [vmem:[%s17825_s6 + $0x840] sm:$0xff] }
 0x895   :  { %v5673_v41 = vpop.permute.xlu1 %5672  ;;  %9396 = vmatprep.mubr.msk.f32.mxu1 %vm10739_vm4, %v18082_v54  ;;  %v9710_v0 = vpack.c.bf16 %v7305_v9, %v7303_v14  ;;  %v7337_v42 = vld [vmem:[%s17825_s6 + $0x798] sm:$0xff]  ;;  %v7336_v14 = vld [vmem:[%s17825_s6 + $0x790] sm:$0xff]  ;;  %v7339_v9 = vld [vmem:[%s17825_s6 + $0x7a8] sm:$0xff] }
 0x896   :  { %v5759_v29 = vmul.f32 %v5673_v41, %v5416_v18  ;;  %v7302_v18 = vld [vmem:[%s17825_s6 + $0x680] sm:$0xff]  ;;  %v7304_v41 = vld [vmem:[%s17825_s6 + $0x690] sm:$0xff] }
 0x897   :  { %9685 = vmatpush1.bf16.msra.mxu0 %v9684_v47  ;;  %v5922_v15 = vld [vmem:[#allocation3 + $0x340] sm:$0xff] }
 0x898   :  { %5808 = vst.msk [vmem:[#allocation3 + $0x3b8] sm:$0xff] %vm604_vm3, %v5759_v29  ;;  %9397 = vmatmul.mubr.msk.f32.gmra.mrb[164].mxu1 %vm604_vm3, %v5919_v63  ;;  %9687 = vmatprep.subr.bf16.mxu0 %v9686_v26  ;;  %v5419_v26 = vld [vmem:[#allocation2 + $0x1d0] sm:$0xff]  ;;  %v7309_v29 = vld [vmem:[%s17825_s6 + $0x6b8] sm:$0xff] }
 0x899   :  { %v5658_v30 = vpop.permute.xlu0 %5657  ;;  %v6960_v61 = vpop.permute.xlu1 %6959  ;;  %9399 = vmatprep.mubr.msk.f32.mxu1 %vm10739_vm4, %v18082_v54  ;;  %v9714_v21 = vpack.c.bf16 %v7309_v29, %v7307_v36  ;;  %v7342_v29 = vld [vmem:[%s17825_s6 + $0x7c0] sm:$0xff] }
 0x89a   :  { %v5756_v19 = vmul.f32 %v5658_v30, %v5413_v22  ;;  %6962 = vst.msk [vmem:[#allocation5 + $0x50] sm:$0xff] %vm6881_vm10, %v6960_v61  ;;  %v7308_v22 = vld [vmem:[%s17825_s6 + $0x6b0] sm:$0xff]  ;;  %v7311_v30 = vld [vmem:[%s17825_s6 + $0x6c8] sm:$0xff]  ;;  %v7313_v61 = vld [vmem:[%s17825_s6 + $0x6d8] sm:$0xff] }
 0x89b   :  { %9689 = vmatpush1.bf16.msra.mxu0 %v9688_v8  ;;  %v5931_v57 = vld [vmem:[#allocation3 + $0x388] sm:$0xff]  ;;  %v9716_v2 = vpack.c.bf16 %v7308_v22, %v7306_v25  ;;  %v7346_v22 = vld [vmem:[%s17825_s6 + $0x7e0] sm:$0xff] }
 0x89c   :  { %5805 = vst.msk [vmem:[#allocation3 + $0x370] sm:$0xff] %vm604_vm3, %v5756_v19  ;;  %9400 = vmatmul.mubr.msk.f32.gmra.mrb[166].mxu1 %vm604_vm3, %v5922_v15  ;;  %9691 = vmatprep.subr.bf16.mxu0 %v9690_v44  ;;  %v9712_v44 = vpack.c.bf16 %v7304_v41, %v7302_v18  ;;  %v9718_v19 = vpack.c.bf16 %v7313_v61, %v7311_v30  ;;  %v7310_v15 = vld [vmem:[%s17825_s6 + $0x6c0] sm:$0xff]  ;;  %v7343_v18 = vld [vmem:[%s17825_s6 + $0x7c8] sm:$0xff]  ;;  %v7345_v41 = vld [vmem:[%s17825_s6 + $0x7d8] sm:$0xff] }
 0x89d   :  { %v5668_v62 = vpop.permute.xlu0 %5667  ;;  %9402 = vmatprep.mubr.msk.f32.mxu1 %vm10739_vm4, %v18082_v54  ;;  %v9750_v36 = vpack.c.bf16 %v7345_v41, %v7343_v18  ;;  %v7348_v30 = vld [vmem:[%s17825_s6 + $0x7f0] sm:$0xff]  ;;  %v7351_v61 = vld [vmem:[%s17825_s6 + $0x808] sm:$0xff]  ;;  %v7385_v18 = vld [vmem:[%s17825_s6 + $0x918] sm:$0xff] }
 0x89e   :  { %v5758_v17 = vmul.f32 %v5668_v62, %v5415_v48 }
 0x89f   :  { %9693 = vmatpush1.bf16.msra.mxu0 %v9692_v58  ;;  %v5937_v8 = vld [vmem:[#allocation3 + $0x3b8] sm:$0xff]  ;;  %v7312_v58 = vld [vmem:[%s17825_s6 + $0x6d0] sm:$0xff] }
 0x8a0   :  { %5807 = vst.msk [vmem:[#allocation3 + $0x3a0] sm:$0xff] %vm604_vm3, %v5758_v17  ;;  %9403 = vmatmul.mubr.msk.f32.gmra.mrb[168].mxu1 %vm604_vm3, %v5925_v13  ;;  %9695 = vmatprep.subr.bf16.mxu0 %v9694_v1  ;;  %v7315_v1 = vld [vmem:[%s17825_s6 + $0x6e8] sm:$0xff]  ;;  %v9720_v48 = vpack.c.bf16 %v7312_v58, %v7310_v15  ;;  %v7321_v13 = vld [vmem:[%s17825_s6 + $0x718] sm:$0xff]  ;;  %v7350_v15 = vld [vmem:[%s17825_s6 + $0x800] sm:$0xff] }
 0x8a1   :  { %v5683_v24 = vpop.permute.xlu1 %5682  ;;  %v6968_v31 = vpop.permute.xlu0 %6967  ;;  %9405 = vmatprep.mubr.msk.f32.mxu1 %vm10739_vm4, %v18082_v54  ;;  %v9722_v62 = vpack.c.bf16 %v7317_v33, %v7315_v1  ;;  %v7319_v17 = vld [vmem:[%s17825_s6 + $0x708] sm:$0xff]  ;;  %v7352_v58 = vld [vmem:[%s17825_s6 + $0x810] sm:$0xff]  ;;  %v7357_v33 = vld [vmem:[%s17825_s6 + $0x838] sm:$0xff] }
 0x8a2   :  { %8100 = vmatmul.mubr.f32.vlgmr.msra.gmra.mrb[0].mxu0 %v7073_v55  ;;  %v5761_v45 = vmul.f32 %v5683_v24, %v5418_v51  ;;  %6970 = vst.msk [vmem:[#allocation5 + $0x58] sm:$0xff] %vm6881_vm10, %v6968_v31  ;;  %v7323_v55 = vld [vmem:[%s17825_s6 + $0x728] sm:$0xff]  ;;  %v7325_v24 = vld [vmem:[%s17825_s6 + $0x738] sm:$0xff] }
 0x8a3   :  { %9697 = vmatpush1.bf16.msra.mxu0 %v9696_v32  ;;  %8170 = vmatprep.mubr.f32.mxu0 %v7076_v56  ;;  %v5928_v4 = vld [vmem:[#allocation3 + $0x370] sm:$0xff]  ;;  %v9724_v32 = vpack.c.bf16 %v7316_v50, %v7314_v16  ;;  %v9730_v60 = vpack.c.bf16 %v7325_v24, %v7323_v55  ;;  %v7324_v56 = vld [vmem:[%s17825_s6 + $0x730] sm:$0xff]  ;;  %v7355_v1 = vld [vmem:[%s17825_s6 + $0x828] sm:$0xff] }
 0x8a4   :  { %5810 = vst.msk [vmem:[#allocation3 + $0x3e8] sm:$0xff] %vm604_vm3, %v5761_v45  ;;  %9406 = vmatmul.mubr.msk.f32.gmra.mrb[170].mxu1 %vm604_vm3, %v5928_v4  ;;  %9699 = vmatprep.subr.bf16.mxu0 %v9698_v11  ;;  %v9726_v11 = vpack.c.bf16 %v7321_v13, %v7319_v17  ;;  %v7322_v45 = vld [vmem:[%s17825_s6 + $0x720] sm:$0xff]  ;;  %v7327_v4 = vld [vmem:[%s17825_s6 + $0x748] sm:$0xff]  ;;  %v7356_v16 = vld [vmem:[%s17825_s6 + $0x830] sm:$0xff] }
 0x8a5   :  { %v5693_v37 = vpop.permute.xlu1 %5692  ;;  %9408 = vmatprep.mubr.msk.f32.mxu1 %vm10739_vm4, %v18082_v54  ;;  %v7075_v50 = vld [vmem:[#allocation5 + $0x30] sm:$0xff]  ;;  %v7359_v17 = vld [vmem:[%s17825_s6 + $0x848] sm:$0xff] }
 0x8a6   :  { %v5763_v59 = vmul.f32 %v5693_v37, %v5420_v35  ;;  %v7329_v35 = vld [vmem:[%s17825_s6 + $0x758] sm:$0xff]  ;;  %v7331_v37 = vld [vmem:[%s17825_s6 + $0x768] sm:$0xff] }
 0x8a7   :  { %9701 = vmatpush1.bf16.msra.mxu0 %v9700_v10  ;;  %v5934_v47 = vld [vmem:[#allocation3 + $0x3a0] sm:$0xff]  ;;  %v9732_v10 = vpack.c.bf16 %v7324_v56, %v7322_v45  ;;  %v7361_v13 = vld [vmem:[%s17825_s6 + $0x858] sm:$0xff]  ;;  %v7364_v45 = vld [vmem:[%s17825_s6 + $0x870] sm:$0xff] }
 0x8a8   :  { %5812 = vst.msk [vmem:[#allocation3 + $0x418] sm:$0xff] %vm604_vm3, %v5763_v59  ;;  %9409 = vmatmul.mubr.msk.f32.gmra.mrb[172].mxu1 %vm604_vm3, %v5931_v57  ;;  %9703 = vmatprep.subr.bf16.mxu0 %v9702_v38  ;;  %v9734_v38 = vpack.c.bf16 %v7329_v35, %v7327_v4  ;;  %v9738_v59 = vpack.c.bf16 %v7333_v5, %v7331_v37  ;;  %v7330_v57 = vld [vmem:[%s17825_s6 + $0x760] sm:$0xff]  ;;  %v7363_v55 = vld [vmem:[%s17825_s6 + $0x868] sm:$0xff]  ;;  %v7365_v24 = vld [vmem:[%s17825_s6 + $0x878] sm:$0xff] }
 0x8a9   :  { %v5678_v43 = vpop.permute.xlu0 %5677  ;;  %9411 = vmatprep.mubr.msk.f32.mxu1 %vm10739_vm4, %v18082_v54  ;;  %v7367_v56 = vld [vmem:[%s17825_s6 + $0x888] sm:$0xff]  ;;  %v7369_v4 = vld [vmem:[%s17825_s6 + $0x898] sm:$0xff] }
 0x8aa   :  { %v5760_v49 = vmul.f32 %v5678_v43, %v5417_v12  ;;  %v7334_v43 = vld [vmem:[%s17825_s6 + $0x780] sm:$0xff]  ;;  %v7373_v37 = vld [vmem:[%s17825_s6 + $0x8b8] sm:$0xff] }
 0x8ab   :  { %9705 = vmatpush1.bf16.msra.mxu0 %v9704_v40  ;;  %v5943_v6 = vld [vmem:[#allocation3 + $0x3e8] sm:$0xff] }
 0x8ac   :  { %5809 = vst.msk [vmem:[#allocation3 + $0x3d0] sm:$0xff] %vm604_vm3, %v5760_v49  ;;  %9412 = vmatmul.mubr.msk.f32.gmra.mrb[174].mxu1 %vm604_vm3, %v5934_v47  ;;  %9707 = vmatprep.subr.bf16.mxu0 %v9706_v23  ;;  %v7332_v40 = vld [vmem:[%s17825_s6 + $0x770] sm:$0xff]  ;;  %v7335_v23 = vld [vmem:[%s17825_s6 + $0x788] sm:$0xff]  ;;  %v7341_v49 = vld [vmem:[%s17825_s6 + $0x7b8] sm:$0xff]  ;;  %v9744_v47 = vpack.c.bf16 %v7336_v14, %v7334_v43 }
 0x8ad   :  { %v5688_v46 = vpop.permute.xlu0 %5687  ;;  %9414 = vmatprep.mubr.msk.f32.mxu1 %vm10739_vm4, %v18082_v54  ;;  %v9740_v39 = vpack.c.bf16 %v7332_v40, %v7330_v57  ;;  %v9742_v12 = vpack.c.bf16 %v7337_v42, %v7335_v23  ;;  %v7372_v57 = vld [vmem:[%s17825_s6 + $0x8b0] sm:$0xff]  ;;  %v7375_v40 = vld [vmem:[%s17825_s6 + $0x8c8] sm:$0xff]  ;;  %v7377_v23 = vld [vmem:[%s17825_s6 + $0x8d8] sm:$0xff] }
 0x8ae   :  { %v5762_v63 = vmul.f32 %v5688_v46, %v5419_v26  ;;  %v9746_v26 = vpack.c.bf16 %v7341_v49, %v7339_v9  ;;  %v7376_v43 = vld [vmem:[%s17825_s6 + $0x8d0] sm:$0xff]  ;;  %v7379_v14 = vld [vmem:[%s17825_s6 + $0x8e8] sm:$0xff]  ;;  %v7381_v9 = vld [vmem:[%s17825_s6 + $0x8f8] sm:$0xff] }
 0x8af   :  { %9709 = vmatpush1.bf16.msra.mxu0 %v9708_v3  ;;  %v5949_v31 = vld [vmem:[#allocation3 + $0x418] sm:$0xff] }
 0x8b0   :  { %5811 = vst.msk [vmem:[#allocation3 + $0x400] sm:$0xff] %vm604_vm3, %v5762_v63  ;;  %9415 = vmatmul.mubr.msk.f32.gmra.mrb[176].mxu1 %vm604_vm3, %v5937_v8  ;;  %9711 = vmatprep.subr.bf16.mxu0 %v9710_v0  ;;  %v7338_v3 = vld [vmem:[%s17825_s6 + $0x7a0] sm:$0xff]  ;;  %v7340_v0 = vld [vmem:[%s17825_s6 + $0x7b0] sm:$0xff]  ;;  %v7347_v8 = vld [vmem:[%s17825_s6 + $0x7e8] sm:$0xff] }
 0x8b1   :  { %9417 = vmatprep.mubr.msk.f32.mxu1 %vm10739_vm4, %v18082_v54  ;;  %v9748_v46 = vpack.c.bf16 %v7340_v0, %v7338_v3  ;;  %v7344_v63 = vld [vmem:[%s17825_s6 + $0x7d0] sm:$0xff]  ;;  %v7383_v0 = vld [vmem:[%s17825_s6 + $0x908] sm:$0xff] }
 0x8b2   :  { %v7380_v3 = vld [vmem:[%s17825_s6 + $0x8f0] sm:$0xff] }
 0x8b3   :  { %9713 = vmatpush1.bf16.msra.mxu0 %v9712_v44  ;;  %v5940_v52 = vld [vmem:[#allocation3 + $0x3d0] sm:$0xff] }
 0x8b4   :  { %9418 = vmatmul.mubr.msk.f32.gmra.mrb[178].mxu1 %vm604_vm3, %v5940_v52  ;;  %9715 = vmatprep.subr.bf16.mxu0 %v9714_v21  ;;  %v7349_v44 = vld [vmem:[%s17825_s6 + $0x7f8] sm:$0xff]  ;;  %v9752_v21 = vpack.c.bf16 %v7344_v63, %v7342_v29  ;;  %v7384_v29 = vld [vmem:[%s17825_s6 + $0x910] sm:$0xff]  ;;  %v7387_v63 = vld [vmem:[%s17825_s6 + $0x928] sm:$0xff] }
 0x8b5   :  { %9420 = vmatprep.mubr.msk.f32.mxu1 %vm10739_vm4, %v18082_v54  ;;  %v9754_v25 = vpack.c.bf16 %v7349_v44, %v7347_v8  ;;  %v7353_v52 = vld [vmem:[%s17825_s6 + $0x818] sm:$0xff] }
 0x8b6   :  { %v7389_v8 = vld [vmem:[%s17825_s6 + $0x938] sm:$0xff] }
 0x8b7   :  { %9717 = vmatpush1.bf16.msra.mxu0 %v9716_v2  ;;  %v5946_v51 = vld [vmem:[#allocation3 + $0x400] sm:$0xff]  ;;  %v9756_v2 = vpack.c.bf16 %v7348_v30, %v7346_v22  ;;  %v7388_v22 = vld [vmem:[%s17825_s6 + $0x930] sm:$0xff] }
 0x8b8   :  { %9421 = vmatmul.mubr.msk.f32.gmra.mrb[180].mxu1 %vm604_vm3, %v5943_v6  ;;  %9719 = vmatprep.subr.bf16.mxu0 %v9718_v19  ;;  %v9758_v19 = vpack.c.bf16 %v7353_v52, %v7351_v61  ;;  %v9760_v6 = vpack.c.bf16 %v7352_v58, %v7350_v15  ;;  %v7391_v30 = vld [vmem:[%s17825_s6 + $0x948] sm:$0xff]  ;;  %v7393_v61 = vld [vmem:[%s17825_s6 + $0x958] sm:$0xff]  ;;  %v7392_v15 = vld [vmem:[%s17825_s6 + $0x950] sm:$0xff] }
 0x8b9   :  { %9423 = vmatprep.mubr.msk.f32.mxu1 %vm10739_vm4, %v18082_v54  ;;  %v7395_v58 = vld [vmem:[%s17825_s6 + $0x968] sm:$0xff] }
 0x8bb   :  { %9721 = vmatpush1.bf16.msra.mxu0 %v9720_v48  ;;  %v9762_v48 = vpack.c.bf16 %v7357_v33, %v7355_v1  ;;  %v7397_v1 = vld [vmem:[%s17825_s6 + $0x978] sm:$0xff] }
 0x8bc   :  { %9424 = vmatmul.mubr.msk.f32.gmra.mrb[182].mxu1 %vm604_vm3, %v5946_v51  ;;  %9723 = vmatprep.subr.bf16.mxu0 %v9722_v62  ;;  %v7354_v62 = vld [vmem:[%s17825_s6 + $0x820] sm:$0xff]  ;;  %v7078_v51 = vld [vmem:[#allocation5 + $0x48] sm:$0xff] }
 0x8bd   :  { %9426 = vmatprep.mubr.msk.f32.mxu1 %vm10739_vm4, %v18082_v54 }
 0x8bf   :  { %9725 = vmatpush1.bf16.msra.mxu0 %v9724_v32  ;;  %v9764_v32 = vpack.c.bf16 %v7356_v16, %v7354_v62  ;;  %v7396_v62 = vld [vmem:[%s17825_s6 + $0x970] sm:$0xff]  ;;  %v7399_v16 = vld [vmem:[%s17825_s6 + $0x988] sm:$0xff] }
 0x8c0   :  { %9427 = vmatmul.mubr.msk.f32.gmra.mrb[184].mxu1 %vm604_vm3, %v5949_v31  ;;  %9727 = vmatprep.subr.bf16.mxu0 %v9726_v11  ;;  %v9766_v11 = vpack.c.bf16 %v7361_v13, %v7359_v17  ;;  %v9768_v31 = vpack.c.bf16 %v7360_v53, %v7358_v7  ;;  %v7405_v7 = vld [vmem:[%s17825_s6 + $0x9b8] sm:$0xff] }
 0x8c1   :  { %9429 = vmatprep.mubr.msk.f32.mxu1 %vm10739_vm4, %v18082_v54 }
 0x8c3   :  { %9729 = vmatpush1.bf16.msra.mxu0 %v9728_v20  ;;  %v9770_v20 = vpack.c.bf16 %v7365_v24, %v7363_v55  ;;  %v7402_v24 = vld [vmem:[%s17825_s6 + $0x9a0] sm:$0xff] }
 0x8c4   :  { %9731 = vmatprep.subr.bf16.mxu0 %v9730_v60  ;;  %v7362_v60 = vld [vmem:[%s17825_s6 + $0x860] sm:$0xff] }
 0x8c5   :  { %v9772_v35 = vpack.c.bf16 %v7364_v45, %v7362_v60  ;;  %v7409_v60 = vld [vmem:[%s17825_s6 + $0x9d8] sm:$0xff] }
 0x8c7   :  { %9733 = vmatpush1.bf16.msra.mxu0 %v9732_v10  ;;  %v9774_v10 = vpack.c.bf16 %v7369_v4, %v7367_v56  ;;  %v7406_v4 = vld [vmem:[%s17825_s6 + $0x9c0] sm:$0xff] }
 0x8c8   :  { %9735 = vmatprep.subr.bf16.mxu0 %v9734_v38  ;;  %v7366_v38 = vld [vmem:[%s17825_s6 + $0x880] sm:$0xff] }
 0x8c9   :  { %v9776_v5 = vpack.c.bf16 %v7368_v27, %v7366_v38  ;;  %v7413_v38 = vld [vmem:[%s17825_s6 + $0x9f8] sm:$0xff] }
 0x8cb   :  { %9737 = vmatpush1.bf16.msra.mxu0 %v9736_v34  ;;  %v9778_v34 = vpack.c.bf16 %v7373_v37, %v7371_v28  ;;  %v7410_v37 = vld [vmem:[%s17825_s6 + $0x9e0] sm:$0xff] }
 0x8cc   :  { %9739 = vmatprep.subr.bf16.mxu0 %v9738_v59  ;;  %v7370_v59 = vld [vmem:[%s17825_s6 + $0x8a0] sm:$0xff] }
 0x8cd   :  { %v9780_v42 = vpack.c.bf16 %v7372_v57, %v7370_v59  ;;  %v7417_v59 = vld [vmem:[%s17825_s6 + $0xa18] sm:$0xff] }
 0x8cf   :  { %9741 = vmatpush1.bf16.msra.mxu0 %v9740_v39  ;;  %v9782_v39 = vpack.c.bf16 %v7377_v23, %v7375_v40  ;;  %v7414_v23 = vld [vmem:[%s17825_s6 + $0xa00] sm:$0xff] }
 0x8d0   :  { %9743 = vmatprep.subr.bf16.mxu0 %v9742_v12  ;;  %v7374_v12 = vld [vmem:[%s17825_s6 + $0x8c0] sm:$0xff] }
 0x8d1   :  { %v9784_v49 = vpack.c.bf16 %v7376_v43, %v7374_v12  ;;  %v7421_v12 = vld [vmem:[%s17825_s6 + $0xa38] sm:$0xff] }
 0x8d3   :  { %9745 = vmatpush1.bf16.msra.mxu0 %v9744_v47  ;;  %v9786_v47 = vpack.c.bf16 %v7381_v9, %v7379_v14  ;;  %v7418_v9 = vld [vmem:[%s17825_s6 + $0xa20] sm:$0xff] }
 0x8d4   :  { %9747 = vmatprep.subr.bf16.mxu0 %v9746_v26  ;;  %v7378_v26 = vld [vmem:[%s17825_s6 + $0x8e0] sm:$0xff] }
 0x8d5   :  { %v9788_v41 = vpack.c.bf16 %v7380_v3, %v7378_v26  ;;  %v7423_v26 = vld [vmem:[%s17825_s6 + $0xa48] sm:$0xff]  ;;  %v7425_v3 = vld [vmem:[%s17825_s6 + $0xa58] sm:$0xff] }
 0x8d7   :  { %9749 = vmatpush1.bf16.msra.mxu0 %v9748_v46  ;;  %v9790_v46 = vpack.c.bf16 %v7385_v18, %v7383_v0  ;;  %v7080_v0 = vld [vmem:[#allocation5 + $0x58] sm:$0xff] }
 0x8d8   :  { %9751 = vmatprep.subr.bf16.mxu0 %v9750_v36  ;;  %v7382_v36 = vld [vmem:[%s17825_s6 + $0x900] sm:$0xff] }
 0x8d9   :  { %v9792_v44 = vpack.c.bf16 %v7384_v29, %v7382_v36  ;;  %v7424_v36 = vld [vmem:[%s17825_s6 + $0xa50] sm:$0xff]  ;;  %v7427_v29 = vld [vmem:[%s17825_s6 + $0xa68] sm:$0xff] }
 0x8db   :  { %9753 = vmatpush1.bf16.msra.mxu0 %v9752_v21  ;;  %v9794_v21 = vpack.c.bf16 %v7389_v8, %v7387_v63  ;;  %v7429_v63 = vld [vmem:[%s17825_s6 + $0xa78] sm:$0xff] }
 0x8dc   :  { %9755 = vmatprep.subr.bf16.mxu0 %v9754_v25  ;;  %v7386_v25 = vld [vmem:[%s17825_s6 + $0x920] sm:$0xff] }
 0x8dd   :  { %v9796_v52 = vpack.c.bf16 %v7388_v22, %v7386_v25  ;;  %v7428_v25 = vld [vmem:[%s17825_s6 + $0xa70] sm:$0xff]  ;;  %v7431_v22 = vld [vmem:[%s17825_s6 + $0xa88] sm:$0xff] }
 0x8df   :  { %9757 = vmatpush1.bf16.msra.mxu0 %v9756_v2  ;;  %v9798_v2 = vpack.c.bf16 %v7393_v61, %v7391_v30  ;;  %v7433_v30 = vld [vmem:[%s17825_s6 + $0xa98] sm:$0xff] }
 0x8e0   :  { %9759 = vmatprep.subr.bf16.mxu0 %v9758_v19  ;;  %v7390_v19 = vld [vmem:[%s17825_s6 + $0x940] sm:$0xff] }
 0x8e1   :  { %v9800_v33 = vpack.c.bf16 %v7392_v15, %v7390_v19  ;;  %v7432_v19 = vld [vmem:[%s17825_s6 + $0xa90] sm:$0xff]  ;;  %v7435_v15 = vld [vmem:[%s17825_s6 + $0xaa8] sm:$0xff] }
 0x8e2   :  { %8171 = vmatmul.mubr.f32.vlgmr.msra.gmra.mrb[0].mxu0 %v7075_v50  ;;  %v7401_v50 = vld [vmem:[%s17825_s6 + $0x998] sm:$0xff] }
 0x8e3   :  { %9761 = vmatpush1.bf16.msra.mxu0 %v9760_v6  ;;  %8241 = vmatprep.mubr.f32.mxu0 %v7078_v51  ;;  %v9802_v6 = vpack.c.bf16 %v7397_v1, %v7395_v58  ;;  %v9806_v13 = vpack.c.bf16 %v7401_v50, %v7399_v16  ;;  %v7398_v51 = vld [vmem:[%s17825_s6 + $0x980] sm:$0xff]  ;;  %v7437_v58 = vld [vmem:[%s17825_s6 + $0xab8] sm:$0xff] }
 0x8e4   :  { %9763 = vmatprep.subr.bf16.mxu0 %v9762_v48  ;;  %v7394_v48 = vld [vmem:[%s17825_s6 + $0x960] sm:$0xff]  ;;  %v7441_v16 = vld [vmem:[%s17825_s6 + $0xad8] sm:$0xff] }
 0x8e5   :  { %v9804_v17 = vpack.c.bf16 %v7396_v62, %v7394_v48  ;;  %v7436_v48 = vld [vmem:[%s17825_s6 + $0xab0] sm:$0xff]  ;;  %v7439_v62 = vld [vmem:[%s17825_s6 + $0xac8] sm:$0xff] }
 0x8e7   :  { %9765 = vmatpush1.bf16.msra.mxu0 %v9764_v32  ;;  %v7400_v32 = vld [vmem:[%s17825_s6 + $0x990] sm:$0xff] }
 0x8e8   :  { %9767 = vmatprep.subr.bf16.mxu0 %v9766_v11  ;;  %v7403_v11 = vld [vmem:[%s17825_s6 + $0x9a8] sm:$0xff]  ;;  %v9808_v53 = vpack.c.bf16 %v7400_v32, %v7398_v51  ;;  %v7440_v51 = vld [vmem:[%s17825_s6 + $0xad0] sm:$0xff] }
 0x8e9   :  { %v9810_v55 = vpack.c.bf16 %v7405_v7, %v7403_v11  ;;  %v7443_v32 = vld [vmem:[%s17825_s6 + $0xae8] sm:$0xff]  ;;  %v7445_v11 = vld [vmem:[%s17825_s6 + $0xaf8] sm:$0xff] }
 0x8eb   :  { %9769 = vmatpush1.bf16.msra.mxu0 %v9768_v31  ;;  %v7404_v31 = vld [vmem:[%s17825_s6 + $0x9b0] sm:$0xff] }
 0x8ec   :  { %9771 = vmatprep.subr.bf16.mxu0 %v9770_v20  ;;  %v7407_v20 = vld [vmem:[%s17825_s6 + $0x9c8] sm:$0xff]  ;;  %v9812_v45 = vpack.c.bf16 %v7404_v31, %v7402_v24  ;;  %v7444_v24 = vld [vmem:[%s17825_s6 + $0xaf0] sm:$0xff] }
 0x8ed   :  { %v9814_v56 = vpack.c.bf16 %v7409_v60, %v7407_v20  ;;  %v7447_v31 = vld [vmem:[%s17825_s6 + $0xb08] sm:$0xff]  ;;  %v7449_v20 = vld [vmem:[%s17825_s6 + $0xb18] sm:$0xff] }
 0x8ef   :  { %9773 = vmatpush1.bf16.msra.mxu0 %v9772_v35  ;;  %v7408_v35 = vld [vmem:[%s17825_s6 + $0x9d0] sm:$0xff] }
 0x8f0   :  { %9775 = vmatprep.subr.bf16.mxu0 %v9774_v10  ;;  %v7411_v10 = vld [vmem:[%s17825_s6 + $0x9e8] sm:$0xff]  ;;  %v9816_v27 = vpack.c.bf16 %v7408_v35, %v7406_v4  ;;  %v7448_v4 = vld [vmem:[%s17825_s6 + $0xb10] sm:$0xff] }
 0x8f1   :  { %v9818_v28 = vpack.c.bf16 %v7413_v38, %v7411_v10  ;;  %v7451_v35 = vld [vmem:[%s17825_s6 + $0xb28] sm:$0xff]  ;;  %v7453_v10 = vld [vmem:[%s17825_s6 + $0xb38] sm:$0xff] }
 0x8f3   :  { %9777 = vmatpush1.bf16.msra.mxu0 %v9776_v5  ;;  %v7412_v5 = vld [vmem:[%s17825_s6 + $0x9f0] sm:$0xff] }
 0x8f4   :  { %9779 = vmatprep.subr.bf16.mxu0 %v9778_v34  ;;  %v7415_v34 = vld [vmem:[%s17825_s6 + $0xa08] sm:$0xff]  ;;  %v9820_v57 = vpack.c.bf16 %v7412_v5, %v7410_v37  ;;  %v7452_v37 = vld [vmem:[%s17825_s6 + $0xb30] sm:$0xff] }
 0x8f5   :  { %v9822_v40 = vpack.c.bf16 %v7417_v59, %v7415_v34  ;;  %v7455_v5 = vld [vmem:[%s17825_s6 + $0xb48] sm:$0xff]  ;;  %v7457_v34 = vld [vmem:[%s17825_s6 + $0xb58] sm:$0xff] }
 0x8f7   :  { %9781 = vmatpush1.bf16.msra.mxu0 %v9780_v42  ;;  %v7416_v42 = vld [vmem:[%s17825_s6 + $0xa10] sm:$0xff] }
 0x8f8   :  { %9783 = vmatprep.subr.bf16.mxu0 %v9782_v39  ;;  %v7419_v39 = vld [vmem:[%s17825_s6 + $0xa28] sm:$0xff]  ;;  %v9824_v43 = vpack.c.bf16 %v7416_v42, %v7414_v23  ;;  %v7456_v23 = vld [vmem:[%s17825_s6 + $0xb50] sm:$0xff] }
 0x8f9   :  { %v9826_v14 = vpack.c.bf16 %v7421_v12, %v7419_v39  ;;  %v7459_v42 = vld [vmem:[%s17825_s6 + $0xb68] sm:$0xff]  ;;  %v7461_v39 = vld [vmem:[%s17825_s6 + $0xb78] sm:$0xff] }
 0x8fb   :  { %9785 = vmatpush1.bf16.msra.mxu0 %v9784_v49  ;;  %v7420_v49 = vld [vmem:[%s17825_s6 + $0xa30] sm:$0xff] }
 0x8fc   :  { %9787 = vmatprep.subr.bf16.mxu0 %v9786_v47  ;;  %v7077_v47 = vld [vmem:[#allocation5 + $0x40] sm:$0xff]  ;;  %v9828_v18 = vpack.c.bf16 %v7420_v49, %v7418_v9 }
 0x8ff   :  { %9789 = vmatpush1.bf16.msra.mxu0 %v9788_v41  ;;  %v9830_v41 = vpack.c.bf16 %v7425_v3, %v7423_v26  ;;  %v7458_v26 = vld [vmem:[%s17825_s6 + $0xb60] sm:$0xff]  ;;  %v7460_v3 = vld [vmem:[%s17825_s6 + $0xb70] sm:$0xff] }
 0x900   :  { %9791 = vmatprep.subr.bf16.mxu0 %v9790_v46  ;;  %v7422_v46 = vld [vmem:[%s17825_s6 + $0xa40] sm:$0xff] }
 0x901   :  { %v9832_v8 = vpack.c.bf16 %v7424_v36, %v7422_v46  ;;  %v9868_v36 = vpack.c.bf16 %v7460_v3, %v7458_v26 }
 0x903   :  { %9793 = vmatpush1.bf16.msra.mxu0 %v9792_v44  ;;  %v9834_v44 = vpack.c.bf16 %v7429_v63, %v7427_v29 }
 0x904   :  { %9795 = vmatprep.subr.bf16.mxu0 %v9794_v21  ;;  %v7426_v21 = vld [vmem:[%s17825_s6 + $0xa60] sm:$0xff] }
 0x905   :  { %v9836_v61 = vpack.c.bf16 %v7428_v25, %v7426_v21  ;;  %v7464_v21 = vld [vmem:[%s17825_s6 + $0xb90] sm:$0xff]  ;;  %v7467_v25 = vld [vmem:[%s17825_s6 + $0xba8] sm:$0xff] }
 0x907   :  { %9797 = vmatpush1.bf16.msra.mxu0 %v9796_v52  ;;  %v9838_v52 = vpack.c.bf16 %v7433_v30, %v7431_v22  ;;  %v7469_v22 = vld [vmem:[%s17825_s6 + $0xbb8] sm:$0xff] }
 0x908   :  { %9799 = vmatprep.subr.bf16.mxu0 %v9798_v2  ;;  %v7430_v2 = vld [vmem:[%s17825_s6 + $0xa80] sm:$0xff] }
 0x909   :  { %v9840_v1 = vpack.c.bf16 %v7432_v19, %v7430_v2 }
 0x90b   :  { %9801 = vmatpush1.bf16.msra.mxu0 %v9800_v33  ;;  %v9842_v33 = vpack.c.bf16 %v7437_v58, %v7435_v15  ;;  %v9874_v15 = vpack.c.bf16 %v7469_v22, %v7467_v25  ;;  %v7466_v58 = vld [vmem:[%s17825_s6 + $0xba0] sm:$0xff]  ;;  %v7487_v22 = vld [vmem:[%s17825_s6 + $0xc48] sm:$0xff] }
 0x90c   :  { %9803 = vmatprep.subr.bf16.mxu0 %v9802_v6  ;;  %v7434_v6 = vld [vmem:[%s17825_s6 + $0xaa0] sm:$0xff] }
 0x90d   :  { %v9844_v50 = vpack.c.bf16 %v7436_v48, %v7434_v6  ;;  %v7473_v6 = vld [vmem:[%s17825_s6 + $0xbd8] sm:$0xff]  ;;  %v5470_v25 = vld [vmem:[%s17820_s1 + $0x160] sm:$0xff] }
 0x90f   :  { %9805 = vmatpush1.bf16.msra.mxu0 %v9804_v17  ;;  %v9846_v17 = vpack.c.bf16 %v7441_v16, %v7439_v62 }
 0x910   :  { %9807 = vmatprep.subr.bf16.mxu0 %v9806_v13  ;;  %v7438_v13 = vld [vmem:[%s17825_s6 + $0xac0] sm:$0xff] }
 0x911   :  { %v9848_v7 = vpack.c.bf16 %v7440_v51, %v7438_v13 }
 0x913   :  { %9809 = vmatpush1.bf16.msra.mxu0 %v9808_v53  ;;  %v9850_v53 = vpack.c.bf16 %v7445_v11, %v7443_v32  ;;  %v7470_v32 = vld [vmem:[%s17825_s6 + $0xbc0] sm:$0xff]  ;;  %v7472_v11 = vld [vmem:[%s17825_s6 + $0xbd0] sm:$0xff] }
 0x914   :  { %9811 = vmatprep.subr.bf16.mxu0 %v9810_v55  ;;  %v7442_v55 = vld [vmem:[%s17825_s6 + $0xae0] sm:$0xff] }
 0x915   :  { %v9852_v60 = vpack.c.bf16 %v7444_v24, %v7442_v55 }
 0x917   :  { %9813 = vmatpush1.bf16.msra.mxu0 %v9812_v45  ;;  %v9854_v45 = vpack.c.bf16 %v7449_v20, %v7447_v31  ;;  %v9880_v20 = vpack.c.bf16 %v7472_v11, %v7470_v32  ;;  %v7491_v32 = vld [vmem:[%s17825_s6 + $0xc68] sm:$0xff]  ;;  %v7493_v11 = vld [vmem:[%s17825_s6 + $0xc78] sm:$0xff] }
 0x918   :  { %9815 = vmatprep.subr.bf16.mxu0 %v9814_v56  ;;  %v7446_v56 = vld [vmem:[%s17825_s6 + $0xb00] sm:$0xff] }
 0x919   :  { %v9856_v38 = vpack.c.bf16 %v7448_v4, %v7446_v56  ;;  %v7474_v4 = vld [vmem:[%s17825_s6 + $0xbe0] sm:$0xff] }
 0x91b   :  { %9817 = vmatpush1.bf16.msra.mxu0 %v9816_v27  ;;  %v9858_v27 = vpack.c.bf16 %v7453_v10, %v7451_v35  ;;  %v7476_v35 = vld [vmem:[%s17825_s6 + $0xbf0] sm:$0xff]  ;;  %v5471_v10 = vld [vmem:[%s17820_s1 + $0x168] sm:$0xff] }
 0x91c   :  { %9819 = vmatprep.subr.bf16.mxu0 %v9818_v28  ;;  %v7450_v28 = vld [vmem:[%s17825_s6 + $0xb20] sm:$0xff] }
 0x91d   :  { %v9860_v59 = vpack.c.bf16 %v7452_v37, %v7450_v28  ;;  %v7481_v28 = vld [vmem:[%s17825_s6 + $0xc18] sm:$0xff] }
 0x91f   :  { %9821 = vmatpush1.bf16.msra.mxu0 %v9820_v57  ;;  %v9862_v57 = vpack.c.bf16 %v7457_v34, %v7455_v5  ;;  %v9884_v5 = vpack.c.bf16 %v7476_v35, %v7474_v4 }
 0x920   :  { %9823 = vmatprep.subr.bf16.mxu0 %v9822_v40  ;;  %v7454_v40 = vld [vmem:[%s17825_s6 + $0xb40] sm:$0xff] }
 0x922   :  { %8242 = vmatmul.mubr.f32.vlgmr.msra.gmra.mrb[0].mxu0 %v7077_v47  ;;  %v9866_v47 = vpack.c.bf16 %v7461_v39, %v7459_v42  ;;  %v5473_v42 = vld [vmem:[%s17820_s1 + $0x178] sm:$0xff] }
 0x923   :  { %9825 = vmatpush1.bf16.msra.mxu0 %v9824_v43  ;;  %8312 = vmatprep.mubr.f32.mxu0 %v7080_v0  ;;  %v9864_v43 = vpack.c.bf16 %v7456_v23, %v7454_v40  ;;  %v7463_v0 = vld [vmem:[%s17825_s6 + $0xb88] sm:$0xff]  ;;  %v7478_v40 = vld [vmem:[%s17825_s6 + $0xc00] sm:$0xff]  ;;  %v7480_v23 = vld [vmem:[%s17825_s6 + $0xc10] sm:$0xff] }
 0x924   :  { %9827 = vmatprep.subr.bf16.mxu0 %v9826_v14  ;;  %v16145_v14 = vld [vmem:[%s17826_s5] ss:$0 sm:$0xff] }
 0x927   :  { %9829 = vmatpush1.bf16.msra.mxu0 %v9828_v18  ;;  %v7465_v18 = vld [vmem:[%s17825_s6 + $0xb98] sm:$0xff] }
 0x928   :  { %9831 = vmatprep.subr.bf16.mxu0 %v9830_v41 }
 0x92b   :  { %9833 = vmatpush1.bf16.msra.mxu0 %v9832_v8  ;;  %v9870_v8 = vpack.c.bf16 %v7465_v18, %v7463_v0  ;;  %v9888_v0 = vpack.c.bf16 %v7480_v23, %v7478_v40  ;;  %v7482_v18 = vld [vmem:[%s17825_s6 + $0xc20] sm:$0xff]  ;;  %v7109_v40 = vld [vmem:[%s17825_s6 + $0x78] sm:$0xff] }
 0x92c   :  { %9835 = vmatprep.subr.bf16.mxu0 %v9834_v44  ;;  %v7462_v44 = vld [vmem:[%s17825_s6 + $0xb80] sm:$0xff] }
 0x92f   :  { %9837 = vmatpush1.bf16.msra.mxu0 %v9836_v61 }
 0x930   :  { %9839 = vmatprep.subr.bf16.mxu0 %v9838_v52  ;;  %v9872_v52 = vpack.c.bf16 %v7464_v21, %v7462_v44  ;;  %v7096_v44 = vld [vmem:[%s17825_s6 + $0x10] sm:$0xff]  ;;  %v7079_v21 = vld [vmem:[#allocation5 + $0x50] sm:$0xff] }
 0x933   :  { %9841 = vmatpush1.bf16.msra.mxu0 %v9840_v1  ;;  %v7468_v1 = vld [vmem:[%s17825_s6 + $0xbb0] sm:$0xff] }
 0x934   :  { %9843 = vmatprep.subr.bf16.mxu0 %v9842_v33  ;;  %v7471_v33 = vld [vmem:[%s17825_s6 + $0xbc8] sm:$0xff]  ;;  %v9876_v16 = vpack.c.bf16 %v7468_v1, %v7466_v58  ;;  %v7486_v1 = vld [vmem:[%s17825_s6 + $0xc40] sm:$0xff] }
 0x935   :  { %v9878_v51 = vpack.c.bf16 %v7473_v6, %v7471_v33 }
 0x937   :  { %9845 = vmatpush1.bf16.msra.mxu0 %v9844_v50 }
 0x938   :  { %9847 = vmatprep.subr.bf16.mxu0 %v9846_v17 }
 0x93b   :  { %9849 = vmatpush1.bf16.msra.mxu0 %v9848_v7  ;;  %v7475_v7 = vld [vmem:[%s17825_s6 + $0xbe8] sm:$0xff] }
 0x93c   :  { %9851 = vmatprep.subr.bf16.mxu0 %v9850_v53  ;;  %v7477_v53 = vld [vmem:[%s17825_s6 + $0xbf8] sm:$0xff] }
 0x93d   :  { %v9882_v56 = vpack.c.bf16 %v7477_v53, %v7475_v7 }
 0x93f   :  { %9853 = vmatpush1.bf16.msra.mxu0 %v9852_v60 }
 0x940   :  { %9855 = vmatprep.subr.bf16.mxu0 %v9854_v45 }
 0x943   :  { %9857 = vmatpush1.bf16.msra.mxu0 %v9856_v38 }
 0x944   :  { %9859 = vmatprep.subr.bf16.mxu0 %v9858_v27  ;;  %v7479_v27 = vld [vmem:[%s17825_s6 + $0xc08] sm:$0xff] }
 0x945   :  { %v9886_v39 = vpack.c.bf16 %v7481_v28, %v7479_v27  ;;  %v7102_v27 = vld [vmem:[%s17825_s6 + $0x40] sm:$0xff]  ;;  %v7104_v28 = vld [vmem:[%s17825_s6 + $0x50] sm:$0xff] }
 0x947   :  { %9861 = vmatpush1.bf16.msra.mxu0 %v9860_v59  ;;  %v6651_v12 = vpop.f32.mrb[146].mxu1 }
 0x948   :  { %v10346_v9 = vadd.f32 %v16145_v14, %v6651_v12  ;;  %v9371_v49 = vpop.f32.mrb[147].mxu1  ;;  %9863 = vmatprep.subr.bf16.mxu0 %v9862_v57  ;;  %v7483_v12 = vld [vmem:[%s17825_s6 + $0xc28] sm:$0xff] }
 0x949   :  { %v7095_v49 = vld [vmem:[%s17825_s6 + $0x8] sm:$0xff] }
 0x94a   :  { %v6799_v41 = vmax.f32 %v10346_v9, 0.0 }
 0x94b   :  { %9865 = vmatpush1.bf16.msra.mxu0 %v9864_v43  ;;  %v6656_v46 = vpop.f32.mrb[148].mxu1  ;;  %v7485_v43 = vld [vmem:[%s17825_s6 + $0xc38] sm:$0xff] }
 0x94c   :  { %6849 = vst.msk [vmem:[#allocation4 + $0xc0] sm:$0xff] %vm6824_vm9, %v6799_v41  ;;  %v10347_v29 = vadd.f32 %v16145_v14, %v6656_v46  ;;  %v9374_v63 = vpop.f32.mrb[149].mxu1  ;;  %9867 = vmatprep.subr.bf16.mxu0 %v9866_v47  ;;  %v7097_v47 = vld [vmem:[%s17825_s6 + $0x18] sm:$0xff] }
 0x94d   :  { %v9502_v41 = vpack.c.bf16 %v7097_v47, %v7095_v49  ;;  %v7484_v63 = vld [vmem:[%s17825_s6 + $0xc30] sm:$0xff] }
 0x94e   :  { %v6800_v30 = vmax.f32 %v10347_v29, 0.0  ;;  %v9890_v29 = vpack.c.bf16 %v7485_v43, %v7483_v12  ;;  %v9892_v58 = vpack.c.bf16 %v7484_v63, %v7482_v18  ;;  %v7106_v43 = vld [vmem:[%s17825_s6 + $0x60] sm:$0xff]  ;;  %v7499_v18 = vld [vmem:[%s17825_s6 + $0xca8] sm:$0xff]  ;;  %v7113_v63 = vld [vmem:[%s17825_s6 + $0x98] sm:$0xff] }
 0x94f   :  { %9869 = vmatpush1.bf16.msra.mxu0 %v9868_v36  ;;  %v6661_v61 = vpop.f32.mrb[150].mxu1  ;;  %9503 = vmatprep.subr.bf16.mxu1 %v9502_v41  ;;  %v7501_v41 = vld [vmem:[%s17825_s6 + $0xcb8] sm:$0xff] }
 0x950   :  { %6850 = vst.msk [vmem:[#allocation4 + $0xc8] sm:$0xff] %vm6824_vm9, %v6800_v30  ;;  %v10348_v2 = vadd.f32 %v16145_v14, %v6661_v61  ;;  %v9377_v19 = vpop.f32.mrb[151].mxu1  ;;  %9871 = vmatprep.subr.bf16.mxu0 %v9870_v8  ;;  %v7094_v8 = vld [vmem:[%s17825_s6] sm:$0xff] }
 0x951   :  { %v9504_v30 = vpack.c.bf16 %v7096_v44, %v7094_v8  ;;  %v7101_v19 = vld [vmem:[%s17825_s6 + $0x38] sm:$0xff] }
 0x952   :  { %v6801_v48 = vmax.f32 %v10348_v2, 0.0  ;;  %v7099_v2 = vld [vmem:[%s17825_s6 + $0x28] sm:$0xff] }
 0x953   :  { %9873 = vmatpush1.bf16.msra.mxu0 %v9872_v52  ;;  %v6666_v62 = vpop.f32.mrb[152].mxu1  ;;  %v6971_v50 = vld [vmem:[#allocation4 + $0xc0] sm:$0xff]  ;;  %v7489_v52 = vld [vmem:[%s17825_s6 + $0xc58] sm:$0xff]  ;;  %9505 = vmatpush1.bf16.msra.mxu1 %v9504_v30  ;;  %v9506_v6 = vpack.c.bf16 %v7101_v19, %v7099_v2  ;;  %v7500_v19 = vld [vmem:[%s17825_s6 + $0xcb0] sm:$0xff] }
 0x954   :  { %6851 = vst.msk [vmem:[#allocation4 + $0xd0] sm:$0xff] %vm6824_vm9, %v6801_v48  ;;  %v10349_v17 = vadd.f32 %v16145_v14, %v6666_v62  ;;  %v9380_v13 = vpop.f32.mrb[153].mxu1  ;;  %9875 = vmatprep.subr.bf16.mxu0 %v9874_v15  ;;  %6972 = vst.msk [vmem:[#allocation5 + $0x60] sm:$0xff] %vm6824_vm9, %v6971_v50  ;;  %v7098_v50 = vld [vmem:[%s17825_s6 + $0x20] sm:$0xff] }
 0x955   :  { %v5472_v13 = vld [vmem:[%s17820_s1 + $0x170] sm:$0xff]  ;;  %9507 = vmatprep.subr.bf16.mxu1 %v9506_v6  ;;  %v7498_v2 = vld [vmem:[%s17825_s6 + $0xca0] sm:$0xff] }
 0x956   :  { %v6802_v55 = vmax.f32 %v10349_v17, 0.0  ;;  %v7100_v17 = vld [vmem:[%s17825_s6 + $0x30] sm:$0xff] }
 0x957   :  { %9877 = vmatpush1.bf16.msra.mxu0 %v9876_v16  ;;  %v6671_v24 = vpop.f32.mrb[154].mxu1  ;;  %v6973_v31 = vld [vmem:[#allocation4 + $0xc8] sm:$0xff]  ;;  %v7488_v16 = vld [vmem:[%s17825_s6 + $0xc50] sm:$0xff]  ;;  %v9508_v7 = vpack.c.bf16 %v7100_v17, %v7098_v50  ;;  %v9908_v17 = vpack.c.bf16 %v7500_v19, %v7498_v2 }
 0x958   :  { %6852 = vst.msk [vmem:[#allocation4 + $0xd8] sm:$0xff] %vm6824_vm9, %v6802_v55  ;;  %v10350_v60 = vadd.f32 %v16145_v14, %v6671_v24  ;;  %6975 = vrot.lane.b32.xlu1 %v6973_v31, %s10749_s22  ;;  %v9383_v45 = vpop.f32.mrb[155].mxu1  ;;  %9879 = vmatprep.subr.bf16.mxu0 %v9878_v51  ;;  %v9894_v51 = vpack.c.bf16 %v7489_v52, %v7487_v22  ;;  %v7103_v55 = vld [vmem:[%s17825_s6 + $0x48] sm:$0xff]  ;;  %v7105_v24 = vld [vmem:[%s17825_s6 + $0x58] sm:$0xff]  ;;  %v7110_v22 = vld [vmem:[%s17825_s6 + $0x80] sm:$0xff] }
 0x959   :  { %v7490_v45 = vld [vmem:[%s17825_s6 + $0xc60] sm:$0xff]  ;;  %9509 = vmatpush1.bf16.msra.mxu1 %v9508_v7  ;;  %v9906_v52 = vpack.c.bf16 %v7501_v41, %v7499_v18 }
 0x95a   :  { %v6803_v38 = vmax.f32 %v10350_v60, 0.0  ;;  %v9896_v60 = vpack.c.bf16 %v7488_v16, %v7486_v1  ;;  %v7503_v1 = vld [vmem:[%s17825_s6 + $0xcc8] sm:$0xff]  ;;  %v7117_v16 = vld [vmem:[%s17825_s6 + $0xb8] sm:$0xff]  ;;  %v7122_v18 = vld [vmem:[%s17825_s6 + $0xe0] sm:$0xff] }
 0x95b   :  { %9881 = vmatpush1.bf16.msra.mxu0 %v9880_v20  ;;  %v6676_v37 = vpop.f32.mrb[156].mxu1  ;;  %v6979_v34 = vld [vmem:[#allocation4 + $0xd0] sm:$0xff] }
 0x95c   :  { %6853 = vst.msk [vmem:[#allocation4 + $0xe0] sm:$0xff] %vm6824_vm9, %v6803_v38  ;;  %v10351_v59 = vadd.f32 %v16145_v14, %v6676_v37  ;;  %5702 = vperm.xlu1 %10667, %v5471_v10   ;;  %v9386_v57 = vpop.f32.mrb[157].mxu1  ;;  %9883 = vmatprep.subr.bf16.mxu0 %v9882_v56  ;;  %6980 = vst.msk [vmem:[#allocation5 + $0x68] sm:$0xff] %vm6824_vm9, %v6979_v34  ;;  %v9510_v56 = vpack.c.bf16 %v7105_v24, %v7103_v55  ;;  %v7492_v38 = vld [vmem:[%s17825_s6 + $0xc70] sm:$0xff]  ;;  %v7495_v37 = vld [vmem:[%s17825_s6 + $0xc88] sm:$0xff] }
 0x95d   :  { %v9898_v10 = vpack.c.bf16 %v7493_v11, %v7491_v32  ;;  %v9512_v34 = vpack.c.bf16 %v7104_v28, %v7102_v27  ;;  %v7107_v57 = vld [vmem:[%s17825_s6 + $0x68] sm:$0xff]  ;;  %v7114_v32 = vld [vmem:[%s17825_s6 + $0xa0] sm:$0xff]  ;;  %v7504_v55 = vld [vmem:[%s17825_s6 + $0xcd0] sm:$0xff] }
 0x95e   :  { %v6804_v9 = vmax.f32 %v10351_v59, 0.0  ;;  %9511 = vmatprep.subr.bf16.mxu1 %v9510_v56  ;;  %v9514_v12 = vpack.c.bf16 %v7109_v40, %v7107_v57  ;;  %v7116_v24 = vld [vmem:[%s17825_s6 + $0xb0] sm:$0xff]  ;;  %v7506_v57 = vld [vmem:[%s17825_s6 + $0xce0] sm:$0xff] }
 0x95f   :  { %9885 = vmatpush1.bf16.msra.mxu0 %v9884_v5  ;;  %v6681_v26 = vpop.f32.mrb[158].mxu1  ;;  %v6981_v3 = vld [vmem:[#allocation4 + $0xd8] sm:$0xff]  ;;  %9513 = vmatpush1.bf16.msra.mxu1 %v9512_v34  ;;  %v7508_v40 = vld [vmem:[%s17825_s6 + $0xcf0] sm:$0xff] }
 0x960   :  { %6854 = vst.msk [vmem:[#allocation4 + $0xe8] sm:$0xff] %vm6824_vm9, %v6804_v9  ;;  %v10352_v46 = vadd.f32 %v16145_v14, %v6681_v26  ;;  %5712 = vperm.xlu1 %10667, %v5473_v42   ;;  %6983 = vrot.lane.b32.xlu0 %v6981_v3, %s10749_s22  ;;  %v9389_v36 = vpop.f32.mrb[159].mxu1  ;;  %v7497_v5 = vld [vmem:[%s17825_s6 + $0xc98] sm:$0xff]  ;;  %v9900_v42 = vpack.c.bf16 %v7492_v38, %v7490_v45  ;;  %v7494_v26 = vld [vmem:[%s17825_s6 + $0xc80] sm:$0xff]  ;;  %v7496_v3 = vld [vmem:[%s17825_s6 + $0xc90] sm:$0xff] }
 0x961   :  { %9887 = vmatprep.subr.bf16.mxu0 %v9886_v39  ;;  %v9902_v47 = vpack.c.bf16 %v7497_v5, %v7495_v37  ;;  %9515 = vmatprep.subr.bf16.mxu1 %v9514_v12  ;;  %v9524_v45 = vpack.c.bf16 %v7116_v24, %v7114_v32  ;;  %v7118_v37 = vld [vmem:[%s17825_s6 + $0xc0] sm:$0xff]  ;;  %v7131_v32 = vld [vmem:[%s17825_s6 + $0x128] sm:$0xff] }
 0x962   :  { %v6805_v61 = vmax.f32 %v10352_v46, 0.0  ;;  %8313 = vmatmul.mubr.f32.vlgmr.msra.gmra.mrb[0].mxu0 %v7079_v21  ;;  %v9904_v21 = vpack.c.bf16 %v7496_v3, %v7494_v26  ;;  %v9916_v26 = vpack.c.bf16 %v7508_v40, %v7506_v57 }
 0x963   :  { %v6686_v15 = vpop.f32.mrb[160].mxu1  ;;  %9889 = vmatpush1.bf16.msra.mxu0 %v9888_v0  ;;  %v6987_v33 = vld [vmem:[#allocation4 + $0xe0] sm:$0xff]  ;;  %v7108_v0 = vld [vmem:[%s17825_s6 + $0x70] sm:$0xff] }
 0x964   :  { %6855 = vst.msk [vmem:[#allocation4 + $0xf0] sm:$0xff] %vm6824_vm9, %v6805_v61  ;;  %v10353_v48 = vadd.f32 %v16145_v14, %v6686_v15  ;;  %5697 = vperm.xlu0 %10668, %v5470_v25   ;;  %v9392_v62 = vpop.f32.mrb[161].mxu1  ;;  %9891 = vmatprep.subr.bf16.mxu0 %v9890_v29  ;;  %6988 = vst.msk [vmem:[#allocation5 + $0x70] sm:$0xff] %vm6824_vm9, %v6987_v33  ;;  %v9516_v46 = vpack.c.bf16 %v7108_v0, %v7106_v43  ;;  %v7111_v29 = vld [vmem:[%s17825_s6 + $0x88] sm:$0xff]  ;;  %v7112_v15 = vld [vmem:[%s17825_s6 + $0x90] sm:$0xff] }
 0x965   :  { %v9518_v25 = vpack.c.bf16 %v7113_v63, %v7111_v29  ;;  %v7505_v33 = vld [vmem:[%s17825_s6 + $0xcd8] sm:$0xff]  ;;  %v9520_v6 = vpack.c.bf16 %v7112_v15, %v7110_v22  ;;  %v7115_v62 = vld [vmem:[%s17825_s6 + $0xa8] sm:$0xff]  ;;  %v7510_v29 = vld [vmem:[%s17825_s6 + $0xd00] sm:$0xff] }
 0x966   :  { %v6806_v53 = vmax.f32 %v10353_v48, 0.0  ;;  %9517 = vmatpush1.bf16.msra.mxu1 %v9516_v46  ;;  %v7512_v63 = vld [vmem:[%s17825_s6 + $0xd10] sm:$0xff] }
 0x967   :  { %v6691_v31 = vpop.f32.mrb[162].mxu1  ;;  %v6989_v20 = vld [vmem:[#allocation4 + $0xe8] sm:$0xff]  ;;  %9893 = vmatpush1.bf16.msra.mxu0 %v9892_v58  ;;  %v5474_v58 = vld [vmem:[%s17820_s1 + $0x180] sm:$0xff]  ;;  %9519 = vmatprep.subr.bf16.mxu1 %v9518_v25  ;;  %v9920_v19 = vpack.c.bf16 %v7512_v63, %v7510_v29 }
 0x968   :  { %6856 = vst.msk [vmem:[#allocation4 + $0xf8] sm:$0xff] %vm6824_vm9, %v6806_v53  ;;  %v10354_v4 = vadd.f32 %v16145_v14, %v6691_v31  ;;  %5707 = vperm.xlu0 %10668, %v5472_v13   ;;  %6991 = vrot.lane.b32.xlu1 %v6989_v20, %s10749_s22  ;;  %v9395_v35 = vpop.f32.mrb[163].mxu1  ;;  %v7502_v13 = vld [vmem:[%s17825_s6 + $0xcc0] sm:$0xff]  ;;  %v9910_v53 = vpack.c.bf16 %v7505_v33, %v7503_v1  ;;  %v7507_v20 = vld [vmem:[%s17825_s6 + $0xce8] sm:$0xff] }
 0x969   :  { %9895 = vmatprep.subr.bf16.mxu0 %v9894_v51  ;;  %v9522_v51 = vpack.c.bf16 %v7117_v16, %v7115_v62  ;;  %v7121_v35 = vld [vmem:[%s17825_s6 + $0xd8] sm:$0xff]  ;;  %v9912_v27 = vpack.c.bf16 %v7504_v55, %v7502_v13  ;;  %v7516_v62 = vld [vmem:[%s17825_s6 + $0xd30] sm:$0xff] }
 0x96a   :  { %v6807_v59 = vmax.f32 %v10354_v4, 0.0  ;;  %9521 = vmatpush1.bf16.msra.mxu1 %v9520_v6  ;;  %v7119_v4 = vld [vmem:[%s17825_s6 + $0xc8] sm:$0xff]  ;;  %v7128_v16 = vld [vmem:[%s17825_s6 + $0x110] sm:$0xff] }
 0x96b   :  { %v6696_v23 = vpop.f32.mrb[164].mxu1  ;;  %9897 = vmatpush1.bf16.msra.mxu0 %v9896_v60  ;;  %v6995_v39 = vld [vmem:[#allocation4 + $0xf0] sm:$0xff]  ;;  %v7509_v60 = vld [vmem:[%s17825_s6 + $0xcf8] sm:$0xff]  ;;  %9523 = vmatprep.subr.bf16.mxu1 %v9522_v51  ;;  %v9526_v28 = vpack.c.bf16 %v7121_v35, %v7119_v4 }
 0x96c   :  { %6857 = vst.msk [vmem:[#allocation4 + $0x100] sm:$0xff] %vm6824_vm9, %v6807_v59  ;;  %v10355_v9 = vadd.f32 %v16145_v14, %v6696_v23  ;;  %v9398_v49 = vpop.f32.mrb[165].mxu1  ;;  %9899 = vmatprep.subr.bf16.mxu0 %v9898_v10  ;;  %6996 = vst.msk [vmem:[#allocation5 + $0x78] sm:$0xff] %vm6824_vm9, %v6995_v39  ;;  %v9914_v59 = vpack.c.bf16 %v7509_v60, %v7507_v20  ;;  %v7120_v23 = vld [vmem:[%s17825_s6 + $0xd0] sm:$0xff]  ;;  %v7513_v39 = vld [vmem:[%s17825_s6 + $0xd18] sm:$0xff] }
 0x96d   :  { %v9528_v12 = vpack.c.bf16 %v7120_v23, %v7118_v37  ;;  %v7125_v49 = vld [vmem:[%s17825_s6 + $0xf8] sm:$0xff]  ;;  %v7520_v4 = vld [vmem:[%s17825_s6 + $0xd50] sm:$0xff]  ;;  %v7135_v37 = vld [vmem:[%s17825_s6 + $0x148] sm:$0xff] }
 0x96e   :  { %v6808_v36 = vmax.f32 %v10355_v9, 0.0  ;;  %9525 = vmatpush1.bf16.msra.mxu1 %v9524_v45  ;;  %v7123_v9 = vld [vmem:[%s17825_s6 + $0xe8] sm:$0xff]  ;;  %v7132_v35 = vld [vmem:[%s17825_s6 + $0x130] sm:$0xff]  ;;  %v7134_v23 = vld [vmem:[%s17825_s6 + $0x140] sm:$0xff] }
 0x96f   :  { %v6701_v8 = vpop.f32.mrb[166].mxu1  ;;  %v6997_v44 = vld [vmem:[#allocation4 + $0xf8] sm:$0xff]  ;;  %9901 = vmatpush1.bf16.msra.mxu0 %v9900_v42  ;;  %v7511_v42 = vld [vmem:[%s17825_s6 + $0xd08] sm:$0xff]  ;;  %9527 = vmatprep.subr.bf16.mxu1 %v9526_v28  ;;  %v9530_v0 = vpack.c.bf16 %v7125_v49, %v7123_v9  ;;  %v7524_v9 = vld [vmem:[%s17825_s6 + $0xd70] sm:$0xff] }
 0x970   :  { %6858 = vst.msk [vmem:[#allocation4 + $0x108] sm:$0xff] %vm6824_vm9, %v6808_v36  ;;  %v10356_v30 = vadd.f32 %v16145_v14, %v6701_v8  ;;  %6999 = vrot.lane.b32.xlu0 %v6997_v44, %s10749_s22  ;;  %v9401_v61 = vpop.f32.mrb[167].mxu1  ;;  %9903 = vmatprep.subr.bf16.mxu0 %v9902_v47  ;;  %v9918_v36 = vpack.c.bf16 %v7513_v39, %v7511_v42  ;;  %v7124_v8 = vld [vmem:[%s17825_s6 + $0xf0] sm:$0xff]  ;;  %v7515_v44 = vld [vmem:[%s17825_s6 + $0xd28] sm:$0xff] }
 0x971   :  { %v9532_v25 = vpack.c.bf16 %v7124_v8, %v7122_v18  ;;  %v7129_v61 = vld [vmem:[%s17825_s6 + $0x118] sm:$0xff]  ;;  %v7136_v49 = vld [vmem:[%s17825_s6 + $0x150] sm:$0xff]  ;;  %v7139_v18 = vld [vmem:[%s17825_s6 + $0x168] sm:$0xff] }
 0x972   :  { %v6809_v48 = vmax.f32 %v10356_v30, 0.0  ;;  %9529 = vmatpush1.bf16.msra.mxu1 %v9528_v12  ;;  %v7127_v30 = vld [vmem:[%s17825_s6 + $0x108] sm:$0xff]  ;;  %v7138_v8 = vld [vmem:[%s17825_s6 + $0x160] sm:$0xff] }
 0x973   :  { %v6706_v50 = vpop.f32.mrb[168].mxu1  ;;  %9905 = vmatpush1.bf16.msra.mxu0 %v9904_v21  ;;  %v7003_v31 = vld [vmem:[#allocation4 + $0x100] sm:$0xff]  ;;  %v7517_v21 = vld [vmem:[%s17825_s6 + $0xd38] sm:$0xff]  ;;  %9531 = vmatprep.subr.bf16.mxu1 %v9530_v0  ;;  %v9534_v15 = vpack.c.bf16 %v7129_v61, %v7127_v30  ;;  %v7528_v30 = vld [vmem:[%s17825_s6 + $0xd90] sm:$0xff] }
 0x974   :  { %6859 = vst.msk [vmem:[#allocation4 + $0x110] sm:$0xff] %vm6824_vm9, %v6809_v48  ;;  %v10357_v11 = vadd.f32 %v16145_v14, %v6706_v50  ;;  %5717 = vperm.xlu0 %10668, %v5474_v58   ;;  %v9404_v7 = vpop.f32.mrb[169].mxu1  ;;  %9907 = vmatprep.subr.bf16.mxu0 %v9906_v52  ;;  %7004 = vst.msk [vmem:[#allocation5 + $0x80] sm:$0xff] %vm6824_vm9, %v7003_v31  ;;  %v7126_v58 = vld [vmem:[%s17825_s6 + $0x100] sm:$0xff]  ;;  %v9922_v6 = vpack.c.bf16 %v7517_v21, %v7515_v44  ;;  %v7519_v50 = vld [vmem:[%s17825_s6 + $0xd48] sm:$0xff] }
 0x975   :  { %v7514_v48 = vld [vmem:[%s17825_s6 + $0xd20] sm:$0xff]  ;;  %v9536_v13 = vpack.c.bf16 %v7128_v16, %v7126_v58  ;;  %v7140_v61 = vld [vmem:[%s17825_s6 + $0x170] sm:$0xff]  ;;  %v7143_v58 = vld [vmem:[%s17825_s6 + $0x188] sm:$0xff] }
 0x976   :  { %v6810_v56 = vmax.f32 %v10357_v11, 0.0  ;;  %9533 = vmatpush1.bf16.msra.mxu1 %v9532_v25  ;;  %v7133_v11 = vld [vmem:[%s17825_s6 + $0x138] sm:$0xff]  ;;  %v7130_v31 = vld [vmem:[%s17825_s6 + $0x120] sm:$0xff] }
 0x977   :  { %v6711_v10 = vpop.f32.mrb[170].mxu1  ;;  %v7005_v38 = vld [vmem:[#allocation4 + $0x108] sm:$0xff]  ;;  %9909 = vmatpush1.bf16.msra.mxu0 %v9908_v17  ;;  %v7521_v17 = vld [vmem:[%s17825_s6 + $0xd58] sm:$0xff]  ;;  %9535 = vmatprep.subr.bf16.mxu1 %v9534_v15  ;;  %v9538_v24 = vpack.c.bf16 %v7133_v11, %v7131_v32  ;;  %v7142_v16 = vld [vmem:[%s17825_s6 + $0x180] sm:$0xff] }
 0x978   :  { %6860 = vst.msk [vmem:[#allocation4 + $0x118] sm:$0xff] %vm6824_vm9, %v6810_v56  ;;  %v10358_v5 = vadd.f32 %v16145_v14, %v6711_v10  ;;  %7007 = vrot.lane.b32.xlu0 %v7005_v38, %s10749_s22  ;;  %v9407_v34 = vpop.f32.mrb[171].mxu1  ;;  %9911 = vmatprep.subr.bf16.mxu0 %v9910_v53  ;;  %v9924_v53 = vpack.c.bf16 %v7516_v62, %v7514_v48  ;;  %v7518_v56 = vld [vmem:[%s17825_s6 + $0xd40] sm:$0xff]  ;;  %v7523_v10 = vld [vmem:[%s17825_s6 + $0xd68] sm:$0xff]  ;;  %v7525_v38 = vld [vmem:[%s17825_s6 + $0xd78] sm:$0xff] }
 0x979   :  { %v9926_v45 = vpack.c.bf16 %v7521_v17, %v7519_v50  ;;  %v9928_v57 = vpack.c.bf16 %v7520_v4, %v7518_v56  ;;  %v9930_v12 = vpack.c.bf16 %v7525_v38, %v7523_v10  ;;  %v7532_v32 = vld [vmem:[%s17825_s6 + $0xdb0] sm:$0xff] }
 0x97a   :  { %v6811_v43 = vmax.f32 %v10358_v5, 0.0  ;;  %9537 = vmatpush1.bf16.msra.mxu1 %v9536_v13  ;;  %v7137_v5 = vld [vmem:[%s17825_s6 + $0x158] sm:$0xff]  ;;  %v7144_v11 = vld [vmem:[%s17825_s6 + $0x190] sm:$0xff] }
 0x97b   :  { %v6716_v47 = vpop.f32.mrb[172].mxu1  ;;  %9913 = vmatpush1.bf16.msra.mxu0 %v9912_v27  ;;  %v7011_v3 = vld [vmem:[#allocation4 + $0x110] sm:$0xff]  ;;  %9539 = vmatprep.subr.bf16.mxu1 %v9538_v24  ;;  %v9540_v27 = vpack.c.bf16 %v7132_v35, %v7130_v31  ;;  %v9542_v40 = vpack.c.bf16 %v7137_v5, %v7135_v37  ;;  %v7147_v31 = vld [vmem:[%s17825_s6 + $0x1a8] sm:$0xff]  ;;  %v7146_v35 = vld [vmem:[%s17825_s6 + $0x1a0] sm:$0xff] }
 0x97c   :  { %6861 = vst.msk [vmem:[#allocation4 + $0x120] sm:$0xff] %vm6824_vm9, %v6811_v43  ;;  %v10359_v41 = vadd.f32 %v16145_v14, %v6716_v47  ;;  %v9410_v46 = vpop.f32.mrb[173].mxu1  ;;  %9915 = vmatprep.subr.bf16.mxu0 %v9914_v59  ;;  %7012 = vst.msk [vmem:[#allocation5 + $0x88] sm:$0xff] %vm6824_vm9, %v7011_v3  ;;  %v7522_v43 = vld [vmem:[%s17825_s6 + $0xd60] sm:$0xff]  ;;  %v7527_v47 = vld [vmem:[%s17825_s6 + $0xd88] sm:$0xff]  ;;  %v9544_v3 = vpack.c.bf16 %v7136_v49, %v7134_v23 }
 0x97d   :  { %v7536_v37 = vld [vmem:[%s17825_s6 + $0xdd0] sm:$0xff]  ;;  %v7153_v23 = vld [vmem:[%s17825_s6 + $0x1d8] sm:$0xff]  ;;  %v7538_v49 = vld [vmem:[%s17825_s6 + $0xde0] sm:$0xff] }
 0x97e   :  { %v6812_v22 = vmax.f32 %v10359_v41, 0.0  ;;  %9541 = vmatpush1.bf16.msra.mxu1 %v9540_v27  ;;  %v7141_v41 = vld [vmem:[%s17825_s6 + $0x178] sm:$0xff]  ;;  %v7148_v5 = vld [vmem:[%s17825_s6 + $0x1b0] sm:$0xff] }
 0x97f   :  { %v6721_v52 = vpop.f32.mrb[174].mxu1  ;;  %v7013_v2 = vld [vmem:[#allocation4 + $0x118] sm:$0xff]  ;;  %9917 = vmatpush1.bf16.msra.mxu0 %v9916_v26  ;;  %9543 = vmatprep.subr.bf16.mxu1 %v9542_v40  ;;  %v9546_v63 = vpack.c.bf16 %v7141_v41, %v7139_v18  ;;  %v7151_v40 = vld [vmem:[%s17825_s6 + $0x1c8] sm:$0xff] }
 0x980   :  { %6862 = vst.msk [vmem:[#allocation4 + $0x128] sm:$0xff] %vm6824_vm9, %v6812_v22  ;;  %v10360_v1 = vadd.f32 %v16145_v14, %v6721_v52  ;;  %7015 = vrot.lane.b32.xlu1 %v7013_v2, %s10749_s22  ;;  %v9413_v33 = vpop.f32.mrb[175].mxu1  ;;  %9919 = vmatprep.subr.bf16.mxu0 %v9918_v36  ;;  %v7529_v26 = vld [vmem:[%s17825_s6 + $0xd98] sm:$0xff]  ;;  %v9932_v36 = vpack.c.bf16 %v7524_v9, %v7522_v43  ;;  %v7526_v22 = vld [vmem:[%s17825_s6 + $0xd80] sm:$0xff]  ;;  %v7531_v52 = vld [vmem:[%s17825_s6 + $0xda8] sm:$0xff] }
 0x981   :  { %v9934_v25 = vpack.c.bf16 %v7529_v26, %v7527_v47  ;;  %v7533_v2 = vld [vmem:[%s17825_s6 + $0xdb8] sm:$0xff]  ;;  %v9936_v48 = vpack.c.bf16 %v7528_v30, %v7526_v22  ;;  %v7150_v43 = vld [vmem:[%s17825_s6 + $0x1c0] sm:$0xff]  ;;  %v7540_v47 = vld [vmem:[%s17825_s6 + $0xdf0] sm:$0xff] }
 0x982   :  { %v6813_v51 = vmax.f32 %v10360_v1, 0.0  ;;  %9545 = vmatpush1.bf16.msra.mxu1 %v9544_v3  ;;  %v7145_v1 = vld [vmem:[%s17825_s6 + $0x198] sm:$0xff]  ;;  %v9938_v13 = vpack.c.bf16 %v7533_v2, %v7531_v52  ;;  %v7152_v26 = vld [vmem:[%s17825_s6 + $0x1d0] sm:$0xff]  ;;  %v7543_v3 = vld [vmem:[%s17825_s6 + $0xe08] sm:$0xff] }
 0x983   :  { %v6726_v7 = vpop.f32.mrb[176].mxu1  ;;  %9921 = vmatpush1.bf16.msra.mxu0 %v9920_v19  ;;  %v7019_v55 = vld [vmem:[#allocation4 + $0x120] sm:$0xff]  ;;  %9547 = vmatprep.subr.bf16.mxu1 %v9546_v63  ;;  %v9548_v19 = vpack.c.bf16 %v7140_v61, %v7138_v8  ;;  %v9550_v62 = vpack.c.bf16 %v7145_v1, %v7143_v58  ;;  %v9560_v18 = vpack.c.bf16 %v7152_v26, %v7150_v43  ;;  %v7155_v41 = vld [vmem:[%s17825_s6 + $0x1e8] sm:$0xff]  ;;  %v6885_v61 = vld [vmem:[#allocation4 + $0x18] sm:$0xff] }
 0x984   :  { %6863 = vst.msk [vmem:[#allocation4 + $0x130] sm:$0xff] %vm6824_vm9, %v6813_v51  ;;  %v10361_v20 = vadd.f32 %v16145_v14, %v6726_v7  ;;  %v9416_v60 = vpop.f32.mrb[177].mxu1  ;;  %9923 = vmatprep.subr.bf16.mxu0 %v9922_v6  ;;  %7020 = vst.msk [vmem:[#allocation5 + $0x90] sm:$0xff] %vm6824_vm9, %v7019_v55  ;;  %v7530_v51 = vld [vmem:[%s17825_s6 + $0xda0] sm:$0xff]  ;;  %v7535_v7 = vld [vmem:[%s17825_s6 + $0xdc8] sm:$0xff]  ;;  %v9552_v55 = vpack.c.bf16 %v7144_v11, %v7142_v16 }
 0x985   :  { %v7547_v58 = vld [vmem:[%s17825_s6 + $0xe28] sm:$0xff]  ;;  %v7549_v1 = vld [vmem:[%s17825_s6 + $0xe38] sm:$0xff]  ;;  %v7546_v16 = vld [vmem:[%s17825_s6 + $0xe20] sm:$0xff] }
 0x986   :  { %v6814_v28 = vmax.f32 %v10361_v20, 0.0  ;;  %9549 = vmatpush1.bf16.msra.mxu1 %v9548_v19  ;;  %v7149_v20 = vld [vmem:[%s17825_s6 + $0x1b8] sm:$0xff]  ;;  %v7542_v19 = vld [vmem:[%s17825_s6 + $0xe00] sm:$0xff] }
 0x987   :  { %v6731_v34 = vpop.f32.mrb[178].mxu1  ;;  %v7021_v59 = vld [vmem:[#allocation4 + $0x128] sm:$0xff]  ;;  %9925 = vmatpush1.bf16.msra.mxu0 %v9924_v53  ;;  %v7537_v53 = vld [vmem:[%s17825_s6 + $0xdd8] sm:$0xff]  ;;  %9551 = vmatprep.subr.bf16.mxu1 %v9550_v62  ;;  %v9554_v4 = vpack.c.bf16 %v7149_v20, %v7147_v31  ;;  %v9954_v62 = vpack.c.bf16 %v7549_v1, %v7547_v58  ;;  %v7552_v31 = vld [vmem:[%s17825_s6 + $0xe50] sm:$0xff] }
 0x988   :  { %6864 = vst.msk [vmem:[#allocation4 + $0x138] sm:$0xff] %vm6824_vm9, %v6814_v28  ;;  %v10362_v42 = vadd.f32 %v16145_v14, %v6731_v34  ;;  %7023 = vrot.lane.b32.xlu0 %v7021_v59, %s10749_s22  ;;  %v9419_v39 = vpop.f32.mrb[179].mxu1  ;;  %9927 = vmatprep.subr.bf16.mxu0 %v9926_v45  ;;  %v9940_v45 = vpack.c.bf16 %v7532_v32, %v7530_v51  ;;  %v7534_v28 = vld [vmem:[%s17825_s6 + $0xdc0] sm:$0xff]  ;;  %v7541_v34 = vld [vmem:[%s17825_s6 + $0xdf8] sm:$0xff]  ;;  %v7551_v51 = vld [vmem:[%s17825_s6 + $0xe48] sm:$0xff] }
 0x989   :  { %v9942_v27 = vpack.c.bf16 %v7537_v53, %v7535_v7  ;;  %v9556_v59 = vpack.c.bf16 %v7148_v5, %v7146_v35  ;;  %v9944_v39 = vpack.c.bf16 %v7536_v37, %v7534_v28  ;;  %v7553_v32 = vld [vmem:[%s17825_s6 + $0xe58] sm:$0xff]  ;;  %v7559_v5 = vld [vmem:[%s17825_s6 + $0xe88] sm:$0xff]  ;;  %v7562_v26 = vld [vmem:[%s17825_s6 + $0xea0] sm:$0xff] }
 0x98a   :  { %v6815_v0 = vmax.f32 %v10362_v42, 0.0  ;;  %9553 = vmatpush1.bf16.msra.mxu1 %v9552_v55  ;;  %v5424_v7 = vld [vmem:[#allocation2 + $0x1f8] sm:$0xff]  ;;  %v9958_v55 = vpack.c.bf16 %v7553_v32, %v7551_v51  ;;  %v7575_v1 = vld [vmem:[%s17825_s6 + $0xf08] sm:$0xff] }
 0x98b   :  { %v6736_v46 = vpop.f32.mrb[180].mxu1  ;;  %9929 = vmatpush1.bf16.msra.mxu0 %v9928_v57  ;;  %v7027_v29 = vld [vmem:[#allocation4 + $0x130] sm:$0xff]  ;;  %9555 = vmatprep.subr.bf16.mxu1 %v9554_v4  ;;  %v5421_v4 = vld [vmem:[#allocation2 + $0x1e0] sm:$0xff]  ;;  %v7565_v43 = vld [vmem:[%s17825_s6 + $0xeb8] sm:$0xff] }
 0x98c   :  { %6865 = vst.msk [vmem:[#allocation4 + $0x140] sm:$0xff] %vm6824_vm9, %v6815_v0  ;;  %v10363_v44 = vadd.f32 %v16145_v14, %v6736_v46  ;;  %v9422_v21 = vpop.f32.mrb[181].mxu1  ;;  %9931 = vmatprep.subr.bf16.mxu0 %v9930_v12  ;;  %7028 = vst.msk [vmem:[#allocation5 + $0x98] sm:$0xff] %vm6824_vm9, %v7027_v29  ;;  %v9558_v12 = vpack.c.bf16 %v7153_v23, %v7151_v40  ;;  %v7545_v0 = vld [vmem:[%s17825_s6 + $0xe18] sm:$0xff]  ;;  %v9948_v29 = vpack.c.bf16 %v7540_v47, %v7538_v49  ;;  %v7558_v23 = vld [vmem:[%s17825_s6 + $0xe80] sm:$0xff] }
 0x98d   :  { %v7157_v46 = vld [vmem:[%s17825_s6 + $0x1f8] sm:$0xff]  ;;  %v9950_v21 = vpack.c.bf16 %v7545_v0, %v7543_v3  ;;  %v7564_v3 = vld [vmem:[%s17825_s6 + $0xeb0] sm:$0xff]  ;;  %v7579_v51 = vld [vmem:[%s17825_s6 + $0xf28] sm:$0xff] }
 0x98e   :  { %v6816_v15 = vmax.f32 %v10363_v44, 0.0  ;;  %9557 = vmatpush1.bf16.msra.mxu1 %v9556_v59  ;;  %v9562_v8 = vpack.c.bf16 %v7157_v46, %v7155_v41  ;;  %v7154_v44 = vld [vmem:[%s17825_s6 + $0x1e0] sm:$0xff]  ;;  %v5423_v59 = vld [vmem:[#allocation2 + $0x1f0] sm:$0xff]  ;;  %v7569_v41 = vld [vmem:[%s17825_s6 + $0xed8] sm:$0xff] }
 0x98f   :  { %v6741_v33 = vpop.f32.mrb[182].mxu1  ;;  %v7029_v6 = vld [vmem:[#allocation4 + $0x138] sm:$0xff]  ;;  %9933 = vmatpush1.bf16.msra.mxu0 %v9932_v36  ;;  %9559 = vmatprep.subr.bf16.mxu1 %v9558_v12  ;;  %v6876_v36 = vld [vmem:[#allocation4 + $0x8] sm:$0xff] }
 0x990   :  { %6866 = vst.msk [vmem:[#allocation4 + $0x148] sm:$0xff] %vm6824_vm9, %v6816_v15  ;;  %v10364_v50 = vadd.f32 %v16145_v14, %v6741_v33  ;;  %7031 = vrot.lane.b32.xlu1 %v7029_v6, %s10749_s22  ;;  %v9425_v17 = vpop.f32.mrb[183].mxu1  ;;  %9935 = vmatprep.subr.bf16.mxu0 %v9934_v25  ;;  %v7156_v25 = vld [vmem:[%s17825_s6 + $0x1f0] sm:$0xff]  ;;  %v5422_v33 = vld [vmem:[#allocation2 + $0x1e8] sm:$0xff]  ;;  %v7581_v32 = vld [vmem:[%s17825_s6 + $0xf38] sm:$0xff] }
 0x991   :  { %v9564_v22 = vpack.c.bf16 %v7156_v25, %v7154_v44  ;;  %v7544_v15 = vld [vmem:[%s17825_s6 + $0xe10] sm:$0xff]  ;;  %v7563_v12 = vld [vmem:[%s17825_s6 + $0xea8] sm:$0xff] }
 0x992   :  { %v6817_v24 = vmax.f32 %v10364_v50, 0.0  ;;  %9561 = vmatpush1.bf16.msra.mxu1 %v9560_v18  ;;  %v9952_v6 = vpack.c.bf16 %v7544_v15, %v7542_v19  ;;  %v7548_v50 = vld [vmem:[%s17825_s6 + $0xe30] sm:$0xff]  ;;  %v9970_v47 = vpack.c.bf16 %v7565_v43, %v7563_v12  ;;  %v7567_v18 = vld [vmem:[%s17825_s6 + $0xec8] sm:$0xff]  ;;  %v7597_v43 = vld [vmem:[%s17825_s6 + $0xfb8] sm:$0xff] }
 0x993   :  { %v6746_v60 = vpop.f32.mrb[184].mxu1  ;;  %9937 = vmatpush1.bf16.msra.mxu0 %v9936_v48  ;;  %v7035_v56 = vld [vmem:[#allocation4 + $0x140] sm:$0xff]  ;;  %9563 = vmatprep.subr.bf16.mxu1 %v9562_v8  ;;  %v9956_v53 = vpack.c.bf16 %v7548_v50, %v7546_v16  ;;  %v7568_v8 = vld [vmem:[%s17825_s6 + $0xed0] sm:$0xff]  ;;  %v7571_v44 = vld [vmem:[%s17825_s6 + $0xee8] sm:$0xff] }
 0x994   :  { %6867 = vst.msk [vmem:[#allocation4 + $0x150] sm:$0xff] %vm6824_vm9, %v6817_v24  ;;  %v10365_v10 = vadd.f32 %v16145_v14, %v6746_v60  ;;  %v9428_v38 = vpop.f32.mrb[185].mxu1  ;;  %9939 = vmatprep.subr.bf16.mxu0 %v9938_v13  ;;  %7036 = vst.msk [vmem:[#allocation5 + $0xa0] sm:$0xff] %vm6824_vm9, %v7035_v56  ;;  %v7539_v14 = vld [vmem:[%s17825_s6 + $0xde8] sm:$0xff]  ;;  %v7550_v24 = vld [vmem:[%s17825_s6 + $0xe40] sm:$0xff] }
 0x995   :  { %v9946_v9 = vpack.c.bf16 %v7541_v34, %v7539_v14  ;;  %v7555_v60 = vld [vmem:[%s17825_s6 + $0xe68] sm:$0xff]  ;;  %v9960_v35 = vpack.c.bf16 %v7552_v31, %v7550_v24  ;;  %v7554_v38 = vld [vmem:[%s17825_s6 + $0xe60] sm:$0xff]  ;;  %v7561_v14 = vld [vmem:[%s17825_s6 + $0xe98] sm:$0xff] }
 0x996   :  { %v6818_v57 = vmax.f32 %v10365_v10, 0.0  ;;  %9565 = vmatpush1.bf16.msra.mxu1 %v9564_v22  ;;  %v9966_v40 = vpack.c.bf16 %v7561_v14, %v7559_v5  ;;  %v5425_v22 = vld [vmem:[#allocation2 + $0x200] sm:$0xff]  ;;  %v7572_v19 = vld [vmem:[%s17825_s6 + $0xef0] sm:$0xff]  ;;  %v7595_v12 = vld [vmem:[%s17825_s6 + $0xfa8] sm:$0xff] }
 0x997   :  { %v7037_v42 = vld [vmem:[#allocation4 + $0x148] sm:$0xff]  ;;  %9941 = vmatpush1.bf16.msra.mxu0 %v9940_v45  ;;  %v7557_v45 = vld [vmem:[%s17825_s6 + $0xe78] sm:$0xff]  ;;  %v7574_v50 = vld [vmem:[%s17825_s6 + $0xf00] sm:$0xff] }
 0x998   :  { %6868 = vst.msk [vmem:[#allocation4 + $0x158] sm:$0xff] %vm6824_vm9, %v6818_v57  ;;  %7039 = vrot.lane.b32.xlu0 %v7037_v42, %s10749_s22  ;;  %9943 = vmatprep.subr.bf16.mxu0 %v9942_v27  ;;  %v9962_v10 = vpack.c.bf16 %v7557_v45, %v7555_v60  ;;  %v7556_v27 = vld [vmem:[%s17825_s6 + $0xe70] sm:$0xff]  ;;  %v7585_v60 = vld [vmem:[%s17825_s6 + $0xf58] sm:$0xff]  ;;  %v7586_v14 = vld [vmem:[%s17825_s6 + $0xf60] sm:$0xff] }
 0x999   :  { %v9964_v57 = vpack.c.bf16 %v7556_v27, %v7554_v38  ;;  %v7560_v42 = vld [vmem:[%s17825_s6 + $0xe90] sm:$0xff]  ;;  %v7587_v38 = vld [vmem:[%s17825_s6 + $0xf68] sm:$0xff]  ;;  %v7589_v27 = vld [vmem:[%s17825_s6 + $0xf78] sm:$0xff] }
 0x99a   :  { %v9968_v49 = vpack.c.bf16 %v7560_v42, %v7558_v23  ;;  %v7580_v24 = vld [vmem:[%s17825_s6 + $0xf30] sm:$0xff]  ;;  %v9994_v5 = vpack.c.bf16 %v7589_v27, %v7587_v38  ;;  %v7590_v42 = vld [vmem:[%s17825_s6 + $0xf80] sm:$0xff]  ;;  %v7623_v38 = vld [vmem:[%s17825_s6 + $0x1088] sm:$0xff] }
 0x99b   :  { %9945 = vmatpush1.bf16.msra.mxu0 %v9944_v39  ;;  %v7043_v63 = vld [vmem:[#allocation4 + $0x150] sm:$0xff]  ;;  %v7625_v27 = vld [vmem:[%s17825_s6 + $0x1098] sm:$0xff] }
 0x99c   :  { %6878 = vrot.lane.b32.xlu0 %v6876_v36, %s10749_s22  ;;  %9947 = vmatprep.subr.bf16.mxu0 %v9946_v9  ;;  %7044 = vst.msk [vmem:[#allocation5 + $0xa8] sm:$0xff] %vm6824_vm9, %v7043_v63  ;;  %v9972_v36 = vpack.c.bf16 %v7564_v3, %v7562_v26  ;;  %v7566_v63 = vld [vmem:[%s17825_s6 + $0xec0] sm:$0xff]  ;;  %v7596_v3 = vld [vmem:[%s17825_s6 + $0xfb0] sm:$0xff] }
 0x99d   :  { %v7594_v26 = vld [vmem:[%s17825_s6 + $0xfa0] sm:$0xff] }
 0x99f   :  { %v7045_v30 = vld [vmem:[#allocation4 + $0x158] sm:$0xff]  ;;  %9949 = vmatpush1.bf16.msra.mxu0 %v9948_v29  ;;  %v9974_v29 = vpack.c.bf16 %v7569_v41, %v7567_v18  ;;  %v10004_v41 = vpack.c.bf16 %v7596_v3, %v7594_v26  ;;  %v7635_v26 = vld [vmem:[%s17825_s6 + $0x10e8] sm:$0xff] }
 0x9a0   :  { %7047 = vrot.lane.b32.xlu1 %v7045_v30, %s10749_s22  ;;  %9951 = vmatprep.subr.bf16.mxu0 %v9950_v21  ;;  %v7573_v21 = vld [vmem:[%s17825_s6 + $0xef8] sm:$0xff]  ;;  %v9976_v30 = vpack.c.bf16 %v7568_v8, %v7566_v63  ;;  %v7600_v63 = vld [vmem:[%s17825_s6 + $0xfd0] sm:$0xff]  ;;  %v7603_v8 = vld [vmem:[%s17825_s6 + $0xfe8] sm:$0xff] }
 0x9a1   :  { %v7601_v18 = vld [vmem:[%s17825_s6 + $0xfd8] sm:$0xff] }
 0x9a2   :  { %v7637_v3 = vld [vmem:[%s17825_s6 + $0x10f8] sm:$0xff] }
 0x9a4   :  { %6887 = vrot.lane.b32.xlu1 %v6885_v61, %s10749_s22 }
 0x9ca   :  { %v6976_v52 = vpop.permute.xlu1 %6975 }
 0x9cb   :  { %6978 = vst.msk [vmem:[#allocation5 + $0x60] sm:$0xff] %vm6881_vm10, %v6976_v52  ;;  %v9978_v52 = vpack.c.bf16 %v7573_v21, %v7571_v44  ;;  %v7605_v44 = vld [vmem:[%s17825_s6 + $0xff8] sm:$0xff] }
 0x9d2   :  { %v6984_v2 = vpop.permute.xlu0 %6983  ;;  %v7081_v13 = vld [vmem:[#allocation5 + $0x60] sm:$0xff] }
 0x9d3   :  { %6986 = vst.msk [vmem:[#allocation5 + $0x68] sm:$0xff] %vm6881_vm10, %v6984_v2  ;;  %v7570_v2 = vld [vmem:[%s17825_s6 + $0xee0] sm:$0xff] }
 0x9da   :  { %v7082_v48 = vld [vmem:[#allocation5 + $0x68] sm:$0xff] }
 0x9db   :  { %v5703_v17 = vpop.permute.xlu1 %5702  ;;  %8383 = vmatprep.mubr.f32.mxu0 %v7082_v48 }
 0x9dc   :  { %v5765_v11 = vmul.f32 %v5703_v17, %v5422_v33  ;;  %8384 = vmatmul.mubr.f32.vlgmr.msra.gmra.mrb[0].mxu0 %v7081_v13  ;;  %v7577_v33 = vld [vmem:[%s17825_s6 + $0xf18] sm:$0xff]  ;;  %v7576_v17 = vld [vmem:[%s17825_s6 + $0xf10] sm:$0xff] }
 0x9dd   :  { %9953 = vmatpush1.bf16.msra.mxu0 %v9952_v6  ;;  %v9982_v16 = vpack.c.bf16 %v7577_v33, %v7575_v1  ;;  %v7606_v1 = vld [vmem:[%s17825_s6 + $0x1000] sm:$0xff]  ;;  %v7608_v33 = vld [vmem:[%s17825_s6 + $0x1010] sm:$0xff] }
 0x9de   :  { %5814 = vst.msk [vmem:[#allocation3 + $0x448] sm:$0xff] %vm604_vm3, %v5765_v11  ;;  %9955 = vmatprep.subr.bf16.mxu0 %v9954_v62  ;;  %v9980_v62 = vpack.c.bf16 %v7572_v19, %v7570_v2  ;;  %v7609_v2 = vld [vmem:[%s17825_s6 + $0x1018] sm:$0xff] }
 0x9df   :  { %v5713_v20 = vpop.permute.xlu1 %5712 }
 0x9e0   :  { %v5767_v56 = vmul.f32 %v5713_v20, %v5424_v7  ;;  %v9984_v7 = vpack.c.bf16 %v7576_v17, %v7574_v50  ;;  %v7583_v20 = vld [vmem:[%s17825_s6 + $0xf48] sm:$0xff]  ;;  %v7610_v50 = vld [vmem:[%s17825_s6 + $0x1020] sm:$0xff]  ;;  %v7612_v17 = vld [vmem:[%s17825_s6 + $0x1030] sm:$0xff] }
 0x9e1   :  { %9957 = vmatpush1.bf16.msra.mxu0 %v9956_v53  ;;  %v9986_v53 = vpack.c.bf16 %v7581_v32, %v7579_v51  ;;  %v7615_v51 = vld [vmem:[%s17825_s6 + $0x1048] sm:$0xff]  ;;  %v7617_v32 = vld [vmem:[%s17825_s6 + $0x1058] sm:$0xff] }
 0x9e2   :  { %5816 = vst.msk [vmem:[#allocation3 + $0x478] sm:$0xff] %vm604_vm3, %v5767_v56  ;;  %9959 = vmatprep.subr.bf16.mxu0 %v9958_v55  ;;  %v7578_v55 = vld [vmem:[%s17825_s6 + $0xf20] sm:$0xff] }
 0x9e3   :  { %v5698_v28 = vpop.permute.xlu0 %5697  ;;  %v6992_v37 = vpop.permute.xlu1 %6991  ;;  %v9988_v56 = vpack.c.bf16 %v7580_v24, %v7578_v55  ;;  %v10022_v55 = vpack.c.bf16 %v7617_v32, %v7615_v51  ;;  %v7614_v24 = vld [vmem:[%s17825_s6 + $0x1040] sm:$0xff]  ;;  %v7655_v51 = vld [vmem:[%s17825_s6 + $0x1188] sm:$0xff]  ;;  %v7657_v32 = vld [vmem:[%s17825_s6 + $0x1198] sm:$0xff] }
 0x9e4   :  { %v5764_v34 = vmul.f32 %v5698_v28, %v5421_v4  ;;  %6994 = vst.msk [vmem:[#allocation5 + $0x70] sm:$0xff] %vm6881_vm10, %v6992_v37  ;;  %v9990_v4 = vpack.c.bf16 %v7585_v60, %v7583_v20  ;;  %v7619_v60 = vld [vmem:[%s17825_s6 + $0x1068] sm:$0xff] }
 0x9e5   :  { %9961 = vmatpush1.bf16.msra.mxu0 %v9960_v35  ;;  %v5955_v25 = vld [vmem:[#allocation3 + $0x448] sm:$0xff]  ;;  %v7582_v35 = vld [vmem:[%s17825_s6 + $0xf40] sm:$0xff] }
 0x9e6   :  { %5813 = vst.msk [vmem:[#allocation3 + $0x430] sm:$0xff] %vm604_vm3, %v5764_v34  ;;  %9963 = vmatprep.subr.bf16.mxu0 %v9962_v10  ;;  %v7584_v10 = vld [vmem:[%s17825_s6 + $0xf50] sm:$0xff] }
 0x9e7   :  { %v5708_v39 = vpop.permute.xlu0 %5707  ;;  %v9992_v28 = vpack.c.bf16 %v7584_v10, %v7582_v35  ;;  %v7588_v34 = vld [vmem:[%s17825_s6 + $0xf70] sm:$0xff]  ;;  %v7618_v35 = vld [vmem:[%s17825_s6 + $0x1060] sm:$0xff] }
 0x9e8   :  { %v5766_v9 = vmul.f32 %v5708_v39, %v5423_v59  ;;  %v7591_v59 = vld [vmem:[%s17825_s6 + $0xf88] sm:$0xff]  ;;  %v7592_v39 = vld [vmem:[%s17825_s6 + $0xf90] sm:$0xff] }
 0x9e9   :  { %9965 = vmatpush1.bf16.msra.mxu0 %v9964_v57  ;;  %v5961_v11 = vld [vmem:[#allocation3 + $0x478] sm:$0xff]  ;;  %v7593_v57 = vld [vmem:[%s17825_s6 + $0xf98] sm:$0xff]  ;;  %v7620_v10 = vld [vmem:[%s17825_s6 + $0x1070] sm:$0xff] }
 0x9ea   :  { %5815 = vst.msk [vmem:[#allocation3 + $0x460] sm:$0xff] %vm604_vm3, %v5766_v9  ;;  %9967 = vmatprep.subr.bf16.mxu0 %v9966_v40  ;;  %v9996_v40 = vpack.c.bf16 %v7588_v34, %v7586_v14  ;;  %v9998_v23 = vpack.c.bf16 %v7593_v57, %v7591_v59  ;;  %v10000_v9 = vpack.c.bf16 %v7592_v39, %v7590_v42  ;;  %v7624_v14 = vld [vmem:[%s17825_s6 + $0x1090] sm:$0xff]  ;;  %v7627_v34 = vld [vmem:[%s17825_s6 + $0x10a8] sm:$0xff]  ;;  %v7629_v59 = vld [vmem:[%s17825_s6 + $0x10b8] sm:$0xff] }
 0x9eb   :  { %v7000_v0 = vpop.permute.xlu0 %6999  ;;  %v7628_v42 = vld [vmem:[%s17825_s6 + $0x10b0] sm:$0xff]  ;;  %v7631_v39 = vld [vmem:[%s17825_s6 + $0x10c8] sm:$0xff] }
 0x9ec   :  { %7002 = vst.msk [vmem:[#allocation5 + $0x78] sm:$0xff] %vm6881_vm10, %v7000_v0  ;;  %v7599_v0 = vld [vmem:[%s17825_s6 + $0xfc8] sm:$0xff] }
 0x9ed   :  { %9969 = vmatpush1.bf16.msra.mxu0 %v9968_v49  ;;  %v5952_v46 = vld [vmem:[#allocation3 + $0x430] sm:$0xff] }
 0x9ee   :  { %9430 = vmatmul.mubr.msk.f32.gmra.mrb[186].mxu1 %vm604_vm3, %v5952_v46  ;;  %9971 = vmatprep.subr.bf16.mxu0 %v9970_v47  ;;  %v10002_v47 = vpack.c.bf16 %v7597_v43, %v7595_v12  ;;  %v7633_v12 = vld [vmem:[%s17825_s6 + $0x10d8] sm:$0xff] }
 0x9ef   :  { %9432 = vmatprep.mubr.msk.f32.mxu1 %vm10739_vm4, %v18082_v54 }
 0x9f1   :  { %9973 = vmatpush1.bf16.msra.mxu0 %v9972_v36  ;;  %v5958_v48 = vld [vmem:[#allocation3 + $0x460] sm:$0xff]  ;;  %v10006_v36 = vpack.c.bf16 %v7601_v18, %v7599_v0  ;;  %v10042_v18 = vpack.c.bf16 %v7637_v3, %v7635_v26  ;;  %v7672_v26 = vld [vmem:[%s17825_s6 + $0x1210] sm:$0xff] }
 0x9f2   :  { %9433 = vmatmul.mubr.msk.f32.gmra.mrb[188].mxu1 %vm604_vm3, %v5955_v25  ;;  %v7016_v61 = vpop.permute.xlu1 %7015  ;;  %9975 = vmatprep.subr.bf16.mxu0 %v9974_v29  ;;  %v7598_v29 = vld [vmem:[%s17825_s6 + $0xfc0] sm:$0xff]  ;;  %v7864_v3 = vld [vmem:[%s17825_s6 + $0x1810] sm:$0xff] }
 0x9f3   :  { %7018 = vst.msk [vmem:[#allocation5 + $0x88] sm:$0xff] %vm6881_vm10, %v7016_v61  ;;  %v5718_v15 = vpop.permute.xlu0 %5717  ;;  %v7084_v58 = vld [vmem:[#allocation5 + $0x78] sm:$0xff]  ;;  %9435 = vmatprep.mubr.msk.f32.mxu1 %vm10739_vm4, %v18082_v54  ;;  %v10008_v21 = vpack.c.bf16 %v7600_v63, %v7598_v29  ;;  %v7604_v61 = vld [vmem:[%s17825_s6 + $0xff0] sm:$0xff]  ;;  %v7641_v29 = vld [vmem:[%s17825_s6 + $0x1118] sm:$0xff] }
 0x9f4   :  { %v5768_v6 = vmul.f32 %v5718_v15, %v5425_v22  ;;  %8454 = vmatprep.mubr.f32.mxu0 %v7084_v58  ;;  %v10010_v22 = vpack.c.bf16 %v7605_v44, %v7603_v8  ;;  %v7638_v44 = vld [vmem:[%s17825_s6 + $0x1100] sm:$0xff] }
 0x9f5   :  { %9977 = vmatpush1.bf16.msra.mxu0 %v9976_v30  ;;  %v7602_v30 = vld [vmem:[%s17825_s6 + $0xfe0] sm:$0xff] }
 0x9f6   :  { %5817 = vst.msk [vmem:[#allocation3 + $0x490] sm:$0xff] %vm604_vm3, %v5768_v6  ;;  %9436 = vmatmul.mubr.msk.f32.gmra.mrb[190].mxu1 %vm604_vm3, %v5958_v48  ;;  %9979 = vmatprep.subr.bf16.mxu0 %v9978_v52  ;;  %v7607_v52 = vld [vmem:[%s17825_s6 + $0x1008] sm:$0xff]  ;;  %v10012_v19 = vpack.c.bf16 %v7604_v61, %v7602_v30  ;;  %v7613_v48 = vld [vmem:[%s17825_s6 + $0x1038] sm:$0xff] }
 0x9f7   :  { %v7008_v13 = vpop.permute.xlu0 %7007  ;;  %9438 = vmatprep.mubr.msk.f32.mxu1 %vm10739_vm4, %v18082_v54  ;;  %v10014_v58 = vpack.c.bf16 %v7609_v2, %v7607_v52  ;;  %v7611_v6 = vld [vmem:[%s17825_s6 + $0x1028] sm:$0xff]  ;;  %v7642_v52 = vld [vmem:[%s17825_s6 + $0x1120] sm:$0xff]  ;;  %v7644_v2 = vld [vmem:[%s17825_s6 + $0x1130] sm:$0xff] }
 0x9f8   :  { %7010 = vst.msk [vmem:[#allocation5 + $0x80] sm:$0xff] %vm6881_vm10, %v7008_v13  ;;  %v7083_v13 = vld [vmem:[#allocation5 + $0x70] sm:$0xff] }
 0x9f9   :  { %9981 = vmatpush1.bf16.msra.mxu0 %v9980_v62  ;;  %v10016_v62 = vpack.c.bf16 %v7608_v33, %v7606_v1  ;;  %v7646_v33 = vld [vmem:[%s17825_s6 + $0x1140] sm:$0xff] }
 0x9fa   :  { %9439 = vmatmul.mubr.msk.f32.gmra.mrb[192].mxu1 %vm604_vm3, %v5961_v11  ;;  %9983 = vmatprep.subr.bf16.mxu0 %v9982_v16  ;;  %v10018_v16 = vpack.c.bf16 %v7613_v48, %v7611_v6  ;;  %v7086_v11 = vld [vmem:[#allocation5 + $0x88] sm:$0xff]  ;;  %v7651_v48 = vld [vmem:[%s17825_s6 + $0x1168] sm:$0xff] }
 0x9fb   :  { %v7024_v31 = vpop.permute.xlu0 %7023  ;;  %9441 = vmatprep.mubr.msk.f32.mxu1 %vm10739_vm4, %v18082_v54  ;;  %v7648_v6 = vld [vmem:[%s17825_s6 + $0x1150] sm:$0xff] }
 0x9fc   :  { %7026 = vst.msk [vmem:[#allocation5 + $0x90] sm:$0xff] %vm6881_vm10, %v7024_v31  ;;  %v7616_v31 = vld [vmem:[%s17825_s6 + $0x1050] sm:$0xff] }
 0x9fd   :  { %9985 = vmatpush1.bf16.msra.mxu0 %v9984_v7  ;;  %v5964_v45 = vld [vmem:[#allocation3 + $0x490] sm:$0xff]  ;;  %v10020_v7 = vpack.c.bf16 %v7612_v17, %v7610_v50  ;;  %v7650_v17 = vld [vmem:[%s17825_s6 + $0x1160] sm:$0xff] }
 0x9fe   :  { %9442 = vmatmul.mubr.msk.f32.gmra.mrb[194].mxu1 %vm604_vm3, %v5964_v45  ;;  %9987 = vmatprep.subr.bf16.mxu0 %v9986_v53  ;;  %v7621_v45 = vld [vmem:[%s17825_s6 + $0x1078] sm:$0xff] }
 0xa01   :  { %9989 = vmatpush1.bf16.msra.mxu0 %v9988_v56  ;;  %v10024_v56 = vpack.c.bf16 %v7616_v31, %v7614_v24  ;;  %v7659_v24 = vld [vmem:[%s17825_s6 + $0x11a8] sm:$0xff]  ;;  %v7661_v31 = vld [vmem:[%s17825_s6 + $0x11b8] sm:$0xff] }
 0xa02   :  { %v7032_v37 = vpop.permute.xlu1 %7031  ;;  %9991 = vmatprep.subr.bf16.mxu0 %v9990_v4  ;;  %v10026_v4 = vpack.c.bf16 %v7621_v45, %v7619_v60  ;;  %v10066_v60 = vpack.c.bf16 %v7661_v31, %v7659_v24  ;;  %v7658_v45 = vld [vmem:[%s17825_s6 + $0x11a0] sm:$0xff] }
 0xa03   :  { %7034 = vst.msk [vmem:[#allocation5 + $0x98] sm:$0xff] %vm6881_vm10, %v7032_v37  ;;  %v10030_v37 = vpack.c.bf16 %v7625_v27, %v7623_v38  ;;  %v7662_v27 = vld [vmem:[%s17825_s6 + $0x11c0] sm:$0xff] }
 0xa05   :  { %9993 = vmatpush1.bf16.msra.mxu0 %v9992_v28  ;;  %v10028_v28 = vpack.c.bf16 %v7620_v10, %v7618_v35  ;;  %v7665_v35 = vld [vmem:[%s17825_s6 + $0x11d8] sm:$0xff] }
 0xa06   :  { %9995 = vmatprep.subr.bf16.mxu0 %v9994_v5  ;;  %v7622_v5 = vld [vmem:[%s17825_s6 + $0x1080] sm:$0xff] }
 0xa07   :  { %v10032_v57 = vpack.c.bf16 %v7624_v14, %v7622_v5  ;;  %v7669_v5 = vld [vmem:[%s17825_s6 + $0x11f8] sm:$0xff] }
 0xa09   :  { %9997 = vmatpush1.bf16.msra.mxu0 %v9996_v40  ;;  %v10034_v40 = vpack.c.bf16 %v7629_v59, %v7627_v34  ;;  %v7666_v59 = vld [vmem:[%s17825_s6 + $0x11e0] sm:$0xff] }
 0xa0a   :  { %v7040_v49 = vpop.permute.xlu0 %7039  ;;  %9999 = vmatprep.subr.bf16.mxu0 %v9998_v23  ;;  %v7626_v23 = vld [vmem:[%s17825_s6 + $0x10a0] sm:$0xff] }
 0xa0b   :  { %7042 = vst.msk [vmem:[#allocation5 + $0xa0] sm:$0xff] %vm6881_vm10, %v7040_v49  ;;  %v10036_v43 = vpack.c.bf16 %v7628_v42, %v7626_v23  ;;  %v7630_v49 = vld [vmem:[%s17825_s6 + $0x10c0] sm:$0xff]  ;;  %v7673_v23 = vld [vmem:[%s17825_s6 + $0x1218] sm:$0xff]  ;;  %v7863_v42 = vld [vmem:[%s17825_s6 + $0x1808] sm:$0xff] }
 0xa0d   :  { %10001 = vmatpush1.bf16.msra.mxu0 %v10000_v9  ;;  %v10038_v9 = vpack.c.bf16 %v7633_v12, %v7631_v39  ;;  %v7865_v39 = vld [vmem:[%s17825_s6 + $0x1818] sm:$0xff] }
 0xa0e   :  { %v6879_v46 = vpop.permute.xlu0 %6878  ;;  %10003 = vmatprep.subr.bf16.mxu0 %v10002_v47  ;;  %v7632_v47 = vld [vmem:[%s17825_s6 + $0x10d0] sm:$0xff] }
 0xa0f   :  { %6882 = vst.msk [vmem:[#allocation5] sm:$0xff] %vm6881_vm10, %v6879_v46  ;;  %v10040_v0 = vpack.c.bf16 %v7632_v47, %v7630_v49  ;;  %v7636_v46 = vld [vmem:[%s17825_s6 + $0x10f0] sm:$0xff]  ;;  %v7670_v47 = vld [vmem:[%s17825_s6 + $0x1200] sm:$0xff] }
 0xa11   :  { %10005 = vmatpush1.bf16.msra.mxu0 %v10004_v41  ;;  %v7634_v41 = vld [vmem:[%s17825_s6 + $0x10e0] sm:$0xff] }
 0xa12   :  { %v7048_v25 = vpop.permute.xlu1 %7047  ;;  %10007 = vmatprep.subr.bf16.mxu0 %v10006_v36  ;;  %v7639_v36 = vld [vmem:[%s17825_s6 + $0x1108] sm:$0xff]  ;;  %v10044_v63 = vpack.c.bf16 %v7636_v46, %v7634_v41 }
 0xa13   :  { %7050 = vst.msk [vmem:[#allocation5 + $0xa8] sm:$0xff] %vm6881_vm10, %v7048_v25  ;;  %v10046_v8 = vpack.c.bf16 %v7641_v29, %v7639_v36  ;;  %v7643_v25 = vld [vmem:[%s17825_s6 + $0x1128] sm:$0xff]  ;;  %v7869_v36 = vld [vmem:[%s17825_s6 + $0x1838] sm:$0xff]  ;;  %v10080_v29 = vpack.c.bf16 %v7672_v26, %v7670_v47 }
 0xa14   :  { %v7867_v46 = vld [vmem:[%s17825_s6 + $0x1828] sm:$0xff] }
 0xa15   :  { %10009 = vmatpush1.bf16.msra.mxu0 %v10008_v21  ;;  %v7640_v21 = vld [vmem:[%s17825_s6 + $0x1110] sm:$0xff] }
 0xa16   :  { %v6888_v15 = vpop.permute.xlu1 %6887  ;;  %10011 = vmatprep.subr.bf16.mxu0 %v10010_v22  ;;  %v7069_v20 = vld [vmem:[#allocation5] sm:$0xff]  ;;  %v7645_v22 = vld [vmem:[%s17825_s6 + $0x1138] sm:$0xff]  ;;  %v10048_v30 = vpack.c.bf16 %v7640_v21, %v7638_v44  ;;  %v7868_v44 = vld [vmem:[%s17825_s6 + $0x1830] sm:$0xff] }
 0xa17   :  { %6890 = vst.msk [vmem:[#allocation5 + $0x8] sm:$0xff] %vm6881_vm10, %v6888_v15  ;;  %v10050_v61 = vpack.c.bf16 %v7645_v22, %v7643_v25  ;;  %v7649_v15 = vld [vmem:[%s17825_s6 + $0x1158] sm:$0xff]  ;;  %v7674_v25 = vld [vmem:[%s17825_s6 + $0x1220] sm:$0xff]  ;;  %v7676_v22 = vld [vmem:[%s17825_s6 + $0x1230] sm:$0xff] }
 0xa19   :  { %10013 = vmatpush1.bf16.msra.mxu0 %v10012_v19  ;;  %v7647_v19 = vld [vmem:[%s17825_s6 + $0x1148] sm:$0xff] }
 0xa1a   :  { %10015 = vmatprep.subr.bf16.mxu0 %v10014_v58  ;;  %v10052_v58 = vpack.c.bf16 %v7644_v2, %v7642_v52  ;;  %v10054_v1 = vpack.c.bf16 %v7649_v15, %v7647_v19  ;;  %v7679_v52 = vld [vmem:[%s17825_s6 + $0x1248] sm:$0xff]  ;;  %v7681_v2 = vld [vmem:[%s17825_s6 + $0x1258] sm:$0xff]  ;;  %v7088_v19 = vld [vmem:[#allocation5 + $0x98] sm:$0xff] }
 0xa1b   :  { %v7678_v15 = vld [vmem:[%s17825_s6 + $0x1240] sm:$0xff] }
 0xa1c   :  { %8455 = vmatmul.mubr.f32.vlgmr.msra.gmra.mrb[0].mxu0 %v7083_v13  ;;  %v7652_v13 = vld [vmem:[%s17825_s6 + $0x1170] sm:$0xff] }
 0xa1d   :  { %10017 = vmatpush1.bf16.msra.mxu0 %v10016_v62  ;;  %8525 = vmatprep.mubr.f32.mxu0 %v7086_v11  ;;  %v7653_v62 = vld [vmem:[%s17825_s6 + $0x1178] sm:$0xff]  ;;  %v10060_v11 = vpack.c.bf16 %v7652_v13, %v7650_v17  ;;  %v7683_v17 = vld [vmem:[%s17825_s6 + $0x1268] sm:$0xff] }
 0xa1e   :  { %v7070_v53 = vld [vmem:[#allocation5 + $0x8] sm:$0xff]  ;;  %10019 = vmatprep.subr.bf16.mxu0 %v10018_v16  ;;  %v10056_v16 = vpack.c.bf16 %v7648_v6, %v7646_v33  ;;  %v10058_v50 = vpack.c.bf16 %v7653_v62, %v7651_v48  ;;  %v10084_v33 = vpack.c.bf16 %v7676_v22, %v7674_v25  ;;  %v7870_v62 = vld [vmem:[%s17825_s6 + $0x1840] sm:$0xff] }
 0xa1f   :  { %7957 = vmatprep.mubr.f32.mxu1 %v7070_v53  ;;  %v7654_v53 = vld [vmem:[%s17825_s6 + $0x1180] sm:$0xff]  ;;  %v7680_v6 = vld [vmem:[%s17825_s6 + $0x1250] sm:$0xff] }
 0xa20   :  { %7958 = vmatmul.mubr.f32.vlgmr.msra.gmra.mrb[196].mxu1 %v7069_v20  ;;  %v10088_v24 = vpack.c.bf16 %v7680_v6, %v7678_v15  ;;  %v7706_v22 = vld [vmem:[%s17825_s6 + $0x1320] sm:$0xff] }
 0xa21   :  { %10021 = vmatpush1.bf16.msra.mxu0 %v10020_v7  ;;  %8809 = vmatprep.mubr.f32.mxu1 %v18082_v54  ;;  %v10062_v7 = vpack.c.bf16 %v7657_v32, %v7655_v51  ;;  %v7875_v51 = vld [vmem:[%s17825_s6 + $0x1868] sm:$0xff]  ;;  %v7877_v32 = vld [vmem:[%s17825_s6 + $0x1878] sm:$0xff]  ;;  %v7710_v15 = vld [vmem:[%s17825_s6 + $0x1340] sm:$0xff] }
 0xa22   :  { %10023 = vmatprep.subr.bf16.mxu0 %v10022_v55  ;;  %v7656_v55 = vld [vmem:[%s17825_s6 + $0x1190] sm:$0xff] }
 0xa23   :  { %v10064_v20 = vpack.c.bf16 %v7656_v55, %v7654_v53  ;;  %v7874_v53 = vld [vmem:[%s17825_s6 + $0x1860] sm:$0xff]  ;;  %v7876_v55 = vld [vmem:[%s17825_s6 + $0x1870] sm:$0xff] }
 0xa25   :  { %10025 = vmatpush1.bf16.msra.mxu0 %v10024_v56  ;;  %v7660_v56 = vld [vmem:[%s17825_s6 + $0x11b0] sm:$0xff] }
 0xa26   :  { %10027 = vmatprep.subr.bf16.mxu0 %v10026_v4  ;;  %v7663_v4 = vld [vmem:[%s17825_s6 + $0x11c8] sm:$0xff]  ;;  %v10068_v10 = vpack.c.bf16 %v7660_v56, %v7658_v45  ;;  %v10284_v45 = vpack.c.bf16 %v7876_v55, %v7874_v53  ;;  %v7725_v53 = vld [vmem:[%s17825_s6 + $0x13b8] sm:$0xff] }
 0xa27   :  { %v10070_v38 = vpack.c.bf16 %v7665_v35, %v7663_v4  ;;  %v7687_v56 = vld [vmem:[%s17825_s6 + $0x1288] sm:$0xff]  ;;  %v7689_v4 = vld [vmem:[%s17825_s6 + $0x1298] sm:$0xff] }
 0xa29   :  { %10029 = vmatpush1.bf16.msra.mxu0 %v10028_v28  ;;  %v7664_v28 = vld [vmem:[%s17825_s6 + $0x11d0] sm:$0xff] }
 0xa2a   :  { %10031 = vmatprep.subr.bf16.mxu0 %v10030_v37  ;;  %v7667_v37 = vld [vmem:[%s17825_s6 + $0x11e8] sm:$0xff]  ;;  %v10072_v14 = vpack.c.bf16 %v7664_v28, %v7662_v27  ;;  %v7688_v27 = vld [vmem:[%s17825_s6 + $0x1290] sm:$0xff] }
 0xa2b   :  { %v10074_v34 = vpack.c.bf16 %v7669_v5, %v7667_v37  ;;  %v7691_v28 = vld [vmem:[%s17825_s6 + $0x12a8] sm:$0xff]  ;;  %v7693_v37 = vld [vmem:[%s17825_s6 + $0x12b8] sm:$0xff]  ;;  %v18083_v5 = vmov 0.0|0.0  }
 0xa2d   :  { %10033 = vmatpush1.bf16.msra.mxu0 %v10032_v57  ;;  %v7668_v57 = vld [vmem:[%s17825_s6 + $0x11f0] sm:$0xff] }
 0xa2e   :  { %10035 = vmatprep.subr.bf16.mxu0 %v10034_v40  ;;  %v7671_v40 = vld [vmem:[%s17825_s6 + $0x1208] sm:$0xff]  ;;  %v10076_v12 = vpack.c.bf16 %v7668_v57, %v7666_v59  ;;  %v7690_v59 = vld [vmem:[%s17825_s6 + $0x12a0] sm:$0xff]  ;;  %v7692_v57 = vld [vmem:[%s17825_s6 + $0x12b0] sm:$0xff] }
 0xa2f   :  { %v10078_v49 = vpack.c.bf16 %v7673_v23, %v7671_v40  ;;  %v7695_v40 = vld [vmem:[%s17825_s6 + $0x12c8] sm:$0xff]  ;;  %v7697_v23 = vld [vmem:[%s17825_s6 + $0x12d8] sm:$0xff] }
 0xa31   :  { %10037 = vmatpush1.bf16.msra.mxu0 %v10036_v43  ;;  %v10270_v43 = vpack.c.bf16 %v7865_v39, %v7863_v42  ;;  %v10100_v42 = vpack.c.bf16 %v7692_v57, %v7690_v59  ;;  %v10102_v39 = vpack.c.bf16 %v7697_v23, %v7695_v40  ;;  %v7735_v59 = vld [vmem:[%s17825_s6 + $0x1408] sm:$0xff]  ;;  %v7737_v57 = vld [vmem:[%s17825_s6 + $0x1418] sm:$0xff] }
 0xa32   :  { %10039 = vmatprep.subr.bf16.mxu0 %v10038_v9  ;;  %v7862_v9 = vld [vmem:[%s17825_s6 + $0x1800] sm:$0xff]  ;;  %v10142_v23 = vpack.c.bf16 %v7737_v57, %v7735_v59  ;;  %v7775_v59 = vld [vmem:[%s17825_s6 + $0x1548] sm:$0xff]  ;;  %v7777_v57 = vld [vmem:[%s17825_s6 + $0x1558] sm:$0xff] }
 0xa33   :  { %10271 = vmatprep.subr.bf16.mxu1 %v10270_v43  ;;  %v10272_v41 = vpack.c.bf16 %v7864_v3, %v7862_v9  ;;  %v7696_v43 = vld [vmem:[%s17825_s6 + $0x12d0] sm:$0xff]  ;;  %v7699_v9 = vld [vmem:[%s17825_s6 + $0x12e8] sm:$0xff]  ;;  %v7698_v3 = vld [vmem:[%s17825_s6 + $0x12e0] sm:$0xff] }
 0xa35   :  { %10041 = vmatpush1.bf16.msra.mxu0 %v10040_v0  ;;  %v7675_v0 = vld [vmem:[%s17825_s6 + $0x1228] sm:$0xff]  ;;  %10273 = vmatpush1.bf16.msra.mxu1 %v10272_v41  ;;  %v7705_v41 = vld [vmem:[%s17825_s6 + $0x1318] sm:$0xff] }
 0xa36   :  { %10043 = vmatprep.subr.bf16.mxu0 %v10042_v18  ;;  %v7677_v18 = vld [vmem:[%s17825_s6 + $0x1238] sm:$0xff] }
 0xa37   :  { %v10082_v21 = vpack.c.bf16 %v7677_v18, %v7675_v0  ;;  %v7700_v0 = vld [vmem:[%s17825_s6 + $0x12f0] sm:$0xff]  ;;  %v7703_v18 = vld [vmem:[%s17825_s6 + $0x1308] sm:$0xff] }
 0xa39   :  { %10045 = vmatpush1.bf16.msra.mxu0 %v10044_v63  ;;  %v10274_v63 = vpack.c.bf16 %v7869_v36, %v7867_v46  ;;  %v10108_v46 = vpack.c.bf16 %v7700_v0, %v7698_v3  ;;  %v10110_v36 = vpack.c.bf16 %v7705_v41, %v7703_v18  ;;  %v7087_v3 = vld [vmem:[#allocation5 + $0x90] sm:$0xff]  ;;  %v7743_v0 = vld [vmem:[%s17825_s6 + $0x1448] sm:$0xff]  ;;  %v7090_v41 = vld [vmem:[#allocation5 + $0xa8] sm:$0xff] }
 0xa3a   :  { %10047 = vmatprep.subr.bf16.mxu0 %v10046_v8  ;;  %v7866_v8 = vld [vmem:[%s17825_s6 + $0x1820] sm:$0xff]  ;;  %v7745_v18 = vld [vmem:[%s17825_s6 + $0x1458] sm:$0xff] }
 0xa3b   :  { %10275 = vmatprep.subr.bf16.mxu1 %v10274_v63  ;;  %v7704_v63 = vld [vmem:[%s17825_s6 + $0x1310] sm:$0xff] }
 0xa3d   :  { %10049 = vmatpush1.bf16.msra.mxu0 %v10048_v30  ;;  %v10276_v30 = vpack.c.bf16 %v7868_v44, %v7866_v8  ;;  %v7707_v8 = vld [vmem:[%s17825_s6 + $0x1328] sm:$0xff]  ;;  %v7709_v44 = vld [vmem:[%s17825_s6 + $0x1338] sm:$0xff] }
 0xa3e   :  { %10051 = vmatprep.subr.bf16.mxu0 %v10050_v61  ;;  %v7085_v61 = vld [vmem:[#allocation5 + $0x80] sm:$0xff]  ;;  %v10114_v25 = vpack.c.bf16 %v7709_v44, %v7707_v8  ;;  %v7749_v44 = vld [vmem:[%s17825_s6 + $0x1478] sm:$0xff] }
 0xa3f   :  { %10277 = vmatpush1.bf16.msra.mxu1 %v10276_v30  ;;  %v7708_v30 = vld [vmem:[%s17825_s6 + $0x1330] sm:$0xff]  ;;  %v7747_v8 = vld [vmem:[%s17825_s6 + $0x1468] sm:$0xff] }
 0xa41   :  { %10053 = vmatpush1.bf16.msra.mxu0 %v10052_v58  ;;  %v7871_v58 = vld [vmem:[%s17825_s6 + $0x1848] sm:$0xff] }
 0xa42   :  { %10055 = vmatprep.subr.bf16.mxu0 %v10054_v1  ;;  %v7873_v1 = vld [vmem:[%s17825_s6 + $0x1858] sm:$0xff] }
 0xa43   :  { %v10278_v48 = vpack.c.bf16 %v7873_v1, %v7871_v58  ;;  %v7712_v58 = vld [vmem:[%s17825_s6 + $0x1350] sm:$0xff]  ;;  %v7715_v1 = vld [vmem:[%s17825_s6 + $0x1368] sm:$0xff] }
 0xa44   :  { %v10120_v6 = vpack.c.bf16 %v7712_v58, %v7710_v15  ;;  %v7750_v15 = vld [vmem:[%s17825_s6 + $0x1480] sm:$0xff]  ;;  %v7752_v58 = vld [vmem:[%s17825_s6 + $0x1490] sm:$0xff] }
 0xa45   :  { %10057 = vmatpush1.bf16.msra.mxu0 %v10056_v16  ;;  %v7872_v16 = vld [vmem:[%s17825_s6 + $0x1850] sm:$0xff]  ;;  %10279 = vmatprep.subr.bf16.mxu1 %v10278_v48 }
 0xa46   :  { %10059 = vmatprep.subr.bf16.mxu0 %v10058_v50  ;;  %v10086_v50 = vpack.c.bf16 %v7681_v2, %v7679_v52  ;;  %v10280_v13 = vpack.c.bf16 %v7872_v16, %v7870_v62  ;;  %v7713_v52 = vld [vmem:[%s17825_s6 + $0x1358] sm:$0xff]  ;;  %v10116_v2 = vpack.c.bf16 %v7708_v30, %v7706_v22  ;;  %v7714_v62 = vld [vmem:[%s17825_s6 + $0x1360] sm:$0xff]  ;;  %v7716_v16 = vld [vmem:[%s17825_s6 + $0x1370] sm:$0xff] }
 0xa47   :  { %v7746_v22 = vld [vmem:[%s17825_s6 + $0x1460] sm:$0xff]  ;;  %v7748_v30 = vld [vmem:[%s17825_s6 + $0x1470] sm:$0xff] }
 0xa48   :  { %10281 = vmatpush1.bf16.msra.mxu1 %v10280_v13  ;;  %v10124_v13 = vpack.c.bf16 %v7716_v16, %v7714_v62  ;;  %v7754_v62 = vld [vmem:[%s17825_s6 + $0x14a0] sm:$0xff]  ;;  %v7756_v16 = vld [vmem:[%s17825_s6 + $0x14b0] sm:$0xff] }
 0xa49   :  { %10061 = vmatpush1.bf16.msra.mxu0 %v10060_v11  ;;  %v7685_v11 = vld [vmem:[%s17825_s6 + $0x1278] sm:$0xff] }
 0xa4a   :  { %10063 = vmatprep.subr.bf16.mxu0 %v10062_v7  ;;  %v10282_v7 = vpack.c.bf16 %v7877_v32, %v7875_v51  ;;  %v10090_v31 = vpack.c.bf16 %v7685_v11, %v7683_v17  ;;  %v7721_v17 = vld [vmem:[%s17825_s6 + $0x1398] sm:$0xff]  ;;  %v7718_v32 = vld [vmem:[%s17825_s6 + $0x1380] sm:$0xff]  ;;  %v7720_v11 = vld [vmem:[%s17825_s6 + $0x1390] sm:$0xff] }
 0xa4b   :  { %v10128_v55 = vpack.c.bf16 %v7720_v11, %v7718_v32  ;;  %v7758_v32 = vld [vmem:[%s17825_s6 + $0x14c0] sm:$0xff]  ;;  %v7760_v11 = vld [vmem:[%s17825_s6 + $0x14d0] sm:$0xff] }
 0xa4c   :  { %10283 = vmatprep.subr.bf16.mxu1 %v10282_v7  ;;  %v7723_v7 = vld [vmem:[%s17825_s6 + $0x13a8] sm:$0xff] }
 0xa4d   :  { %10065 = vmatpush1.bf16.msra.mxu0 %v10064_v20  ;;  %v7682_v20 = vld [vmem:[%s17825_s6 + $0x1260] sm:$0xff]  ;;  %10285 = vmatpush1.bf16.msra.mxu1 %v10284_v45  ;;  %v7729_v45 = vld [vmem:[%s17825_s6 + $0x13d8] sm:$0xff] }
 0xa4e   :  { %10067 = vmatprep.subr.bf16.mxu0 %v10066_v60  ;;  %v7684_v60 = vld [vmem:[%s17825_s6 + $0x1270] sm:$0xff]  ;;  %10286 = vmatprep.subr.bf16.mxu1 %v18083_v5 }
 0xa4f   :  { %v10092_v35 = vpack.c.bf16 %v7684_v60, %v7682_v20  ;;  %v7724_v20 = vld [vmem:[%s17825_s6 + $0x13b0] sm:$0xff]  ;;  %v7727_v60 = vld [vmem:[%s17825_s6 + $0x13c8] sm:$0xff] }
 0xa51   :  { %10069 = vmatpush1.bf16.msra.mxu0 %v10068_v10  ;;  %v10094_v10 = vpack.c.bf16 %v7689_v4, %v7687_v56  ;;  %v10134_v4 = vpack.c.bf16 %v7729_v45, %v7727_v60  ;;  %v7767_v60 = vld [vmem:[%s17825_s6 + $0x1508] sm:$0xff]  ;;  %v7769_v45 = vld [vmem:[%s17825_s6 + $0x1518] sm:$0xff] }
 0xa52   :  { %10071 = vmatprep.subr.bf16.mxu0 %v10070_v38  ;;  %v7686_v38 = vld [vmem:[%s17825_s6 + $0x1280] sm:$0xff] }
 0xa55   :  { %10073 = vmatpush1.bf16.msra.mxu0 %v10072_v14  ;;  %v10096_v14 = vpack.c.bf16 %v7688_v27, %v7686_v38  ;;  %v7731_v38 = vld [vmem:[%s17825_s6 + $0x13e8] sm:$0xff]  ;;  %v7733_v27 = vld [vmem:[%s17825_s6 + $0x13f8] sm:$0xff] }
 0xa56   :  { %10075 = vmatprep.subr.bf16.mxu0 %v10074_v34  ;;  %v10098_v34 = vpack.c.bf16 %v7693_v37, %v7691_v28  ;;  %v10138_v37 = vpack.c.bf16 %v7733_v27, %v7731_v38  ;;  %v7771_v38 = vld [vmem:[%s17825_s6 + $0x1528] sm:$0xff]  ;;  %v7773_v27 = vld [vmem:[%s17825_s6 + $0x1538] sm:$0xff] }
 0xa59   :  { %10077 = vmatpush1.bf16.msra.mxu0 %v10076_v12  ;;  %v7694_v12 = vld [vmem:[%s17825_s6 + $0x12c0] sm:$0xff] }
 0xa5a   :  { %10079 = vmatprep.subr.bf16.mxu0 %v10078_v49  ;;  %v7701_v49 = vld [vmem:[%s17825_s6 + $0x12f8] sm:$0xff]  ;;  %v10104_v47 = vpack.c.bf16 %v7696_v43, %v7694_v12  ;;  %v7739_v12 = vld [vmem:[%s17825_s6 + $0x1428] sm:$0xff] }
 0xa5b   :  { %v10106_v26 = vpack.c.bf16 %v7701_v49, %v7699_v9  ;;  %v7741_v43 = vld [vmem:[%s17825_s6 + $0x1438] sm:$0xff] }
 0xa5c   :  { %8526 = vmatmul.mubr.f32.vlgmr.msra.gmra.mrb[0].mxu0 %v7085_v61  ;;  %v7711_v61 = vld [vmem:[%s17825_s6 + $0x1348] sm:$0xff]  ;;  %v10146_v49 = vpack.c.bf16 %v7741_v43, %v7739_v12  ;;  %v7781_v43 = vld [vmem:[%s17825_s6 + $0x1578] sm:$0xff] }
 0xa5d   :  { %10081 = vmatpush1.bf16.msra.mxu0 %v10080_v29  ;;  %8596 = vmatprep.mubr.f32.mxu0 %v7088_v19  ;;  %v7702_v29 = vld [vmem:[%s17825_s6 + $0x1300] sm:$0xff]  ;;  %v10118_v19 = vpack.c.bf16 %v7713_v52, %v7711_v61  ;;  %v7751_v61 = vld [vmem:[%s17825_s6 + $0x1488] sm:$0xff]  ;;  %v7753_v52 = vld [vmem:[%s17825_s6 + $0x1498] sm:$0xff] }
 0xa5e   :  { %10083 = vmatprep.subr.bf16.mxu0 %v10082_v21  ;;  %v10112_v21 = vpack.c.bf16 %v7704_v63, %v7702_v29  ;;  %v7742_v29 = vld [vmem:[%s17825_s6 + $0x1440] sm:$0xff]  ;;  %v7744_v63 = vld [vmem:[%s17825_s6 + $0x1450] sm:$0xff]  ;;  %v7779_v12 = vld [vmem:[%s17825_s6 + $0x1568] sm:$0xff] }
 0xa61   :  { %10085 = vmatpush1.bf16.msra.mxu0 %v10084_v33  ;;  %v7717_v33 = vld [vmem:[%s17825_s6 + $0x1378] sm:$0xff] }
 0xa62   :  { %10087 = vmatprep.subr.bf16.mxu0 %v10086_v50  ;;  %v10122_v48 = vpack.c.bf16 %v7717_v33, %v7715_v1  ;;  %v7719_v50 = vld [vmem:[%s17825_s6 + $0x1388] sm:$0xff]  ;;  %v7757_v33 = vld [vmem:[%s17825_s6 + $0x14b8] sm:$0xff] }
 0xa63   :  { %v10126_v51 = vpack.c.bf16 %v7721_v17, %v7719_v50  ;;  %v7755_v1 = vld [vmem:[%s17825_s6 + $0x14a8] sm:$0xff]  ;;  %v7761_v17 = vld [vmem:[%s17825_s6 + $0x14d8] sm:$0xff] }
 0xa64   :  { %v7759_v50 = vld [vmem:[%s17825_s6 + $0x14c8] sm:$0xff] }
 0xa65   :  { %10089 = vmatpush1.bf16.msra.mxu0 %v10088_v24  ;;  %v10130_v24 = vpack.c.bf16 %v7725_v53, %v7723_v7  ;;  %v7763_v7 = vld [vmem:[%s17825_s6 + $0x14e8] sm:$0xff]  ;;  %v7765_v53 = vld [vmem:[%s17825_s6 + $0x14f8] sm:$0xff] }
 0xa66   :  { %10091 = vmatprep.subr.bf16.mxu0 %v10090_v31  ;;  %v7722_v31 = vld [vmem:[%s17825_s6 + $0x13a0] sm:$0xff] }
 0xa67   :  { %v10132_v56 = vpack.c.bf16 %v7724_v20, %v7722_v31  ;;  %v7762_v31 = vld [vmem:[%s17825_s6 + $0x14e0] sm:$0xff]  ;;  %v7764_v20 = vld [vmem:[%s17825_s6 + $0x14f0] sm:$0xff] }
 0xa69   :  { %10093 = vmatpush1.bf16.msra.mxu0 %v10092_v35  ;;  %v7726_v35 = vld [vmem:[%s17825_s6 + $0x13c0] sm:$0xff] }
 0xa6a   :  { %10095 = vmatprep.subr.bf16.mxu0 %v10094_v10  ;;  %v7728_v10 = vld [vmem:[%s17825_s6 + $0x13d0] sm:$0xff] }
 0xa6b   :  { %v10136_v28 = vpack.c.bf16 %v7728_v10, %v7726_v35  ;;  %v7766_v35 = vld [vmem:[%s17825_s6 + $0x1500] sm:$0xff]  ;;  %v7768_v10 = vld [vmem:[%s17825_s6 + $0x1510] sm:$0xff] }
 0xa6d   :  { %10097 = vmatpush1.bf16.msra.mxu0 %v10096_v14  ;;  %v7730_v14 = vld [vmem:[%s17825_s6 + $0x13e0] sm:$0xff] }
 0xa6e   :  { %10099 = vmatprep.subr.bf16.mxu0 %v10098_v34  ;;  %v7732_v34 = vld [vmem:[%s17825_s6 + $0x13f0] sm:$0xff] }
 0xa6f   :  { %v10140_v40 = vpack.c.bf16 %v7732_v34, %v7730_v14  ;;  %v7770_v14 = vld [vmem:[%s17825_s6 + $0x1520] sm:$0xff]  ;;  %v7772_v34 = vld [vmem:[%s17825_s6 + $0x1530] sm:$0xff] }
 0xa71   :  { %10101 = vmatpush1.bf16.msra.mxu0 %v10100_v42  ;;  %v7734_v42 = vld [vmem:[%s17825_s6 + $0x1400] sm:$0xff] }
 0xa72   :  { %10103 = vmatprep.subr.bf16.mxu0 %v10102_v39  ;;  %v7736_v39 = vld [vmem:[%s17825_s6 + $0x1410] sm:$0xff] }
 0xa73   :  { %v10144_v9 = vpack.c.bf16 %v7736_v39, %v7734_v42  ;;  %v7774_v42 = vld [vmem:[%s17825_s6 + $0x1540] sm:$0xff]  ;;  %v7776_v39 = vld [vmem:[%s17825_s6 + $0x1550] sm:$0xff] }
 0xa75   :  { %10105 = vmatpush1.bf16.msra.mxu0 %v10104_v47  ;;  %v7738_v47 = vld [vmem:[%s17825_s6 + $0x1420] sm:$0xff] }
 0xa76   :  { %10107 = vmatprep.subr.bf16.mxu0 %v10106_v26  ;;  %v7740_v26 = vld [vmem:[%s17825_s6 + $0x1430] sm:$0xff] }
 0xa79   :  { %10109 = vmatpush1.bf16.msra.mxu0 %v10108_v46  ;;  %v10148_v46 = vpack.c.bf16 %v7740_v26, %v7738_v47  ;;  %v10735_v47 = vld [vmem:[%s17826_s5] ss:$0 sm:$0xff] }
 0xa7a   :  { %10111 = vmatprep.subr.bf16.mxu0 %v10110_v36  ;;  %v10150_v36 = vpack.c.bf16 %v7745_v18, %v7743_v0  ;;  %v10186_v0 = vpack.c.bf16 %v7781_v43, %v7779_v12  ;;  %v7778_v18 = vld [vmem:[%s17825_s6 + $0x1560] sm:$0xff] }
 0xa7d   :  { %10113 = vmatpush1.bf16.msra.mxu0 %v10112_v21  ;;  %v10152_v21 = vpack.c.bf16 %v7744_v63, %v7742_v29 }
 0xa7e   :  { %10115 = vmatprep.subr.bf16.mxu0 %v10114_v25  ;;  %v10154_v25 = vpack.c.bf16 %v7749_v44, %v7747_v8 }
 0xa81   :  { %10117 = vmatpush1.bf16.msra.mxu0 %v10116_v2  ;;  %v10156_v2 = vpack.c.bf16 %v7748_v30, %v7746_v22  ;;  %v7782_v22 = vld [vmem:[%s17825_s6 + $0x1580] sm:$0xff]  ;;  %v7784_v30 = vld [vmem:[%s17825_s6 + $0x1590] sm:$0xff] }
 0xa82   :  { %10119 = vmatprep.subr.bf16.mxu0 %v10118_v19  ;;  %v10158_v19 = vpack.c.bf16 %v7753_v52, %v7751_v61  ;;  %v7787_v61 = vld [vmem:[%s17825_s6 + $0x15a8] sm:$0xff]  ;;  %v7789_v52 = vld [vmem:[%s17825_s6 + $0x15b8] sm:$0xff] }
 0xa85   :  { %10121 = vmatpush1.bf16.msra.mxu0 %v10120_v6  ;;  %v10160_v6 = vpack.c.bf16 %v7752_v58, %v7750_v15  ;;  %v10192_v15 = vpack.c.bf16 %v7784_v30, %v7782_v22  ;;  %v7812_v22 = vld [vmem:[%s17825_s6 + $0x1670] sm:$0xff]  ;;  %v7815_v30 = vld [vmem:[%s17825_s6 + $0x1688] sm:$0xff] }
 0xa86   :  { %10123 = vmatprep.subr.bf16.mxu0 %v10122_v48  ;;  %v10162_v48 = vpack.c.bf16 %v7757_v33, %v7755_v1  ;;  %v10194_v33 = vpack.c.bf16 %v7789_v52, %v7787_v61  ;;  %v7817_v61 = vld [vmem:[%s17825_s6 + $0x1698] sm:$0xff] }
 0xa89   :  { %10125 = vmatpush1.bf16.msra.mxu0 %v10124_v13  ;;  %v10164_v13 = vpack.c.bf16 %v7756_v16, %v7754_v62  ;;  %v7791_v62 = vld [vmem:[%s17825_s6 + $0x15c8] sm:$0xff]  ;;  %v7793_v16 = vld [vmem:[%s17825_s6 + $0x15d8] sm:$0xff] }
 0xa8a   :  { %10127 = vmatprep.subr.bf16.mxu0 %v10126_v51  ;;  %v10166_v51 = vpack.c.bf16 %v7761_v17, %v7759_v50 }
 0xa8d   :  { %10129 = vmatpush1.bf16.msra.mxu0 %v10128_v55  ;;  %v10168_v55 = vpack.c.bf16 %v7760_v11, %v7758_v32 }
 0xa8e   :  { %10131 = vmatprep.subr.bf16.mxu0 %v10130_v24  ;;  %v10170_v24 = vpack.c.bf16 %v7765_v53, %v7763_v7  ;;  %v10198_v7 = vpack.c.bf16 %v7793_v16, %v7791_v62  ;;  %v7790_v53 = vld [vmem:[%s17825_s6 + $0x15c0] sm:$0xff]  ;;  %v7820_v16 = vld [vmem:[%s17825_s6 + $0x16b0] sm:$0xff] }
 0xa8f   :  { %v7818_v62 = vld [vmem:[%s17825_s6 + $0x16a0] sm:$0xff] }
 0xa91   :  { %10133 = vmatpush1.bf16.msra.mxu0 %v10132_v56  ;;  %v10172_v56 = vpack.c.bf16 %v7764_v20, %v7762_v31  ;;  %v7797_v31 = vld [vmem:[%s17825_s6 + $0x15f8] sm:$0xff] }
 0xa92   :  { %10135 = vmatprep.subr.bf16.mxu0 %v10134_v4  ;;  %v10174_v4 = vpack.c.bf16 %v7769_v45, %v7767_v60 }
 0xa95   :  { %10137 = vmatpush1.bf16.msra.mxu0 %v10136_v28  ;;  %v10176_v28 = vpack.c.bf16 %v7768_v10, %v7766_v35 }
 0xa96   :  { %10139 = vmatprep.subr.bf16.mxu0 %v10138_v37  ;;  %v10178_v37 = vpack.c.bf16 %v7773_v27, %v7771_v38  ;;  %v7794_v38 = vld [vmem:[%s17825_s6 + $0x15e0] sm:$0xff]  ;;  %v7796_v27 = vld [vmem:[%s17825_s6 + $0x15f0] sm:$0xff] }
 0xa99   :  { %10141 = vmatpush1.bf16.msra.mxu0 %v10140_v40  ;;  %v10180_v40 = vpack.c.bf16 %v7772_v34, %v7770_v14  ;;  %v10204_v34 = vpack.c.bf16 %v7796_v27, %v7794_v38  ;;  %v7830_v38 = vld [vmem:[%s17825_s6 + $0x1700] sm:$0xff]  ;;  %v7832_v27 = vld [vmem:[%s17825_s6 + $0x1710] sm:$0xff] }
 0xa9a   :  { %10143 = vmatprep.subr.bf16.mxu0 %v10142_v23  ;;  %v10182_v23 = vpack.c.bf16 %v7777_v57, %v7775_v59 }
 0xa9c   :  { %8597 = vmatmul.mubr.f32.vlgmr.msra.gmra.mrb[0].mxu0 %v7087_v3 }
 0xa9d   :  { %10145 = vmatpush1.bf16.msra.mxu0 %v10144_v9  ;;  %8667 = vmatprep.mubr.f32.mxu0 %v7090_v41  ;;  %v7780_v41 = vld [vmem:[%s17825_s6 + $0x1570] sm:$0xff] }
 0xa9e   :  { %10147 = vmatprep.subr.bf16.mxu0 %v10146_v49  ;;  %v10184_v49 = vpack.c.bf16 %v7776_v39, %v7774_v42  ;;  %v10188_v8 = vpack.c.bf16 %v7780_v41, %v7778_v18  ;;  %v7803_v42 = vld [vmem:[%s17825_s6 + $0x1628] sm:$0xff]  ;;  %v7805_v39 = vld [vmem:[%s17825_s6 + $0x1638] sm:$0xff] }
 0xaa1   :  { %10149 = vmatpush1.bf16.msra.mxu0 %v10148_v46  ;;  %v7783_v46 = vld [vmem:[%s17825_s6 + $0x1588] sm:$0xff] }
 0xaa2   :  { %10151 = vmatprep.subr.bf16.mxu0 %v10150_v36  ;;  %v7785_v36 = vld [vmem:[%s17825_s6 + $0x1598] sm:$0xff] }
 0xaa5   :  { %10153 = vmatpush1.bf16.msra.mxu0 %v10152_v21 }
 0xaa6   :  { %10155 = vmatprep.subr.bf16.mxu0 %v10154_v25  ;;  %v10190_v25 = vpack.c.bf16 %v7785_v36, %v7783_v46  ;;  %v7806_v36 = vld [vmem:[%s17825_s6 + $0x1640] sm:$0xff] }
 0xaa9   :  { %10157 = vmatpush1.bf16.msra.mxu0 %v10156_v2 }
 0xaaa   :  { %10159 = vmatprep.subr.bf16.mxu0 %v10158_v19 }
 0xaad   :  { %10161 = vmatpush1.bf16.msra.mxu0 %v10160_v6  ;;  %v7786_v6 = vld [vmem:[%s17825_s6 + $0x15a0] sm:$0xff] }
 0xaae   :  { %10163 = vmatprep.subr.bf16.mxu0 %v10162_v48  ;;  %v7788_v48 = vld [vmem:[%s17825_s6 + $0x15b0] sm:$0xff] }
 0xab1   :  { %10165 = vmatpush1.bf16.msra.mxu0 %v10164_v13  ;;  %v10196_v13 = vpack.c.bf16 %v7788_v48, %v7786_v6 }
 0xab2   :  { %10167 = vmatprep.subr.bf16.mxu0 %v10166_v51 }
 0xab5   :  { %10169 = vmatpush1.bf16.msra.mxu0 %v10168_v55  ;;  %v7792_v55 = vld [vmem:[%s17825_s6 + $0x15d0] sm:$0xff] }
 0xab6   :  { %10171 = vmatprep.subr.bf16.mxu0 %v10170_v24  ;;  %v7795_v24 = vld [vmem:[%s17825_s6 + $0x15e8] sm:$0xff] }
 0xab7   :  { %v10202_v10 = vpack.c.bf16 %v7797_v31, %v7795_v24  ;;  %v7826_v31 = vld [vmem:[%s17825_s6 + $0x16e0] sm:$0xff] }
 0xab9   :  { %10173 = vmatpush1.bf16.msra.mxu0 %v10172_v56  ;;  %v10200_v56 = vpack.c.bf16 %v7792_v55, %v7790_v53  ;;  %v7829_v53 = vld [vmem:[%s17825_s6 + $0x16f8] sm:$0xff] }
 0xaba   :  { %10175 = vmatprep.subr.bf16.mxu0 %v10174_v4 }
 0xabd   :  { %10177 = vmatpush1.bf16.msra.mxu0 %v10176_v28  ;;  %v7799_v28 = vld [vmem:[%s17825_s6 + $0x1608] sm:$0xff] }
 0xabe   :  { %10179 = vmatprep.subr.bf16.mxu0 %v10178_v37  ;;  %v7801_v37 = vld [vmem:[%s17825_s6 + $0x1618] sm:$0xff] }
 0xabf   :  { %v10206_v57 = vpack.c.bf16 %v7801_v37, %v7799_v28  ;;  %v7835_v28 = vld [vmem:[%s17825_s6 + $0x1728] sm:$0xff]  ;;  %v7837_v37 = vld [vmem:[%s17825_s6 + $0x1738] sm:$0xff] }
 0xac1   :  { %10181 = vmatpush1.bf16.msra.mxu0 %v10180_v40  ;;  %v6751_v9 = vpop.f32.mrb[186].mxu1  ;;  %v7798_v40 = vld [vmem:[%s17825_s6 + $0x1600] sm:$0xff] }
 0xac2   :  { %v10366_v26 = vadd.f32 %v10735_v47, %v6751_v9  ;;  %v9431_v3 = vpop.f32.mrb[187].mxu1  ;;  %10183 = vmatprep.subr.bf16.mxu0 %v10182_v23  ;;  %v7800_v23 = vld [vmem:[%s17825_s6 + $0x1610] sm:$0xff]  ;;  %v10210_v9 = vpack.c.bf16 %v7805_v39, %v7803_v42 }
 0xac3   :  { %v10208_v43 = vpack.c.bf16 %v7800_v23, %v7798_v40  ;;  %v7807_v3 = vld [vmem:[%s17825_s6 + $0x1648] sm:$0xff]  ;;  %v7841_v23 = vld [vmem:[%s17825_s6 + $0x1758] sm:$0xff] }
 0xac4   :  { %v6819_v29 = vmax.f32 %v10366_v26, 0.0  ;;  %v7089_v26 = vld [vmem:[#allocation5 + $0xa0] sm:$0xff] }
 0xac5   :  { %10185 = vmatpush1.bf16.msra.mxu0 %v10184_v49  ;;  %v6756_v63 = vpop.f32.mrb[188].mxu1  ;;  %v7802_v49 = vld [vmem:[%s17825_s6 + $0x1620] sm:$0xff]  ;;  %v7839_v40 = vld [vmem:[%s17825_s6 + $0x1748] sm:$0xff] }
 0xac6   :  { %6869 = vst.msk [vmem:[#allocation4 + $0x160] sm:$0xff] %vm6824_vm9, %v6819_v29  ;;  %v10367_v44 = vadd.f32 %v10735_v47, %v6756_v63  ;;  %v9434_v21 = vpop.f32.mrb[189].mxu1  ;;  %10187 = vmatprep.subr.bf16.mxu0 %v10186_v0  ;;  %v7809_v0 = vld [vmem:[%s17825_s6 + $0x1658] sm:$0xff]  ;;  %v7808_v29 = vld [vmem:[%s17825_s6 + $0x1650] sm:$0xff]  ;;  %v7811_v63 = vld [vmem:[%s17825_s6 + $0x1668] sm:$0xff]  ;;  %v10246_v39 = vpack.c.bf16 %v7841_v23, %v7839_v40 }
 0xac7   :  { %v10214_v46 = vpack.c.bf16 %v7809_v0, %v7807_v3  ;;  %v7842_v3 = vld [vmem:[%s17825_s6 + $0x1760] sm:$0xff]  ;;  %v7844_v0 = vld [vmem:[%s17825_s6 + $0x1770] sm:$0xff]  ;;  %v8833_v23 = vld [vmem:[%s17827_s8 + $0x78] sm:$0xff] }
 0xac8   :  { %v6820_v2 = vmax.f32 %v10367_v44, 0.0  ;;  %v10216_v44 = vpack.c.bf16 %v7808_v29, %v7806_v36  ;;  %v7846_v29 = vld [vmem:[%s17825_s6 + $0x1780] sm:$0xff]  ;;  %v8832_v40 = vld [vmem:[%s17827_s8 + $0x70] sm:$0xff] }
 0xac9   :  { %10189 = vmatpush1.bf16.msra.mxu0 %v10188_v8  ;;  %v6761_v19 = vpop.f32.mrb[190].mxu1  ;;  %v7813_v8 = vld [vmem:[%s17825_s6 + $0x1678] sm:$0xff] }
 0xaca   :  { %6870 = vst.msk [vmem:[#allocation4 + $0x168] sm:$0xff] %vm6824_vm9, %v6820_v2  ;;  %v10368_v58 = vadd.f32 %v10735_v47, %v6761_v19  ;;  %v9437_v1 = vpop.f32.mrb[191].mxu1  ;;  %10191 = vmatprep.subr.bf16.mxu0 %v10190_v25  ;;  %v10218_v21 = vpack.c.bf16 %v7813_v8, %v7811_v63  ;;  %v7810_v25 = vld [vmem:[%s17825_s6 + $0x1660] sm:$0xff]  ;;  %v10222_v19 = vpack.c.bf16 %v7817_v61, %v7815_v30  ;;  %v7848_v63 = vld [vmem:[%s17825_s6 + $0x1790] sm:$0xff]  ;;  %v7851_v8 = vld [vmem:[%s17825_s6 + $0x17a8] sm:$0xff] }
 0xacb   :  { %v10220_v2 = vpack.c.bf16 %v7812_v22, %v7810_v25  ;;  %v7819_v1 = vld [vmem:[%s17825_s6 + $0x16a8] sm:$0xff]  ;;  %v7850_v22 = vld [vmem:[%s17825_s6 + $0x17a0] sm:$0xff]  ;;  %v7852_v30 = vld [vmem:[%s17825_s6 + $0x17b0] sm:$0xff] }
 0xacc   :  { %v6821_v50 = vmax.f32 %v10368_v58, 0.0  ;;  %v7816_v58 = vld [vmem:[%s17825_s6 + $0x1690] sm:$0xff]  ;;  %v7855_v61 = vld [vmem:[%s17825_s6 + $0x17c8] sm:$0xff] }
 0xacd   :  { %10193 = vmatpush1.bf16.msra.mxu0 %v10192_v15  ;;  %v6766_v17 = vpop.f32.mrb[192].mxu1  ;;  %v7051_v51 = vld [vmem:[#allocation4 + $0x160] sm:$0xff] }
 0xace   :  { %6871 = vst.msk [vmem:[#allocation4 + $0x170] sm:$0xff] %vm6824_vm9, %v6821_v50  ;;  %v10369_v32 = vadd.f32 %v10735_v47, %v6766_v17  ;;  %v9440_v11 = vpop.f32.mrb[193].mxu1  ;;  %10195 = vmatprep.subr.bf16.mxu0 %v10194_v33  ;;  %7052 = vst.msk [vmem:[#allocation5 + $0xb0] sm:$0xff] %vm6824_vm9, %v7051_v51  ;;  %v7814_v15 = vld [vmem:[%s17825_s6 + $0x1680] sm:$0xff]  ;;  %v7821_v33 = vld [vmem:[%s17825_s6 + $0x16b8] sm:$0xff] }
 0xacf   :  { %v10224_v6 = vpack.c.bf16 %v7816_v58, %v7814_v15  ;;  %v10226_v48 = vpack.c.bf16 %v7821_v33, %v7819_v1  ;;  %v7823_v50 = vld [vmem:[%s17825_s6 + $0x16c8] sm:$0xff]  ;;  %v7825_v17 = vld [vmem:[%s17825_s6 + $0x16d8] sm:$0xff]  ;;  %v7824_v11 = vld [vmem:[%s17825_s6 + $0x16d0] sm:$0xff] }
 0xad0   :  { %v6822_v20 = vmax.f32 %v10369_v32, 0.0  ;;  %v10230_v51 = vpack.c.bf16 %v7825_v17, %v7823_v50  ;;  %v7822_v32 = vld [vmem:[%s17825_s6 + $0x16c0] sm:$0xff]  ;;  %v7856_v58 = vld [vmem:[%s17825_s6 + $0x17d0] sm:$0xff]  ;;  %v7859_v1 = vld [vmem:[%s17825_s6 + $0x17e8] sm:$0xff] }
 0xad1   :  { %10197 = vmatpush1.bf16.msra.mxu0 %v10196_v13  ;;  %v6771_v60 = vpop.f32.mrb[194].mxu1  ;;  %v7053_v45 = vld [vmem:[#allocation4 + $0x168] sm:$0xff]  ;;  %v10228_v13 = vpack.c.bf16 %v7820_v16, %v7818_v62  ;;  %v10232_v55 = vpack.c.bf16 %v7824_v11, %v7822_v32  ;;  %v7854_v15 = vld [vmem:[%s17825_s6 + $0x17c0] sm:$0xff]  ;;  %v7861_v33 = vld [vmem:[%s17825_s6 + $0x17f8] sm:$0xff] }
 0xad2   :  { %6872 = vst.msk [vmem:[#allocation4 + $0x178] sm:$0xff] %vm6824_vm9, %v6822_v20  ;;  %v10370_v4 = vadd.f32 %v10735_v47, %v6771_v60  ;;  %7055 = vrot.lane.b32.xlu0 %v7053_v45, %s10749_s22  ;;  %v9443_v35 = vpop.f32.mrb[195].mxu1  ;;  %10199 = vmatprep.subr.bf16.mxu0 %v10198_v7  ;;  %v7804_v47 = vld [vmem:[%s17825_s6 + $0x1630] sm:$0xff]  ;;  %v7827_v7 = vld [vmem:[%s17825_s6 + $0x16e8] sm:$0xff]  ;;  %v7858_v62 = vld [vmem:[%s17825_s6 + $0x17e0] sm:$0xff] }
 0xad3   :  { %v10212_v41 = vpack.c.bf16 %v7804_v47, %v7802_v49  ;;  %v10234_v24 = vpack.c.bf16 %v7829_v53, %v7827_v7  ;;  %v7828_v20 = vld [vmem:[%s17825_s6 + $0x16f0] sm:$0xff]  ;;  %v7831_v45 = vld [vmem:[%s17825_s6 + $0x1708] sm:$0xff]  ;;  %v7845_v49 = vld [vmem:[%s17825_s6 + $0x1778] sm:$0xff] }
 0xad4   :  { %v6823_v14 = vmax.f32 %v10370_v4, 0.0  ;;  %v10236_v35 = vpack.c.bf16 %v7828_v20, %v7826_v31  ;;  %v7860_v16 = vld [vmem:[%s17825_s6 + $0x17f0] sm:$0xff]  ;;  %v8818_v17 = vld [vmem:[%s17827_s8] sm:$0xff]  ;;  %v8821_v11 = vld [vmem:[%s17827_s8 + $0x18] sm:$0xff] }
 0xad5   :  { %10201 = vmatpush1.bf16.msra.mxu0 %v10200_v56  ;;  %v7059_v59 = vld [vmem:[#allocation4 + $0x170] sm:$0xff]  ;;  %v7833_v56 = vld [vmem:[%s17825_s6 + $0x1718] sm:$0xff]  ;;  %v10268_v50 = vpack.c.bf16 %v7860_v16, %v7858_v62  ;;  %v8822_v53 = vld [vmem:[%s17827_s8 + $0x20] sm:$0xff] }
 0xad6   :  { %6873 = vst.msk [vmem:[#allocation4 + $0x180] sm:$0xff] %vm6824_vm9, %v6823_v14  ;;  %10203 = vmatprep.subr.bf16.mxu0 %v10202_v10  ;;  %7060 = vst.msk [vmem:[#allocation5 + $0xb8] sm:$0xff] %vm6824_vm9, %v7059_v59  ;;  %v10238_v10 = vpack.c.bf16 %v7833_v56, %v7831_v45  ;;  %v10240_v14 = vpack.c.bf16 %v7832_v27, %v7830_v38  ;;  %v7834_v59 = vld [vmem:[%s17825_s6 + $0x1720] sm:$0xff]  ;;  %v8824_v31 = vld [vmem:[%s17827_s8 + $0x30] sm:$0xff] }
 0xad7   :  { %v8825_v20 = vld [vmem:[%s17827_s8 + $0x38] sm:$0xff]  ;;  %v8828_v27 = vld [vmem:[%s17827_s8 + $0x50] sm:$0xff]  ;;  %v9032_v16 = vld [vmem:[%s17829_s9] ss:$0 sm:$0xff] }
 0xad8   :  { %v10296_v56 = vpack.c.bf16 %v8825_v20, %v8824_v31 }
 0xad9   :  { %10205 = vmatpush1.bf16.msra.mxu0 %v10204_v34  ;;  %v7061_v12 = vld [vmem:[#allocation4 + $0x178] sm:$0xff]  ;;  %v10242_v34 = vpack.c.bf16 %v7837_v37, %v7835_v28 }
 0xada   :  { %7063 = vrot.lane.b32.xlu1 %v7061_v12, %s10749_s22  ;;  %10207 = vmatprep.subr.bf16.mxu0 %v10206_v57  ;;  %v7836_v57 = vld [vmem:[%s17825_s6 + $0x1730] sm:$0xff]  ;;  %v7838_v12 = vld [vmem:[%s17825_s6 + $0x1740] sm:$0xff]  ;;  %v8829_v28 = vld [vmem:[%s17827_s8 + $0x58] sm:$0xff] }
 0xadb   :  { %v10244_v42 = vpack.c.bf16 %v7836_v57, %v7834_v59  ;;  %v8831_v59 = vld [vmem:[%s17827_s8 + $0x68] sm:$0xff] }
 0xadc   :  { %8668 = vmatmul.mubr.f32.vlgmr.msra.gmra.mrb[0].mxu0 %v7089_v26 }
 0xadd   :  { %v7067_v18 = vld [vmem:[#allocation4 + $0x180] sm:$0xff]  ;;  %10209 = vmatpush1.bf16.msra.mxu0 %v10208_v43  ;;  %v7840_v43 = vld [vmem:[%s17825_s6 + $0x1750] sm:$0xff] }
 0xade   :  { %7068 = vst.msk [vmem:[#allocation5 + $0xc0] sm:$0xff] %vm6824_vm9, %v7067_v18  ;;  %10211 = vmatprep.subr.bf16.mxu0 %v10210_v9  ;;  %v7843_v9 = vld [vmem:[%s17825_s6 + $0x1768] sm:$0xff]  ;;  %v10248_v47 = vpack.c.bf16 %v7840_v43, %v7838_v12  ;;  %v10308_v12 = vpack.c.bf16 %v8833_v23, %v8832_v40  ;;  %v8834_v43 = vld [vmem:[%s17827_s8 + $0x80] sm:$0xff] }
 0xadf   :  { %v10250_v26 = vpack.c.bf16 %v7845_v49, %v7843_v9  ;;  %v7847_v18 = vld [vmem:[%s17825_s6 + $0x1788] sm:$0xff] }
 0xae0   :  { %v8835_v9 = vld [vmem:[%s17827_s8 + $0x88] sm:$0xff] }
 0xae1   :  { %10213 = vmatpush1.bf16.msra.mxu0 %v10212_v41  ;;  %v7849_v41 = vld [vmem:[%s17825_s6 + $0x1798] sm:$0xff]  ;;  %v10311_v49 = vpack.c.bf16 %v8835_v9, %v8834_v43 }
 0xae2   :  { %10215 = vmatprep.subr.bf16.mxu0 %v10214_v46  ;;  %v10252_v46 = vpack.c.bf16 %v7844_v0, %v7842_v3  ;;  %v10254_v36 = vpack.c.bf16 %v7849_v41, %v7847_v18  ;;  %v8838_v0 = vld [vmem:[%s17827_s8 + $0xa0] sm:$0xff]  ;;  %v8839_v18 = vld [vmem:[%s17827_s8 + $0xa8] sm:$0xff] }
 0xae3   :  { %v10317_v41 = vpack.c.bf16 %v8839_v18, %v8838_v0 }
 0xae5   :  { %v7093_v52 = vld [vmem:[#allocation5 + $0xc0] sm:$0xff]  ;;  %10217 = vmatpush1.bf16.msra.mxu0 %v10216_v44  ;;  %v7853_v44 = vld [vmem:[%s17825_s6 + $0x17b8] sm:$0xff] }
 0xae6   :  { %9031 = vmatmul.mubr.msk.f32.vlgmr.msra.gmra.mrb[198].mxu1 %vm6824_vm9, %v7093_v52  ;;  %10219 = vmatprep.subr.bf16.mxu0 %v10218_v21  ;;  %v10256_v21 = vpack.c.bf16 %v7848_v63, %v7846_v29  ;;  %v10258_v25 = vpack.c.bf16 %v7853_v44, %v7851_v8  ;;  %v7857_v52 = vld [vmem:[%s17825_s6 + $0x17d8] sm:$0xff]  ;;  %v8842_v63 = vld [vmem:[%s17827_s8 + $0xc0] sm:$0xff] }
 0xae9   :  { %10221 = vmatpush1.bf16.msra.mxu0 %v10220_v2  ;;  %v10260_v2 = vpack.c.bf16 %v7852_v30, %v7850_v22  ;;  %v7878_v22 = vld [vmem:[%s17828_s7] sm:$0x3] }
 0xaea   :  { %10223 = vmatprep.subr.bf16.mxu0 %v10222_v19  ;;  %v10262_v19 = vpack.c.bf16 %v7857_v52, %v7855_v61 }
 0xaed   :  { %10225 = vmatpush1.bf16.msra.mxu0 %v10224_v6  ;;  %v10264_v6 = vpack.c.bf16 %v7856_v58, %v7854_v15 }
 0xaee   :  { %10227 = vmatprep.subr.bf16.mxu0 %v10226_v48  ;;  %v10266_v48 = vpack.c.bf16 %v7861_v33, %v7859_v1 }
 0xaf1   :  { %10229 = vmatpush1.bf16.msra.mxu0 %v10228_v13  ;;  %v8819_v13 = vld [vmem:[%s17827_s8 + $0x8] sm:$0xff] }
 0xaf2   :  { %10231 = vmatprep.subr.bf16.mxu0 %v10230_v51  ;;  %v8820_v51 = vld [vmem:[%s17827_s8 + $0x10] sm:$0xff]  ;;  %v10287_v32 = vpack.c.bf16 %v8819_v13, %v8818_v17 }
 0xaf3   :  { %v17620_v60 = vpop.f32.mrb[196].mxu1  ;;  %v10290_v7 = vpack.c.bf16 %v8821_v11, %v8820_v51 }
 0xaf4   :  { %v17628_v4 = vpop.f32.mrb[197].mxu1  ;;  %10288 = vmatpush1.bf16.msra.mxu1 %v10287_v32 }
 0xaf5   :  { %10233 = vmatpush1.bf16.msra.mxu0 %v10232_v55  ;;  %10289 = vmatprep.subr.bf16.mxu1 %v18083_v5  ;;  %v8823_v55 = vld [vmem:[%s17827_s8 + $0x28] sm:$0xff] }
 0xaf6   :  { %10235 = vmatprep.subr.bf16.mxu0 %v10234_v24  ;;  %v10293_v24 = vpack.c.bf16 %v8823_v55, %v8822_v53 }
 0xaf8   :  { %10291 = vmatpush1.bf16.msra.mxu1 %v10290_v7 }
 0xaf9   :  { %10237 = vmatpush1.bf16.msra.mxu0 %v10236_v35  ;;  %10292 = vmatprep.subr.bf16.mxu1 %v18083_v5  ;;  %v8826_v35 = vld [vmem:[%s17827_s8 + $0x40] sm:$0xff] }
 0xafa   :  { %10239 = vmatprep.subr.bf16.mxu0 %v10238_v10  ;;  %v8827_v10 = vld [vmem:[%s17827_s8 + $0x48] sm:$0xff] }
 0xafb   :  { %v10299_v38 = vpack.c.bf16 %v8827_v10, %v8826_v35 }
 0xafc   :  { %10294 = vmatpush1.bf16.msra.mxu1 %v10293_v24 }
 0xafd   :  { %10241 = vmatpush1.bf16.msra.mxu0 %v10240_v14  ;;  %10295 = vmatprep.subr.bf16.mxu1 %v18083_v5  ;;  %v10302_v14 = vpack.c.bf16 %v8829_v28, %v8828_v27 }
 0xafe   :  { %10243 = vmatprep.subr.bf16.mxu0 %v10242_v34  ;;  %v8830_v34 = vld [vmem:[%s17827_s8 + $0x60] sm:$0xff] }
 0xaff   :  { %v10305_v57 = vpack.c.bf16 %v8831_v59, %v8830_v34 }
 0xb00   :  { %10297 = vmatpush1.bf16.msra.mxu1 %v10296_v56 }
 0xb01   :  { %10245 = vmatpush1.bf16.msra.mxu0 %v10244_v42  ;;  %10298 = vmatprep.subr.bf16.mxu1 %v18083_v5 }
 0xb02   :  { %10247 = vmatprep.subr.bf16.mxu0 %v10246_v39 }
 0xb04   :  { %10300 = vmatpush1.bf16.msra.mxu1 %v10299_v38 }
 0xb05   :  { %10249 = vmatpush1.bf16.msra.mxu0 %v10248_v47  ;;  %10301 = vmatprep.subr.bf16.mxu1 %v18083_v5  ;;  %v8836_v47 = vld [vmem:[%s17827_s8 + $0x90] sm:$0xff] }
 0xb06   :  { %10251 = vmatprep.subr.bf16.mxu0 %v10250_v26  ;;  %v8837_v26 = vld [vmem:[%s17827_s8 + $0x98] sm:$0xff] }
 0xb07   :  { %v10314_v3 = vpack.c.bf16 %v8837_v26, %v8836_v47 }
 0xb08   :  { %10303 = vmatpush1.bf16.msra.mxu1 %v10302_v14 }
 0xb09   :  { %10253 = vmatpush1.bf16.msra.mxu0 %v10252_v46  ;;  %10304 = vmatprep.subr.bf16.mxu1 %v18083_v5  ;;  %v8840_v46 = vld [vmem:[%s17827_s8 + $0xb0] sm:$0xff] }
 0xb0a   :  { %10255 = vmatprep.subr.bf16.mxu0 %v10254_v36  ;;  %v8841_v36 = vld [vmem:[%s17827_s8 + $0xb8] sm:$0xff] }
 0xb0b   :  { %v10320_v29 = vpack.c.bf16 %v8841_v36, %v8840_v46 }
 0xb0c   :  { %10306 = vmatpush1.bf16.msra.mxu1 %v10305_v57 }
 0xb0d   :  { %10257 = vmatpush1.bf16.msra.mxu0 %v10256_v21  ;;  %10307 = vmatprep.subr.bf16.mxu1 %v18083_v5 }
 0xb0e   :  { %10259 = vmatprep.subr.bf16.mxu0 %v10258_v25 }
 0xb10   :  { %10309 = vmatpush1.bf16.msra.mxu1 %v10308_v12 }
 0xb11   :  { %10261 = vmatpush1.bf16.msra.mxu0 %v10260_v2  ;;  %10310 = vmatprep.subr.bf16.mxu1 %v18083_v5 }
 0xb12   :  { %10263 = vmatprep.subr.bf16.mxu0 %v10262_v19 }
 0xb14   :  { %10312 = vmatpush1.bf16.msra.mxu1 %v10311_v49 }
 0xb15   :  { %10265 = vmatpush1.bf16.msra.mxu0 %v10264_v6  ;;  %10313 = vmatprep.subr.bf16.mxu1 %v18083_v5 }
 0xb16   :  { %10267 = vmatprep.subr.bf16.mxu0 %v10266_v48 }
 0xb18   :  { %10315 = vmatpush1.bf16.msra.mxu1 %v10314_v3 }
 0xb19   :  { %10269 = vmatpush1.bf16.msra.mxu0 %v10268_v50  ;;  %10316 = vmatprep.subr.bf16.mxu1 %v18083_v5 }
 0xb1c   :  { %10318 = vmatpush1.bf16.msra.mxu1 %v10317_v41 }
 0xb1d   :  { %10319 = vmatprep.subr.bf16.mxu1 %v18083_v5  ;;  %v7880_v5 = vlaneseq }
 0xb1f   :  { %v7881_v21 = vshrl.u32 %v7880_v5, 7 }
 0xb20   :  { %10321 = vmatpush1.bf16.msra.mxu1 %v10320_v29 }
 0xb21   :  { %8902 = vmatprep.subr.mxu1 %v18082_v54  ;;  %v7882_v25 = vsub.s32 0, %v7881_v21  ;;  %v7886_v30 = vsub.s32 1, %v7881_v21 }
 0xb23   :  { %v7883_v61 = vrot.slane %v7878_v22, %v7882_v25  ;;  %v7887_v52 = vrot.slane %v7878_v22, %v7886_v30 }
 0xb24   :  { %8903 = vmatpush1.msra.mxu1 %v8842_v63 }
 0xb25   :  { %v7960_v2 = vadd.f32 %v17620_v60, %v7883_v61  ;;  %v7962_v54 = vadd.f32 %v17628_v4, %v7887_v52 }
 0xb44   :  { %v7056_v45 = vpop.permute.xlu0 %7055 }
 0xb45   :  { %7058 = vst.msk [vmem:[#allocation5 + $0xb0] sm:$0xff] %vm6881_vm10, %v7056_v45 }
 0xb4c   :  { %v7064_v37 = vpop.permute.xlu1 %7063  ;;  %v7091_v39 = vld [vmem:[#allocation5 + $0xb0] sm:$0xff] }
 0xb4d   :  { %7066 = vst.msk [vmem:[#allocation5 + $0xb8] sm:$0xff] %vm6881_vm10, %v7064_v37 }
 0xb54   :  { %v7092_v42 = vld [vmem:[#allocation5 + $0xb8] sm:$0xff] }
 0xb55   :  { %8738 = vmatprep.mubr.f32.mxu0 %v7092_v42 }
 0xb56   :  { %8739 = vmatmul.mubr.f32.vlgmr.msra.gmra.mrb[0].mxu0 %v7091_v39 }
 0xbb9   :  { %v8811_v8 = vpop.f32.mrb[198].mxu1 }
 0xbba   :  { %v8813_v44 = vpop.f32.mrb[199].mxu1 }
 0xc29   :  { %v8740_v19 = vpop.f32.mrb[0].mxu0 }
 0xc2a   :  { %v10372_v15 = vadd.f32 %v8740_v19, %v7960_v2  ;;  %v8742_v58 = vpop.f32.mrb[1].mxu0 }
 0xc2b   :  { %v10375_v1 = vadd.f32 %v8742_v58, %v7962_v54 }
 0xc2c   :  { %v10373_v33 = vadd.f32 %v10372_v15, %v8811_v8 }
 0xc2d   :  { %v10376_v6 = vadd.f32 %v10375_v1, %v8813_v44 }
 0xc2e   :  { %v8816_v62 = vmax.f32 %v10373_v33, 0.0 }
 0xc2f   :  { %v8817_v48 = vmax.f32 %v10376_v6, 0.0 }
 0xc31   :  { %9033 = vmatprep.mubr.msk.f32.mxu1 %vm8850_vm11, %v8817_v48 }
 0xc32   :  { %8919 = vmatmul.mubr.f32.vlgmr.msra.gmra.mrb[200].mxu1 %v8816_v62 }
 0xd05   :  { %v8920_v50 = vpop.f32.mrb[200].mxu1 }
 0xd06   :  { %v8921_v60 = vadd.f32 %v9032_v16, %v8920_v50  ;;  %v8922_v17 = vpop.f32.mrb[201].mxu1 }
 0xd08   :  { %8925 = vst.msk [vmem:[%s17830_s10] sm:$0xff] %vm8924_vm12, %v8921_v60 }

</bundles_post_ra>
